<compile_context>
chip_gen: v7x
topology: tpu7x:2x2x1
jax: 0.10.0
libtpu: 0.0.40
codegen_flags: <defaults>
</compile_context>

<pallas_src>
import functools

import jax
import jax.numpy as jnp
import numpy as np
from jax import lax
from jax.experimental import pallas as pl
from jax.experimental.pallas import tpu as pltpu

EPS = 1e-5  # nn.GroupNorm default eps
DILATIONS = (1, 2, 4)


def _round_up(n, m):
    return ((n + m - 1) // m) * m


def _pick_bt(B, C, T_pad, itemsize=4):
    # samples per grid step: target ~1 MiB of activation input per block, but keep
    # >= 2 grid steps so the parallel grid axis can shard across 2 TCs (v7x).
    budget = 1 << 20
    cap = max(1, budget // (C * T_pad * itemsize))
    cap = min(cap, max(1, B // 2))
    cap = min(cap, B)
    for bt in range(cap, 0, -1):
        if B % bt == 0:
            return bt
    return 1


# --------------------------------- the kernel --------------------------------

def wavenet_kernel(C, F, K, dils, T_valid, T_pad, bt, boffs, precision,
                   x_ref, w_small_ref, w_conv_ref, w_kr_ref, b_ref, out_ref):
    rF = _round_up(F, 8)
    rC = _round_up(C, 8)
    o_stem, o_st, o_kr, o_out2, o_out3 = boffs
    inv_nC = 1.0 / float(C * T_valid)
    inv_nF = 1.0 / float(F * T_valid)
    max_shift = (K - 1) * max(dils)
    has_pad = T_valid < T_pad

    # hoisted (1, bt*T_pad) helper rows (lane-dense, built once per grid step)
    t_seg = lax.broadcasted_iota(jnp.int32, (1, T_pad), 1)
    t_in_seg = t_seg if bt == 1 else jnp.concatenate([t_seg] * bt, axis=1)
    valid = (t_in_seg < T_valid).astype(jnp.float32) if has_pad else None

    def mm(w, v):
        return jnp.dot(w, v, precision=precision,
                       preferred_element_type=jnp.float32)

    def gn(x, inv_n):
        # GroupNorm(1, ch): per-sample stats over (channels, valid time).
        # Inputs have zero pad lanes by construction, so plain segment sums are exact.
        stats = []
        for j in range(bt):
            seg = x if bt == 1 else x[:, j * T_pad:(j + 1) * T_pad]
            s1 = jnp.sum(seg)
            s2 = jnp.sum(seg * seg)
            m = s1 * inv_n
            r = lax.rsqrt(jnp.maximum(s2 * inv_n - m * m, 0.0) + EPS)
            stats.append((m, r))
        if bt == 1:
            m, r = stats[0]
            rr = r if valid is None else r * valid
            return (x - m) * rr
        mean_row = jnp.concatenate(
            [jnp.broadcast_to(m, (1, T_pad)) for m, _ in stats], axis=1)
        rstd_row = jnp.concatenate(
            [jnp.broadcast_to(r, (1, T_pad)) for _, r in stats], axis=1)
        if valid is not None:
            # fold the valid mask into rstd -> normalized outputs have zero pad lanes
            rstd_row = rstd_row * valid
        return (x - mean_row) * rstd_row

    def shifted(xb, s):
        # y[:, t] = xb[:, t - s] within each sample segment, 0 for t < s (causal pad).
        if s == 0:
            return xb
        if s >= T_pad:
            return jnp.zeros_like(xb)
        rolled = pltpu.roll(xb, shift=s, axis=1)
        if s > T_pad - T_valid:
            # wrapped-in lanes could carry real data from the previous segment -> mask
            return jnp.where(t_in_seg >= s, rolled, 0.0)
        return rolled  # wrapped-in lanes come from zeroed pad lanes -> already causal zeros

    x = x_ref[...]                                                   # (C, L) f32, zero pad
    # stem: GroupNorm folded into 1x1 conv (C -> F)
    h = mm(w_small_ref[0:F, :], gn(x, inv_nC)) + b_ref[o_stem:o_stem + F, :]

    skip = None
    for j, d in enumerate(dils):
        # shared stats for the sigmoid/tanh GroupNorms (same input); gammas folded into
        # the fused conv weights, betas baked into the per-lane bias slab.
        hn = gn(h, inv_nF)
        stack = jnp.concatenate(
            [shifted(hn, (K - 1 - k) * d) for k in range(K)], axis=0)  # (K*F, L)
        st = mm(w_conv_ref[j], stack) + b_ref[o_st[j]:o_st[j] + 2 * F, :]  # (2F, L)
        gated = jax.nn.sigmoid(st[0:F]) * jnp.tanh(st[F:2 * F])           # (F, L)
        if valid is not None and max_shift > 0:
            gated = gated * valid        # clear roll leakage into pad lanes (stats safety)

        # shared stats for the skip/residual GroupNorms; kconv+rconv fused matmul
        kr = mm(w_kr_ref[j], gn(gated, inv_nF)) + b_ref[o_kr[j]:o_kr[j] + F + C, :]
        h = kr[0:F]                                              # residual -> next block
        skip = kr[F:F + C] if skip is None else skip + kr[F:F + C]

    y = jnp.maximum(skip, 0.0)
    y = mm(w_small_ref[rF:rF + C, :], gn(y, inv_nC)) + b_ref[o_out2:o_out2 + C, :]
    y = jnp.maximum(y, 0.0)
    y = mm(w_small_ref[rF + rC:rF + rC + C, :], gn(y, inv_nC)) + b_ref[o_out3:o_out3 + C, :]
    out_ref[...] = y


# --------------------------- host-side param folding / packing ----------------

def pack_params(p, C, F, K, dils, T, T_pad, bt):
    """Fold GroupNorm affines into the following convs, bake causal-boundary + pad-zero
    bias patterns into per-lane slabs, and pack everything into 4 arrays."""
    rF, rC = _round_up(F, 8), _round_up(C, 8)

    def fold(w, bconv, g, beta):        # 1x1 conv after GroupNorm (exact)
        return w * g[None, :], w @ beta + bconv

    w1, b1 = fold(p["conv1_w"], p["conv1_b"], p["gn1_g"], p["gn1_b"])
    w2, b2 = fold(p["conv2_w"], p["conv2_b"], p["gn2_g"], p["gn2_b"])
    w3, b3 = fold(p["conv3_w"], p["conv3_b"], p["gn3_g"], p["gn3_b"])

    w_small = jnp.zeros((rF + 2 * rC, C), jnp.float32)
    w_small = (w_small.at[0:F].set(w1)
               .at[rF:rF + C].set(w2)
               .at[rF + rC:rF + rC + C].set(w3))

    t = jnp.arange(T_pad)[None, :]
    in_valid = t < T

    def slab(base, taps=()):
        # (rows, T_pad): bias per lane, causal-boundary aware, zero on pad lanes
        col = jnp.where(in_valid, base[:, None], 0.0)
        for tap, s in taps:
            col = col + jnp.where(in_valid & (t >= s), tap[:, None], 0.0)
        return col.astype(jnp.float32)

    slabs = [("stem", slab(b1))]
    w_conv_blocks, w_kr_blocks = [], []
    for bi, d in zip((1, 2, 3), dils):
        pre = f"b{bi}_"
        gs, bs = p[pre + "sgn_g"], p[pre + "sgn_b"]
        gt, btt = p[pre + "tgn_g"], p[pre + "tgn_b"]
        ws, wt = p[pre + "sconv_w"], p[pre + "tconv_w"]          # (K, F, F)
        cols, taps = [], []
        for k in range(K):
            cols.append(jnp.concatenate([ws[k] * gs[None, :], wt[k] * gt[None, :]], 0))
            taps.append((jnp.concatenate([ws[k] @ bs, wt[k] @ btt], 0), (K - 1 - k) * d))
        w_conv_blocks.append(jnp.concatenate(cols, axis=1))       # (2F, K*F)
        base_st = jnp.concatenate([p[pre + "sconv_b"], p[pre + "tconv_b"]], 0)
        slabs.append((f"st{bi}", slab(base_st, taps)))

        wr, br = fold(p[pre + "rconv_w"], p[pre + "rconv_b"], p[pre + "rgn_g"], p[pre + "rgn_b"])
        wk, bk = fold(p[pre + "kconv_w"], p[pre + "kconv_b"], p[pre + "kgn_g"], p[pre + "kgn_b"])
        w_kr_blocks.append(jnp.concatenate([wr, wk], axis=0))     # (F+C, F): residual, skip
        slabs.append((f"kr{bi}", slab(jnp.concatenate([br, bk], 0))))

    slabs.append(("out2", slab(b2)))
    slabs.append(("out3", slab(b3)))

    # pack bias slabs into one (R_total, bt*T_pad) array at 8-aligned row offsets
    offsets, pieces, off = {}, [], 0
    for name, s in slabs:
        r = s.shape[0]
        rpad = _round_up(r, 8)
        offsets[name] = off
        pieces.append(jnp.pad(s, ((0, rpad - r), (0, 0))))
        off += rpad
    b_slab = jnp.tile(jnp.concatenate(pieces, axis=0), (1, bt))

    w_conv = jnp.stack(w_conv_blocks).astype(jnp.float32)         # (3, 2F, K*F)
    w_kr = jnp.stack(w_kr_blocks).astype(jnp.float32)             # (3, F+C, F)
    boffs = (offsets["stem"],
             tuple(offsets[f"st{bi}"] for bi in (1, 2, 3)),
             tuple(offsets[f"kr{bi}"] for bi in (1, 2, 3)),
             offsets["out2"], offsets["out3"])
    return w_small, w_conv, w_kr, b_slab, boffs


# --------------------------------- wrapper ------------------------------------

def wavenet_forward(x, params, kernel_size, dilations=DILATIONS,
                    matmul_precision=jax.lax.Precision.HIGHEST):
    # x: (B, 1, C, T) like the PyTorch module. Returns (B, 1, C, T).
    B, _, C, T = x.shape
    F = params["conv1_w"].shape[0]
    K = kernel_size
    T_pad = max(128, _round_up(T, 128))      # lane-dense per-sample time segment
    bt = _pick_bt(B, C, T_pad)
    L = bt * T_pad                           # lanes per block (multiple of 256 when bt even)

    w_small, w_conv, w_kr, b_slab, boffs = pack_params(
        params, C, F, K, tuple(dilations), T, T_pad, bt)

    # lay samples out along the lane axis: (C, B*T_pad), zero pad lanes
    xt = jnp.transpose(x[:, 0].astype(jnp.float32), (1, 0, 2))        # (C, B, T)
    xt = jnp.pad(xt, ((0, 0), (0, 0), (0, T_pad - T)))                 # (C, B, T_pad)
    x_lanes = xt.reshape(C, B * T_pad)

    kern = functools.partial(wavenet_kernel, C, F, K, tuple(dilations), T, T_pad, bt,
                             boffs, matmul_precision)

    y = pl.pallas_call(
        kern,
        out_shape=jax.ShapeDtypeStruct((C, B * T_pad), jnp.float32),
        grid=(B // bt,),
        in_specs=[
            pl.BlockSpec((C, L), lambda i: (0, i)),
            pl.BlockSpec(w_small.shape, lambda i: (0, 0)),
            pl.BlockSpec(w_conv.shape, lambda i: (0, 0, 0)),
            pl.BlockSpec(w_kr.shape, lambda i: (0, 0, 0)),
            pl.BlockSpec(b_slab.shape, lambda i: (0, 0)),
        ],
        out_specs=pl.BlockSpec((C, L), lambda i: (0, i)),
        compiler_params=pltpu.CompilerParams(dimension_semantics=("parallel",)),
    )(x_lanes, w_small, w_conv, w_kr, b_slab)

    y = y.reshape(C, B, T_pad).transpose(1, 0, 2)[:, :, :T]
    return y[:, None]


# ------------------------- deterministic parameter init -----------------------

def init_params(key, n_channel, n_mul, kernel_size):
    C, K = n_channel, kernel_size
    F = C * n_mul
    keys = iter(jax.random.split(key, 64))

    def w(shape, fan_in):
        return jax.random.normal(next(keys), shape, jnp.float32) / np.sqrt(float(fan_in))

    def b(ch):
        return 0.01 * jax.random.normal(next(keys), (ch,), jnp.float32)

    p = {}

    def gn(name, ch):
        # non-trivial affine so the host-side GN folding is actually exercised
        p[name + "_g"] = 1.0 + 0.1 * jax.random.normal(next(keys), (ch,), jnp.float32)
        p[name + "_b"] = 0.1 * jax.random.normal(next(keys), (ch,), jnp.float32)

    gn("gn1", C)
    p["conv1_w"] = w((F, C), C); p["conv1_b"] = b(F)
    for bi in (1, 2, 3):
        pre = f"b{bi}_"
        gn(pre + "sgn", F)
        p[pre + "sconv_w"] = w((K, F, F), F * K); p[pre + "sconv_b"] = b(F)
        gn(pre + "tgn", F)
        p[pre + "tconv_w"] = w((K, F, F), F * K); p[pre + "tconv_b"] = b(F)
        gn(pre + "kgn", F)
        p[pre + "kconv_w"] = w((C, F), F); p[pre + "kconv_b"] = b(C)
        gn(pre + "rgn", F)
        p[pre + "rconv_w"] = w((F, F), F); p[pre + "rconv_b"] = b(F)
    gn("gn2", C)
    p["conv2_w"] = w((C, C), C); p["conv2_b"] = b(C)
    gn("gn3", C)
    p["conv3_w"] = w((C, C), C); p["conv3_b"] = b(C)
    return p


# ------------------------------ pure-JAX reference ----------------------------

def ref_forward(x, p, K):
    HI = jax.lax.Precision.HIGHEST
    v = x[:, 0].astype(jnp.float32)  # (B, C, T)

    def gn(a, g, b):
        m = jnp.mean(a, axis=(1, 2), keepdims=True)
        var = jnp.mean((a - m) ** 2, axis=(1, 2), keepdims=True)
        return (a - m) / jnp.sqrt(var + EPS) * g[None, :, None] + b[None, :, None]

    def pw(a, w, b):
        return jnp.einsum("oc,bct->bot", w, a, precision=HI) + b[None, :, None]

    def cconv(a, w, b, d):
        T = a.shape[2]
        acc = jnp.zeros((a.shape[0], w.shape[1], T), jnp.float32)
        for k in range(K):
            s = (K - 1 - k) * d
            if s == 0:
                vs = a
            elif s >= T:
                vs = jnp.zeros_like(a)
            else:
                vs = jnp.pad(a, ((0, 0), (0, 0), (s, 0)))[:, :, :T]
            acc = acc + jnp.einsum("oc,bct->bot", w[k], vs, precision=HI)
        return acc + b[None, :, None]

    v = pw(gn(v, p["gn1_g"], p["gn1_b"]), p["conv1_w"], p["conv1_b"])
    skip = 0.0
    for bi, d in zip((1, 2, 3), DILATIONS):
        pre = f"b{bi}_"
        f_ = cconv(gn(v, p[pre + "sgn_g"], p[pre + "sgn_b"]), p[pre + "sconv_w"], p[pre + "sconv_b"], d)
        g_ = cconv(gn(v, p[pre + "tgn_g"], p[pre + "tgn_b"]), p[pre + "tconv_w"], p[pre + "tconv_b"], d)
        gate = jax.nn.sigmoid(f_) * jnp.tanh(g_)
        skip = skip + pw(gn(gate, p[pre + "kgn_g"], p[pre + "kgn_b"]), p[pre + "kconv_w"], p[pre + "kconv_b"])
        v = pw(gn(gate, p[pre + "rgn_g"], p[pre + "rgn_b"]), p[pre + "rconv_w"], p[pre + "rconv_b"])
    y = jnp.maximum(skip, 0.0)
    y = pw(gn(y, p["gn2_g"], p["gn2_b"]), p["conv2_w"], p["conv2_b"])
    y = jnp.maximum(y, 0.0)
    y = pw(gn(y, p["gn3_g"], p["gn3_b"]), p["conv3_w"], p["conv3_b"])
    return y[:, None]


# ----------------------------------- main -------------------------------------

if __name__ == "__main__":
    B, n_channel, n_mul, kernel_size, T = 4, 4, 4, 3, 16

    key = jax.random.PRNGKey(0)
    kx, kp = jax.random.split(key)
    x = jax.random.normal(kx, (B, 1, n_channel, T), jnp.float32)

    params = init_params(kp, n_channel, n_mul, kernel_size)

    try:
        out = jax.block_until_ready(wavenet_forward(x, params, kernel_size))
    except Exception:
        # some Mosaic versions only accept DEFAULT matmul precision inside kernels;
        # f32 operands keep full precision there anyway.
        out = jax.block_until_ready(
            wavenet_forward(x, params, kernel_size, matmul_precision=None))

    assert out.shape == (B, 1, n_channel, T)

    ref = ref_forward(x, params, kernel_size)
    np.testing.assert_allclose(np.asarray(out), np.asarray(ref), atol=5e-3, rtol=5e-3)

    print("KERNEL_OK")
</pallas_src>

<mosaic_0001>
module attributes {stable_mosaic.version = 11 : i64} {
  func.func @wavenet_kernel(%arg0: i32, %arg1: memref<4x256xf32, #tpu.memory_space<vmem>>, %arg2: memref<32x4xf32, #tpu.memory_space<vmem>>, %arg3: memref<3x32x48xf32, #tpu.memory_space<vmem>>, %arg4: memref<3x20x16xf32, #tpu.memory_space<vmem>>, %arg5: memref<200x256xf32, #tpu.memory_space<vmem>>, %arg6: memref<4x256xf32, #tpu.memory_space<vmem>>) attributes {dimension_semantics = [#tpu.dimension_semantics<parallel>], iteration_bounds = array<i64: 2>, scalar_prefetch = 0 : i64, scratch_operands = 0 : i64, tpu.core_type = #tpu.core_type<tc>, window_params = [{transform_indices = @transform_0, window_bounds = array<i64: 4, 256>}, {pipeline_mode = #tpu.pipeline_mode<synchronous>, transform_indices = @transform_1, window_bounds = array<i64: 32, 4>}, {pipeline_mode = #tpu.pipeline_mode<synchronous>, transform_indices = @transform_2, window_bounds = array<i64: 3, 32, 48>}, {pipeline_mode = #tpu.pipeline_mode<synchronous>, transform_indices = @transform_3, window_bounds = array<i64: 3, 20, 16>}, {pipeline_mode = #tpu.pipeline_mode<synchronous>, transform_indices = @transform_4, window_bounds = array<i64: 200, 256>}, {transform_indices = @transform_5, window_bounds = array<i64: 4, 256>}]} {
    %0 = tpu.iota {dimensions = array<i32: 1>} : vector<1x128xi32>
    %1 = tpu.concatenate %0, %0 in 1 : vector<1x128xi32>, vector<1x128xi32> -> vector<1x256xi32>
    %c16_i32 = arith.constant 16 : i32
    %2 = vector.broadcast %c16_i32 : i32 to vector<1x256xi32>
    %3 = arith.cmpi slt, %1, %2 : vector<1x256xi32>
    %4 = arith.extui %3 : vector<1x256xi1> to vector<1x256xi32>
    %5 = arith.sitofp %4 : vector<1x256xi32> to vector<1x256xf32>
    %c0 = arith.constant 0 : index
    %c0_0 = arith.constant 0 : index
    %6 = vector.load %arg1[%c0, %c0_0] : memref<4x256xf32, #tpu.memory_space<vmem>>, vector<4x256xf32>
    %c0_1 = arith.constant 0 : index
    %c0_2 = arith.constant 0 : index
    %7 = vector.load %arg2[%c0_1, %c0_2] : memref<32x4xf32, #tpu.memory_space<vmem>>, vector<16x4xf32>
    %8 = vector.extract_strided_slice %6 {offsets = [0, 0], sizes = [4, 128], strides = [1, 1]} : vector<4x256xf32> to vector<4x128xf32>
    %9 = vector.shape_cast %8 : vector<4x128xf32> to vector<1x4x128xf32>
    %cst = arith.constant dense<0.000000e+00> : vector<1xf32>
    %10 = vector.multi_reduction <add>, %9, %cst [1, 2] : vector<1x4x128xf32> to vector<1xf32>
    %11 = vector.shape_cast %10 : vector<1xf32> to vector<1x1x1xf32>
    %12 = vector.extract %11[0, 0, 0] : f32 from vector<1x1x1xf32>
    %13 = arith.mulf %8, %8 : vector<4x128xf32>
    %14 = vector.shape_cast %13 : vector<4x128xf32> to vector<1x4x128xf32>
    %cst_3 = arith.constant dense<0.000000e+00> : vector<1xf32>
    %15 = vector.multi_reduction <add>, %14, %cst_3 [1, 2] : vector<1x4x128xf32> to vector<1xf32>
    %16 = vector.shape_cast %15 : vector<1xf32> to vector<1x1x1xf32>
    %17 = vector.extract %16[0, 0, 0] : f32 from vector<1x1x1xf32>
    %cst_4 = arith.constant 1.562500e-02 : f32
    %18 = arith.mulf %12, %cst_4 : f32
    %cst_5 = arith.constant 1.562500e-02 : f32
    %19 = arith.mulf %17, %cst_5 : f32
    %20 = arith.mulf %18, %18 : f32
    %21 = arith.subf %19, %20 : f32
    %cst_6 = arith.constant 0.000000e+00 : f32
    %22 = arith.maximumf %21, %cst_6 : f32
    %cst_7 = arith.constant 9.99999974E-6 : f32
    %23 = arith.addf %22, %cst_7 : f32
    %24 = math.rsqrt %23 : f32
    %25 = vector.extract_strided_slice %6 {offsets = [0, 128], sizes = [4, 128], strides = [1, 1]} : vector<4x256xf32> to vector<4x128xf32>
    %26 = vector.shape_cast %25 : vector<4x128xf32> to vector<1x4x128xf32>
    %cst_8 = arith.constant dense<0.000000e+00> : vector<1xf32>
    %27 = vector.multi_reduction <add>, %26, %cst_8 [1, 2] : vector<1x4x128xf32> to vector<1xf32>
    %28 = vector.shape_cast %27 : vector<1xf32> to vector<1x1x1xf32>
    %29 = vector.extract %28[0, 0, 0] : f32 from vector<1x1x1xf32>
    %30 = arith.mulf %25, %25 : vector<4x128xf32>
    %31 = vector.shape_cast %30 : vector<4x128xf32> to vector<1x4x128xf32>
    %cst_9 = arith.constant dense<0.000000e+00> : vector<1xf32>
    %32 = vector.multi_reduction <add>, %31, %cst_9 [1, 2] : vector<1x4x128xf32> to vector<1xf32>
    %33 = vector.shape_cast %32 : vector<1xf32> to vector<1x1x1xf32>
    %34 = vector.extract %33[0, 0, 0] : f32 from vector<1x1x1xf32>
    %cst_10 = arith.constant 1.562500e-02 : f32
    %35 = arith.mulf %29, %cst_10 : f32
    %cst_11 = arith.constant 1.562500e-02 : f32
    %36 = arith.mulf %34, %cst_11 : f32
    %37 = arith.mulf %35, %35 : f32
    %38 = arith.subf %36, %37 : f32
    %cst_12 = arith.constant 0.000000e+00 : f32
    %39 = arith.maximumf %38, %cst_12 : f32
    %cst_13 = arith.constant 9.99999974E-6 : f32
    %40 = arith.addf %39, %cst_13 : f32
    %41 = math.rsqrt %40 : f32
    %42 = vector.broadcast %18 : f32 to vector<1x128xf32>
    %43 = vector.broadcast %35 : f32 to vector<1x128xf32>
    %44 = tpu.concatenate %42, %43 in 1 : vector<1x128xf32>, vector<1x128xf32> -> vector<1x256xf32>
    %45 = vector.broadcast %24 : f32 to vector<1x128xf32>
    %46 = vector.broadcast %41 : f32 to vector<1x128xf32>
    %47 = tpu.concatenate %45, %46 in 1 : vector<1x128xf32>, vector<1x128xf32> -> vector<1x256xf32>
    %48 = arith.mulf %47, %5 : vector<1x256xf32>
    %49 = vector.broadcast %44 : vector<1x256xf32> to vector<4x256xf32>
    %50 = arith.subf %6, %49 : vector<4x256xf32>
    %51 = vector.broadcast %48 : vector<1x256xf32> to vector<4x256xf32>
    %52 = arith.mulf %50, %51 : vector<4x256xf32>
    %cst_14 = arith.constant dense<0.000000e+00> : vector<16x256xf32>
    %53 = tpu.matmul %7, %52, %cst_14 {dimension_numbers = #tpu.dot_dimension_numbers<[1], [0], [0], [1], [0, 0, 1, 1], [], []>, precision = #tpu.contract_precision<fp32>} : vector<16x4xf32>, vector<4x256xf32>, vector<16x256xf32> -> vector<16x256xf32>
    %c0_15 = arith.constant 0 : index
    %c0_16 = arith.constant 0 : index
    %54 = vector.load %arg5[%c0_15, %c0_16] : memref<200x256xf32, #tpu.memory_space<vmem>>, vector<16x256xf32>
    %55 = arith.addf %53, %54 : vector<16x256xf32>
    %56 = vector.extract_strided_slice %55 {offsets = [0, 0], sizes = [16, 128], strides = [1, 1]} : vector<16x256xf32> to vector<16x128xf32>
    %57 = vector.shape_cast %56 : vector<16x128xf32> to vector<1x16x128xf32>
    %cst_17 = arith.constant dense<0.000000e+00> : vector<1xf32>
    %58 = vector.multi_reduction <add>, %57, %cst_17 [1, 2] : vector<1x16x128xf32> to vector<1xf32>
    %59 = vector.shape_cast %58 : vector<1xf32> to vector<1x1x1xf32>
    %60 = vector.extract %59[0, 0, 0] : f32 from vector<1x1x1xf32>
    %61 = arith.mulf %56, %56 : vector<16x128xf32>
    %62 = vector.shape_cast %61 : vector<16x128xf32> to vector<1x16x128xf32>
    %cst_18 = arith.constant dense<0.000000e+00> : vector<1xf32>
    %63 = vector.multi_reduction <add>, %62, %cst_18 [1, 2] : vector<1x16x128xf32> to vector<1xf32>
    %64 = vector.shape_cast %63 : vector<1xf32> to vector<1x1x1xf32>
    %65 = vector.extract %64[0, 0, 0] : f32 from vector<1x1x1xf32>
    %cst_19 = arith.constant 3.906250e-03 : f32
    %66 = arith.mulf %60, %cst_19 : f32
    %cst_20 = arith.constant 3.906250e-03 : f32
    %67 = arith.mulf %65, %cst_20 : f32
    %68 = arith.mulf %66, %66 : f32
    %69 = arith.subf %67, %68 : f32
    %cst_21 = arith.constant 0.000000e+00 : f32
    %70 = arith.maximumf %69, %cst_21 : f32
    %cst_22 = arith.constant 9.99999974E-6 : f32
    %71 = arith.addf %70, %cst_22 : f32
    %72 = math.rsqrt %71 : f32
    %73 = vector.extract_strided_slice %55 {offsets = [0, 128], sizes = [16, 128], strides = [1, 1]} : vector<16x256xf32> to vector<16x128xf32>
    %74 = vector.shape_cast %73 : vector<16x128xf32> to vector<1x16x128xf32>
    %cst_23 = arith.constant dense<0.000000e+00> : vector<1xf32>
    %75 = vector.multi_reduction <add>, %74, %cst_23 [1, 2] : vector<1x16x128xf32> to vector<1xf32>
    %76 = vector.shape_cast %75 : vector<1xf32> to vector<1x1x1xf32>
    %77 = vector.extract %76[0, 0, 0] : f32 from vector<1x1x1xf32>
    %78 = arith.mulf %73, %73 : vector<16x128xf32>
    %79 = vector.shape_cast %78 : vector<16x128xf32> to vector<1x16x128xf32>
    %cst_24 = arith.constant dense<0.000000e+00> : vector<1xf32>
    %80 = vector.multi_reduction <add>, %79, %cst_24 [1, 2] : vector<1x16x128xf32> to vector<1xf32>
    %81 = vector.shape_cast %80 : vector<1xf32> to vector<1x1x1xf32>
    %82 = vector.extract %81[0, 0, 0] : f32 from vector<1x1x1xf32>
    %cst_25 = arith.constant 3.906250e-03 : f32
    %83 = arith.mulf %77, %cst_25 : f32
    %cst_26 = arith.constant 3.906250e-03 : f32
    %84 = arith.mulf %82, %cst_26 : f32
    %85 = arith.mulf %83, %83 : f32
    %86 = arith.subf %84, %85 : f32
    %cst_27 = arith.constant 0.000000e+00 : f32
    %87 = arith.maximumf %86, %cst_27 : f32
    %cst_28 = arith.constant 9.99999974E-6 : f32
    %88 = arith.addf %87, %cst_28 : f32
    %89 = math.rsqrt %88 : f32
    %90 = vector.broadcast %66 : f32 to vector<1x128xf32>
    %91 = vector.broadcast %83 : f32 to vector<1x128xf32>
    %92 = tpu.concatenate %90, %91 in 1 : vector<1x128xf32>, vector<1x128xf32> -> vector<1x256xf32>
    %93 = vector.broadcast %72 : f32 to vector<1x128xf32>
    %94 = vector.broadcast %89 : f32 to vector<1x128xf32>
    %95 = tpu.concatenate %93, %94 in 1 : vector<1x128xf32>, vector<1x128xf32> -> vector<1x256xf32>
    %96 = arith.mulf %95, %5 : vector<1x256xf32>
    %97 = vector.broadcast %92 : vector<1x256xf32> to vector<16x256xf32>
    %98 = arith.subf %55, %97 : vector<16x256xf32>
    %99 = vector.broadcast %96 : vector<1x256xf32> to vector<16x256xf32>
    %100 = arith.mulf %98, %99 : vector<16x256xf32>
    %c2_i32 = arith.constant 2 : i32
    %101 = tpu.dynamic_rotate %100 by %c2_i32 dim 1 : vector<16x256xf32>, i32 -> vector<16x256xf32>
    %c1_i32 = arith.constant 1 : i32
    %102 = tpu.dynamic_rotate %100 by %c1_i32 dim 1 : vector<16x256xf32>, i32 -> vector<16x256xf32>
    %103 = tpu.concatenate %101, %102, %100 in 0 : vector<16x256xf32>, vector<16x256xf32>, vector<16x256xf32> -> vector<48x256xf32>
    %c0_29 = arith.constant 0 : index
    %c0_30 = arith.constant 0 : index
    %c0_31 = arith.constant 0 : index
    %104 = vector.load %arg3[%c0_29, %c0_30, %c0_31] : memref<3x32x48xf32, #tpu.memory_space<vmem>>, vector<1x32x48xf32>
    %105 = vector.shape_cast %104 : vector<1x32x48xf32> to vector<32x48xf32>
    %cst_32 = arith.constant dense<0.000000e+00> : vector<32x256xf32>
    %106 = tpu.matmul %105, %103, %cst_32 {dimension_numbers = #tpu.dot_dimension_numbers<[1], [0], [0], [1], [0, 0, 1, 1], [], []>, precision = #tpu.contract_precision<fp32>} : vector<32x48xf32>, vector<48x256xf32>, vector<32x256xf32> -> vector<32x256xf32>
    %c16 = arith.constant 16 : index
    %c0_33 = arith.constant 0 : index
    %107 = vector.load %arg5[%c16, %c0_33] : memref<200x256xf32, #tpu.memory_space<vmem>>, vector<32x256xf32>
    %108 = arith.addf %106, %107 : vector<32x256xf32>
    %109 = vector.extract_strided_slice %108 {offsets = [0, 0], sizes = [16, 256], strides = [1, 1]} : vector<32x256xf32> to vector<16x256xf32>
    %110 = arith.negf %109 : vector<16x256xf32>
    %111 = math.exp %110 : vector<16x256xf32>
    %cst_34 = arith.constant 1.000000e+00 : f32
    %112 = vector.broadcast %cst_34 : f32 to vector<16x256xf32>
    %113 = arith.addf %112, %111 : vector<16x256xf32>
    %114 = arith.divf %112, %113 : vector<16x256xf32>
    %115 = vector.extract_strided_slice %108 {offsets = [16, 0], sizes = [16, 256], strides = [1, 1]} : vector<32x256xf32> to vector<16x256xf32>
    %116 = math.tanh %115 : vector<16x256xf32>
    %117 = arith.mulf %114, %116 : vector<16x256xf32>
    %118 = vector.broadcast %5 : vector<1x256xf32> to vector<16x256xf32>
    %119 = arith.mulf %117, %118 : vector<16x256xf32>
    %c0_35 = arith.constant 0 : index
    %c0_36 = arith.constant 0 : index
    %c0_37 = arith.constant 0 : index
    %120 = vector.load %arg4[%c0_35, %c0_36, %c0_37] : memref<3x20x16xf32, #tpu.memory_space<vmem>>, vector<1x20x16xf32>
    %121 = vector.shape_cast %120 : vector<1x20x16xf32> to vector<20x16xf32>
    %122 = vector.extract_strided_slice %119 {offsets = [0, 0], sizes = [16, 128], strides = [1, 1]} : vector<16x256xf32> to vector<16x128xf32>
    %123 = vector.shape_cast %122 : vector<16x128xf32> to vector<1x16x128xf32>
    %cst_38 = arith.constant dense<0.000000e+00> : vector<1xf32>
    %124 = vector.multi_reduction <add>, %123, %cst_38 [1, 2] : vector<1x16x128xf32> to vector<1xf32>
    %125 = vector.shape_cast %124 : vector<1xf32> to vector<1x1x1xf32>
    %126 = vector.extract %125[0, 0, 0] : f32 from vector<1x1x1xf32>
    %127 = arith.mulf %122, %122 : vector<16x128xf32>
    %128 = vector.shape_cast %127 : vector<16x128xf32> to vector<1x16x128xf32>
    %cst_39 = arith.constant dense<0.000000e+00> : vector<1xf32>
    %129 = vector.multi_reduction <add>, %128, %cst_39 [1, 2] : vector<1x16x128xf32> to vector<1xf32>
    %130 = vector.shape_cast %129 : vector<1xf32> to vector<1x1x1xf32>
    %131 = vector.extract %130[0, 0, 0] : f32 from vector<1x1x1xf32>
    %cst_40 = arith.constant 3.906250e-03 : f32
    %132 = arith.mulf %126, %cst_40 : f32
    %cst_41 = arith.constant 3.906250e-03 : f32
    %133 = arith.mulf %131, %cst_41 : f32
    %134 = arith.mulf %132, %132 : f32
    %135 = arith.subf %133, %134 : f32
    %cst_42 = arith.constant 0.000000e+00 : f32
    %136 = arith.maximumf %135, %cst_42 : f32
    %cst_43 = arith.constant 9.99999974E-6 : f32
    %137 = arith.addf %136, %cst_43 : f32
    %138 = math.rsqrt %137 : f32
    %139 = vector.extract_strided_slice %119 {offsets = [0, 128], sizes = [16, 128], strides = [1, 1]} : vector<16x256xf32> to vector<16x128xf32>
    %140 = vector.shape_cast %139 : vector<16x128xf32> to vector<1x16x128xf32>
    %cst_44 = arith.constant dense<0.000000e+00> : vector<1xf32>
    %141 = vector.multi_reduction <add>, %140, %cst_44 [1, 2] : vector<1x16x128xf32> to vector<1xf32>
    %142 = vector.shape_cast %141 : vector<1xf32> to vector<1x1x1xf32>
    %143 = vector.extract %142[0, 0, 0] : f32 from vector<1x1x1xf32>
    %144 = arith.mulf %139, %139 : vector<16x128xf32>
    %145 = vector.shape_cast %144 : vector<16x128xf32> to vector<1x16x128xf32>
    %cst_45 = arith.constant dense<0.000000e+00> : vector<1xf32>
    %146 = vector.multi_reduction <add>, %145, %cst_45 [1, 2] : vector<1x16x128xf32> to vector<1xf32>
    %147 = vector.shape_cast %146 : vector<1xf32> to vector<1x1x1xf32>
    %148 = vector.extract %147[0, 0, 0] : f32 from vector<1x1x1xf32>
    %cst_46 = arith.constant 3.906250e-03 : f32
    %149 = arith.mulf %143, %cst_46 : f32
    %cst_47 = arith.constant 3.906250e-03 : f32
    %150 = arith.mulf %148, %cst_47 : f32
    %151 = arith.mulf %149, %149 : f32
    %152 = arith.subf %150, %151 : f32
    %cst_48 = arith.constant 0.000000e+00 : f32
    %153 = arith.maximumf %152, %cst_48 : f32
    %cst_49 = arith.constant 9.99999974E-6 : f32
    %154 = arith.addf %153, %cst_49 : f32
    %155 = math.rsqrt %154 : f32
    %156 = vector.broadcast %132 : f32 to vector<1x128xf32>
    %157 = vector.broadcast %149 : f32 to vector<1x128xf32>
    %158 = tpu.concatenate %156, %157 in 1 : vector<1x128xf32>, vector<1x128xf32> -> vector<1x256xf32>
    %159 = vector.broadcast %138 : f32 to vector<1x128xf32>
    %160 = vector.broadcast %155 : f32 to vector<1x128xf32>
    %161 = tpu.concatenate %159, %160 in 1 : vector<1x128xf32>, vector<1x128xf32> -> vector<1x256xf32>
    %162 = arith.mulf %161, %5 : vector<1x256xf32>
    %163 = vector.broadcast %158 : vector<1x256xf32> to vector<16x256xf32>
    %164 = arith.subf %119, %163 : vector<16x256xf32>
    %165 = vector.broadcast %162 : vector<1x256xf32> to vector<16x256xf32>
    %166 = arith.mulf %164, %165 : vector<16x256xf32>
    %cst_50 = arith.constant dense<0.000000e+00> : vector<20x256xf32>
    %167 = tpu.matmul %121, %166, %cst_50 {dimension_numbers = #tpu.dot_dimension_numbers<[1], [0], [0], [1], [0, 0, 1, 1], [], []>, precision = #tpu.contract_precision<fp32>} : vector<20x16xf32>, vector<16x256xf32>, vector<20x256xf32> -> vector<20x256xf32>
    %c48 = arith.constant 48 : index
    %c0_51 = arith.constant 0 : index
    %168 = vector.load %arg5[%c48, %c0_51] : memref<200x256xf32, #tpu.memory_space<vmem>>, vector<20x256xf32>
    %169 = arith.addf %167, %168 : vector<20x256xf32>
    %170 = vector.extract_strided_slice %169 {offsets = [0, 0], sizes = [16, 256], strides = [1, 1]} : vector<20x256xf32> to vector<16x256xf32>
    %171 = vector.extract_strided_slice %169 {offsets = [16, 0], sizes = [4, 256], strides = [1, 1]} : vector<20x256xf32> to vector<4x256xf32>
    %172 = vector.extract_strided_slice %170 {offsets = [0, 0], sizes = [16, 128], strides = [1, 1]} : vector<16x256xf32> to vector<16x128xf32>
    %173 = vector.shape_cast %172 : vector<16x128xf32> to vector<1x16x128xf32>
    %cst_52 = arith.constant dense<0.000000e+00> : vector<1xf32>
    %174 = vector.multi_reduction <add>, %173, %cst_52 [1, 2] : vector<1x16x128xf32> to vector<1xf32>
    %175 = vector.shape_cast %174 : vector<1xf32> to vector<1x1x1xf32>
    %176 = vector.extract %175[0, 0, 0] : f32 from vector<1x1x1xf32>
    %177 = arith.mulf %172, %172 : vector<16x128xf32>
    %178 = vector.shape_cast %177 : vector<16x128xf32> to vector<1x16x128xf32>
    %cst_53 = arith.constant dense<0.000000e+00> : vector<1xf32>
    %179 = vector.multi_reduction <add>, %178, %cst_53 [1, 2] : vector<1x16x128xf32> to vector<1xf32>
    %180 = vector.shape_cast %179 : vector<1xf32> to vector<1x1x1xf32>
    %181 = vector.extract %180[0, 0, 0] : f32 from vector<1x1x1xf32>
    %cst_54 = arith.constant 3.906250e-03 : f32
    %182 = arith.mulf %176, %cst_54 : f32
    %cst_55 = arith.constant 3.906250e-03 : f32
    %183 = arith.mulf %181, %cst_55 : f32
    %184 = arith.mulf %182, %182 : f32
    %185 = arith.subf %183, %184 : f32
    %cst_56 = arith.constant 0.000000e+00 : f32
    %186 = arith.maximumf %185, %cst_56 : f32
    %cst_57 = arith.constant 9.99999974E-6 : f32
    %187 = arith.addf %186, %cst_57 : f32
    %188 = math.rsqrt %187 : f32
    %189 = vector.extract_strided_slice %170 {offsets = [0, 128], sizes = [16, 128], strides = [1, 1]} : vector<16x256xf32> to vector<16x128xf32>
    %190 = vector.shape_cast %189 : vector<16x128xf32> to vector<1x16x128xf32>
    %cst_58 = arith.constant dense<0.000000e+00> : vector<1xf32>
    %191 = vector.multi_reduction <add>, %190, %cst_58 [1, 2] : vector<1x16x128xf32> to vector<1xf32>
    %192 = vector.shape_cast %191 : vector<1xf32> to vector<1x1x1xf32>
    %193 = vector.extract %192[0, 0, 0] : f32 from vector<1x1x1xf32>
    %194 = arith.mulf %189, %189 : vector<16x128xf32>
    %195 = vector.shape_cast %194 : vector<16x128xf32> to vector<1x16x128xf32>
    %cst_59 = arith.constant dense<0.000000e+00> : vector<1xf32>
    %196 = vector.multi_reduction <add>, %195, %cst_59 [1, 2] : vector<1x16x128xf32> to vector<1xf32>
    %197 = vector.shape_cast %196 : vector<1xf32> to vector<1x1x1xf32>
    %198 = vector.extract %197[0, 0, 0] : f32 from vector<1x1x1xf32>
    %cst_60 = arith.constant 3.906250e-03 : f32
    %199 = arith.mulf %193, %cst_60 : f32
    %cst_61 = arith.constant 3.906250e-03 : f32
    %200 = arith.mulf %198, %cst_61 : f32
    %201 = arith.mulf %199, %199 : f32
    %202 = arith.subf %200, %201 : f32
    %cst_62 = arith.constant 0.000000e+00 : f32
    %203 = arith.maximumf %202, %cst_62 : f32
    %cst_63 = arith.constant 9.99999974E-6 : f32
    %204 = arith.addf %203, %cst_63 : f32
    %205 = math.rsqrt %204 : f32
    %206 = vector.broadcast %182 : f32 to vector<1x128xf32>
    %207 = vector.broadcast %199 : f32 to vector<1x128xf32>
    %208 = tpu.concatenate %206, %207 in 1 : vector<1x128xf32>, vector<1x128xf32> -> vector<1x256xf32>
    %209 = vector.broadcast %188 : f32 to vector<1x128xf32>
    %210 = vector.broadcast %205 : f32 to vector<1x128xf32>
    %211 = tpu.concatenate %209, %210 in 1 : vector<1x128xf32>, vector<1x128xf32> -> vector<1x256xf32>
    %212 = arith.mulf %211, %5 : vector<1x256xf32>
    %213 = vector.broadcast %208 : vector<1x256xf32> to vector<16x256xf32>
    %214 = arith.subf %170, %213 : vector<16x256xf32>
    %215 = vector.broadcast %212 : vector<1x256xf32> to vector<16x256xf32>
    %216 = arith.mulf %214, %215 : vector<16x256xf32>
    %c4_i32 = arith.constant 4 : i32
    %217 = tpu.dynamic_rotate %216 by %c4_i32 dim 1 : vector<16x256xf32>, i32 -> vector<16x256xf32>
    %c2_i32_64 = arith.constant 2 : i32
    %218 = tpu.dynamic_rotate %216 by %c2_i32_64 dim 1 : vector<16x256xf32>, i32 -> vector<16x256xf32>
    %219 = tpu.concatenate %217, %218, %216 in 0 : vector<16x256xf32>, vector<16x256xf32>, vector<16x256xf32> -> vector<48x256xf32>
    %c1 = arith.constant 1 : index
    %c0_65 = arith.constant 0 : index
    %c0_66 = arith.constant 0 : index
    %220 = vector.load %arg3[%c1, %c0_65, %c0_66] : memref<3x32x48xf32, #tpu.memory_space<vmem>>, vector<1x32x48xf32>
    %221 = vector.shape_cast %220 : vector<1x32x48xf32> to vector<32x48xf32>
    %cst_67 = arith.constant dense<0.000000e+00> : vector<32x256xf32>
    %222 = tpu.matmul %221, %219, %cst_67 {dimension_numbers = #tpu.dot_dimension_numbers<[1], [0], [0], [1], [0, 0, 1, 1], [], []>, precision = #tpu.contract_precision<fp32>} : vector<32x48xf32>, vector<48x256xf32>, vector<32x256xf32> -> vector<32x256xf32>
    %c72 = arith.constant 72 : index
    %c0_68 = arith.constant 0 : index
    %223 = vector.load %arg5[%c72, %c0_68] : memref<200x256xf32, #tpu.memory_space<vmem>>, vector<32x256xf32>
    %224 = arith.addf %222, %223 : vector<32x256xf32>
    %225 = vector.extract_strided_slice %224 {offsets = [0, 0], sizes = [16, 256], strides = [1, 1]} : vector<32x256xf32> to vector<16x256xf32>
    %226 = arith.negf %225 : vector<16x256xf32>
    %227 = math.exp %226 : vector<16x256xf32>
    %cst_69 = arith.constant 1.000000e+00 : f32
    %228 = vector.broadcast %cst_69 : f32 to vector<16x256xf32>
    %229 = arith.addf %228, %227 : vector<16x256xf32>
    %230 = arith.divf %228, %229 : vector<16x256xf32>
    %231 = vector.extract_strided_slice %224 {offsets = [16, 0], sizes = [16, 256], strides = [1, 1]} : vector<32x256xf32> to vector<16x256xf32>
    %232 = math.tanh %231 : vector<16x256xf32>
    %233 = arith.mulf %230, %232 : vector<16x256xf32>
    %234 = vector.broadcast %5 : vector<1x256xf32> to vector<16x256xf32>
    %235 = arith.mulf %233, %234 : vector<16x256xf32>
    %c1_70 = arith.constant 1 : index
    %c0_71 = arith.constant 0 : index
    %c0_72 = arith.constant 0 : index
    %236 = vector.load %arg4[%c1_70, %c0_71, %c0_72] : memref<3x20x16xf32, #tpu.memory_space<vmem>>, vector<1x20x16xf32>
    %237 = vector.shape_cast %236 : vector<1x20x16xf32> to vector<20x16xf32>
    %238 = vector.extract_strided_slice %235 {offsets = [0, 0], sizes = [16, 128], strides = [1, 1]} : vector<16x256xf32> to vector<16x128xf32>
    %239 = vector.shape_cast %238 : vector<16x128xf32> to vector<1x16x128xf32>
    %cst_73 = arith.constant dense<0.000000e+00> : vector<1xf32>
    %240 = vector.multi_reduction <add>, %239, %cst_73 [1, 2] : vector<1x16x128xf32> to vector<1xf32>
    %241 = vector.shape_cast %240 : vector<1xf32> to vector<1x1x1xf32>
    %242 = vector.extract %241[0, 0, 0] : f32 from vector<1x1x1xf32>
    %243 = arith.mulf %238, %238 : vector<16x128xf32>
    %244 = vector.shape_cast %243 : vector<16x128xf32> to vector<1x16x128xf32>
    %cst_74 = arith.constant dense<0.000000e+00> : vector<1xf32>
    %245 = vector.multi_reduction <add>, %244, %cst_74 [1, 2] : vector<1x16x128xf32> to vector<1xf32>
    %246 = vector.shape_cast %245 : vector<1xf32> to vector<1x1x1xf32>
    %247 = vector.extract %246[0, 0, 0] : f32 from vector<1x1x1xf32>
    %cst_75 = arith.constant 3.906250e-03 : f32
    %248 = arith.mulf %242, %cst_75 : f32
    %cst_76 = arith.constant 3.906250e-03 : f32
    %249 = arith.mulf %247, %cst_76 : f32
    %250 = arith.mulf %248, %248 : f32
    %251 = arith.subf %249, %250 : f32
    %cst_77 = arith.constant 0.000000e+00 : f32
    %252 = arith.maximumf %251, %cst_77 : f32
    %cst_78 = arith.constant 9.99999974E-6 : f32
    %253 = arith.addf %252, %cst_78 : f32
    %254 = math.rsqrt %253 : f32
    %255 = vector.extract_strided_slice %235 {offsets = [0, 128], sizes = [16, 128], strides = [1, 1]} : vector<16x256xf32> to vector<16x128xf32>
    %256 = vector.shape_cast %255 : vector<16x128xf32> to vector<1x16x128xf32>
    %cst_79 = arith.constant dense<0.000000e+00> : vector<1xf32>
    %257 = vector.multi_reduction <add>, %256, %cst_79 [1, 2] : vector<1x16x128xf32> to vector<1xf32>
    %258 = vector.shape_cast %257 : vector<1xf32> to vector<1x1x1xf32>
    %259 = vector.extract %258[0, 0, 0] : f32 from vector<1x1x1xf32>
    %260 = arith.mulf %255, %255 : vector<16x128xf32>
    %261 = vector.shape_cast %260 : vector<16x128xf32> to vector<1x16x128xf32>
    %cst_80 = arith.constant dense<0.000000e+00> : vector<1xf32>
    %262 = vector.multi_reduction <add>, %261, %cst_80 [1, 2] : vector<1x16x128xf32> to vector<1xf32>
    %263 = vector.shape_cast %262 : vector<1xf32> to vector<1x1x1xf32>
    %264 = vector.extract %263[0, 0, 0] : f32 from vector<1x1x1xf32>
    %cst_81 = arith.constant 3.906250e-03 : f32
    %265 = arith.mulf %259, %cst_81 : f32
    %cst_82 = arith.constant 3.906250e-03 : f32
    %266 = arith.mulf %264, %cst_82 : f32
    %267 = arith.mulf %265, %265 : f32
    %268 = arith.subf %266, %267 : f32
    %cst_83 = arith.constant 0.000000e+00 : f32
    %269 = arith.maximumf %268, %cst_83 : f32
    %cst_84 = arith.constant 9.99999974E-6 : f32
    %270 = arith.addf %269, %cst_84 : f32
    %271 = math.rsqrt %270 : f32
    %272 = vector.broadcast %248 : f32 to vector<1x128xf32>
    %273 = vector.broadcast %265 : f32 to vector<1x128xf32>
    %274 = tpu.concatenate %272, %273 in 1 : vector<1x128xf32>, vector<1x128xf32> -> vector<1x256xf32>
    %275 = vector.broadcast %254 : f32 to vector<1x128xf32>
    %276 = vector.broadcast %271 : f32 to vector<1x128xf32>
    %277 = tpu.concatenate %275, %276 in 1 : vector<1x128xf32>, vector<1x128xf32> -> vector<1x256xf32>
    %278 = arith.mulf %277, %5 : vector<1x256xf32>
    %279 = vector.broadcast %274 : vector<1x256xf32> to vector<16x256xf32>
    %280 = arith.subf %235, %279 : vector<16x256xf32>
    %281 = vector.broadcast %278 : vector<1x256xf32> to vector<16x256xf32>
    %282 = arith.mulf %280, %281 : vector<16x256xf32>
    %cst_85 = arith.constant dense<0.000000e+00> : vector<20x256xf32>
    %283 = tpu.matmul %237, %282, %cst_85 {dimension_numbers = #tpu.dot_dimension_numbers<[1], [0], [0], [1], [0, 0, 1, 1], [], []>, precision = #tpu.contract_precision<fp32>} : vector<20x16xf32>, vector<16x256xf32>, vector<20x256xf32> -> vector<20x256xf32>
    %c104 = arith.constant 104 : index
    %c0_86 = arith.constant 0 : index
    %284 = vector.load %arg5[%c104, %c0_86] : memref<200x256xf32, #tpu.memory_space<vmem>>, vector<20x256xf32>
    %285 = arith.addf %283, %284 : vector<20x256xf32>
    %286 = vector.extract_strided_slice %285 {offsets = [0, 0], sizes = [16, 256], strides = [1, 1]} : vector<20x256xf32> to vector<16x256xf32>
    %287 = vector.extract_strided_slice %285 {offsets = [16, 0], sizes = [4, 256], strides = [1, 1]} : vector<20x256xf32> to vector<4x256xf32>
    %288 = arith.addf %171, %287 : vector<4x256xf32>
    %289 = vector.extract_strided_slice %286 {offsets = [0, 0], sizes = [16, 128], strides = [1, 1]} : vector<16x256xf32> to vector<16x128xf32>
    %290 = vector.shape_cast %289 : vector<16x128xf32> to vector<1x16x128xf32>
    %cst_87 = arith.constant dense<0.000000e+00> : vector<1xf32>
    %291 = vector.multi_reduction <add>, %290, %cst_87 [1, 2] : vector<1x16x128xf32> to vector<1xf32>
    %292 = vector.shape_cast %291 : vector<1xf32> to vector<1x1x1xf32>
    %293 = vector.extract %292[0, 0, 0] : f32 from vector<1x1x1xf32>
    %294 = arith.mulf %289, %289 : vector<16x128xf32>
    %295 = vector.shape_cast %294 : vector<16x128xf32> to vector<1x16x128xf32>
    %cst_88 = arith.constant dense<0.000000e+00> : vector<1xf32>
    %296 = vector.multi_reduction <add>, %295, %cst_88 [1, 2] : vector<1x16x128xf32> to vector<1xf32>
    %297 = vector.shape_cast %296 : vector<1xf32> to vector<1x1x1xf32>
    %298 = vector.extract %297[0, 0, 0] : f32 from vector<1x1x1xf32>
    %cst_89 = arith.constant 3.906250e-03 : f32
    %299 = arith.mulf %293, %cst_89 : f32
    %cst_90 = arith.constant 3.906250e-03 : f32
    %300 = arith.mulf %298, %cst_90 : f32
    %301 = arith.mulf %299, %299 : f32
    %302 = arith.subf %300, %301 : f32
    %cst_91 = arith.constant 0.000000e+00 : f32
    %303 = arith.maximumf %302, %cst_91 : f32
    %cst_92 = arith.constant 9.99999974E-6 : f32
    %304 = arith.addf %303, %cst_92 : f32
    %305 = math.rsqrt %304 : f32
    %306 = vector.extract_strided_slice %286 {offsets = [0, 128], sizes = [16, 128], strides = [1, 1]} : vector<16x256xf32> to vector<16x128xf32>
    %307 = vector.shape_cast %306 : vector<16x128xf32> to vector<1x16x128xf32>
    %cst_93 = arith.constant dense<0.000000e+00> : vector<1xf32>
    %308 = vector.multi_reduction <add>, %307, %cst_93 [1, 2] : vector<1x16x128xf32> to vector<1xf32>
    %309 = vector.shape_cast %308 : vector<1xf32> to vector<1x1x1xf32>
    %310 = vector.extract %309[0, 0, 0] : f32 from vector<1x1x1xf32>
    %311 = arith.mulf %306, %306 : vector<16x128xf32>
    %312 = vector.shape_cast %311 : vector<16x128xf32> to vector<1x16x128xf32>
    %cst_94 = arith.constant dense<0.000000e+00> : vector<1xf32>
    %313 = vector.multi_reduction <add>, %312, %cst_94 [1, 2] : vector<1x16x128xf32> to vector<1xf32>
    %314 = vector.shape_cast %313 : vector<1xf32> to vector<1x1x1xf32>
    %315 = vector.extract %314[0, 0, 0] : f32 from vector<1x1x1xf32>
    %cst_95 = arith.constant 3.906250e-03 : f32
    %316 = arith.mulf %310, %cst_95 : f32
    %cst_96 = arith.constant 3.906250e-03 : f32
    %317 = arith.mulf %315, %cst_96 : f32
    %318 = arith.mulf %316, %316 : f32
    %319 = arith.subf %317, %318 : f32
    %cst_97 = arith.constant 0.000000e+00 : f32
    %320 = arith.maximumf %319, %cst_97 : f32
    %cst_98 = arith.constant 9.99999974E-6 : f32
    %321 = arith.addf %320, %cst_98 : f32
    %322 = math.rsqrt %321 : f32
    %323 = vector.broadcast %299 : f32 to vector<1x128xf32>
    %324 = vector.broadcast %316 : f32 to vector<1x128xf32>
    %325 = tpu.concatenate %323, %324 in 1 : vector<1x128xf32>, vector<1x128xf32> -> vector<1x256xf32>
    %326 = vector.broadcast %305 : f32 to vector<1x128xf32>
    %327 = vector.broadcast %322 : f32 to vector<1x128xf32>
    %328 = tpu.concatenate %326, %327 in 1 : vector<1x128xf32>, vector<1x128xf32> -> vector<1x256xf32>
    %329 = arith.mulf %328, %5 : vector<1x256xf32>
    %330 = vector.broadcast %325 : vector<1x256xf32> to vector<16x256xf32>
    %331 = arith.subf %286, %330 : vector<16x256xf32>
    %332 = vector.broadcast %329 : vector<1x256xf32> to vector<16x256xf32>
    %333 = arith.mulf %331, %332 : vector<16x256xf32>
    %c8_i32 = arith.constant 8 : i32
    %334 = tpu.dynamic_rotate %333 by %c8_i32 dim 1 : vector<16x256xf32>, i32 -> vector<16x256xf32>
    %c4_i32_99 = arith.constant 4 : i32
    %335 = tpu.dynamic_rotate %333 by %c4_i32_99 dim 1 : vector<16x256xf32>, i32 -> vector<16x256xf32>
    %336 = tpu.concatenate %334, %335, %333 in 0 : vector<16x256xf32>, vector<16x256xf32>, vector<16x256xf32> -> vector<48x256xf32>
    %c2 = arith.constant 2 : index
    %c0_100 = arith.constant 0 : index
    %c0_101 = arith.constant 0 : index
    %337 = vector.load %arg3[%c2, %c0_100, %c0_101] : memref<3x32x48xf32, #tpu.memory_space<vmem>>, vector<1x32x48xf32>
    %338 = vector.shape_cast %337 : vector<1x32x48xf32> to vector<32x48xf32>
    %cst_102 = arith.constant dense<0.000000e+00> : vector<32x256xf32>
    %339 = tpu.matmul %338, %336, %cst_102 {dimension_numbers = #tpu.dot_dimension_numbers<[1], [0], [0], [1], [0, 0, 1, 1], [], []>, precision = #tpu.contract_precision<fp32>} : vector<32x48xf32>, vector<48x256xf32>, vector<32x256xf32> -> vector<32x256xf32>
    %c128 = arith.constant 128 : index
    %c0_103 = arith.constant 0 : index
    %340 = vector.load %arg5[%c128, %c0_103] : memref<200x256xf32, #tpu.memory_space<vmem>>, vector<32x256xf32>
    %341 = arith.addf %339, %340 : vector<32x256xf32>
    %342 = vector.extract_strided_slice %341 {offsets = [0, 0], sizes = [16, 256], strides = [1, 1]} : vector<32x256xf32> to vector<16x256xf32>
    %343 = arith.negf %342 : vector<16x256xf32>
    %344 = math.exp %343 : vector<16x256xf32>
    %cst_104 = arith.constant 1.000000e+00 : f32
    %345 = vector.broadcast %cst_104 : f32 to vector<16x256xf32>
    %346 = arith.addf %345, %344 : vector<16x256xf32>
    %347 = arith.divf %345, %346 : vector<16x256xf32>
    %348 = vector.extract_strided_slice %341 {offsets = [16, 0], sizes = [16, 256], strides = [1, 1]} : vector<32x256xf32> to vector<16x256xf32>
    %349 = math.tanh %348 : vector<16x256xf32>
    %350 = arith.mulf %347, %349 : vector<16x256xf32>
    %351 = vector.broadcast %5 : vector<1x256xf32> to vector<16x256xf32>
    %352 = arith.mulf %350, %351 : vector<16x256xf32>
    %c2_105 = arith.constant 2 : index
    %c0_106 = arith.constant 0 : index
    %c0_107 = arith.constant 0 : index
    %353 = vector.load %arg4[%c2_105, %c0_106, %c0_107] : memref<3x20x16xf32, #tpu.memory_space<vmem>>, vector<1x20x16xf32>
    %354 = vector.shape_cast %353 : vector<1x20x16xf32> to vector<20x16xf32>
    %355 = vector.extract_strided_slice %352 {offsets = [0, 0], sizes = [16, 128], strides = [1, 1]} : vector<16x256xf32> to vector<16x128xf32>
    %356 = vector.shape_cast %355 : vector<16x128xf32> to vector<1x16x128xf32>
    %cst_108 = arith.constant dense<0.000000e+00> : vector<1xf32>
    %357 = vector.multi_reduction <add>, %356, %cst_108 [1, 2] : vector<1x16x128xf32> to vector<1xf32>
    %358 = vector.shape_cast %357 : vector<1xf32> to vector<1x1x1xf32>
    %359 = vector.extract %358[0, 0, 0] : f32 from vector<1x1x1xf32>
    %360 = arith.mulf %355, %355 : vector<16x128xf32>
    %361 = vector.shape_cast %360 : vector<16x128xf32> to vector<1x16x128xf32>
    %cst_109 = arith.constant dense<0.000000e+00> : vector<1xf32>
    %362 = vector.multi_reduction <add>, %361, %cst_109 [1, 2] : vector<1x16x128xf32> to vector<1xf32>
    %363 = vector.shape_cast %362 : vector<1xf32> to vector<1x1x1xf32>
    %364 = vector.extract %363[0, 0, 0] : f32 from vector<1x1x1xf32>
    %cst_110 = arith.constant 3.906250e-03 : f32
    %365 = arith.mulf %359, %cst_110 : f32
    %cst_111 = arith.constant 3.906250e-03 : f32
    %366 = arith.mulf %364, %cst_111 : f32
    %367 = arith.mulf %365, %365 : f32
    %368 = arith.subf %366, %367 : f32
    %cst_112 = arith.constant 0.000000e+00 : f32
    %369 = arith.maximumf %368, %cst_112 : f32
    %cst_113 = arith.constant 9.99999974E-6 : f32
    %370 = arith.addf %369, %cst_113 : f32
    %371 = math.rsqrt %370 : f32
    %372 = vector.extract_strided_slice %352 {offsets = [0, 128], sizes = [16, 128], strides = [1, 1]} : vector<16x256xf32> to vector<16x128xf32>
    %373 = vector.shape_cast %372 : vector<16x128xf32> to vector<1x16x128xf32>
    %cst_114 = arith.constant dense<0.000000e+00> : vector<1xf32>
    %374 = vector.multi_reduction <add>, %373, %cst_114 [1, 2] : vector<1x16x128xf32> to vector<1xf32>
    %375 = vector.shape_cast %374 : vector<1xf32> to vector<1x1x1xf32>
    %376 = vector.extract %375[0, 0, 0] : f32 from vector<1x1x1xf32>
    %377 = arith.mulf %372, %372 : vector<16x128xf32>
    %378 = vector.shape_cast %377 : vector<16x128xf32> to vector<1x16x128xf32>
    %cst_115 = arith.constant dense<0.000000e+00> : vector<1xf32>
    %379 = vector.multi_reduction <add>, %378, %cst_115 [1, 2] : vector<1x16x128xf32> to vector<1xf32>
    %380 = vector.shape_cast %379 : vector<1xf32> to vector<1x1x1xf32>
    %381 = vector.extract %380[0, 0, 0] : f32 from vector<1x1x1xf32>
    %cst_116 = arith.constant 3.906250e-03 : f32
    %382 = arith.mulf %376, %cst_116 : f32
    %cst_117 = arith.constant 3.906250e-03 : f32
    %383 = arith.mulf %381, %cst_117 : f32
    %384 = arith.mulf %382, %382 : f32
    %385 = arith.subf %383, %384 : f32
    %cst_118 = arith.constant 0.000000e+00 : f32
    %386 = arith.maximumf %385, %cst_118 : f32
    %cst_119 = arith.constant 9.99999974E-6 : f32
    %387 = arith.addf %386, %cst_119 : f32
    %388 = math.rsqrt %387 : f32
    %389 = vector.broadcast %365 : f32 to vector<1x128xf32>
    %390 = vector.broadcast %382 : f32 to vector<1x128xf32>
    %391 = tpu.concatenate %389, %390 in 1 : vector<1x128xf32>, vector<1x128xf32> -> vector<1x256xf32>
    %392 = vector.broadcast %371 : f32 to vector<1x128xf32>
    %393 = vector.broadcast %388 : f32 to vector<1x128xf32>
    %394 = tpu.concatenate %392, %393 in 1 : vector<1x128xf32>, vector<1x128xf32> -> vector<1x256xf32>
    %395 = arith.mulf %394, %5 : vector<1x256xf32>
    %396 = vector.broadcast %391 : vector<1x256xf32> to vector<16x256xf32>
    %397 = arith.subf %352, %396 : vector<16x256xf32>
    %398 = vector.broadcast %395 : vector<1x256xf32> to vector<16x256xf32>
    %399 = arith.mulf %397, %398 : vector<16x256xf32>
    %cst_120 = arith.constant dense<0.000000e+00> : vector<20x256xf32>
    %400 = tpu.matmul %354, %399, %cst_120 {dimension_numbers = #tpu.dot_dimension_numbers<[1], [0], [0], [1], [0, 0, 1, 1], [], []>, precision = #tpu.contract_precision<fp32>} : vector<20x16xf32>, vector<16x256xf32>, vector<20x256xf32> -> vector<20x256xf32>
    %c160 = arith.constant 160 : index
    %c0_121 = arith.constant 0 : index
    %401 = vector.load %arg5[%c160, %c0_121] : memref<200x256xf32, #tpu.memory_space<vmem>>, vector<20x256xf32>
    %402 = arith.addf %400, %401 : vector<20x256xf32>
    %403 = vector.extract_strided_slice %402 {offsets = [16, 0], sizes = [4, 256], strides = [1, 1]} : vector<20x256xf32> to vector<4x256xf32>
    %404 = arith.addf %288, %403 : vector<4x256xf32>
    %cst_122 = arith.constant 0.000000e+00 : f32
    %405 = vector.broadcast %cst_122 : f32 to vector<4x256xf32>
    %406 = arith.maximumf %404, %405 : vector<4x256xf32>
    %c16_123 = arith.constant 16 : index
    %c0_124 = arith.constant 0 : index
    %407 = vector.load %arg2[%c16_123, %c0_124] : memref<32x4xf32, #tpu.memory_space<vmem>>, vector<4x4xf32>
    %408 = vector.extract_strided_slice %406 {offsets = [0, 0], sizes = [4, 128], strides = [1, 1]} : vector<4x256xf32> to vector<4x128xf32>
    %409 = vector.shape_cast %408 : vector<4x128xf32> to vector<1x4x128xf32>
    %cst_125 = arith.constant dense<0.000000e+00> : vector<1xf32>
    %410 = vector.multi_reduction <add>, %409, %cst_125 [1, 2] : vector<1x4x128xf32> to vector<1xf32>
    %411 = vector.shape_cast %410 : vector<1xf32> to vector<1x1x1xf32>
    %412 = vector.extract %411[0, 0, 0] : f32 from vector<1x1x1xf32>
    %413 = arith.mulf %408, %408 : vector<4x128xf32>
    %414 = vector.shape_cast %413 : vector<4x128xf32> to vector<1x4x128xf32>
    %cst_126 = arith.constant dense<0.000000e+00> : vector<1xf32>
    %415 = vector.multi_reduction <add>, %414, %cst_126 [1, 2] : vector<1x4x128xf32> to vector<1xf32>
    %416 = vector.shape_cast %415 : vector<1xf32> to vector<1x1x1xf32>
    %417 = vector.extract %416[0, 0, 0] : f32 from vector<1x1x1xf32>
    %cst_127 = arith.constant 1.562500e-02 : f32
    %418 = arith.mulf %412, %cst_127 : f32
    %cst_128 = arith.constant 1.562500e-02 : f32
    %419 = arith.mulf %417, %cst_128 : f32
    %420 = arith.mulf %418, %418 : f32
    %421 = arith.subf %419, %420 : f32
    %cst_129 = arith.constant 0.000000e+00 : f32
    %422 = arith.maximumf %421, %cst_129 : f32
    %cst_130 = arith.constant 9.99999974E-6 : f32
    %423 = arith.addf %422, %cst_130 : f32
    %424 = math.rsqrt %423 : f32
    %425 = vector.extract_strided_slice %406 {offsets = [0, 128], sizes = [4, 128], strides = [1, 1]} : vector<4x256xf32> to vector<4x128xf32>
    %426 = vector.shape_cast %425 : vector<4x128xf32> to vector<1x4x128xf32>
    %cst_131 = arith.constant dense<0.000000e+00> : vector<1xf32>
    %427 = vector.multi_reduction <add>, %426, %cst_131 [1, 2] : vector<1x4x128xf32> to vector<1xf32>
    %428 = vector.shape_cast %427 : vector<1xf32> to vector<1x1x1xf32>
    %429 = vector.extract %428[0, 0, 0] : f32 from vector<1x1x1xf32>
    %430 = arith.mulf %425, %425 : vector<4x128xf32>
    %431 = vector.shape_cast %430 : vector<4x128xf32> to vector<1x4x128xf32>
    %cst_132 = arith.constant dense<0.000000e+00> : vector<1xf32>
    %432 = vector.multi_reduction <add>, %431, %cst_132 [1, 2] : vector<1x4x128xf32> to vector<1xf32>
    %433 = vector.shape_cast %432 : vector<1xf32> to vector<1x1x1xf32>
    %434 = vector.extract %433[0, 0, 0] : f32 from vector<1x1x1xf32>
    %cst_133 = arith.constant 1.562500e-02 : f32
    %435 = arith.mulf %429, %cst_133 : f32
    %cst_134 = arith.constant 1.562500e-02 : f32
    %436 = arith.mulf %434, %cst_134 : f32
    %437 = arith.mulf %435, %435 : f32
    %438 = arith.subf %436, %437 : f32
    %cst_135 = arith.constant 0.000000e+00 : f32
    %439 = arith.maximumf %438, %cst_135 : f32
    %cst_136 = arith.constant 9.99999974E-6 : f32
    %440 = arith.addf %439, %cst_136 : f32
    %441 = math.rsqrt %440 : f32
    %442 = vector.broadcast %418 : f32 to vector<1x128xf32>
    %443 = vector.broadcast %435 : f32 to vector<1x128xf32>
    %444 = tpu.concatenate %442, %443 in 1 : vector<1x128xf32>, vector<1x128xf32> -> vector<1x256xf32>
    %445 = vector.broadcast %424 : f32 to vector<1x128xf32>
    %446 = vector.broadcast %441 : f32 to vector<1x128xf32>
    %447 = tpu.concatenate %445, %446 in 1 : vector<1x128xf32>, vector<1x128xf32> -> vector<1x256xf32>
    %448 = arith.mulf %447, %5 : vector<1x256xf32>
    %449 = vector.broadcast %444 : vector<1x256xf32> to vector<4x256xf32>
    %450 = arith.subf %406, %449 : vector<4x256xf32>
    %451 = vector.broadcast %448 : vector<1x256xf32> to vector<4x256xf32>
    %452 = arith.mulf %450, %451 : vector<4x256xf32>
    %cst_137 = arith.constant dense<0.000000e+00> : vector<4x256xf32>
    %453 = tpu.matmul %407, %452, %cst_137 {dimension_numbers = #tpu.dot_dimension_numbers<[1], [0], [0], [1], [0, 0, 1, 1], [], []>, precision = #tpu.contract_precision<fp32>} : vector<4x4xf32>, vector<4x256xf32>, vector<4x256xf32> -> vector<4x256xf32>
    %c184 = arith.constant 184 : index
    %c0_138 = arith.constant 0 : index
    %454 = vector.load %arg5[%c184, %c0_138] : memref<200x256xf32, #tpu.memory_space<vmem>>, vector<4x256xf32>
    %455 = arith.addf %453, %454 : vector<4x256xf32>
    %cst_139 = arith.constant 0.000000e+00 : f32
    %456 = vector.broadcast %cst_139 : f32 to vector<4x256xf32>
    %457 = arith.maximumf %455, %456 : vector<4x256xf32>
    %c24 = arith.constant 24 : index
    %c0_140 = arith.constant 0 : index
    %458 = vector.load %arg2[%c24, %c0_140] : memref<32x4xf32, #tpu.memory_space<vmem>>, vector<4x4xf32>
    %459 = vector.extract_strided_slice %457 {offsets = [0, 0], sizes = [4, 128], strides = [1, 1]} : vector<4x256xf32> to vector<4x128xf32>
    %460 = vector.shape_cast %459 : vector<4x128xf32> to vector<1x4x128xf32>
    %cst_141 = arith.constant dense<0.000000e+00> : vector<1xf32>
    %461 = vector.multi_reduction <add>, %460, %cst_141 [1, 2] : vector<1x4x128xf32> to vector<1xf32>
    %462 = vector.shape_cast %461 : vector<1xf32> to vector<1x1x1xf32>
    %463 = vector.extract %462[0, 0, 0] : f32 from vector<1x1x1xf32>
    %464 = arith.mulf %459, %459 : vector<4x128xf32>
    %465 = vector.shape_cast %464 : vector<4x128xf32> to vector<1x4x128xf32>
    %cst_142 = arith.constant dense<0.000000e+00> : vector<1xf32>
    %466 = vector.multi_reduction <add>, %465, %cst_142 [1, 2] : vector<1x4x128xf32> to vector<1xf32>
    %467 = vector.shape_cast %466 : vector<1xf32> to vector<1x1x1xf32>
    %468 = vector.extract %467[0, 0, 0] : f32 from vector<1x1x1xf32>
    %cst_143 = arith.constant 1.562500e-02 : f32
    %469 = arith.mulf %463, %cst_143 : f32
    %cst_144 = arith.constant 1.562500e-02 : f32
    %470 = arith.mulf %468, %cst_144 : f32
    %471 = arith.mulf %469, %469 : f32
    %472 = arith.subf %470, %471 : f32
    %cst_145 = arith.constant 0.000000e+00 : f32
    %473 = arith.maximumf %472, %cst_145 : f32
    %cst_146 = arith.constant 9.99999974E-6 : f32
    %474 = arith.addf %473, %cst_146 : f32
    %475 = math.rsqrt %474 : f32
    %476 = vector.extract_strided_slice %457 {offsets = [0, 128], sizes = [4, 128], strides = [1, 1]} : vector<4x256xf32> to vector<4x128xf32>
    %477 = vector.shape_cast %476 : vector<4x128xf32> to vector<1x4x128xf32>
    %cst_147 = arith.constant dense<0.000000e+00> : vector<1xf32>
    %478 = vector.multi_reduction <add>, %477, %cst_147 [1, 2] : vector<1x4x128xf32> to vector<1xf32>
    %479 = vector.shape_cast %478 : vector<1xf32> to vector<1x1x1xf32>
    %480 = vector.extract %479[0, 0, 0] : f32 from vector<1x1x1xf32>
    %481 = arith.mulf %476, %476 : vector<4x128xf32>
    %482 = vector.shape_cast %481 : vector<4x128xf32> to vector<1x4x128xf32>
    %cst_148 = arith.constant dense<0.000000e+00> : vector<1xf32>
    %483 = vector.multi_reduction <add>, %482, %cst_148 [1, 2] : vector<1x4x128xf32> to vector<1xf32>
    %484 = vector.shape_cast %483 : vector<1xf32> to vector<1x1x1xf32>
    %485 = vector.extract %484[0, 0, 0] : f32 from vector<1x1x1xf32>
    %cst_149 = arith.constant 1.562500e-02 : f32
    %486 = arith.mulf %480, %cst_149 : f32
    %cst_150 = arith.constant 1.562500e-02 : f32
    %487 = arith.mulf %485, %cst_150 : f32
    %488 = arith.mulf %486, %486 : f32
    %489 = arith.subf %487, %488 : f32
    %cst_151 = arith.constant 0.000000e+00 : f32
    %490 = arith.maximumf %489, %cst_151 : f32
    %cst_152 = arith.constant 9.99999974E-6 : f32
    %491 = arith.addf %490, %cst_152 : f32
    %492 = math.rsqrt %491 : f32
    %493 = vector.broadcast %469 : f32 to vector<1x128xf32>
    %494 = vector.broadcast %486 : f32 to vector<1x128xf32>
    %495 = tpu.concatenate %493, %494 in 1 : vector<1x128xf32>, vector<1x128xf32> -> vector<1x256xf32>
    %496 = vector.broadcast %475 : f32 to vector<1x128xf32>
    %497 = vector.broadcast %492 : f32 to vector<1x128xf32>
    %498 = tpu.concatenate %496, %497 in 1 : vector<1x128xf32>, vector<1x128xf32> -> vector<1x256xf32>
    %499 = arith.mulf %498, %5 : vector<1x256xf32>
    %500 = vector.broadcast %495 : vector<1x256xf32> to vector<4x256xf32>
    %501 = arith.subf %457, %500 : vector<4x256xf32>
    %502 = vector.broadcast %499 : vector<1x256xf32> to vector<4x256xf32>
    %503 = arith.mulf %501, %502 : vector<4x256xf32>
    %cst_153 = arith.constant dense<0.000000e+00> : vector<4x256xf32>
    %504 = tpu.matmul %458, %503, %cst_153 {dimension_numbers = #tpu.dot_dimension_numbers<[1], [0], [0], [1], [0, 0, 1, 1], [], []>, precision = #tpu.contract_precision<fp32>} : vector<4x4xf32>, vector<4x256xf32>, vector<4x256xf32> -> vector<4x256xf32>
    %c192 = arith.constant 192 : index
    %c0_154 = arith.constant 0 : index
    %505 = vector.load %arg5[%c192, %c0_154] : memref<200x256xf32, #tpu.memory_space<vmem>>, vector<4x256xf32>
    %506 = arith.addf %504, %505 : vector<4x256xf32>
    %c0_155 = arith.constant 0 : index
    %c0_156 = arith.constant 0 : index
    %507 = vector.load %arg6[%c0_155, %c0_156] : memref<4x256xf32, #tpu.memory_space<vmem>>, vector<4x256xf32>
    tpu.vector_store %arg6[%c0_155, %c0_156], %506 {strides = array<i32>} : memref<4x256xf32, #tpu.memory_space<vmem>>, vector<4x256xf32>,
    return
  }
  func.func @transform_0(%arg0: i32) -> (i32, i32) {
    %c0_i32 = arith.constant 0 : i32
    %c0_i32_0 = arith.constant 0 : i32
    return %c0_i32, %arg0 : i32, i32
  }
  func.func @transform_1(%arg0: i32) -> (i32, i32) {
    %c0_i32 = arith.constant 0 : i32
    %c0_i32_0 = arith.constant 0 : i32
    %c0_i32_1 = arith.constant 0 : i32
    return %c0_i32, %c0_i32_0 : i32, i32
  }
  func.func @transform_2(%arg0: i32) -> (i32, i32, i32) {
    %c0_i32 = arith.constant 0 : i32
    %c0_i32_0 = arith.constant 0 : i32
    %c0_i32_1 = arith.constant 0 : i32
    %c0_i32_2 = arith.constant 0 : i32
    return %c0_i32, %c0_i32_0, %c0_i32_1 : i32, i32, i32
  }
  func.func @transform_3(%arg0: i32) -> (i32, i32, i32) {
    %c0_i32 = arith.constant 0 : i32
    %c0_i32_0 = arith.constant 0 : i32
    %c0_i32_1 = arith.constant 0 : i32
    %c0_i32_2 = arith.constant 0 : i32
    return %c0_i32, %c0_i32_0, %c0_i32_1 : i32, i32, i32
  }
  func.func @transform_4(%arg0: i32) -> (i32, i32) {
    %c0_i32 = arith.constant 0 : i32
    %c0_i32_0 = arith.constant 0 : i32
    %c0_i32_1 = arith.constant 0 : i32
    return %c0_i32, %c0_i32_0 : i32, i32
  }
  func.func @transform_5(%arg0: i32) -> (i32, i32) {
    %c0_i32 = arith.constant 0 : i32
    %c0_i32_0 = arith.constant 0 : i32
    return %c0_i32, %arg0 : i32, i32
  }
}

module attributes {stable_mosaic.version = 11 : i64} {
  func.func @wavenet_kernel(%arg0: i32, %arg1: memref<4x256xf32, #tpu.memory_space<vmem>>, %arg2: memref<32x4xf32, #tpu.memory_space<vmem>>, %arg3: memref<3x32x48xf32, #tpu.memory_space<vmem>>, %arg4: memref<3x20x16xf32, #tpu.memory_space<vmem>>, %arg5: memref<200x256xf32, #tpu.memory_space<vmem>>, %arg6: memref<4x256xf32, #tpu.memory_space<vmem>>) attributes {dimension_semantics = [#tpu.dimension_semantics<parallel>], iteration_bounds = array<i64: 2>, scalar_prefetch = 0 : i64, scratch_operands = 0 : i64, tpu.core_type = #tpu.core_type<tc>, window_params = [{transform_indices = @transform_0, window_bounds = array<i64: 4, 256>}, {pipeline_mode = #tpu.pipeline_mode<synchronous>, transform_indices = @transform_1, window_bounds = array<i64: 32, 4>}, {pipeline_mode = #tpu.pipeline_mode<synchronous>, transform_indices = @transform_2, window_bounds = array<i64: 3, 32, 48>}, {pipeline_mode = #tpu.pipeline_mode<synchronous>, transform_indices = @transform_3, window_bounds = array<i64: 3, 20, 16>}, {pipeline_mode = #tpu.pipeline_mode<synchronous>, transform_indices = @transform_4, window_bounds = array<i64: 200, 256>}, {transform_indices = @transform_5, window_bounds = array<i64: 4, 256>}]} {
    %0 = tpu.iota {dimensions = array<i32: 1>} : vector<1x128xi32>
    %1 = tpu.concatenate %0, %0 in 1 : vector<1x128xi32>, vector<1x128xi32> -> vector<1x256xi32>
    %c16_i32 = arith.constant 16 : i32
    %2 = vector.broadcast %c16_i32 : i32 to vector<1x256xi32>
    %3 = arith.cmpi slt, %1, %2 : vector<1x256xi32>
    %4 = arith.extui %3 : vector<1x256xi1> to vector<1x256xi32>
    %5 = arith.sitofp %4 : vector<1x256xi32> to vector<1x256xf32>
    %c0 = arith.constant 0 : index
    %c0_0 = arith.constant 0 : index
    %6 = vector.load %arg1[%c0, %c0_0] : memref<4x256xf32, #tpu.memory_space<vmem>>, vector<4x256xf32>
    %c0_1 = arith.constant 0 : index
    %c0_2 = arith.constant 0 : index
    %7 = vector.load %arg2[%c0_1, %c0_2] : memref<32x4xf32, #tpu.memory_space<vmem>>, vector<16x4xf32>
    %8 = vector.extract_strided_slice %6 {offsets = [0, 0], sizes = [4, 128], strides = [1, 1]} : vector<4x256xf32> to vector<4x128xf32>
    %9 = vector.shape_cast %8 : vector<4x128xf32> to vector<1x4x128xf32>
    %cst = arith.constant dense<0.000000e+00> : vector<1xf32>
    %10 = vector.multi_reduction <add>, %9, %cst [1, 2] : vector<1x4x128xf32> to vector<1xf32>
    %11 = vector.shape_cast %10 : vector<1xf32> to vector<1x1x1xf32>
    %12 = vector.extract %11[0, 0, 0] : f32 from vector<1x1x1xf32>
    %13 = arith.mulf %8, %8 : vector<4x128xf32>
    %14 = vector.shape_cast %13 : vector<4x128xf32> to vector<1x4x128xf32>
    %cst_3 = arith.constant dense<0.000000e+00> : vector<1xf32>
    %15 = vector.multi_reduction <add>, %14, %cst_3 [1, 2] : vector<1x4x128xf32> to vector<1xf32>
    %16 = vector.shape_cast %15 : vector<1xf32> to vector<1x1x1xf32>
    %17 = vector.extract %16[0, 0, 0] : f32 from vector<1x1x1xf32>
    %cst_4 = arith.constant 1.562500e-02 : f32
    %18 = arith.mulf %12, %cst_4 : f32
    %cst_5 = arith.constant 1.562500e-02 : f32
    %19 = arith.mulf %17, %cst_5 : f32
    %20 = arith.mulf %18, %18 : f32
    %21 = arith.subf %19, %20 : f32
    %cst_6 = arith.constant 0.000000e+00 : f32
    %22 = arith.maximumf %21, %cst_6 : f32
    %cst_7 = arith.constant 9.99999974E-6 : f32
    %23 = arith.addf %22, %cst_7 : f32
    %24 = math.rsqrt %23 : f32
    %25 = vector.extract_strided_slice %6 {offsets = [0, 128], sizes = [4, 128], strides = [1, 1]} : vector<4x256xf32> to vector<4x128xf32>
    %26 = vector.shape_cast %25 : vector<4x128xf32> to vector<1x4x128xf32>
    %cst_8 = arith.constant dense<0.000000e+00> : vector<1xf32>
    %27 = vector.multi_reduction <add>, %26, %cst_8 [1, 2] : vector<1x4x128xf32> to vector<1xf32>
    %28 = vector.shape_cast %27 : vector<1xf32> to vector<1x1x1xf32>
    %29 = vector.extract %28[0, 0, 0] : f32 from vector<1x1x1xf32>
    %30 = arith.mulf %25, %25 : vector<4x128xf32>
    %31 = vector.shape_cast %30 : vector<4x128xf32> to vector<1x4x128xf32>
    %cst_9 = arith.constant dense<0.000000e+00> : vector<1xf32>
    %32 = vector.multi_reduction <add>, %31, %cst_9 [1, 2] : vector<1x4x128xf32> to vector<1xf32>
    %33 = vector.shape_cast %32 : vector<1xf32> to vector<1x1x1xf32>
    %34 = vector.extract %33[0, 0, 0] : f32 from vector<1x1x1xf32>
    %cst_10 = arith.constant 1.562500e-02 : f32
    %35 = arith.mulf %29, %cst_10 : f32
    %cst_11 = arith.constant 1.562500e-02 : f32
    %36 = arith.mulf %34, %cst_11 : f32
    %37 = arith.mulf %35, %35 : f32
    %38 = arith.subf %36, %37 : f32
    %cst_12 = arith.constant 0.000000e+00 : f32
    %39 = arith.maximumf %38, %cst_12 : f32
    %cst_13 = arith.constant 9.99999974E-6 : f32
    %40 = arith.addf %39, %cst_13 : f32
    %41 = math.rsqrt %40 : f32
    %42 = vector.broadcast %18 : f32 to vector<1x128xf32>
    %43 = vector.broadcast %35 : f32 to vector<1x128xf32>
    %44 = tpu.concatenate %42, %43 in 1 : vector<1x128xf32>, vector<1x128xf32> -> vector<1x256xf32>
    %45 = vector.broadcast %24 : f32 to vector<1x128xf32>
    %46 = vector.broadcast %41 : f32 to vector<1x128xf32>
    %47 = tpu.concatenate %45, %46 in 1 : vector<1x128xf32>, vector<1x128xf32> -> vector<1x256xf32>
    %48 = arith.mulf %47, %5 : vector<1x256xf32>
    %49 = vector.broadcast %44 : vector<1x256xf32> to vector<4x256xf32>
    %50 = arith.subf %6, %49 : vector<4x256xf32>
    %51 = vector.broadcast %48 : vector<1x256xf32> to vector<4x256xf32>
    %52 = arith.mulf %50, %51 : vector<4x256xf32>
    %cst_14 = arith.constant dense<0.000000e+00> : vector<16x256xf32>
    %53 = tpu.matmul %7, %52, %cst_14 {dimension_numbers = #tpu.dot_dimension_numbers<[1], [0], [0], [1], [0, 0, 1, 1], [], []>} : vector<16x4xf32>, vector<4x256xf32>, vector<16x256xf32> -> vector<16x256xf32>
    %c0_15 = arith.constant 0 : index
    %c0_16 = arith.constant 0 : index
    %54 = vector.load %arg5[%c0_15, %c0_16] : memref<200x256xf32, #tpu.memory_space<vmem>>, vector<16x256xf32>
    %55 = arith.addf %53, %54 : vector<16x256xf32>
    %56 = vector.extract_strided_slice %55 {offsets = [0, 0], sizes = [16, 128], strides = [1, 1]} : vector<16x256xf32> to vector<16x128xf32>
    %57 = vector.shape_cast %56 : vector<16x128xf32> to vector<1x16x128xf32>
    %cst_17 = arith.constant dense<0.000000e+00> : vector<1xf32>
    %58 = vector.multi_reduction <add>, %57, %cst_17 [1, 2] : vector<1x16x128xf32> to vector<1xf32>
    %59 = vector.shape_cast %58 : vector<1xf32> to vector<1x1x1xf32>
    %60 = vector.extract %59[0, 0, 0] : f32 from vector<1x1x1xf32>
    %61 = arith.mulf %56, %56 : vector<16x128xf32>
    %62 = vector.shape_cast %61 : vector<16x128xf32> to vector<1x16x128xf32>
    %cst_18 = arith.constant dense<0.000000e+00> : vector<1xf32>
    %63 = vector.multi_reduction <add>, %62, %cst_18 [1, 2] : vector<1x16x128xf32> to vector<1xf32>
    %64 = vector.shape_cast %63 : vector<1xf32> to vector<1x1x1xf32>
    %65 = vector.extract %64[0, 0, 0] : f32 from vector<1x1x1xf32>
    %cst_19 = arith.constant 3.906250e-03 : f32
    %66 = arith.mulf %60, %cst_19 : f32
    %cst_20 = arith.constant 3.906250e-03 : f32
    %67 = arith.mulf %65, %cst_20 : f32
    %68 = arith.mulf %66, %66 : f32
    %69 = arith.subf %67, %68 : f32
    %cst_21 = arith.constant 0.000000e+00 : f32
    %70 = arith.maximumf %69, %cst_21 : f32
    %cst_22 = arith.constant 9.99999974E-6 : f32
    %71 = arith.addf %70, %cst_22 : f32
    %72 = math.rsqrt %71 : f32
    %73 = vector.extract_strided_slice %55 {offsets = [0, 128], sizes = [16, 128], strides = [1, 1]} : vector<16x256xf32> to vector<16x128xf32>
    %74 = vector.shape_cast %73 : vector<16x128xf32> to vector<1x16x128xf32>
    %cst_23 = arith.constant dense<0.000000e+00> : vector<1xf32>
    %75 = vector.multi_reduction <add>, %74, %cst_23 [1, 2] : vector<1x16x128xf32> to vector<1xf32>
    %76 = vector.shape_cast %75 : vector<1xf32> to vector<1x1x1xf32>
    %77 = vector.extract %76[0, 0, 0] : f32 from vector<1x1x1xf32>
    %78 = arith.mulf %73, %73 : vector<16x128xf32>
    %79 = vector.shape_cast %78 : vector<16x128xf32> to vector<1x16x128xf32>
    %cst_24 = arith.constant dense<0.000000e+00> : vector<1xf32>
    %80 = vector.multi_reduction <add>, %79, %cst_24 [1, 2] : vector<1x16x128xf32> to vector<1xf32>
    %81 = vector.shape_cast %80 : vector<1xf32> to vector<1x1x1xf32>
    %82 = vector.extract %81[0, 0, 0] : f32 from vector<1x1x1xf32>
    %cst_25 = arith.constant 3.906250e-03 : f32
    %83 = arith.mulf %77, %cst_25 : f32
    %cst_26 = arith.constant 3.906250e-03 : f32
    %84 = arith.mulf %82, %cst_26 : f32
    %85 = arith.mulf %83, %83 : f32
    %86 = arith.subf %84, %85 : f32
    %cst_27 = arith.constant 0.000000e+00 : f32
    %87 = arith.maximumf %86, %cst_27 : f32
    %cst_28 = arith.constant 9.99999974E-6 : f32
    %88 = arith.addf %87, %cst_28 : f32
    %89 = math.rsqrt %88 : f32
    %90 = vector.broadcast %66 : f32 to vector<1x128xf32>
    %91 = vector.broadcast %83 : f32 to vector<1x128xf32>
    %92 = tpu.concatenate %90, %91 in 1 : vector<1x128xf32>, vector<1x128xf32> -> vector<1x256xf32>
    %93 = vector.broadcast %72 : f32 to vector<1x128xf32>
    %94 = vector.broadcast %89 : f32 to vector<1x128xf32>
    %95 = tpu.concatenate %93, %94 in 1 : vector<1x128xf32>, vector<1x128xf32> -> vector<1x256xf32>
    %96 = arith.mulf %95, %5 : vector<1x256xf32>
    %97 = vector.broadcast %92 : vector<1x256xf32> to vector<16x256xf32>
    %98 = arith.subf %55, %97 : vector<16x256xf32>
    %99 = vector.broadcast %96 : vector<1x256xf32> to vector<16x256xf32>
    %100 = arith.mulf %98, %99 : vector<16x256xf32>
    %c2_i32 = arith.constant 2 : i32
    %101 = tpu.dynamic_rotate %100 by %c2_i32 dim 1 : vector<16x256xf32>, i32 -> vector<16x256xf32>
    %c1_i32 = arith.constant 1 : i32
    %102 = tpu.dynamic_rotate %100 by %c1_i32 dim 1 : vector<16x256xf32>, i32 -> vector<16x256xf32>
    %103 = tpu.concatenate %101, %102, %100 in 0 : vector<16x256xf32>, vector<16x256xf32>, vector<16x256xf32> -> vector<48x256xf32>
    %c0_29 = arith.constant 0 : index
    %c0_30 = arith.constant 0 : index
    %c0_31 = arith.constant 0 : index
    %104 = vector.load %arg3[%c0_29, %c0_30, %c0_31] : memref<3x32x48xf32, #tpu.memory_space<vmem>>, vector<1x32x48xf32>
    %105 = vector.shape_cast %104 : vector<1x32x48xf32> to vector<32x48xf32>
    %cst_32 = arith.constant dense<0.000000e+00> : vector<32x256xf32>
    %106 = tpu.matmul %105, %103, %cst_32 {dimension_numbers = #tpu.dot_dimension_numbers<[1], [0], [0], [1], [0, 0, 1, 1], [], []>} : vector<32x48xf32>, vector<48x256xf32>, vector<32x256xf32> -> vector<32x256xf32>
    %c16 = arith.constant 16 : index
    %c0_33 = arith.constant 0 : index
    %107 = vector.load %arg5[%c16, %c0_33] : memref<200x256xf32, #tpu.memory_space<vmem>>, vector<32x256xf32>
    %108 = arith.addf %106, %107 : vector<32x256xf32>
    %109 = vector.extract_strided_slice %108 {offsets = [0, 0], sizes = [16, 256], strides = [1, 1]} : vector<32x256xf32> to vector<16x256xf32>
    %110 = arith.negf %109 : vector<16x256xf32>
    %111 = math.exp %110 : vector<16x256xf32>
    %cst_34 = arith.constant 1.000000e+00 : f32
    %112 = vector.broadcast %cst_34 : f32 to vector<16x256xf32>
    %113 = arith.addf %112, %111 : vector<16x256xf32>
    %114 = arith.divf %112, %113 : vector<16x256xf32>
    %115 = vector.extract_strided_slice %108 {offsets = [16, 0], sizes = [16, 256], strides = [1, 1]} : vector<32x256xf32> to vector<16x256xf32>
    %116 = math.tanh %115 : vector<16x256xf32>
    %117 = arith.mulf %114, %116 : vector<16x256xf32>
    %118 = vector.broadcast %5 : vector<1x256xf32> to vector<16x256xf32>
    %119 = arith.mulf %117, %118 : vector<16x256xf32>
    %c0_35 = arith.constant 0 : index
    %c0_36 = arith.constant 0 : index
    %c0_37 = arith.constant 0 : index
    %120 = vector.load %arg4[%c0_35, %c0_36, %c0_37] : memref<3x20x16xf32, #tpu.memory_space<vmem>>, vector<1x20x16xf32>
    %121 = vector.shape_cast %120 : vector<1x20x16xf32> to vector<20x16xf32>
    %122 = vector.extract_strided_slice %119 {offsets = [0, 0], sizes = [16, 128], strides = [1, 1]} : vector<16x256xf32> to vector<16x128xf32>
    %123 = vector.shape_cast %122 : vector<16x128xf32> to vector<1x16x128xf32>
    %cst_38 = arith.constant dense<0.000000e+00> : vector<1xf32>
    %124 = vector.multi_reduction <add>, %123, %cst_38 [1, 2] : vector<1x16x128xf32> to vector<1xf32>
    %125 = vector.shape_cast %124 : vector<1xf32> to vector<1x1x1xf32>
    %126 = vector.extract %125[0, 0, 0] : f32 from vector<1x1x1xf32>
    %127 = arith.mulf %122, %122 : vector<16x128xf32>
    %128 = vector.shape_cast %127 : vector<16x128xf32> to vector<1x16x128xf32>
    %cst_39 = arith.constant dense<0.000000e+00> : vector<1xf32>
    %129 = vector.multi_reduction <add>, %128, %cst_39 [1, 2] : vector<1x16x128xf32> to vector<1xf32>
    %130 = vector.shape_cast %129 : vector<1xf32> to vector<1x1x1xf32>
    %131 = vector.extract %130[0, 0, 0] : f32 from vector<1x1x1xf32>
    %cst_40 = arith.constant 3.906250e-03 : f32
    %132 = arith.mulf %126, %cst_40 : f32
    %cst_41 = arith.constant 3.906250e-03 : f32
    %133 = arith.mulf %131, %cst_41 : f32
    %134 = arith.mulf %132, %132 : f32
    %135 = arith.subf %133, %134 : f32
    %cst_42 = arith.constant 0.000000e+00 : f32
    %136 = arith.maximumf %135, %cst_42 : f32
    %cst_43 = arith.constant 9.99999974E-6 : f32
    %137 = arith.addf %136, %cst_43 : f32
    %138 = math.rsqrt %137 : f32
    %139 = vector.extract_strided_slice %119 {offsets = [0, 128], sizes = [16, 128], strides = [1, 1]} : vector<16x256xf32> to vector<16x128xf32>
    %140 = vector.shape_cast %139 : vector<16x128xf32> to vector<1x16x128xf32>
    %cst_44 = arith.constant dense<0.000000e+00> : vector<1xf32>
    %141 = vector.multi_reduction <add>, %140, %cst_44 [1, 2] : vector<1x16x128xf32> to vector<1xf32>
    %142 = vector.shape_cast %141 : vector<1xf32> to vector<1x1x1xf32>
    %143 = vector.extract %142[0, 0, 0] : f32 from vector<1x1x1xf32>
    %144 = arith.mulf %139, %139 : vector<16x128xf32>
    %145 = vector.shape_cast %144 : vector<16x128xf32> to vector<1x16x128xf32>
    %cst_45 = arith.constant dense<0.000000e+00> : vector<1xf32>
    %146 = vector.multi_reduction <add>, %145, %cst_45 [1, 2] : vector<1x16x128xf32> to vector<1xf32>
    %147 = vector.shape_cast %146 : vector<1xf32> to vector<1x1x1xf32>
    %148 = vector.extract %147[0, 0, 0] : f32 from vector<1x1x1xf32>
    %cst_46 = arith.constant 3.906250e-03 : f32
    %149 = arith.mulf %143, %cst_46 : f32
    %cst_47 = arith.constant 3.906250e-03 : f32
    %150 = arith.mulf %148, %cst_47 : f32
    %151 = arith.mulf %149, %149 : f32
    %152 = arith.subf %150, %151 : f32
    %cst_48 = arith.constant 0.000000e+00 : f32
    %153 = arith.maximumf %152, %cst_48 : f32
    %cst_49 = arith.constant 9.99999974E-6 : f32
    %154 = arith.addf %153, %cst_49 : f32
    %155 = math.rsqrt %154 : f32
    %156 = vector.broadcast %132 : f32 to vector<1x128xf32>
    %157 = vector.broadcast %149 : f32 to vector<1x128xf32>
    %158 = tpu.concatenate %156, %157 in 1 : vector<1x128xf32>, vector<1x128xf32> -> vector<1x256xf32>
    %159 = vector.broadcast %138 : f32 to vector<1x128xf32>
    %160 = vector.broadcast %155 : f32 to vector<1x128xf32>
    %161 = tpu.concatenate %159, %160 in 1 : vector<1x128xf32>, vector<1x128xf32> -> vector<1x256xf32>
    %162 = arith.mulf %161, %5 : vector<1x256xf32>
    %163 = vector.broadcast %158 : vector<1x256xf32> to vector<16x256xf32>
    %164 = arith.subf %119, %163 : vector<16x256xf32>
    %165 = vector.broadcast %162 : vector<1x256xf32> to vector<16x256xf32>
    %166 = arith.mulf %164, %165 : vector<16x256xf32>
    %cst_50 = arith.constant dense<0.000000e+00> : vector<20x256xf32>
    %167 = tpu.matmul %121, %166, %cst_50 {dimension_numbers = #tpu.dot_dimension_numbers<[1], [0], [0], [1], [0, 0, 1, 1], [], []>} : vector<20x16xf32>, vector<16x256xf32>, vector<20x256xf32> -> vector<20x256xf32>
    %c48 = arith.constant 48 : index
    %c0_51 = arith.constant 0 : index
    %168 = vector.load %arg5[%c48, %c0_51] : memref<200x256xf32, #tpu.memory_space<vmem>>, vector<20x256xf32>
    %169 = arith.addf %167, %168 : vector<20x256xf32>
    %170 = vector.extract_strided_slice %169 {offsets = [0, 0], sizes = [16, 256], strides = [1, 1]} : vector<20x256xf32> to vector<16x256xf32>
    %171 = vector.extract_strided_slice %169 {offsets = [16, 0], sizes = [4, 256], strides = [1, 1]} : vector<20x256xf32> to vector<4x256xf32>
    %172 = vector.extract_strided_slice %170 {offsets = [0, 0], sizes = [16, 128], strides = [1, 1]} : vector<16x256xf32> to vector<16x128xf32>
    %173 = vector.shape_cast %172 : vector<16x128xf32> to vector<1x16x128xf32>
    %cst_52 = arith.constant dense<0.000000e+00> : vector<1xf32>
    %174 = vector.multi_reduction <add>, %173, %cst_52 [1, 2] : vector<1x16x128xf32> to vector<1xf32>
    %175 = vector.shape_cast %174 : vector<1xf32> to vector<1x1x1xf32>
    %176 = vector.extract %175[0, 0, 0] : f32 from vector<1x1x1xf32>
    %177 = arith.mulf %172, %172 : vector<16x128xf32>
    %178 = vector.shape_cast %177 : vector<16x128xf32> to vector<1x16x128xf32>
    %cst_53 = arith.constant dense<0.000000e+00> : vector<1xf32>
    %179 = vector.multi_reduction <add>, %178, %cst_53 [1, 2] : vector<1x16x128xf32> to vector<1xf32>
    %180 = vector.shape_cast %179 : vector<1xf32> to vector<1x1x1xf32>
    %181 = vector.extract %180[0, 0, 0] : f32 from vector<1x1x1xf32>
    %cst_54 = arith.constant 3.906250e-03 : f32
    %182 = arith.mulf %176, %cst_54 : f32
    %cst_55 = arith.constant 3.906250e-03 : f32
    %183 = arith.mulf %181, %cst_55 : f32
    %184 = arith.mulf %182, %182 : f32
    %185 = arith.subf %183, %184 : f32
    %cst_56 = arith.constant 0.000000e+00 : f32
    %186 = arith.maximumf %185, %cst_56 : f32
    %cst_57 = arith.constant 9.99999974E-6 : f32
    %187 = arith.addf %186, %cst_57 : f32
    %188 = math.rsqrt %187 : f32
    %189 = vector.extract_strided_slice %170 {offsets = [0, 128], sizes = [16, 128], strides = [1, 1]} : vector<16x256xf32> to vector<16x128xf32>
    %190 = vector.shape_cast %189 : vector<16x128xf32> to vector<1x16x128xf32>
    %cst_58 = arith.constant dense<0.000000e+00> : vector<1xf32>
    %191 = vector.multi_reduction <add>, %190, %cst_58 [1, 2] : vector<1x16x128xf32> to vector<1xf32>
    %192 = vector.shape_cast %191 : vector<1xf32> to vector<1x1x1xf32>
    %193 = vector.extract %192[0, 0, 0] : f32 from vector<1x1x1xf32>
    %194 = arith.mulf %189, %189 : vector<16x128xf32>
    %195 = vector.shape_cast %194 : vector<16x128xf32> to vector<1x16x128xf32>
    %cst_59 = arith.constant dense<0.000000e+00> : vector<1xf32>
    %196 = vector.multi_reduction <add>, %195, %cst_59 [1, 2] : vector<1x16x128xf32> to vector<1xf32>
    %197 = vector.shape_cast %196 : vector<1xf32> to vector<1x1x1xf32>
    %198 = vector.extract %197[0, 0, 0] : f32 from vector<1x1x1xf32>
    %cst_60 = arith.constant 3.906250e-03 : f32
    %199 = arith.mulf %193, %cst_60 : f32
    %cst_61 = arith.constant 3.906250e-03 : f32
    %200 = arith.mulf %198, %cst_61 : f32
    %201 = arith.mulf %199, %199 : f32
    %202 = arith.subf %200, %201 : f32
    %cst_62 = arith.constant 0.000000e+00 : f32
    %203 = arith.maximumf %202, %cst_62 : f32
    %cst_63 = arith.constant 9.99999974E-6 : f32
    %204 = arith.addf %203, %cst_63 : f32
    %205 = math.rsqrt %204 : f32
    %206 = vector.broadcast %182 : f32 to vector<1x128xf32>
    %207 = vector.broadcast %199 : f32 to vector<1x128xf32>
    %208 = tpu.concatenate %206, %207 in 1 : vector<1x128xf32>, vector<1x128xf32> -> vector<1x256xf32>
    %209 = vector.broadcast %188 : f32 to vector<1x128xf32>
    %210 = vector.broadcast %205 : f32 to vector<1x128xf32>
    %211 = tpu.concatenate %209, %210 in 1 : vector<1x128xf32>, vector<1x128xf32> -> vector<1x256xf32>
    %212 = arith.mulf %211, %5 : vector<1x256xf32>
    %213 = vector.broadcast %208 : vector<1x256xf32> to vector<16x256xf32>
    %214 = arith.subf %170, %213 : vector<16x256xf32>
    %215 = vector.broadcast %212 : vector<1x256xf32> to vector<16x256xf32>
    %216 = arith.mulf %214, %215 : vector<16x256xf32>
    %c4_i32 = arith.constant 4 : i32
    %217 = tpu.dynamic_rotate %216 by %c4_i32 dim 1 : vector<16x256xf32>, i32 -> vector<16x256xf32>
    %c2_i32_64 = arith.constant 2 : i32
    %218 = tpu.dynamic_rotate %216 by %c2_i32_64 dim 1 : vector<16x256xf32>, i32 -> vector<16x256xf32>
    %219 = tpu.concatenate %217, %218, %216 in 0 : vector<16x256xf32>, vector<16x256xf32>, vector<16x256xf32> -> vector<48x256xf32>
    %c1 = arith.constant 1 : index
    %c0_65 = arith.constant 0 : index
    %c0_66 = arith.constant 0 : index
    %220 = vector.load %arg3[%c1, %c0_65, %c0_66] : memref<3x32x48xf32, #tpu.memory_space<vmem>>, vector<1x32x48xf32>
    %221 = vector.shape_cast %220 : vector<1x32x48xf32> to vector<32x48xf32>
    %cst_67 = arith.constant dense<0.000000e+00> : vector<32x256xf32>
    %222 = tpu.matmul %221, %219, %cst_67 {dimension_numbers = #tpu.dot_dimension_numbers<[1], [0], [0], [1], [0, 0, 1, 1], [], []>} : vector<32x48xf32>, vector<48x256xf32>, vector<32x256xf32> -> vector<32x256xf32>
    %c72 = arith.constant 72 : index
    %c0_68 = arith.constant 0 : index
    %223 = vector.load %arg5[%c72, %c0_68] : memref<200x256xf32, #tpu.memory_space<vmem>>, vector<32x256xf32>
    %224 = arith.addf %222, %223 : vector<32x256xf32>
    %225 = vector.extract_strided_slice %224 {offsets = [0, 0], sizes = [16, 256], strides = [1, 1]} : vector<32x256xf32> to vector<16x256xf32>
    %226 = arith.negf %225 : vector<16x256xf32>
    %227 = math.exp %226 : vector<16x256xf32>
    %cst_69 = arith.constant 1.000000e+00 : f32
    %228 = vector.broadcast %cst_69 : f32 to vector<16x256xf32>
    %229 = arith.addf %228, %227 : vector<16x256xf32>
    %230 = arith.divf %228, %229 : vector<16x256xf32>
    %231 = vector.extract_strided_slice %224 {offsets = [16, 0], sizes = [16, 256], strides = [1, 1]} : vector<32x256xf32> to vector<16x256xf32>
    %232 = math.tanh %231 : vector<16x256xf32>
    %233 = arith.mulf %230, %232 : vector<16x256xf32>
    %234 = vector.broadcast %5 : vector<1x256xf32> to vector<16x256xf32>
    %235 = arith.mulf %233, %234 : vector<16x256xf32>
    %c1_70 = arith.constant 1 : index
    %c0_71 = arith.constant 0 : index
    %c0_72 = arith.constant 0 : index
    %236 = vector.load %arg4[%c1_70, %c0_71, %c0_72] : memref<3x20x16xf32, #tpu.memory_space<vmem>>, vector<1x20x16xf32>
    %237 = vector.shape_cast %236 : vector<1x20x16xf32> to vector<20x16xf32>
    %238 = vector.extract_strided_slice %235 {offsets = [0, 0], sizes = [16, 128], strides = [1, 1]} : vector<16x256xf32> to vector<16x128xf32>
    %239 = vector.shape_cast %238 : vector<16x128xf32> to vector<1x16x128xf32>
    %cst_73 = arith.constant dense<0.000000e+00> : vector<1xf32>
    %240 = vector.multi_reduction <add>, %239, %cst_73 [1, 2] : vector<1x16x128xf32> to vector<1xf32>
    %241 = vector.shape_cast %240 : vector<1xf32> to vector<1x1x1xf32>
    %242 = vector.extract %241[0, 0, 0] : f32 from vector<1x1x1xf32>
    %243 = arith.mulf %238, %238 : vector<16x128xf32>
    %244 = vector.shape_cast %243 : vector<16x128xf32> to vector<1x16x128xf32>
    %cst_74 = arith.constant dense<0.000000e+00> : vector<1xf32>
    %245 = vector.multi_reduction <add>, %244, %cst_74 [1, 2] : vector<1x16x128xf32> to vector<1xf32>
    %246 = vector.shape_cast %245 : vector<1xf32> to vector<1x1x1xf32>
    %247 = vector.extract %246[0, 0, 0] : f32 from vector<1x1x1xf32>
    %cst_75 = arith.constant 3.906250e-03 : f32
    %248 = arith.mulf %242, %cst_75 : f32
    %cst_76 = arith.constant 3.906250e-03 : f32
    %249 = arith.mulf %247, %cst_76 : f32
    %250 = arith.mulf %248, %248 : f32
    %251 = arith.subf %249, %250 : f32
    %cst_77 = arith.constant 0.000000e+00 : f32
    %252 = arith.maximumf %251, %cst_77 : f32
    %cst_78 = arith.constant 9.99999974E-6 : f32
    %253 = arith.addf %252, %cst_78 : f32
    %254 = math.rsqrt %253 : f32
    %255 = vector.extract_strided_slice %235 {offsets = [0, 128], sizes = [16, 128], strides = [1, 1]} : vector<16x256xf32> to vector<16x128xf32>
    %256 = vector.shape_cast %255 : vector<16x128xf32> to vector<1x16x128xf32>
    %cst_79 = arith.constant dense<0.000000e+00> : vector<1xf32>
    %257 = vector.multi_reduction <add>, %256, %cst_79 [1, 2] : vector<1x16x128xf32> to vector<1xf32>
    %258 = vector.shape_cast %257 : vector<1xf32> to vector<1x1x1xf32>
    %259 = vector.extract %258[0, 0, 0] : f32 from vector<1x1x1xf32>
    %260 = arith.mulf %255, %255 : vector<16x128xf32>
    %261 = vector.shape_cast %260 : vector<16x128xf32> to vector<1x16x128xf32>
    %cst_80 = arith.constant dense<0.000000e+00> : vector<1xf32>
    %262 = vector.multi_reduction <add>, %261, %cst_80 [1, 2] : vector<1x16x128xf32> to vector<1xf32>
    %263 = vector.shape_cast %262 : vector<1xf32> to vector<1x1x1xf32>
    %264 = vector.extract %263[0, 0, 0] : f32 from vector<1x1x1xf32>
    %cst_81 = arith.constant 3.906250e-03 : f32
    %265 = arith.mulf %259, %cst_81 : f32
    %cst_82 = arith.constant 3.906250e-03 : f32
    %266 = arith.mulf %264, %cst_82 : f32
    %267 = arith.mulf %265, %265 : f32
    %268 = arith.subf %266, %267 : f32
    %cst_83 = arith.constant 0.000000e+00 : f32
    %269 = arith.maximumf %268, %cst_83 : f32
    %cst_84 = arith.constant 9.99999974E-6 : f32
    %270 = arith.addf %269, %cst_84 : f32
    %271 = math.rsqrt %270 : f32
    %272 = vector.broadcast %248 : f32 to vector<1x128xf32>
    %273 = vector.broadcast %265 : f32 to vector<1x128xf32>
    %274 = tpu.concatenate %272, %273 in 1 : vector<1x128xf32>, vector<1x128xf32> -> vector<1x256xf32>
    %275 = vector.broadcast %254 : f32 to vector<1x128xf32>
    %276 = vector.broadcast %271 : f32 to vector<1x128xf32>
    %277 = tpu.concatenate %275, %276 in 1 : vector<1x128xf32>, vector<1x128xf32> -> vector<1x256xf32>
    %278 = arith.mulf %277, %5 : vector<1x256xf32>
    %279 = vector.broadcast %274 : vector<1x256xf32> to vector<16x256xf32>
    %280 = arith.subf %235, %279 : vector<16x256xf32>
    %281 = vector.broadcast %278 : vector<1x256xf32> to vector<16x256xf32>
    %282 = arith.mulf %280, %281 : vector<16x256xf32>
    %cst_85 = arith.constant dense<0.000000e+00> : vector<20x256xf32>
    %283 = tpu.matmul %237, %282, %cst_85 {dimension_numbers = #tpu.dot_dimension_numbers<[1], [0], [0], [1], [0, 0, 1, 1], [], []>} : vector<20x16xf32>, vector<16x256xf32>, vector<20x256xf32> -> vector<20x256xf32>
    %c104 = arith.constant 104 : index
    %c0_86 = arith.constant 0 : index
    %284 = vector.load %arg5[%c104, %c0_86] : memref<200x256xf32, #tpu.memory_space<vmem>>, vector<20x256xf32>
    %285 = arith.addf %283, %284 : vector<20x256xf32>
    %286 = vector.extract_strided_slice %285 {offsets = [0, 0], sizes = [16, 256], strides = [1, 1]} : vector<20x256xf32> to vector<16x256xf32>
    %287 = vector.extract_strided_slice %285 {offsets = [16, 0], sizes = [4, 256], strides = [1, 1]} : vector<20x256xf32> to vector<4x256xf32>
    %288 = arith.addf %171, %287 : vector<4x256xf32>
    %289 = vector.extract_strided_slice %286 {offsets = [0, 0], sizes = [16, 128], strides = [1, 1]} : vector<16x256xf32> to vector<16x128xf32>
    %290 = vector.shape_cast %289 : vector<16x128xf32> to vector<1x16x128xf32>
    %cst_87 = arith.constant dense<0.000000e+00> : vector<1xf32>
    %291 = vector.multi_reduction <add>, %290, %cst_87 [1, 2] : vector<1x16x128xf32> to vector<1xf32>
    %292 = vector.shape_cast %291 : vector<1xf32> to vector<1x1x1xf32>
    %293 = vector.extract %292[0, 0, 0] : f32 from vector<1x1x1xf32>
    %294 = arith.mulf %289, %289 : vector<16x128xf32>
    %295 = vector.shape_cast %294 : vector<16x128xf32> to vector<1x16x128xf32>
    %cst_88 = arith.constant dense<0.000000e+00> : vector<1xf32>
    %296 = vector.multi_reduction <add>, %295, %cst_88 [1, 2] : vector<1x16x128xf32> to vector<1xf32>
    %297 = vector.shape_cast %296 : vector<1xf32> to vector<1x1x1xf32>
    %298 = vector.extract %297[0, 0, 0] : f32 from vector<1x1x1xf32>
    %cst_89 = arith.constant 3.906250e-03 : f32
    %299 = arith.mulf %293, %cst_89 : f32
    %cst_90 = arith.constant 3.906250e-03 : f32
    %300 = arith.mulf %298, %cst_90 : f32
    %301 = arith.mulf %299, %299 : f32
    %302 = arith.subf %300, %301 : f32
    %cst_91 = arith.constant 0.000000e+00 : f32
    %303 = arith.maximumf %302, %cst_91 : f32
    %cst_92 = arith.constant 9.99999974E-6 : f32
    %304 = arith.addf %303, %cst_92 : f32
    %305 = math.rsqrt %304 : f32
    %306 = vector.extract_strided_slice %286 {offsets = [0, 128], sizes = [16, 128], strides = [1, 1]} : vector<16x256xf32> to vector<16x128xf32>
    %307 = vector.shape_cast %306 : vector<16x128xf32> to vector<1x16x128xf32>
    %cst_93 = arith.constant dense<0.000000e+00> : vector<1xf32>
    %308 = vector.multi_reduction <add>, %307, %cst_93 [1, 2] : vector<1x16x128xf32> to vector<1xf32>
    %309 = vector.shape_cast %308 : vector<1xf32> to vector<1x1x1xf32>
    %310 = vector.extract %309[0, 0, 0] : f32 from vector<1x1x1xf32>
    %311 = arith.mulf %306, %306 : vector<16x128xf32>
    %312 = vector.shape_cast %311 : vector<16x128xf32> to vector<1x16x128xf32>
    %cst_94 = arith.constant dense<0.000000e+00> : vector<1xf32>
    %313 = vector.multi_reduction <add>, %312, %cst_94 [1, 2] : vector<1x16x128xf32> to vector<1xf32>
    %314 = vector.shape_cast %313 : vector<1xf32> to vector<1x1x1xf32>
    %315 = vector.extract %314[0, 0, 0] : f32 from vector<1x1x1xf32>
    %cst_95 = arith.constant 3.906250e-03 : f32
    %316 = arith.mulf %310, %cst_95 : f32
    %cst_96 = arith.constant 3.906250e-03 : f32
    %317 = arith.mulf %315, %cst_96 : f32
    %318 = arith.mulf %316, %316 : f32
    %319 = arith.subf %317, %318 : f32
    %cst_97 = arith.constant 0.000000e+00 : f32
    %320 = arith.maximumf %319, %cst_97 : f32
    %cst_98 = arith.constant 9.99999974E-6 : f32
    %321 = arith.addf %320, %cst_98 : f32
    %322 = math.rsqrt %321 : f32
    %323 = vector.broadcast %299 : f32 to vector<1x128xf32>
    %324 = vector.broadcast %316 : f32 to vector<1x128xf32>
    %325 = tpu.concatenate %323, %324 in 1 : vector<1x128xf32>, vector<1x128xf32> -> vector<1x256xf32>
    %326 = vector.broadcast %305 : f32 to vector<1x128xf32>
    %327 = vector.broadcast %322 : f32 to vector<1x128xf32>
    %328 = tpu.concatenate %326, %327 in 1 : vector<1x128xf32>, vector<1x128xf32> -> vector<1x256xf32>
    %329 = arith.mulf %328, %5 : vector<1x256xf32>
    %330 = vector.broadcast %325 : vector<1x256xf32> to vector<16x256xf32>
    %331 = arith.subf %286, %330 : vector<16x256xf32>
    %332 = vector.broadcast %329 : vector<1x256xf32> to vector<16x256xf32>
    %333 = arith.mulf %331, %332 : vector<16x256xf32>
    %c8_i32 = arith.constant 8 : i32
    %334 = tpu.dynamic_rotate %333 by %c8_i32 dim 1 : vector<16x256xf32>, i32 -> vector<16x256xf32>
    %c4_i32_99 = arith.constant 4 : i32
    %335 = tpu.dynamic_rotate %333 by %c4_i32_99 dim 1 : vector<16x256xf32>, i32 -> vector<16x256xf32>
    %336 = tpu.concatenate %334, %335, %333 in 0 : vector<16x256xf32>, vector<16x256xf32>, vector<16x256xf32> -> vector<48x256xf32>
    %c2 = arith.constant 2 : index
    %c0_100 = arith.constant 0 : index
    %c0_101 = arith.constant 0 : index
    %337 = vector.load %arg3[%c2, %c0_100, %c0_101] : memref<3x32x48xf32, #tpu.memory_space<vmem>>, vector<1x32x48xf32>
    %338 = vector.shape_cast %337 : vector<1x32x48xf32> to vector<32x48xf32>
    %cst_102 = arith.constant dense<0.000000e+00> : vector<32x256xf32>
    %339 = tpu.matmul %338, %336, %cst_102 {dimension_numbers = #tpu.dot_dimension_numbers<[1], [0], [0], [1], [0, 0, 1, 1], [], []>} : vector<32x48xf32>, vector<48x256xf32>, vector<32x256xf32> -> vector<32x256xf32>
    %c128 = arith.constant 128 : index
    %c0_103 = arith.constant 0 : index
    %340 = vector.load %arg5[%c128, %c0_103] : memref<200x256xf32, #tpu.memory_space<vmem>>, vector<32x256xf32>
    %341 = arith.addf %339, %340 : vector<32x256xf32>
    %342 = vector.extract_strided_slice %341 {offsets = [0, 0], sizes = [16, 256], strides = [1, 1]} : vector<32x256xf32> to vector<16x256xf32>
    %343 = arith.negf %342 : vector<16x256xf32>
    %344 = math.exp %343 : vector<16x256xf32>
    %cst_104 = arith.constant 1.000000e+00 : f32
    %345 = vector.broadcast %cst_104 : f32 to vector<16x256xf32>
    %346 = arith.addf %345, %344 : vector<16x256xf32>
    %347 = arith.divf %345, %346 : vector<16x256xf32>
    %348 = vector.extract_strided_slice %341 {offsets = [16, 0], sizes = [16, 256], strides = [1, 1]} : vector<32x256xf32> to vector<16x256xf32>
    %349 = math.tanh %348 : vector<16x256xf32>
    %350 = arith.mulf %347, %349 : vector<16x256xf32>
    %351 = vector.broadcast %5 : vector<1x256xf32> to vector<16x256xf32>
    %352 = arith.mulf %350, %351 : vector<16x256xf32>
    %c2_105 = arith.constant 2 : index
    %c0_106 = arith.constant 0 : index
    %c0_107 = arith.constant 0 : index
    %353 = vector.load %arg4[%c2_105, %c0_106, %c0_107] : memref<3x20x16xf32, #tpu.memory_space<vmem>>, vector<1x20x16xf32>
    %354 = vector.shape_cast %353 : vector<1x20x16xf32> to vector<20x16xf32>
    %355 = vector.extract_strided_slice %352 {offsets = [0, 0], sizes = [16, 128], strides = [1, 1]} : vector<16x256xf32> to vector<16x128xf32>
    %356 = vector.shape_cast %355 : vector<16x128xf32> to vector<1x16x128xf32>
    %cst_108 = arith.constant dense<0.000000e+00> : vector<1xf32>
    %357 = vector.multi_reduction <add>, %356, %cst_108 [1, 2] : vector<1x16x128xf32> to vector<1xf32>
    %358 = vector.shape_cast %357 : vector<1xf32> to vector<1x1x1xf32>
    %359 = vector.extract %358[0, 0, 0] : f32 from vector<1x1x1xf32>
    %360 = arith.mulf %355, %355 : vector<16x128xf32>
    %361 = vector.shape_cast %360 : vector<16x128xf32> to vector<1x16x128xf32>
    %cst_109 = arith.constant dense<0.000000e+00> : vector<1xf32>
    %362 = vector.multi_reduction <add>, %361, %cst_109 [1, 2] : vector<1x16x128xf32> to vector<1xf32>
    %363 = vector.shape_cast %362 : vector<1xf32> to vector<1x1x1xf32>
    %364 = vector.extract %363[0, 0, 0] : f32 from vector<1x1x1xf32>
    %cst_110 = arith.constant 3.906250e-03 : f32
    %365 = arith.mulf %359, %cst_110 : f32
    %cst_111 = arith.constant 3.906250e-03 : f32
    %366 = arith.mulf %364, %cst_111 : f32
    %367 = arith.mulf %365, %365 : f32
    %368 = arith.subf %366, %367 : f32
    %cst_112 = arith.constant 0.000000e+00 : f32
    %369 = arith.maximumf %368, %cst_112 : f32
    %cst_113 = arith.constant 9.99999974E-6 : f32
    %370 = arith.addf %369, %cst_113 : f32
    %371 = math.rsqrt %370 : f32
    %372 = vector.extract_strided_slice %352 {offsets = [0, 128], sizes = [16, 128], strides = [1, 1]} : vector<16x256xf32> to vector<16x128xf32>
    %373 = vector.shape_cast %372 : vector<16x128xf32> to vector<1x16x128xf32>
    %cst_114 = arith.constant dense<0.000000e+00> : vector<1xf32>
    %374 = vector.multi_reduction <add>, %373, %cst_114 [1, 2] : vector<1x16x128xf32> to vector<1xf32>
    %375 = vector.shape_cast %374 : vector<1xf32> to vector<1x1x1xf32>
    %376 = vector.extract %375[0, 0, 0] : f32 from vector<1x1x1xf32>
    %377 = arith.mulf %372, %372 : vector<16x128xf32>
    %378 = vector.shape_cast %377 : vector<16x128xf32> to vector<1x16x128xf32>
    %cst_115 = arith.constant dense<0.000000e+00> : vector<1xf32>
    %379 = vector.multi_reduction <add>, %378, %cst_115 [1, 2] : vector<1x16x128xf32> to vector<1xf32>
    %380 = vector.shape_cast %379 : vector<1xf32> to vector<1x1x1xf32>
    %381 = vector.extract %380[0, 0, 0] : f32 from vector<1x1x1xf32>
    %cst_116 = arith.constant 3.906250e-03 : f32
    %382 = arith.mulf %376, %cst_116 : f32
    %cst_117 = arith.constant 3.906250e-03 : f32
    %383 = arith.mulf %381, %cst_117 : f32
    %384 = arith.mulf %382, %382 : f32
    %385 = arith.subf %383, %384 : f32
    %cst_118 = arith.constant 0.000000e+00 : f32
    %386 = arith.maximumf %385, %cst_118 : f32
    %cst_119 = arith.constant 9.99999974E-6 : f32
    %387 = arith.addf %386, %cst_119 : f32
    %388 = math.rsqrt %387 : f32
    %389 = vector.broadcast %365 : f32 to vector<1x128xf32>
    %390 = vector.broadcast %382 : f32 to vector<1x128xf32>
    %391 = tpu.concatenate %389, %390 in 1 : vector<1x128xf32>, vector<1x128xf32> -> vector<1x256xf32>
    %392 = vector.broadcast %371 : f32 to vector<1x128xf32>
    %393 = vector.broadcast %388 : f32 to vector<1x128xf32>
    %394 = tpu.concatenate %392, %393 in 1 : vector<1x128xf32>, vector<1x128xf32> -> vector<1x256xf32>
    %395 = arith.mulf %394, %5 : vector<1x256xf32>
    %396 = vector.broadcast %391 : vector<1x256xf32> to vector<16x256xf32>
    %397 = arith.subf %352, %396 : vector<16x256xf32>
    %398 = vector.broadcast %395 : vector<1x256xf32> to vector<16x256xf32>
    %399 = arith.mulf %397, %398 : vector<16x256xf32>
    %cst_120 = arith.constant dense<0.000000e+00> : vector<20x256xf32>
    %400 = tpu.matmul %354, %399, %cst_120 {dimension_numbers = #tpu.dot_dimension_numbers<[1], [0], [0], [1], [0, 0, 1, 1], [], []>} : vector<20x16xf32>, vector<16x256xf32>, vector<20x256xf32> -> vector<20x256xf32>
    %c160 = arith.constant 160 : index
    %c0_121 = arith.constant 0 : index
    %401 = vector.load %arg5[%c160, %c0_121] : memref<200x256xf32, #tpu.memory_space<vmem>>, vector<20x256xf32>
    %402 = arith.addf %400, %401 : vector<20x256xf32>
    %403 = vector.extract_strided_slice %402 {offsets = [16, 0], sizes = [4, 256], strides = [1, 1]} : vector<20x256xf32> to vector<4x256xf32>
    %404 = arith.addf %288, %403 : vector<4x256xf32>
    %cst_122 = arith.constant 0.000000e+00 : f32
    %405 = vector.broadcast %cst_122 : f32 to vector<4x256xf32>
    %406 = arith.maximumf %404, %405 : vector<4x256xf32>
    %c16_123 = arith.constant 16 : index
    %c0_124 = arith.constant 0 : index
    %407 = vector.load %arg2[%c16_123, %c0_124] : memref<32x4xf32, #tpu.memory_space<vmem>>, vector<4x4xf32>
    %408 = vector.extract_strided_slice %406 {offsets = [0, 0], sizes = [4, 128], strides = [1, 1]} : vector<4x256xf32> to vector<4x128xf32>
    %409 = vector.shape_cast %408 : vector<4x128xf32> to vector<1x4x128xf32>
    %cst_125 = arith.constant dense<0.000000e+00> : vector<1xf32>
    %410 = vector.multi_reduction <add>, %409, %cst_125 [1, 2] : vector<1x4x128xf32> to vector<1xf32>
    %411 = vector.shape_cast %410 : vector<1xf32> to vector<1x1x1xf32>
    %412 = vector.extract %411[0, 0, 0] : f32 from vector<1x1x1xf32>
    %413 = arith.mulf %408, %408 : vector<4x128xf32>
    %414 = vector.shape_cast %413 : vector<4x128xf32> to vector<1x4x128xf32>
    %cst_126 = arith.constant dense<0.000000e+00> : vector<1xf32>
    %415 = vector.multi_reduction <add>, %414, %cst_126 [1, 2] : vector<1x4x128xf32> to vector<1xf32>
    %416 = vector.shape_cast %415 : vector<1xf32> to vector<1x1x1xf32>
    %417 = vector.extract %416[0, 0, 0] : f32 from vector<1x1x1xf32>
    %cst_127 = arith.constant 1.562500e-02 : f32
    %418 = arith.mulf %412, %cst_127 : f32
    %cst_128 = arith.constant 1.562500e-02 : f32
    %419 = arith.mulf %417, %cst_128 : f32
    %420 = arith.mulf %418, %418 : f32
    %421 = arith.subf %419, %420 : f32
    %cst_129 = arith.constant 0.000000e+00 : f32
    %422 = arith.maximumf %421, %cst_129 : f32
    %cst_130 = arith.constant 9.99999974E-6 : f32
    %423 = arith.addf %422, %cst_130 : f32
    %424 = math.rsqrt %423 : f32
    %425 = vector.extract_strided_slice %406 {offsets = [0, 128], sizes = [4, 128], strides = [1, 1]} : vector<4x256xf32> to vector<4x128xf32>
    %426 = vector.shape_cast %425 : vector<4x128xf32> to vector<1x4x128xf32>
    %cst_131 = arith.constant dense<0.000000e+00> : vector<1xf32>
    %427 = vector.multi_reduction <add>, %426, %cst_131 [1, 2] : vector<1x4x128xf32> to vector<1xf32>
    %428 = vector.shape_cast %427 : vector<1xf32> to vector<1x1x1xf32>
    %429 = vector.extract %428[0, 0, 0] : f32 from vector<1x1x1xf32>
    %430 = arith.mulf %425, %425 : vector<4x128xf32>
    %431 = vector.shape_cast %430 : vector<4x128xf32> to vector<1x4x128xf32>
    %cst_132 = arith.constant dense<0.000000e+00> : vector<1xf32>
    %432 = vector.multi_reduction <add>, %431, %cst_132 [1, 2] : vector<1x4x128xf32> to vector<1xf32>
    %433 = vector.shape_cast %432 : vector<1xf32> to vector<1x1x1xf32>
    %434 = vector.extract %433[0, 0, 0] : f32 from vector<1x1x1xf32>
    %cst_133 = arith.constant 1.562500e-02 : f32
    %435 = arith.mulf %429, %cst_133 : f32
    %cst_134 = arith.constant 1.562500e-02 : f32
    %436 = arith.mulf %434, %cst_134 : f32
    %437 = arith.mulf %435, %435 : f32
    %438 = arith.subf %436, %437 : f32
    %cst_135 = arith.constant 0.000000e+00 : f32
    %439 = arith.maximumf %438, %cst_135 : f32
    %cst_136 = arith.constant 9.99999974E-6 : f32
    %440 = arith.addf %439, %cst_136 : f32
    %441 = math.rsqrt %440 : f32
    %442 = vector.broadcast %418 : f32 to vector<1x128xf32>
    %443 = vector.broadcast %435 : f32 to vector<1x128xf32>
    %444 = tpu.concatenate %442, %443 in 1 : vector<1x128xf32>, vector<1x128xf32> -> vector<1x256xf32>
    %445 = vector.broadcast %424 : f32 to vector<1x128xf32>
    %446 = vector.broadcast %441 : f32 to vector<1x128xf32>
    %447 = tpu.concatenate %445, %446 in 1 : vector<1x128xf32>, vector<1x128xf32> -> vector<1x256xf32>
    %448 = arith.mulf %447, %5 : vector<1x256xf32>
    %449 = vector.broadcast %444 : vector<1x256xf32> to vector<4x256xf32>
    %450 = arith.subf %406, %449 : vector<4x256xf32>
    %451 = vector.broadcast %448 : vector<1x256xf32> to vector<4x256xf32>
    %452 = arith.mulf %450, %451 : vector<4x256xf32>
    %cst_137 = arith.constant dense<0.000000e+00> : vector<4x256xf32>
    %453 = tpu.matmul %407, %452, %cst_137 {dimension_numbers = #tpu.dot_dimension_numbers<[1], [0], [0], [1], [0, 0, 1, 1], [], []>} : vector<4x4xf32>, vector<4x256xf32>, vector<4x256xf32> -> vector<4x256xf32>
    %c184 = arith.constant 184 : index
    %c0_138 = arith.constant 0 : index
    %454 = vector.load %arg5[%c184, %c0_138] : memref<200x256xf32, #tpu.memory_space<vmem>>, vector<4x256xf32>
    %455 = arith.addf %453, %454 : vector<4x256xf32>
    %cst_139 = arith.constant 0.000000e+00 : f32
    %456 = vector.broadcast %cst_139 : f32 to vector<4x256xf32>
    %457 = arith.maximumf %455, %456 : vector<4x256xf32>
    %c24 = arith.constant 24 : index
    %c0_140 = arith.constant 0 : index
    %458 = vector.load %arg2[%c24, %c0_140] : memref<32x4xf32, #tpu.memory_space<vmem>>, vector<4x4xf32>
    %459 = vector.extract_strided_slice %457 {offsets = [0, 0], sizes = [4, 128], strides = [1, 1]} : vector<4x256xf32> to vector<4x128xf32>
    %460 = vector.shape_cast %459 : vector<4x128xf32> to vector<1x4x128xf32>
    %cst_141 = arith.constant dense<0.000000e+00> : vector<1xf32>
    %461 = vector.multi_reduction <add>, %460, %cst_141 [1, 2] : vector<1x4x128xf32> to vector<1xf32>
    %462 = vector.shape_cast %461 : vector<1xf32> to vector<1x1x1xf32>
    %463 = vector.extract %462[0, 0, 0] : f32 from vector<1x1x1xf32>
    %464 = arith.mulf %459, %459 : vector<4x128xf32>
    %465 = vector.shape_cast %464 : vector<4x128xf32> to vector<1x4x128xf32>
    %cst_142 = arith.constant dense<0.000000e+00> : vector<1xf32>
    %466 = vector.multi_reduction <add>, %465, %cst_142 [1, 2] : vector<1x4x128xf32> to vector<1xf32>
    %467 = vector.shape_cast %466 : vector<1xf32> to vector<1x1x1xf32>
    %468 = vector.extract %467[0, 0, 0] : f32 from vector<1x1x1xf32>
    %cst_143 = arith.constant 1.562500e-02 : f32
    %469 = arith.mulf %463, %cst_143 : f32
    %cst_144 = arith.constant 1.562500e-02 : f32
    %470 = arith.mulf %468, %cst_144 : f32
    %471 = arith.mulf %469, %469 : f32
    %472 = arith.subf %470, %471 : f32
    %cst_145 = arith.constant 0.000000e+00 : f32
    %473 = arith.maximumf %472, %cst_145 : f32
    %cst_146 = arith.constant 9.99999974E-6 : f32
    %474 = arith.addf %473, %cst_146 : f32
    %475 = math.rsqrt %474 : f32
    %476 = vector.extract_strided_slice %457 {offsets = [0, 128], sizes = [4, 128], strides = [1, 1]} : vector<4x256xf32> to vector<4x128xf32>
    %477 = vector.shape_cast %476 : vector<4x128xf32> to vector<1x4x128xf32>
    %cst_147 = arith.constant dense<0.000000e+00> : vector<1xf32>
    %478 = vector.multi_reduction <add>, %477, %cst_147 [1, 2] : vector<1x4x128xf32> to vector<1xf32>
    %479 = vector.shape_cast %478 : vector<1xf32> to vector<1x1x1xf32>
    %480 = vector.extract %479[0, 0, 0] : f32 from vector<1x1x1xf32>
    %481 = arith.mulf %476, %476 : vector<4x128xf32>
    %482 = vector.shape_cast %481 : vector<4x128xf32> to vector<1x4x128xf32>
    %cst_148 = arith.constant dense<0.000000e+00> : vector<1xf32>
    %483 = vector.multi_reduction <add>, %482, %cst_148 [1, 2] : vector<1x4x128xf32> to vector<1xf32>
    %484 = vector.shape_cast %483 : vector<1xf32> to vector<1x1x1xf32>
    %485 = vector.extract %484[0, 0, 0] : f32 from vector<1x1x1xf32>
    %cst_149 = arith.constant 1.562500e-02 : f32
    %486 = arith.mulf %480, %cst_149 : f32
    %cst_150 = arith.constant 1.562500e-02 : f32
    %487 = arith.mulf %485, %cst_150 : f32
    %488 = arith.mulf %486, %486 : f32
    %489 = arith.subf %487, %488 : f32
    %cst_151 = arith.constant 0.000000e+00 : f32
    %490 = arith.maximumf %489, %cst_151 : f32
    %cst_152 = arith.constant 9.99999974E-6 : f32
    %491 = arith.addf %490, %cst_152 : f32
    %492 = math.rsqrt %491 : f32
    %493 = vector.broadcast %469 : f32 to vector<1x128xf32>
    %494 = vector.broadcast %486 : f32 to vector<1x128xf32>
    %495 = tpu.concatenate %493, %494 in 1 : vector<1x128xf32>, vector<1x128xf32> -> vector<1x256xf32>
    %496 = vector.broadcast %475 : f32 to vector<1x128xf32>
    %497 = vector.broadcast %492 : f32 to vector<1x128xf32>
    %498 = tpu.concatenate %496, %497 in 1 : vector<1x128xf32>, vector<1x128xf32> -> vector<1x256xf32>
    %499 = arith.mulf %498, %5 : vector<1x256xf32>
    %500 = vector.broadcast %495 : vector<1x256xf32> to vector<4x256xf32>
    %501 = arith.subf %457, %500 : vector<4x256xf32>
    %502 = vector.broadcast %499 : vector<1x256xf32> to vector<4x256xf32>
    %503 = arith.mulf %501, %502 : vector<4x256xf32>
    %cst_153 = arith.constant dense<0.000000e+00> : vector<4x256xf32>
    %504 = tpu.matmul %458, %503, %cst_153 {dimension_numbers = #tpu.dot_dimension_numbers<[1], [0], [0], [1], [0, 0, 1, 1], [], []>} : vector<4x4xf32>, vector<4x256xf32>, vector<4x256xf32> -> vector<4x256xf32>
    %c192 = arith.constant 192 : index
    %c0_154 = arith.constant 0 : index
    %505 = vector.load %arg5[%c192, %c0_154] : memref<200x256xf32, #tpu.memory_space<vmem>>, vector<4x256xf32>
    %506 = arith.addf %504, %505 : vector<4x256xf32>
    %c0_155 = arith.constant 0 : index
    %c0_156 = arith.constant 0 : index
    %507 = vector.load %arg6[%c0_155, %c0_156] : memref<4x256xf32, #tpu.memory_space<vmem>>, vector<4x256xf32>
    tpu.vector_store %arg6[%c0_155, %c0_156], %506 {strides = array<i32>} : memref<4x256xf32, #tpu.memory_space<vmem>>, vector<4x256xf32>,
    return
  }
  func.func @transform_0(%arg0: i32) -> (i32, i32) {
    %c0_i32 = arith.constant 0 : i32
    %c0_i32_0 = arith.constant 0 : i32
    return %c0_i32, %arg0 : i32, i32
  }
  func.func @transform_1(%arg0: i32) -> (i32, i32) {
    %c0_i32 = arith.constant 0 : i32
    %c0_i32_0 = arith.constant 0 : i32
    %c0_i32_1 = arith.constant 0 : i32
    return %c0_i32, %c0_i32_0 : i32, i32
  }
  func.func @transform_2(%arg0: i32) -> (i32, i32, i32) {
    %c0_i32 = arith.constant 0 : i32
    %c0_i32_0 = arith.constant 0 : i32
    %c0_i32_1 = arith.constant 0 : i32
    %c0_i32_2 = arith.constant 0 : i32
    return %c0_i32, %c0_i32_0, %c0_i32_1 : i32, i32, i32
  }
  func.func @transform_3(%arg0: i32) -> (i32, i32, i32) {
    %c0_i32 = arith.constant 0 : i32
    %c0_i32_0 = arith.constant 0 : i32
    %c0_i32_1 = arith.constant 0 : i32
    %c0_i32_2 = arith.constant 0 : i32
    return %c0_i32, %c0_i32_0, %c0_i32_1 : i32, i32, i32
  }
  func.func @transform_4(%arg0: i32) -> (i32, i32) {
    %c0_i32 = arith.constant 0 : i32
    %c0_i32_0 = arith.constant 0 : i32
    %c0_i32_1 = arith.constant 0 : i32
    return %c0_i32, %c0_i32_0 : i32, i32
  }
  func.func @transform_5(%arg0: i32) -> (i32, i32) {
    %c0_i32 = arith.constant 0 : i32
    %c0_i32_0 = arith.constant 0 : i32
    return %c0_i32, %arg0 : i32, i32
  }
}

</mosaic_0001>

<bundles_post_ra>
// kernel: tpu_custom_call.1
= control target key start
LH: loop header
LB: loop body
LE: loop exit
PB: predicated region body
PF: predicated region fallthrough
CT: control target
= control target key end

     0   :  { %10 = vsyncpa [#allocation3], 0  ;;  %s9426_s0 = inlined_call_operand.vmem [shape: f32[4,512], index: 0, kind: input, shape index: {}]   ;;  %s9427_s1 = inlined_call_operand.vmem [shape: f32[32,4], index: 1, kind: input, shape index: {}]   ;;  %s9428_s2 = inlined_call_operand.vmem [shape: f32[3,32,48], index: 2, kind: input, shape index: {}]   ;;  %s9429_s3 = inlined_call_operand.vmem [shape: f32[3,20,16], index: 3, kind: input, shape index: {}]   ;;  %s9430_s4 = inlined_call_operand.hbm [shape: f32[200,256], index: 4, kind: input, shape index: {}]   ;;  %s9431_s5 = inlined_call_operand.hbm [shape: f32[4,512], index: 5, kind: output, shape index: {}]  }
   0x1   :  { %11 = vsyncpa [#allocation4], 0 }
   0x2   :  { %13 = vsyncpa [#allocation4 + $0x1], 0  ;;  %s7940_s18 = smov 0   ;;  %s7942_s19 = smov 0  }
   0x3   :  { %s7944_s20 = smov 0   ;;  %s7946_s21 = smov 0  }
   0x4 LB: > { %s7961_s22 = sadd.s32 4294967295, %s7898_s21   ;;  %s6920_s23 = sadd.s32 4294967294, %s7898_s21   ;;  %s7898_s21 = sphi %s7946_s21, %s9458_s21   ;;  %s7894_s20 = sphi %s7944_s20, %s9457_s20   ;;  %s7890_s19 = sphi %s7942_s19, %s9456_s19   ;;  %s7886_s18 = sphi %s7940_s18, %s9455_s18  }
   0x5   : > { %s7965_s24 = sadd.s32 1, %s7898_s21   ;;  %s136_s25 = sadd.s32 1, %s7894_s20 }
   0x6   : > { %s133_s26 = ssub.s32 %s7898_s21, %s7965_s24  ;;  %p146_p0 = scmp.ne.s32.totalorder %s7894_s20, %s7890_s19 }
   0x7   : > { %p134_p1 = scmp.eq.s32.totalorder %s133_s26, 0  ;;  %p147_p2 = scmp.eq.s32.totalorder %s7961_s22, 1 }
   0x8   : > { %p152_p3 = scmp.ne.s32.totalorder %s7890_s19, %s7886_s18  ;;  %p153_p4 = scmp.eq.s32.totalorder %s6920_s23, 1 }
   0x9   : > { %s7976_s27 = scalar_select %p134_p1, %s7894_s20, %s136_s25  }
   0xa   : > { %p7978_p5 = por %p147_p2, %p146_p0  ;;  %p7982_p6 = por %p153_p4, %p152_p3 }
   0xb   : > { %p6921_p7 = scmp.ge.s32.totalorder %s7898_s21, 1  ;;  %p160_p8 = scmp.lt.s32.totalorder %s7898_s21, 3 }
   0xc   : > { %s9440_s28 = scalar_select %p7978_p5, 1, 0 }
   0xd   : > { %s9441_s29 = scalar_select %p7982_p6, 1, 0 }
   0xe   : > { %p9432_p9 = scmp.eq.s32.totalorder %s7961_s22, 0  ;;  %p7989_p10 = pnand %p6921_p7, %p160_p8 }
   0xf   : > { %s7900_s6 = smov [#allocation2]   ;;  %s7804_s11 = scalar_lea.hbm %s9430_s4, 6400 }
  0x10   : > { %s9442_s30 = scalar_select %p7989_p10, 1, 0 }
  0x11   : > { %s181_s7 = sshll.u32 %s7900_s6, 4  ;;  %p7644_p11 = pneg %p7989_p10  ;;  %s182_s7 = int_to_ptr.vmem [resolvable:$true] %s181_s7 }
  0x12   : > { %p7805_p13 = scmp.ne.s32.totalorder %s9430_s4, %s7804_s11  ;;  %p7811_p3 = scmp.lt.u32.totalorder %s7804_s11, %s9430_s4 }
  0x13   : > { %p7997_p12 = pnand %p9432_p9, %p7644_p11 }
  0x15   : > { %p7806_p0 = pneg %p7997_p12 }
  0x17   : > { %p7807_p1 = pnand %p7806_p0, %p7805_p13 }
  0x19   : > { %p7808_p2 = pneg %p7807_p1 }
  0x1b   : > { %p7813_p4 = pnand %p7811_p3, %p7808_p2 }
  0x1d   : > { %7816 = shalt.err (!%p7813_p4)
}
  0x1e   : > { %s7817_s16 = scalar_lea.vmem %s182_s7, 6400  ;;  %p7825_p9 = scmp.lt.s32.totalorder %s182_s7, %s182_s7 }
  0x1f   : > { %p7818_p7 = scmp.ne.s32.totalorder %s182_s7, %s7817_s16  ;;  %p7826_p6 = scmp.lt.s32.totalorder %s7817_s16, %s7817_s16 }
  0x21   : > { %p7820_p8 = pnand %p7818_p7, %p7806_p0  ;;  %p7827_p5 = por %p7826_p6, %p7825_p9 }
  0x23   : > { %p7821_p11 = pneg %p7820_p8 }
  0x25   : > { %p7828_p10 = pnand %p7827_p5, %p7821_p11 }
  0x27   : > { %7831 = shalt.err (!%p7828_p10)
}
  0x28   : > { %s7901_s17 = smov 256   ;;  %s7902_s23 = smov 16  }
  0x29   : > { %7647 = dma.hbm_to_vmem [thread:$0]  (!%p7997_p12), %s9430_s4, 6400, %s182_s7, [#allocation3], %s7901_s17, %s7901_s17, %s7902_s23  }
  0x2a   : > { %p9444_p13 = scmp.ne.s32.totalorder %s9442_s30, 0 }
  0x2b   : > { %p9445_p1 = scmp.eq.s32.totalorder (!%p9444_p13), %s7961_s22, 0 }
  0x2c   : > { %206 = sbr.rel (%p9444_p13) target bundleno = 6284 (0x188c), region = 40 }
  0x33   : > { %7877 = dma.done.wait (%p9445_p1), [#allocation3], 6400   ;;  %p9446_p0 = pmov %p9445_p1 }
  0x34   : > { %s6927_s6 = sshll.u32 %s7961_s22, 1  ;;  %vm249_vm0 = vcmask 1043456   ;;  %v9438_v8 = vmov 0.0   ;;  %s7904_s16 = smov 0.0   ;;  %v241_v44 = vlaneseq  ;;  %v247_v49 = vld [vmem:[%s9427_s1] sm:$0xff]  ;;  %vm349_vm2 = vcmask 31744  }
  0x35   : > { %7879 = vsyncadd (%p9446_p0), [#allocation3], 4294960896  ;;  %p235_p5 = scmp.lt.s32.totalorder %s6927_s6, 3  ;;  %523 = vmatprep.mubr.f32.mxu0 %v9438_v8  ;;  %426 = vmatprep.mubr.f32.mxu1 %v9438_v8  ;;  %v351_v52 = vsel %vm349_vm2, %v247_v49, 0  ;;  %v248_v54 = vld [vmem:[%s9427_s1 + $0x8] sm:$0xff]  ;;  %vm1002_vm4 = vcmask 392192  }
  0x36   : > { %v8046_v45 = vand.u32 127, %v241_v44  ;;  %v331_v46 = vshrl.u32 %v241_v44, 7  ;;  %v427_v56 = vand.u32 4294901760, %v351_v52  ;;  %v354_v59 = vsel %vm349_vm2, %v248_v54, 0  ;;  %p9453_p9 = scmp.ne.s32.totalorder %s9440_s28, 0 }
  0x37   : > { %s9460_s6 = smov (!%p235_p5, %s6927_s6), 3  ;;  %v438_v63 = vand.u32 4294901760, %v354_v59  ;;  %vm1896_vm6 = vcmask 130048  }
  0x38   : > { %s6928_s9 = sshll.u32 %s9460_s6, 2  ;;  %vm243_vm1 = vcmp.lt.s32.totalorder %v8046_v45, 16  ;;  %v8056_v51 = vsub.s32 0, %v331_v46  ;;  %v428_v60 = vsub.f32 %v351_v52, %v427_v56  ;;  %vm972_vm3 = vcmp.lt.s32.totalorder %v8046_v45, 2 }
  0x39   : > { %s238_s11 = scalar_lea.vmem %s9426_s0, %s6928_s9  ;;  %v8050_v47 = vsel %vm243_vm1, 1.0, %v9438_v8  ;;  %vm985_vm5 = vcmp.lt.s32.totalorder %v8046_v45, 1  ;;  %vm2593_vm7 = vcmp.lt.s32.totalorder %v8046_v45, 4  ;;  %vm4211_vm8 = vcmp.lt.s32.totalorder %v8046_v45, 8  ;;  %v6948_v45 = vld [vmem:[%s9428_s2 + $0x58] sm:$0xff] }
  0x3a   : > { %v8027_v0 = vld [vmem:[%s238_s11] sm:$0xff] }
  0x3b   : > { %v250_v1 = vsel %vm249_vm0, %v8027_v0, 0.0  ;;  %v260_v2 = vmul.f32 %v8027_v0, %v8027_v0  ;;  %v281_v3 = vrot.slane %v8027_v0, 4 }
  0x3c   : > { %251 = vadd.xlane.f32.xlu0 %v250_v1  ;;  %v429_v1 = vand.u32 4294901760, %v428_v60 }
  0x3d   : > { %v261_v4 = vsel %vm249_vm0, %v260_v2, 0.0  ;;  %v283_v5 = vsel %vm249_vm0, %v281_v3, 0.0  ;;  %v293_v6 = vmul.f32 %v281_v3, %v281_v3  ;;  %v439_v3 = vsub.f32 %v354_v59, %v438_v63 }
  0x3e   : > { %284 = vadd.xlane.f32.xlu1 %v283_v5 }
  0x3f   : > { %v294_v7 = vsel %vm249_vm0, %v293_v6, 0.0 }
  0x40   : > { %262 = vadd.xlane.f32.xlu0 %v261_v4  ;;  %v430_v4 = vsub.f32 %v428_v60, %v429_v1 }
  0x42   : > { %295 = vadd.xlane.f32.xlu1 %v294_v7 }
  0xc9   : > { %v252_v9 = vpop.xlane.xlu0 %251 }
  0xca   : > { %v253_v10 = vrot.slane %v252_v9, 4 }
  0xcb   : > { %v285_v23 = vpop.xlane.xlu1 %284 }
  0xcc   : > { %v254_v11 = vadd.f32 %v253_v10, %v252_v9  ;;  %v286_v25 = vrot.slane %v285_v23, 4  ;;  %v440_v9 = vand.u32 4294901760, %v439_v3 }
  0xcd   : > { %v263_v12 = vpop.xlane.xlu0 %262 }
  0xce   : > { %v255_v13 = vrot.slane %v254_v11, 2  ;;  %v264_v14 = vrot.slane %v263_v12, 4  ;;  %v287_v27 = vadd.f32 %v286_v25, %v285_v23 }
  0xcf   : > { %v296_v24 = vpop.xlane.xlu1 %295 }
  0xd0   : > { %v265_v15 = vadd.f32 %v264_v14, %v263_v12  ;;  %v256_v16 = vadd.f32 %v255_v13, %v254_v11  ;;  %v297_v26 = vrot.slane %v296_v24, 4  ;;  %v288_v29 = vrot.slane %v287_v27, 2 }
  0xd1   : > { %v431_v13 = vand.u32 4294901760, %v430_v4  ;;  %v441_v14 = vsub.f32 %v439_v3, %v440_v9 }
  0xd2   : > { %v266_v17 = vrot.slane %v265_v15, 2  ;;  %v257_v18 = vrot.slane %v256_v16, 1  ;;  %v298_v28 = vadd.f32 %v297_v26, %v296_v24  ;;  %v289_v32 = vadd.f32 %v288_v29, %v287_v27  ;;  %v343_v26 = vld [vmem:[#allocation2] sm:$0xff]  ;;  %v344_v27 = vld [vmem:[#allocation2 + $0x8] sm:$0xff] }
  0xd4   : > { %v258_v19 = vadd.f32 %v257_v18, %v256_v16  ;;  %v267_v20 = vadd.f32 %v266_v17, %v265_v15  ;;  %v299_v31 = vrot.slane %v298_v28, 2  ;;  %v290_v34 = vrot.slane %v289_v32, 1 }
  0xd5   : > { %v442_v17 = vand.u32 4294901760, %v441_v14 }
  0xd6   : > { %7530 = vpush %v258_v19  ;;  %v268_v21 = vrot.slane %v267_v20, 1  ;;  %v300_v33 = vadd.f32 %v299_v31, %v298_v28  ;;  %v291_v37 = vadd.f32 %v290_v34, %v289_v32  ;;  %v346_v31 = vld [vmem:[#allocation2 + $0x18] sm:$0xff] }
  0xd8   : > { %v269_v22 = vadd.f32 %v268_v21, %v267_v20  ;;  %v301_v35 = vrot.slane %v300_v33, 1 }
  0xda   : > { %7532 = vpush %v269_v22  ;;  %v302_v38 = vadd.f32 %v301_v35, %v300_v33 }
 0x107   : > { %s7531_s30 = spop %7530 }
 0x108   : > { %s8039_s7 = smul.f32 0.015625, %s7531_s30 }
 0x10a   : > { %s273_s12 = smul.f32 %s8039_s7, %s8039_s7  ;;  %v313_v39 = vstv %s8039_s7 }
 0x10b   : > { %s7533_s13 = spop %7532 }
 0x10c   : > { %s272_s14 = smul.f32 0.015625, %s7533_s13 }
 0x10e   : > { %s274_s15 = ssub.f32 %s272_s14, %s273_s12 }
 0x110   : > { %s275_s17 = smax.f32 %s7904_s16, %s274_s15 }
 0x111   : > { %s276_s23 = sadd.f32 1e-05, %s275_s17 }
 0x113   : > { %v277_v30 = vstv %s276_s23 }
 0x114   : > { %7696 = vrsqrt.f32 %v277_v30  ;;  %v345_v30 = vld [vmem:[#allocation2 + $0x10] sm:$0xff] }
 0x11e   : > { %v7697_v36 = vpop.eup %7696 }
 0x11f   : > { %7534 = vpush %v7697_v36 }
 0x120   : > { %7536 = vpush %v291_v37 }
 0x121   : > { %7538 = vpush %v302_v38 }
 0x150   : > { %s7535_s25 = spop %7534 }
 0x151   : > { %s7537_s26 = spop %7536  ;;  %v315_v48 = vstv %s7535_s25 }
 0x152   : > { %s304_s6 = smul.f32 0.015625, %s7537_s26  ;;  %s7539_s9 = spop %7538  ;;  %v317_v50 = vmul.f32 %v8050_v47, %v315_v48 }
 0x153   : > { %s305_s8 = smul.f32 0.015625, %s7539_s9 }
 0x154   : > { %s306_s10 = smul.f32 %s304_s6, %s304_s6  ;;  %v314_v40 = vstv %s304_s6  ;;  %v333_v57 = vrot.slane %v317_v50, %v8056_v51 }
 0x155   : > { %v327_v41 = vcombine.low %v313_v39, %v314_v40 }
 0x156   : > { %s307_s11 = ssub.f32 %s305_s8, %s306_s10 }
 0x157   : > { %v329_v61 = vsub.f32 %v8027_v0, %v327_v41 }
 0x158   : > { %s308_s30 = smax.f32 %s7904_s16, %s307_s11 }
 0x159   : > { %s309_s12 = sadd.f32 1e-05, %s308_s30 }
 0x15b   : > { %v310_v42 = vstv %s309_s12 }
 0x15c   : > { %7698 = vrsqrt.f32 %v310_v42 }
 0x166   : > { %v7699_v43 = vpop.eup %7698 }
 0x167   : > { %7540 = vpush %v7699_v43 }
 0x198   : > { %s7541_s14 = spop %7540 }
 0x199   : > { %v316_v53 = vstv %s7541_s14 }
 0x19a   : > { %v318_v55 = vmul.f32 %v8050_v47, %v316_v53 }
 0x19c   : > { %v337_v58 = vrot.slane %v318_v55, %v8056_v51 }
 0x19e   : > { %v340_v62 = vcombine.low %v333_v57, %v337_v58 }
 0x1a0   : > { %v342_v2 = vmul.f32 %v340_v62, %v329_v61 }
 0x1a2   : > { %v348_v5 = vcombine.high %v342_v2, %v342_v2  ;;  %v356_v6 = vsel %vm249_vm0, %v342_v2, 0 }
 0x1a3   : > { %v362_v7 = vand.u32 4294901760, %v356_v6 }
 0x1a4   : > { %v358_v10 = vsel %vm249_vm0, %v348_v5, 0 }
 0x1a5   : > { %v360_v11 = vand.u32 4294901760, %v358_v10  ;;  %v456_v12 = vsub.f32 %v356_v6, %v362_v7 }
 0x1a7   : > { %361 = vmatprep.subr.mxu1 %v360_v11  ;;  %v450_v15 = vsub.f32 %v358_v10, %v360_v11  ;;  %v457_v0 = vand.u32 4294901760, %v456_v12 }
 0x1a8   : > { %363 = vmatpush1.msra.mxu1 %v362_v7 }
 0x1a9   : > { %v451_v16 = vand.u32 4294901760, %v450_v15  ;;  %432 = vmatmul.mubr.f32.vlgmr.msra.gmra.mrb[0].mxu1 %v431_v13  ;;  %v458_v18 = vsub.f32 %v456_v12, %v457_v0 }
 0x1aa   : > { %437 = vmatprep.mubr.f32.mxu1 %v9438_v8 }
 0x1ab   : > { %v452_v19 = vsub.f32 %v450_v15, %v451_v16  ;;  %v459_v21 = vand.u32 4294901760, %v458_v18 }
 0x1ad   : > { %v453_v20 = vand.u32 4294901760, %v452_v19  ;;  %443 = vmatmul.mubr.f32.gmra.mrb[2].mxu1 %v442_v17 }
 0x1ae   : > { %1091 = vmatprep.mubr.f32.mxu1 %v9438_v8 }
 0x1af   : > { %454 = vmatprep.subr.mxu0 %v453_v20 }
 0x1b0   : > { %460 = vmatpush1.msra.mxu0 %v459_v21 }
 0x1b1   : > { %525 = vmatmul.mubr.f32.vlgmr.msra.gmra.mrb[0].mxu0 %v427_v56  ;;  %540 = vmatprep.subr.mxu0 %v450_v15 }
 0x1b2   : > { %543 = vmatpush1.msra.mxu0 %v456_v12  ;;  %530 = vmatprep.mubr.f32.mxu0 %v9438_v8 }
 0x1b3   : > { %624 = vmatprep.subr.mxu0 %v360_v11 }
 0x1b5   : > { %532 = vmatmul.mubr.f32.gmra.mrb[2].mxu0 %v438_v63 }
 0x1b6   : > { %606 = vmatprep.mubr.f32.mxu0 %v9438_v8 }
 0x1b9   : > { %609 = vmatmul.mubr.f32.vlgmr.msra.gmra.mrb[0].mxu0 %v428_v60 }
 0x1ba   : > { %626 = vmatpush1.msra.mxu0 %v362_v7  ;;  %614 = vmatprep.mubr.f32.mxu0 %v9438_v8 }
 0x1bb   : > { %711 = vmatprep.subr.mxu0 %v451_v16 }
 0x1bd   : > { %617 = vmatmul.mubr.f32.gmra.mrb[2].mxu0 %v439_v3 }
 0x1be   : > { %689 = vmatprep.mubr.f32.mxu0 %v9438_v8 }
 0x1c1   : > { %693 = vmatmul.mubr.f32.vlgmr.msra.gmra.mrb[0].mxu0 %v429_v1 }
 0x1c2   : > { %715 = vmatpush1.msra.mxu0 %v457_v0  ;;  %698 = vmatprep.mubr.f32.mxu0 %v9438_v8 }
 0x1c3   : > { %794 = vmatprep.subr.mxu0 %v360_v11 }
 0x1c5   : > { %702 = vmatmul.mubr.f32.gmra.mrb[2].mxu0 %v440_v9 }
 0x1c6   : > { %778 = vmatprep.mubr.f32.mxu0 %v9438_v8 }
 0x1c9   : > { %780 = vmatmul.mubr.f32.vlgmr.msra.gmra.mrb[0].mxu0 %v427_v56 }
 0x1ca   : > { %796 = vmatpush1.msra.mxu0 %v362_v7  ;;  %785 = vmatprep.mubr.f32.mxu0 %v9438_v8 }
 0x1cd   : > { %787 = vmatmul.mubr.f32.gmra.mrb[2].mxu0 %v438_v63 }
 0x1ce   : > { %859 = vmatprep.mubr.f32.mxu0 %v9438_v8 }
 0x1d1   : > { %861 = vmatmul.mubr.f32.vlgmr.msra.gmra.mrb[0].mxu0 %v427_v56 }
 0x1d2   : > { %866 = vmatprep.mubr.f32.mxu0 %v9438_v8 }
 0x1d5   : > { %868 = vmatmul.mubr.f32.gmra.mrb[2].mxu0 %v438_v63 }
 0x1d6   : > { %1974 = vmatprep.mubr.f32.mxu0 %v9438_v8 }
 0x27c   : > { %v433_v22 = vpop.f32.mrb[0].mxu1 }
 0x27d   : > { %v435_v23 = vpop.f32.mrb[1].mxu1  ;;  %v434_v28 = vadd.f32 %v433_v22, %v343_v26 }
 0x27e   : > { %v436_v29 = vadd.f32 %v435_v23, %v344_v27 }
 0x280   : > { %v444_v24 = vpop.f32.mrb[2].mxu1 }
 0x281   : > { %v446_v25 = vpop.f32.mrb[3].mxu1  ;;  %v445_v34 = vadd.f32 %v444_v24, %v345_v30 }
 0x282   : > { %v447_v37 = vadd.f32 %v446_v25, %v346_v31 }
 0x2a4   : > { %v862_v32 = vpop.f32.mrb[0].mxu0 }
 0x2a5   : > { %v8081_v33 = vadd.f32 %v862_v32, %v434_v28  ;;  %v864_v35 = vpop.f32.mrb[1].mxu0 }
 0x2a6   : > { %v8083_v36 = vadd.f32 %v864_v35, %v436_v29 }
 0x2a7   : > { %v884_v43 = vmul.f32 %v8081_v33, %v8081_v33 }
 0x2a8   : > { %v869_v38 = vpop.f32.mrb[2].mxu0  ;;  %v915_v50 = vmul.f32 %v8083_v36, %v8083_v36 }
 0x2a9   : > { %v8085_v39 = vadd.f32 %v869_v38, %v445_v34  ;;  %v871_v40 = vpop.f32.mrb[3].mxu0 }
 0x2aa   : > { %v8087_v41 = vadd.f32 %v871_v40, %v447_v37 }
 0x2ab   : > { %v874_v42 = vadd.f32 %v8085_v39, %v8081_v33  ;;  %v885_v44 = vmul.f32 %v8085_v39, %v8085_v39 }
 0x2ac   : > { %v916_v48 = vmul.f32 %v8087_v41, %v8087_v41  ;;  %v905_v49 = vadd.f32 %v8087_v41, %v8083_v36 }
 0x2ad   : > { %875 = vadd.xlane.f32.xlu0 %v874_v42  ;;  %v886_v46 = vadd.f32 %v885_v44, %v884_v43 }
 0x2ae   : > { %v917_v52 = vadd.f32 %v916_v48, %v915_v50 }
 0x2af   : > { %887 = vadd.xlane.f32.xlu1 %v886_v46 }
 0x2b1   : > { %906 = vadd.xlane.f32.xlu0 %v905_v49 }
 0x2b3   : > { %918 = vadd.xlane.f32.xlu1 %v917_v52 }
 0x33a   : > { %v876_v53 = vpop.xlane.xlu0 %875 }
 0x33b   : > { %v877_v54 = vrot.slane %v876_v53, 4 }
 0x33c   : > { %v888_v55 = vpop.xlane.xlu1 %887 }
 0x33d   : > { %v878_v56 = vadd.f32 %v877_v54, %v876_v53  ;;  %v889_v57 = vrot.slane %v888_v55, 4 }
 0x33e   : > { %v907_v4 = vpop.xlane.xlu0 %906 }
 0x33f   : > { %v879_v58 = vrot.slane %v878_v56, 2  ;;  %v890_v59 = vadd.f32 %v889_v57, %v888_v55  ;;  %v908_v6 = vrot.slane %v907_v4, 4 }
 0x340   : > { %v919_v5 = vpop.xlane.xlu1 %918 }
 0x341   : > { %v891_v60 = vrot.slane %v890_v59, 2  ;;  %v880_v61 = vadd.f32 %v879_v58, %v878_v56  ;;  %v920_v7 = vrot.slane %v919_v5, 4  ;;  %v909_v9 = vadd.f32 %v908_v6, %v907_v4 }
 0x343   : > { %v881_v62 = vrot.slane %v880_v61, 1  ;;  %v892_v63 = vadd.f32 %v891_v60, %v890_v59  ;;  %v921_v10 = vadd.f32 %v920_v7, %v919_v5  ;;  %v910_v11 = vrot.slane %v909_v9, 2 }
 0x345   : > { %v882_v1 = vadd.f32 %v881_v62, %v880_v61  ;;  %v893_v2 = vrot.slane %v892_v63, 1  ;;  %v922_v12 = vrot.slane %v921_v10, 2  ;;  %v911_v14 = vadd.f32 %v910_v11, %v909_v9  ;;  %v990_v11 = vld [vmem:[%s9428_s2] sm:$0xff] }
 0x347   : > { %7542 = vpush %v882_v1  ;;  %v894_v3 = vadd.f32 %v893_v2, %v892_v63  ;;  %v923_v15 = vadd.f32 %v922_v12, %v921_v10  ;;  %v912_v0 = vrot.slane %v911_v14, 1 }
 0x349   : > { %7544 = vpush %v894_v3  ;;  %v924_v16 = vrot.slane %v923_v15, 1  ;;  %v913_v18 = vadd.f32 %v912_v0, %v911_v14  ;;  %v991_v0 = vld [vmem:[%s9428_s2 + $0x8] sm:$0xff] }
 0x34b   : > { %v925_v19 = vadd.f32 %v924_v16, %v923_v15  ;;  %v1004_v15 = vsel %vm1002_vm4, %v990_v11, 0 }
 0x378   : > { %s7543_s23 = spop %7542 }
 0x379   : > { %s8101_s25 = smul.f32 0.00390625, %s7543_s23 }
 0x37a   : > { %s7545_s26 = spop %7544 }
 0x37b   : > { %s898_s6 = smul.f32 %s8101_s25, %s8101_s25  ;;  %v936_v20 = vstv %s8101_s25  ;;  %s7905_s25 = smov 2  }
 0x37c   : > { %s897_s9 = smul.f32 0.00390625, %s7545_s26  ;;  %v948_v23 = vsub.f32 %v8081_v33, %v936_v20  ;;  %v950_v24 = vsub.f32 %v8085_v39, %v936_v20  ;;  %v8176_v20 = vand.u32 4294901760, %v1004_v15 }
 0x37e   : > { %s899_s8 = ssub.f32 %s897_s9, %s898_s6  ;;  %s7906_s6 = smov 1  }
 0x380   : > { %s900_s10 = smax.f32 %s7904_s16, %s899_s8 }
 0x381   : > { %s901_s11 = sadd.f32 1e-05, %s900_s10 }
 0x383   : > { %v902_v13 = vstv %s901_s11 }
 0x384   : > { %7700 = vrsqrt.f32 %v902_v13 }
 0x38e   : > { %v7701_v17 = vpop.eup %7700 }
 0x38f   : > { %7546 = vpush %v7701_v17 }
 0x390   : > { %7548 = vpush %v913_v18 }
 0x391   : > { %7550 = vpush %v925_v19 }
 0x3c0   : > { %s7547_s30 = spop %7546 }
 0x3c1   : > { %v938_v21 = vstv %s7547_s30  ;;  %s7549_s12 = spop %7548 }
 0x3c2   : > { %v940_v22 = vmul.f32 %v8050_v47, %v938_v21  ;;  %s8108_s7 = smul.f32 0.00390625, %s7549_s12  ;;  %s7551_s13 = spop %7550 }
 0x3c3   : > { %s928_s14 = smul.f32 0.00390625, %s7551_s13 }
 0x3c4   : > { %v955_v25 = vrot.slane %v940_v22, %v8056_v51  ;;  %s929_s15 = smul.f32 %s8108_s7, %s8108_s7  ;;  %v937_v48 = vstv %s8108_s7 }
 0x3c5   : > { %v949_v52 = vsub.f32 %v8083_v36, %v937_v48  ;;  %v951_v53 = vsub.f32 %v8087_v41, %v937_v48 }
 0x3c6   : > { %v960_v26 = vmul.f32 %v955_v25, %v948_v23  ;;  %v962_v27 = vmul.f32 %v955_v25, %v950_v24  ;;  %s930_s17 = ssub.f32 %s928_s14, %s929_s15  ;;  %v1007_v23 = vsel %vm1002_vm4, %v991_v0, 0  ;;  %v992_v25 = vld [vmem:[%s9428_s2 + $0x10] sm:$0xff] }
 0x3c8   : > { %s931_s23 = smax.f32 %s7904_s16, %s930_s17  ;;  %966 = vrot.lane.b32.xlu1 %v962_v27, %s7905_s25  ;;  %964 = vrot.lane.b32.xlu0 %v960_v26, %s7905_s25  ;;  %v1033_v28 = vand.u32 4294901760, %v960_v26  ;;  %v1037_v29 = vand.u32 4294901760, %v962_v27 }
 0x3c9   : > { %s932_s26 = sadd.f32 1e-05, %s931_s23 }
 0x3ca   : > { %v8118_v30 = vpack.c.bf16 %v1037_v29, %v1033_v28  ;;  %v8120_v31 = vsub.f32 %v960_v26, %v1033_v28  ;;  %v8122_v32 = vsub.f32 %v962_v27, %v1037_v29 }
 0x3cb   : > { %v933_v33 = vstv %s932_s26 }
 0x3cc   : > { %7702 = vrsqrt.f32 %v933_v33  ;;  %979 = vrot.lane.b32.xlu1 %v962_v27, %s7906_s6  ;;  %977 = vrot.lane.b32.xlu0 %v960_v26, %s7906_s6  ;;  %v1192_v34 = vand.u32 4294901760, %v8120_v31  ;;  %v1204_v35 = vand.u32 4294901760, %v8122_v32  ;;  %v6996_v37 = vpack.c.bf16 %v8122_v32, %v8120_v31 }
 0x3ce   : > { %v1193_v38 = vsub.f32 %v8120_v31, %v1192_v34  ;;  %v1205_v39 = vsub.f32 %v8122_v32, %v1204_v35  ;;  %v8132_v40 = vpack.c.bf16 %v1204_v35, %v1192_v34  ;;  %v8191_v35 = vsub.f32 %v1004_v15, %v8176_v20 }
 0x3d0   : > { %v1194_v42 = vand.u32 4294901760, %v1193_v38  ;;  %v1206_v43 = vand.u32 4294901760, %v1205_v39  ;;  %v8193_v38 = vand.u32 4294901760, %v1007_v23 }
 0x3d2   : > { %v8134_v44 = vpack.c.bf16 %v1206_v43, %v1194_v42 }
 0x3d6   : > { %v7703_v46 = vpop.eup %7702 }
 0x3d7   : > { %7552 = vpush %v7703_v46  ;;  %v1010_v46 = vsel %vm1002_vm4, %v992_v25, 0 }
 0x408   : > { %s7553_s9 = spop %7552 }
 0x409   : > { %v939_v49 = vstv %s7553_s9 }
 0x40a   : > { %v941_v50 = vmul.f32 %v8050_v47, %v939_v49 }
 0x40c   : > { %v959_v54 = vrot.slane %v941_v50, %v8056_v51 }
 0x40e   : > { %v961_v55 = vmul.f32 %v959_v54, %v949_v52  ;;  %v963_v56 = vmul.f32 %v959_v54, %v951_v53 }
 0x410   : > { %981 = vrot.lane.b32.xlu0 %v961_v55, %s7906_s6  ;;  %968 = vrot.lane.b32.xlu1 %v961_v55, %s7905_s25  ;;  %v1031_v57 = vand.u32 4294901760, %v961_v55  ;;  %v1035_v58 = vand.u32 4294901760, %v963_v56 }
 0x412   : > { %v8143_v59 = vpack.c.bf16 %v1035_v58, %v1031_v57  ;;  %v8145_v60 = vsub.f32 %v961_v55, %v1031_v57  ;;  %v8147_v61 = vsub.f32 %v963_v56, %v1035_v58 }
 0x414   : > { %970 = vrot.lane.b32.xlu1 %v963_v56, %s7905_s25  ;;  %v1186_v36 = vand.u32 4294901760, %v8145_v60  ;;  %v1198_v41 = vand.u32 4294901760, %v8147_v61  ;;  %v6994_v62 = vpack.c.bf16 %v8147_v61, %v8145_v60 }
 0x416   : > { %v1187_v63 = vsub.f32 %v8145_v60, %v1186_v36  ;;  %v1199_v1 = vsub.f32 %v8147_v61, %v1198_v41  ;;  %v8156_v2 = vpack.c.bf16 %v1198_v41, %v1186_v36 }
 0x418   : > { %983 = vrot.lane.b32.xlu1 %v963_v56, %s7906_s6  ;;  %v1188_v3 = vand.u32 4294901760, %v1187_v63  ;;  %v1200_v4 = vand.u32 4294901760, %v1199_v1  ;;  %v993_v63 = vld [vmem:[%s9428_s2 + $0x18] sm:$0xff] }
 0x41a   : > { %v8159_v5 = vpack.c.bf16 %v1200_v4, %v1188_v3  ;;  %v1094_v4 = vand.u32 4294901760, %v8191_v35 }
 0x43a   : > { %v967_v6 = vpop.permute.xlu1 %966  ;;  %v965_v7 = vpop.permute.xlu0 %964 }
 0x43e   : > { %v980_v9 = vpop.permute.xlu1 %979  ;;  %v978_v10 = vpop.permute.xlu0 %977 }
 0x482   : > { %v969_v12 = vpop.permute.xlu1 %968  ;;  %v982_v14 = vpop.permute.xlu0 %981 }
 0x483   : > { %v973_v13 = vsel %vm972_vm3, %v965_v7, %v969_v12  ;;  %v975_v16 = vsel %vm972_vm3, %v969_v12, %v965_v7  ;;  %v986_v18 = vsel %vm985_vm5, %v978_v10, %v982_v14  ;;  %v988_v26 = vsel %vm985_vm5, %v982_v14, %v978_v10 }
 0x484   : > { %v1015_v17 = vand.u32 4294901760, %v973_v13  ;;  %v1017_v24 = vand.u32 4294901760, %v975_v16  ;;  %v1023_v27 = vand.u32 4294901760, %v986_v18  ;;  %v1025_v49 = vand.u32 4294901760, %v988_v26 }
 0x485   : > { %v8233_v10 = vand.u32 4294901760, %v1010_v46  ;;  %v1013_v14 = vsel %vm1002_vm4, %v993_v63, 0 }
 0x486   : > { %v971_v19 = vpop.permute.xlu1 %970  ;;  %v8188_v33 = vsub.f32 %v973_v13, %v1015_v17  ;;  %v8202_v48 = vsub.f32 %v975_v16, %v1017_v24  ;;  %v8206_v53 = vsub.f32 %v986_v18, %v1023_v27  ;;  %v8236_v12 = vsub.f32 %v988_v26, %v1025_v49 }
 0x487   : > { %v974_v21 = vsel %vm972_vm3, %v967_v6, %v971_v19  ;;  %v976_v22 = vsel %vm972_vm3, %v971_v19, %v967_v6  ;;  %v8226_v6 = vsub.f32 %v1007_v23, %v8193_v38  ;;  %v1095_v18 = vsub.f32 %v8191_v35, %v1094_v4 }
 0x488   : > { %v1019_v28 = vand.u32 4294901760, %v974_v21  ;;  %v1021_v29 = vand.u32 4294901760, %v976_v22  ;;  %v1138_v57 = vand.u32 4294901760, %v8188_v33  ;;  %v1144_v11 = vand.u32 4294901760, %v8202_v48 }
 0x489   : > { %v1162_v15 = vand.u32 4294901760, %v8206_v53  ;;  %v9435_v19 = vand.u32 4294901760, %v8226_v6  ;;  %v8259_v23 = vsub.f32 %v1010_v46, %v8233_v10  ;;  %v1168_v26 = vand.u32 4294901760, %v8236_v12 }
 0x48a   : > { %v984_v34 = vpop.permute.xlu1 %983  ;;  %v8195_v39 = vsub.f32 %v974_v21, %v1019_v28  ;;  %v8197_v42 = vsub.f32 %v976_v22, %v1021_v29  ;;  %v8208_v54 = vpack.c.bf16 %v1021_v29, %v1017_v24  ;;  %v8214_v36 = vpack.c.bf16 %v1019_v28, %v1015_v17 }
 0x48b   : > { %v987_v43 = vsel %vm985_vm5, %v980_v9, %v984_v34  ;;  %v989_v50 = vsel %vm985_vm5, %v984_v34, %v980_v9  ;;  %v1139_v0 = vsub.f32 %v8188_v33, %v1138_v57  ;;  %v8261_v24 = vand.u32 4294901760, %v1013_v14 }
 0x48c   : > { %v1027_v52 = vand.u32 4294901760, %v987_v43  ;;  %v1150_v55 = vand.u32 4294901760, %v8195_v39  ;;  %v1029_v56 = vand.u32 4294901760, %v989_v50  ;;  %v1156_v1 = vand.u32 4294901760, %v8197_v42  ;;  %6963 = vmatprep.subr.bf16.mxu1 %v8214_v36 }
 0x48d   : > { %6965 = vmatpush1.bf16.msra.mxu1 %v8208_v54  ;;  %v1145_v25 = vsub.f32 %v8202_v48, %v1144_v11  ;;  %v1163_v28 = vsub.f32 %v8206_v53, %v1162_v15  ;;  %v1106_v46 = vsub.f32 %v8226_v6, %v9435_v19  ;;  %v9447_v61 = vand.u32 4294901760, %v8226_v6 }
 0x48e   : > { %v8212_v58 = vsub.f32 %v987_v43, %v1027_v52  ;;  %v8216_v41 = vpack.c.bf16 %v1027_v52, %v1023_v27  ;;  %v8222_v3 = vsub.f32 %v989_v50, %v1029_v56  ;;  %v1151_v9 = vsub.f32 %v8195_v39, %v1150_v55 }
 0x48f   : > { %v8238_v13 = vpack.c.bf16 %v1029_v56, %v1025_v49  ;;  %v1157_v16 = vsub.f32 %v8197_v42, %v1156_v1  ;;  %v1140_v27 = vand.u32 4294901760, %v1139_v0  ;;  %v1096_v43 = vand.u32 4294901760, %v1095_v18 }
 0x490   : > { %v1174_v7 = vand.u32 4294901760, %v8212_v58  ;;  %6967 = vmatprep.subr.bf16.mxu1 %v8216_v41  ;;  %v1180_v17 = vand.u32 4294901760, %v8222_v3  ;;  %v1152_v21 = vand.u32 4294901760, %v1151_v9  ;;  %v1116_v52 = vand.u32 4294901760, %v8259_v23 }
 0x491   : > { %6969 = vmatpush1.bf16.msra.mxu1 %v8238_v13  ;;  %v1158_v29 = vand.u32 4294901760, %v1157_v16  ;;  %v8280_v56 = vsub.f32 %v1013_v14, %v8261_v24  ;;  %v1146_v63 = vand.u32 4294901760, %v1145_v25  ;;  %v1169_v9 = vsub.f32 %v8236_v12, %v1168_v26 }
 0x492   : > { %v1175_v22 = vsub.f32 %v8212_v58, %v1174_v7  ;;  %6971 = vmatprep.subr.bf16.mxu1 %v8143_v59  ;;  %v1181_v34 = vsub.f32 %v8222_v3, %v1180_v17  ;;  %v6974_v49 = vpack.c.bf16 %v1152_v21, %v1140_v27  ;;  %v1164_v0 = vand.u32 4294901760, %v1163_v28 }
 0x493   : > { %v6976_v18 = vpack.c.bf16 %v1158_v29, %v1146_v63  ;;  %v1107_v21 = vand.u32 4294901760, %v1106_v46  ;;  %v1127_v14 = vand.u32 4294901760, %v8280_v56  ;;  %v1170_v25 = vand.u32 4294901760, %v1169_v9 }
 0x494   : > { %v1176_v50 = vand.u32 4294901760, %v1175_v22  ;;  %v1182_v16 = vand.u32 4294901760, %v1181_v34  ;;  %v1117_v22 = vsub.f32 %v8259_v23, %v1116_v52  ;;  %v6986_v29 = vpack.c.bf16 %v8195_v39, %v8188_v33  ;;  %v996_v33 = vld [vmem:[#allocation2 + $0x30] sm:$0xff]  ;;  %v997_v39 = vld [vmem:[#allocation2 + $0x38] sm:$0xff] }
 0x495   : > { %6973 = vmatpush1.bf16.msra.mxu1 %v8118_v30  ;;  %v1128_v28 = vsub.f32 %v8280_v56, %v1127_v14  ;;  %v7010_v31 = vpack.c.bf16 %v1150_v55, %v1138_v57  ;;  %v7012_v32 = vpack.c.bf16 %v1156_v1, %v1144_v11  ;;  %v7016_v60 = vpack.c.bf16 %v1180_v17, %v1168_v26  ;;  %v999_v1 = vld [vmem:[#allocation2 + $0x48] sm:$0xff]  ;;  %v1001_v11 = vld [vmem:[#allocation2 + $0x58] sm:$0xff] }
 0x496   : > { %6975 = vmatprep.subr.bf16.mxu1 %v6974_v49  ;;  %v6978_v19 = vpack.c.bf16 %v1176_v50, %v1164_v0  ;;  %v6980_v27 = vpack.c.bf16 %v1182_v16, %v1170_v25  ;;  %v1118_v49 = vand.u32 4294901760, %v1117_v22  ;;  %v8389_v16 = vrot.slane %v8050_v47, %v8056_v51 }
 0x497   : > { %v1129_v34 = vand.u32 4294901760, %v1128_v28 }
 0x498   : > { %1097 = vmatmul.mubr.f32.vlgmr.msra.gmra.mrb[4].mxu1 %v1096_v43 }
 0x499   : > { %6977 = vmatpush1.bf16.msra.mxu1 %v6976_v18  ;;  %1102 = vmatprep.mubr.f32.mxu1 %v9438_v8 }
 0x49a   : > { %6979 = vmatprep.subr.bf16.mxu1 %v6978_v19  ;;  %v6988_v19 = vpack.c.bf16 %v8197_v42, %v8202_v48 }
 0x49c   : > { %1108 = vmatmul.mubr.f32.gmra.mrb[6].mxu1 %v1107_v21 }
 0x49d   : > { %6981 = vmatpush1.bf16.msra.mxu1 %v6980_v27  ;;  %1113 = vmatprep.mubr.f32.mxu1 %v9438_v8 }
 0x49e   : > { %6983 = vmatprep.subr.bf16.mxu1 %v8159_v5  ;;  %v6990_v5 = vpack.c.bf16 %v8212_v58, %v8206_v53 }
 0x4a0   : > { %1119 = vmatmul.mubr.f32.gmra.mrb[8].mxu1 %v1118_v49 }
 0x4a1   : > { %6985 = vmatpush1.bf16.msra.mxu1 %v8134_v44  ;;  %1124 = vmatprep.mubr.f32.mxu1 %v9438_v8  ;;  %v6992_v44 = vpack.c.bf16 %v8222_v3, %v8236_v12 }
 0x4a2   : > { %6987 = vmatprep.subr.bf16.mxu1 %v6986_v29 }
 0x4a4   : > { %1130 = vmatmul.mubr.f32.gmra.mrb[10].mxu1 %v1129_v34 }
 0x4a5   : > { %1260 = vmatprep.mubr.f32.mxu1 %v9438_v8 }
 0x4a8   : > { %1262 = vmatmul.mubr.f32.vlgmr.msra.gmra.mrb[4].mxu1 %v8176_v20 }
 0x4a9   : > { %6989 = vmatpush1.bf16.msra.mxu1 %v6988_v19  ;;  %1267 = vmatprep.mubr.f32.mxu1 %v9438_v8 }
 0x4aa   : > { %6991 = vmatprep.subr.bf16.mxu1 %v6990_v5 }
 0x4ac   : > { %1269 = vmatmul.mubr.f32.gmra.mrb[6].mxu1 %v8193_v38 }
 0x4ad   : > { %6993 = vmatpush1.bf16.msra.mxu1 %v6992_v44  ;;  %1274 = vmatprep.mubr.f32.mxu1 %v9438_v8 }
 0x4ae   : > { %6995 = vmatprep.subr.bf16.mxu1 %v6994_v62 }
 0x4b0   : > { %1276 = vmatmul.mubr.f32.gmra.mrb[8].mxu1 %v8233_v10 }
 0x4b1   : > { %6997 = vmatpush1.bf16.msra.mxu1 %v6996_v37  ;;  %1281 = vmatprep.mubr.f32.mxu1 %v9438_v8  ;;  %v7014_v37 = vpack.c.bf16 %v1174_v7, %v1162_v15  ;;  %v1000_v7 = vld [vmem:[#allocation2 + $0x50] sm:$0xff] }
 0x4b2   : > { %6999 = vmatprep.subr.bf16.mxu1 %v8214_v36 }
 0x4b4   : > { %1283 = vmatmul.mubr.f32.gmra.mrb[10].mxu1 %v8261_v24 }
 0x4b5   : > { %1377 = vmatprep.mubr.f32.mxu1 %v9438_v8 }
 0x4b8   : > { %1380 = vmatmul.mubr.f32.vlgmr.msra.gmra.mrb[4].mxu1 %v8191_v35 }
 0x4b9   : > { %7001 = vmatpush1.bf16.msra.mxu1 %v8208_v54  ;;  %1385 = vmatprep.mubr.f32.mxu1 %v9438_v8 }
 0x4ba   : > { %7003 = vmatprep.subr.bf16.mxu1 %v8216_v41 }
 0x4bc   : > { %1388 = vmatmul.mubr.f32.gmra.mrb[6].mxu1 %v8226_v6 }
 0x4bd   : > { %7005 = vmatpush1.bf16.msra.mxu1 %v8238_v13  ;;  %1393 = vmatprep.mubr.f32.mxu1 %v9438_v8 }
 0x4be   : > { %7007 = vmatprep.subr.bf16.mxu1 %v8143_v59 }
 0x4c0   : > { %1396 = vmatmul.mubr.f32.gmra.mrb[8].mxu1 %v8259_v23 }
 0x4c1   : > { %7009 = vmatpush1.bf16.msra.mxu1 %v8118_v30  ;;  %1401 = vmatprep.mubr.f32.mxu1 %v9438_v8 }
 0x4c2   : > { %7011 = vmatprep.subr.bf16.mxu1 %v7010_v31 }
 0x4c4   : > { %1404 = vmatmul.mubr.f32.gmra.mrb[10].mxu1 %v8280_v56 }
 0x4c5   : > { %1486 = vmatprep.mubr.f32.mxu1 %v9438_v8 }
 0x4c8   : > { %1490 = vmatmul.mubr.f32.vlgmr.msra.gmra.mrb[4].mxu1 %v1094_v4 }
 0x4c9   : > { %7013 = vmatpush1.bf16.msra.mxu1 %v7012_v32  ;;  %1495 = vmatprep.mubr.f32.mxu1 %v9438_v8 }
 0x4ca   : > { %7015 = vmatprep.subr.bf16.mxu1 %v7014_v37 }
 0x4cc   : > { %1499 = vmatmul.mubr.f32.gmra.mrb[6].mxu1 %v9447_v61 }
 0x4cd   : > { %7017 = vmatpush1.bf16.msra.mxu1 %v7016_v60  ;;  %1504 = vmatprep.mubr.f32.mxu1 %v9438_v8 }
 0x4ce   : > { %7019 = vmatprep.subr.bf16.mxu1 %v8156_v2 }
 0x4d0   : > { %1508 = vmatmul.mubr.f32.gmra.mrb[8].mxu1 %v1116_v52 }
 0x4d1   : > { %7021 = vmatpush1.bf16.msra.mxu1 %v8132_v40  ;;  %1513 = vmatprep.mubr.f32.mxu1 %v9438_v8  ;;  %v995_v40 = vld [vmem:[#allocation2 + $0x28] sm:$0xff] }
 0x4d2   : > { %7023 = vmatprep.subr.bf16.mxu1 %v8214_v36  ;;  %v998_v36 = vld [vmem:[#allocation2 + $0x40] sm:$0xff] }
 0x4d4   : > { %1517 = vmatmul.mubr.f32.gmra.mrb[10].mxu1 %v1127_v14 }
 0x4d5   : > { %1623 = vmatprep.mubr.f32.mxu1 %v9438_v8 }
 0x4d8   : > { %1625 = vmatmul.mubr.f32.vlgmr.msra.gmra.mrb[4].mxu1 %v8176_v20 }
 0x4d9   : > { %7025 = vmatpush1.bf16.msra.mxu1 %v8208_v54  ;;  %1630 = vmatprep.mubr.f32.mxu1 %v9438_v8 }
 0x4da   : > { %7027 = vmatprep.subr.bf16.mxu1 %v8216_v41 }
 0x4dc   : > { %1632 = vmatmul.mubr.f32.gmra.mrb[6].mxu1 %v8193_v38 }
 0x4dd   : > { %7029 = vmatpush1.bf16.msra.mxu1 %v8238_v13  ;;  %1637 = vmatprep.mubr.f32.mxu1 %v9438_v8 }
 0x4de   : > { %7031 = vmatprep.subr.bf16.mxu1 %v8143_v59 }
 0x4e0   : > { %1639 = vmatmul.mubr.f32.gmra.mrb[8].mxu1 %v8233_v10 }
 0x4e1   : > { %7033 = vmatpush1.bf16.msra.mxu1 %v8118_v30  ;;  %1644 = vmatprep.mubr.f32.mxu1 %v9438_v8  ;;  %v994_v30 = vld [vmem:[#allocation2 + $0x20] sm:$0xff] }
 0x4e4   : > { %1646 = vmatmul.mubr.f32.gmra.mrb[10].mxu1 %v8261_v24 }
 0x4e5   : > { %1728 = vmatprep.mubr.f32.mxu1 %v9438_v8 }
 0x4e8   : > { %1730 = vmatmul.mubr.f32.vlgmr.msra.gmra.mrb[4].mxu1 %v8176_v20 }
 0x4e9   : > { %1735 = vmatprep.mubr.f32.mxu1 %v9438_v8 }
 0x4ec   : > { %1737 = vmatmul.mubr.f32.gmra.mrb[6].mxu1 %v8193_v38 }
 0x4ed   : > { %1742 = vmatprep.mubr.f32.mxu1 %v9438_v8 }
 0x4f0   : > { %1744 = vmatmul.mubr.f32.gmra.mrb[8].mxu1 %v8233_v10 }
 0x4f1   : > { %1749 = vmatprep.mubr.f32.mxu1 %v9438_v8 }
 0x4f4   : > { %1751 = vmatmul.mubr.f32.gmra.mrb[10].mxu1 %v8261_v24 }
 0x4f5   : > { %2711 = vmatprep.mubr.f32.mxu1 %v9438_v8 }
 0x5bb   : > { %v1731_v59 = vpop.f32.mrb[4].mxu1 }
 0x5bc   : > { %v7258_v62 = vadd.f32 %v1731_v59, %v994_v30  ;;  %v1733_v2 = vpop.f32.mrb[5].mxu1 }
 0x5bd   : > { %v7259_v20 = vadd.f32 %v1733_v2, %v995_v40 }
 0x5be   : > { %v6930_v35 = vmul.f32 -1.442695, %v7258_v62 }
 0x5bf   : > { %v6931_v38 = vmul.f32 -1.442695, %v7259_v20  ;;  %v1738_v42 = vpop.f32.mrb[6].mxu1 }
 0x5c0   : > { %7704 = vpow2.f32 %v6930_v35  ;;  %v7260_v48 = vadd.f32 %v1738_v42, %v996_v33  ;;  %v1740_v53 = vpop.f32.mrb[7].mxu1 }
 0x5c1   : > { %7706 = vpow2.f32 %v6931_v38  ;;  %v7261_v54 = vadd.f32 %v1740_v53, %v997_v39 }
 0x5c2   : > { %v6932_v55 = vmul.f32 -1.442695, %v7260_v48 }
 0x5c3   : > { %v6933_v57 = vmul.f32 -1.442695, %v7261_v54  ;;  %v1745_v58 = vpop.f32.mrb[8].mxu1 }
 0x5c4   : > { %7708 = vpow2.f32 %v6932_v55  ;;  %v1747_v41 = vpop.f32.mrb[9].mxu1  ;;  %v7262_v3 = vadd.f32 %v1745_v58, %v998_v36 }
 0x5c5   : > { %7710 = vpow2.f32 %v6933_v57  ;;  %v7263_v6 = vadd.f32 %v1747_v41, %v999_v1 }
 0x5c6   : > { %7712 = vtanh.f32 %v7262_v3 }
 0x5c7   : > { %v1752_v4 = vpop.f32.mrb[10].mxu1  ;;  %7714 = vtanh.f32 %v7263_v6 }
 0x5c8   : > { %v1754_v10 = vpop.f32.mrb[11].mxu1  ;;  %v7264_v17 = vadd.f32 %v1752_v4, %v1000_v7 }
 0x5c9   : > { %v7265_v24 = vadd.f32 %v1754_v10, %v1001_v11 }
 0x5ca   : > { %v7705_v12 = vpop.eup %7704 }
 0x5cb   : > { %v7707_v13 = vpop.eup %7706  ;;  %v1769_v15 = vadd.f32 1.0, %v7705_v12 }
 0x5cc   : > { %v1770_v23 = vadd.f32 1.0, %v7707_v13 }
 0x5cd   : > { %7716 = vrcp.f32 %v1769_v15 }
 0x5ce   : > { %v7709_v26 = vpop.eup %7708  ;;  %7718 = vrcp.f32 %v1770_v23 }
 0x5cf   : > { %v7711_v43 = vpop.eup %7710  ;;  %v1771_v46 = vadd.f32 1.0, %v7709_v26  ;;  %7720 = vtanh.f32 %v7264_v17 }
 0x5d0   : > { %v1772_v50 = vadd.f32 1.0, %v7711_v43  ;;  %7722 = vtanh.f32 %v7265_v24  ;;  %v7713_v52 = vpop.eup %7712 }
 0x5d1   : > { %7724 = vrcp.f32 %v1771_v46  ;;  %v7715_v56 = vpop.eup %7714 }
 0x5d2   : > { %7726 = vrcp.f32 %v1772_v50 }
 0x5d7   : > { %v7717_v63 = vpop.eup %7716 }
 0x5d8   : > { %v7719_v9 = vpop.eup %7718  ;;  %v1785_v0 = vmul.f32 %v7717_v63, %v7713_v52 }
 0x5d9   : > { %v7721_v18 = vpop.eup %7720  ;;  %v1786_v21 = vmul.f32 %v7719_v9, %v7715_v56 }
 0x5da   : > { %v7723_v22 = vpop.eup %7722  ;;  %v8392_v49 = vmul.f32 %v8389_v16, %v1785_v0 }
 0x5db   : > { %v7725_v14 = vpop.eup %7724  ;;  %v8407_v32 = vmul.f32 %v8389_v16, %v1786_v21 }
 0x5dc   : > { %v7727_v25 = vpop.eup %7726  ;;  %v1787_v27 = vmul.f32 %v7725_v14, %v7721_v18  ;;  %v1810_v19 = vmul.f32 %v8392_v49, %v8392_v49 }
 0x5dd   : > { %v1788_v28 = vmul.f32 %v7727_v25, %v7723_v22  ;;  %v1841_v61 = vmul.f32 %v8407_v32, %v8407_v32 }
 0x5de   : > { %v8395_v29 = vmul.f32 %v8389_v16, %v1787_v27 }
 0x5df   : > { %v8404_v44 = vmul.f32 %v8389_v16, %v1788_v28 }
 0x5e0   : > { %v1800_v34 = vadd.f32 %v8395_v29, %v8392_v49  ;;  %v1811_v5 = vmul.f32 %v8395_v29, %v8395_v29 }
 0x5e1   : > { %v1831_v37 = vadd.f32 %v8404_v44, %v8407_v32  ;;  %v1842_v60 = vmul.f32 %v8404_v44, %v8404_v44 }
 0x5e2   : > { %1801 = vadd.xlane.f32.xlu0 %v1800_v34  ;;  %v1812_v31 = vadd.f32 %v1811_v5, %v1810_v19 }
 0x5e3   : > { %v1843_v30 = vadd.f32 %v1842_v60, %v1841_v61  ;;  %v1797_v60 = vld [vmem:[%s9429_s3] sm:$0xff] }
 0x5e4   : > { %1813 = vadd.xlane.f32.xlu1 %v1812_v31  ;;  %v1898_v61 = vsel %vm1896_vm6, %v1797_v60, 0 }
 0x5e6   : > { %1832 = vadd.xlane.f32.xlu0 %v1831_v37 }
 0x5ea   : > { %1844 = vadd.xlane.f32.xlu0 %v1843_v30  ;;  %v1798_v30 = vld [vmem:[%s9429_s3 + $0x8] sm:$0xff] }
 0x66f   : > { %v1802_v40 = vpop.xlane.xlu0 %1801 }
 0x670   : > { %v1803_v59 = vrot.slane %v1802_v40, 4 }
 0x671   : > { %v1814_v62 = vpop.xlane.xlu1 %1813 }
 0x672   : > { %v1804_v2 = vadd.f32 %v1803_v59, %v1802_v40  ;;  %v1815_v20 = vrot.slane %v1814_v62, 4  ;;  %v8451_v40 = vand.u32 4294901760, %v1898_v61  ;;  %v1901_v59 = vsel %vm1896_vm6, %v1798_v30, 0 }
 0x673   : > { %v1833_v57 = vpop.xlane.xlu0 %1832 }
 0x674   : > { %v1805_v33 = vrot.slane %v1804_v2, 2  ;;  %v1816_v35 = vadd.f32 %v1815_v20, %v1814_v62  ;;  %v1834_v36 = vrot.slane %v1833_v57, 4  ;;  %v1799_v62 = vld [vmem:[%s9429_s3 + $0x10] sm:$0xf]  ;;  %v8460_v20 = vand.u32 4294901760, %v1901_v59 }
 0x676   : > { %v1817_v39 = vrot.slane %v1816_v35, 2  ;;  %v1806_v38 = vadd.f32 %v1805_v33, %v1804_v2  ;;  %v1835_v1 = vadd.f32 %v1834_v36, %v1833_v57  ;;  %v8458_v2 = vsub.f32 %v1898_v61, %v8451_v40 }
 0x677   : > { %v1845_v58 = vpop.xlane.xlu0 %1844 }
 0x678   : > { %v1807_v42 = vrot.slane %v1806_v38, 1  ;;  %v1818_v48 = vadd.f32 %v1817_v39, %v1816_v35  ;;  %v1846_v41 = vrot.slane %v1845_v58, 4  ;;  %v1836_v4 = vrot.slane %v1835_v1, 2 }
 0x679   : > { %v1904_v39 = vsel %vm1896_vm6, %v1799_v62, 0 }
 0x67a   : > { %v1808_v53 = vadd.f32 %v1807_v42, %v1806_v38  ;;  %v1819_v54 = vrot.slane %v1818_v48, 1  ;;  %v1847_v3 = vadd.f32 %v1846_v41, %v1845_v58  ;;  %v1837_v10 = vadd.f32 %v1836_v4, %v1835_v1 }
 0x67b   : > { %v1977_v42 = vand.u32 4294901760, %v8458_v2  ;;  %v8470_v57 = vand.u32 4294901760, %v1904_v39 }
 0x67c   : > { %7554 = vpush %v1808_v53  ;;  %v1820_v55 = vadd.f32 %v1819_v54, %v1818_v48  ;;  %v1848_v6 = vrot.slane %v1847_v3, 2  ;;  %v1838_v12 = vrot.slane %v1837_v10, 1  ;;  %v1987_v48 = vsub.f32 %v1901_v59, %v8460_v20 }
 0x67d   : > { %v1978_v41 = vsub.f32 %v8458_v2, %v1977_v42 }
 0x67e   : > { %7556 = vpush %v1820_v55  ;;  %v1849_v11 = vadd.f32 %v1848_v6, %v1847_v3  ;;  %v1839_v17 = vadd.f32 %v1838_v12, %v1837_v10  ;;  %v1988_v4 = vand.u32 4294901760, %v1987_v48  ;;  %v1998_v6 = vsub.f32 %v1904_v39, %v8470_v57 }
 0x67f   : > { %v1979_v12 = vand.u32 4294901760, %v1978_v41 }
 0x680   : > { %v1850_v13 = vrot.slane %v1849_v11, 1 }
 0x682   : > { %v1851_v23 = vadd.f32 %v1850_v13, %v1849_v11 }
 0x6ad   : > { %s7555_s15 = spop %7554 }
 0x6ae   : > { %s8415_s17 = smul.f32 0.00390625, %s7555_s15 }
 0x6af   : > { %s7557_s23 = spop %7556 }
 0x6b0   : > { %s1824_s26 = smul.f32 %s8415_s17, %s8415_s17  ;;  %v1862_v24 = vstv %s8415_s17 }
 0x6b1   : > { %s1823_s6 = smul.f32 0.00390625, %s7557_s23  ;;  %v1874_v46 = vsub.f32 %v8392_v49, %v1862_v24  ;;  %v1876_v50 = vsub.f32 %v8395_v29, %v1862_v24 }
 0x6b3   : > { %s1825_s9 = ssub.f32 %s1823_s6, %s1824_s26 }
 0x6b5   : > { %s1826_s8 = smax.f32 %s7904_s16, %s1825_s9 }
 0x6b6   : > { %s1827_s10 = sadd.f32 1e-05, %s1826_s8 }
 0x6b8   : > { %v1828_v7 = vstv %s1827_s10 }
 0x6b9   : > { %7728 = vrsqrt.f32 %v1828_v7 }
 0x6c3   : > { %v7729_v15 = vpop.eup %7728 }
 0x6c4   : > { %7558 = vpush %v7729_v15  ;;  %v1999_v15 = vand.u32 4294901760, %v1998_v6 }
 0x6c5   : > { %7560 = vpush %v1839_v17 }
 0x6c6   : > { %7562 = vpush %v1851_v23 }
 0x6f5   : > { %s7559_s11 = spop %7558 }
 0x6f6   : > { %v1864_v26 = vstv %s7559_s11  ;;  %s7561_s30 = spop %7560 }
 0x6f7   : > { %v1866_v43 = vmul.f32 %v8050_v47, %v1864_v26  ;;  %s8422_s12 = smul.f32 0.00390625, %s7561_s30  ;;  %s7563_s7 = spop %7562 }
 0x6f8   : > { %s1854_s13 = smul.f32 0.00390625, %s7563_s7 }
 0x6f9   : > { %v1881_v52 = vrot.slane %v1866_v43, %v8056_v51  ;;  %s1855_s14 = smul.f32 %s8422_s12, %s8422_s12  ;;  %v1863_v33 = vstv %s8422_s12 }
 0x6fa   : > { %v1875_v53 = vsub.f32 %v8407_v32, %v1863_v33  ;;  %v1877_v54 = vsub.f32 %v8404_v44, %v1863_v33  ;;  %v1989_v32 = vsub.f32 %v1987_v48, %v1988_v4 }
 0x6fb   : > { %v1886_v56 = vmul.f32 %v1881_v52, %v1874_v46  ;;  %v1888_v63 = vmul.f32 %v1881_v52, %v1876_v50  ;;  %s1856_s15 = ssub.f32 %s1854_s13, %s1855_s14  ;;  %v2000_v46 = vsub.f32 %v1998_v6, %v1999_v15 }
 0x6fc   : > { %v1990_v24 = vand.u32 4294901760, %v1989_v32 }
 0x6fd   : > { %v1908_v9 = vand.u32 4294901760, %v1886_v56  ;;  %v1912_v0 = vand.u32 4294901760, %v1888_v63  ;;  %s1857_s17 = smax.f32 %s7904_s16, %s1856_s15 }
 0x6fe   : > { %s1858_s23 = sadd.f32 1e-05, %s1857_s17 }
 0x6ff   : > { %v8430_v18 = vsub.f32 %v1886_v56, %v1908_v9  ;;  %v8432_v21 = vsub.f32 %v1888_v63, %v1912_v0  ;;  %v8434_v22 = vpack.c.bf16 %v1912_v0, %v1908_v9  ;;  %v2001_v56 = vand.u32 4294901760, %v2000_v46  ;;  %v1890_v9 = vld [vmem:[#allocation2 + $0x60] sm:$0xff] }
 0x700   : > { %v1859_v14 = vstv %s1858_s23 }
 0x701   : > { %7730 = vrsqrt.f32 %v1859_v14  ;;  %v2016_v25 = vand.u32 4294901760, %v8430_v18  ;;  %v2028_v27 = vand.u32 4294901760, %v8432_v21  ;;  %v7044_v49 = vpack.c.bf16 %v8432_v21, %v8430_v18  ;;  %v1893_v14 = vld [vmem:[#allocation2 + $0x78] sm:$0xff] }
 0x703   : > { %v2017_v28 = vsub.f32 %v8430_v18, %v2016_v25  ;;  %v2029_v29 = vsub.f32 %v8432_v21, %v2028_v27  ;;  %v8442_v34 = vpack.c.bf16 %v2028_v27, %v2016_v25  ;;  %v1892_v21 = vld [vmem:[#allocation2 + $0x70] sm:$0xff]  ;;  %v1891_v25 = vld [vmem:[#allocation2 + $0x68] sm:$0xff] }
 0x705   : > { %v2018_v19 = vand.u32 4294901760, %v2017_v28  ;;  %v2030_v5 = vand.u32 4294901760, %v2029_v29 }
 0x707   : > { %v7040_v31 = vpack.c.bf16 %v2030_v5, %v2018_v19 }
 0x70b   : > { %v7731_v37 = vpop.eup %7730 }
 0x70c   : > { %7564 = vpush %v7731_v37 }
 0x73d   : > { %s7565_s30 = spop %7564 }
 0x73e   : > { %v1865_v35 = vstv %s7565_s30 }
 0x73f   : > { %v1867_v38 = vmul.f32 %v8050_v47, %v1865_v35 }
 0x741   : > { %v1885_v55 = vrot.slane %v1867_v38, %v8056_v51 }
 0x743   : > { %v1887_v58 = vmul.f32 %v1885_v55, %v1875_v53  ;;  %v1889_v36 = vmul.f32 %v1885_v55, %v1877_v54 }
 0x745   : > { %v1906_v1 = vand.u32 4294901760, %v1887_v58  ;;  %v1910_v3 = vand.u32 4294901760, %v1889_v36 }
 0x747   : > { %v7034_v7 = vpack.c.bf16 %v1910_v3, %v1906_v1  ;;  %v2009_v10 = vsub.f32 %v1887_v58, %v1906_v1  ;;  %v2021_v11 = vsub.f32 %v1889_v36, %v1910_v3 }
 0x749   : > { %7035 = vmatprep.subr.bf16.mxu0 %v7034_v7  ;;  %v2010_v44 = vand.u32 4294901760, %v2009_v10  ;;  %v2022_v13 = vand.u32 4294901760, %v2021_v11  ;;  %v7042_v52 = vpack.c.bf16 %v2021_v11, %v2009_v10 }
 0x74a   : > { %7037 = vmatpush1.bf16.msra.mxu0 %v8434_v22 }
 0x74b   : > { %v2011_v17 = vsub.f32 %v2009_v10, %v2010_v44  ;;  %v2023_v23 = vsub.f32 %v2021_v11, %v2022_v13  ;;  %v7050_v63 = vpack.c.bf16 %v2022_v13, %v2010_v44 }
 0x74d   : > { %1980 = vmatmul.mubr.f32.vlgmr.msra.gmra.mrb[4].mxu0 %v1979_v12  ;;  %v2012_v26 = vand.u32 4294901760, %v2011_v17  ;;  %v2024_v43 = vand.u32 4294901760, %v2023_v23 }
 0x74e   : > { %1985 = vmatprep.mubr.f32.mxu0 %v9438_v8 }
 0x74f   : > { %v7038_v50 = vpack.c.bf16 %v2024_v43, %v2012_v26 }
 0x751   : > { %1991 = vmatmul.mubr.f32.gmra.mrb[6].mxu0 %v1990_v24  ;;  %7039 = vmatprep.subr.bf16.mxu0 %v7038_v50 }
 0x752   : > { %7041 = vmatpush1.bf16.msra.mxu0 %v7040_v31  ;;  %1996 = vmatprep.mubr.f32.mxu0 %v9438_v8 }
 0x753   : > { %7043 = vmatprep.subr.bf16.mxu0 %v7042_v52 }
 0x755   : > { %2002 = vmatmul.mubr.f32.gmra.mrb[8].mxu0 %v2001_v56 }
 0x756   : > { %2092 = vmatprep.mubr.f32.mxu0 %v9438_v8 }
 0x759   : > { %2094 = vmatmul.mubr.f32.vlgmr.msra.gmra.mrb[4].mxu0 %v8451_v40 }
 0x75a   : > { %7045 = vmatpush1.bf16.msra.mxu0 %v7044_v49  ;;  %2099 = vmatprep.mubr.f32.mxu0 %v9438_v8 }
 0x75b   : > { %7047 = vmatprep.subr.bf16.mxu0 %v7034_v7 }
 0x75d   : > { %2101 = vmatmul.mubr.f32.gmra.mrb[6].mxu0 %v8460_v20 }
 0x75e   : > { %2106 = vmatprep.mubr.f32.mxu0 %v9438_v8 }
 0x761   : > { %2108 = vmatmul.mubr.f32.gmra.mrb[8].mxu0 %v8470_v57 }
 0x762   : > { %2186 = vmatprep.mubr.f32.mxu0 %v9438_v8 }
 0x765   : > { %2189 = vmatmul.mubr.f32.vlgmr.msra.gmra.mrb[4].mxu0 %v8458_v2 }
 0x766   : > { %7049 = vmatpush1.bf16.msra.mxu0 %v8434_v22  ;;  %2194 = vmatprep.mubr.f32.mxu0 %v9438_v8 }
 0x767   : > { %7051 = vmatprep.subr.bf16.mxu0 %v7050_v63 }
 0x769   : > { %2197 = vmatmul.mubr.f32.gmra.mrb[6].mxu0 %v1987_v48 }
 0x76a   : > { %2202 = vmatprep.mubr.f32.mxu0 %v9438_v8 }
 0x76d   : > { %2205 = vmatmul.mubr.f32.gmra.mrb[8].mxu0 %v1998_v6 }
 0x76e   : > { %2279 = vmatprep.mubr.f32.mxu0 %v9438_v8 }
 0x771   : > { %2283 = vmatmul.mubr.f32.vlgmr.msra.gmra.mrb[4].mxu0 %v1977_v42 }
 0x772   : > { %7053 = vmatpush1.bf16.msra.mxu0 %v8442_v34  ;;  %2288 = vmatprep.mubr.f32.mxu0 %v9438_v8 }
 0x773   : > { %7055 = vmatprep.subr.bf16.mxu0 %v7034_v7 }
 0x775   : > { %2292 = vmatmul.mubr.f32.gmra.mrb[6].mxu0 %v1988_v4 }
 0x776   : > { %2297 = vmatprep.mubr.f32.mxu0 %v9438_v8 }
 0x779   : > { %2301 = vmatmul.mubr.f32.gmra.mrb[8].mxu0 %v1999_v15 }
 0x77a   : > { %2383 = vmatprep.mubr.f32.mxu0 %v9438_v8 }
 0x77d   : > { %2385 = vmatmul.mubr.f32.vlgmr.msra.gmra.mrb[4].mxu0 %v8451_v40 }
 0x77e   : > { %7057 = vmatpush1.bf16.msra.mxu0 %v8434_v22  ;;  %2390 = vmatprep.mubr.f32.mxu0 %v9438_v8 }
 0x781   : > { %2392 = vmatmul.mubr.f32.gmra.mrb[6].mxu0 %v8460_v20 }
 0x782   : > { %2397 = vmatprep.mubr.f32.mxu0 %v9438_v8 }
 0x785   : > { %2399 = vmatmul.mubr.f32.gmra.mrb[8].mxu0 %v8470_v57 }
 0x786   : > { %2473 = vmatprep.mubr.f32.mxu0 %v9438_v8 }
 0x789   : > { %2475 = vmatmul.mubr.f32.vlgmr.msra.gmra.mrb[4].mxu0 %v8451_v40 }
 0x78a   : > { %2480 = vmatprep.mubr.f32.mxu0 %v9438_v8 }
 0x78d   : > { %2482 = vmatmul.mubr.f32.gmra.mrb[6].mxu0 %v8460_v20 }
 0x78e   : > { %2487 = vmatprep.mubr.f32.mxu0 %v9438_v8 }
 0x791   : > { %2489 = vmatmul.mubr.f32.gmra.mrb[8].mxu0 %v8470_v57 }
 0x792   : > { %3590 = vmatprep.mubr.f32.mxu0 %v9438_v8 }
 0x85c   : > { %v2476_v0 = vpop.f32.mrb[4].mxu0 }
 0x85d   : > { %v2478_v18 = vpop.f32.mrb[5].mxu0  ;;  %v8509_v22 = vadd.f32 %v2476_v0, %v1890_v9 }
 0x85e   : > { %v8515_v34 = vadd.f32 %v2478_v18, %v1891_v25 }
 0x85f   : > { %v2505_v5 = vmul.f32 %v8509_v22, %v8509_v22 }
 0x860   : > { %v2483_v27 = vpop.f32.mrb[6].mxu0  ;;  %v2536_v30 = vmul.f32 %v8515_v34, %v8515_v34 }
 0x861   : > { %v8511_v49 = vadd.f32 %v2483_v27, %v1892_v21  ;;  %v2485_v28 = vpop.f32.mrb[7].mxu0 }
 0x862   : > { %v8513_v29 = vadd.f32 %v2485_v28, %v1893_v14 }
 0x863   : > { %v2495_v19 = vadd.f32 %v8511_v49, %v8509_v22  ;;  %v2506_v31 = vmul.f32 %v8511_v49, %v8511_v49 }
 0x864   : > { %v2537_v60 = vmul.f32 %v8513_v29, %v8513_v29  ;;  %v2526_v61 = vadd.f32 %v8513_v29, %v8515_v34 }
 0x865   : > { %2496 = vadd.xlane.f32.xlu0 %v2495_v19  ;;  %v2507_v37 = vadd.f32 %v2506_v31, %v2505_v5 }
 0x866   : > { %v2538_v40 = vadd.f32 %v2537_v60, %v2536_v30 }
 0x867   : > { %2508 = vadd.xlane.f32.xlu1 %v2507_v37 }
 0x869   : > { %2527 = vadd.xlane.f32.xlu0 %v2526_v61 }
 0x86b   : > { %2539 = vadd.xlane.f32.xlu1 %v2538_v40 }
 0x8f2   : > { %v2497_v59 = vpop.xlane.xlu0 %2496 }
 0x8f3   : > { %v2498_v62 = vrot.slane %v2497_v59, 4 }
 0x8f4   : > { %v2509_v2 = vpop.xlane.xlu1 %2508 }
 0x8f5   : > { %v2499_v20 = vadd.f32 %v2498_v62, %v2497_v59  ;;  %v2510_v33 = vrot.slane %v2509_v2, 4 }
 0x8f6   : > { %v2528_v58 = vpop.xlane.xlu0 %2527 }
 0x8f7   : > { %v2500_v35 = vrot.slane %v2499_v20, 2  ;;  %v2511_v39 = vadd.f32 %v2510_v33, %v2509_v2  ;;  %v2529_v41 = vrot.slane %v2528_v58, 4 }
 0x8f8   : > { %v2540_v36 = vpop.xlane.xlu1 %2539 }
 0x8f9   : > { %v2512_v38 = vrot.slane %v2511_v39, 2  ;;  %v2501_v42 = vadd.f32 %v2500_v35, %v2499_v20  ;;  %v2541_v1 = vrot.slane %v2540_v36, 4  ;;  %v2530_v3 = vadd.f32 %v2529_v41, %v2528_v58 }
 0x8fb   : > { %v2502_v48 = vrot.slane %v2501_v42, 1  ;;  %v2513_v53 = vadd.f32 %v2512_v38, %v2511_v39  ;;  %v2542_v4 = vadd.f32 %v2541_v1, %v2540_v36  ;;  %v2531_v6 = vrot.slane %v2530_v3, 2 }
 0x8fd   : > { %v2503_v54 = vadd.f32 %v2502_v48, %v2501_v42  ;;  %v2514_v55 = vrot.slane %v2513_v53, 1  ;;  %v2543_v7 = vrot.slane %v2542_v4, 2  ;;  %v2532_v11 = vadd.f32 %v2531_v6, %v2530_v3 }
 0x8ff   : > { %7566 = vpush %v2503_v54  ;;  %v2515_v57 = vadd.f32 %v2514_v55, %v2513_v53  ;;  %v2544_v12 = vadd.f32 %v2543_v7, %v2542_v4  ;;  %v2533_v32 = vrot.slane %v2532_v11, 1  ;;  %v6934_v7 = vld [vmem:[%s9428_s2 + $0x20] sm:$0xff] }
 0x901   : > { %7568 = vpush %v2515_v57  ;;  %v2545_v44 = vrot.slane %v2544_v12, 1  ;;  %v2534_v15 = vadd.f32 %v2533_v32, %v2532_v11  ;;  %v2624_v32 = vsel %vm1002_vm4, %v6934_v7, 0 }
 0x903   : > { %v2546_v17 = vadd.f32 %v2545_v44, %v2544_v12  ;;  %v6935_v44 = vld [vmem:[%s9428_s2 + $0x28] sm:$0xff] }
 0x930   : > { %s7567_s12 = spop %7566 }
 0x931   : > { %s8529_s7 = smul.f32 0.00390625, %s7567_s12 }
 0x932   : > { %s7569_s13 = spop %7568 }
 0x933   : > { %s2519_s14 = smul.f32 %s8529_s7, %s8529_s7  ;;  %v2557_v23 = vstv %s8529_s7 }
 0x934   : > { %s2518_s15 = smul.f32 0.00390625, %s7569_s13  ;;  %v2569_v43 = vsub.f32 %v8509_v22, %v2557_v23  ;;  %v2571_v46 = vsub.f32 %v8511_v49, %v2557_v23  ;;  %s7907_s13 = smov 4  }
 0x936   : > { %s2520_s17 = ssub.f32 %s2518_s15, %s2519_s14 }
 0x938   : > { %s2521_s23 = smax.f32 %s7904_s16, %s2520_s17 }
 0x939   : > { %s2522_s26 = sadd.f32 1e-05, %s2521_s23 }
 0x93b   : > { %v2523_v10 = vstv %s2522_s26 }
 0x93c   : > { %7732 = vrsqrt.f32 %v2523_v10 }
 0x946   : > { %v7733_v13 = vpop.eup %7732 }
 0x947   : > { %7570 = vpush %v7733_v13 }
 0x948   : > { %7572 = vpush %v2534_v15 }
 0x949   : > { %7574 = vpush %v2546_v17 }
 0x978   : > { %s7571_s6 = spop %7570 }
 0x979   : > { %v2559_v24 = vstv %s7571_s6  ;;  %s7573_s9 = spop %7572 }
 0x97a   : > { %v2561_v26 = vmul.f32 %v8050_v47, %v2559_v24  ;;  %s8536_s8 = smul.f32 0.00390625, %s7573_s9  ;;  %s7575_s10 = spop %7574  ;;  %v8603_v24 = vand.u32 4294901760, %v2624_v32 }
 0x97b   : > { %s2549_s11 = smul.f32 0.00390625, %s7575_s10 }
 0x97c   : > { %v2576_v50 = vrot.slane %v2561_v26, %v8056_v51  ;;  %s2550_s30 = smul.f32 %s8536_s8, %s8536_s8  ;;  %v2558_v61 = vstv %s8536_s8 }
 0x97d   : > { %v2570_v59 = vsub.f32 %v8515_v34, %v2558_v61  ;;  %v2572_v62 = vsub.f32 %v8513_v29, %v2558_v61 }
 0x97e   : > { %v2581_v52 = vmul.f32 %v2576_v50, %v2569_v43  ;;  %v2583_v56 = vmul.f32 %v2576_v50, %v2571_v46  ;;  %s2551_s12 = ssub.f32 %s2549_s11, %s2550_s30  ;;  %v2627_v46 = vsel %vm1002_vm4, %v6935_v44, 0 }
 0x980   : > { %s2552_s7 = smax.f32 %s7904_s16, %s2551_s12  ;;  %2587 = vrot.lane.b32.xlu1 %v2583_v56, %s7907_s13  ;;  %2585 = vrot.lane.b32.xlu0 %v2581_v52, %s7907_s13  ;;  %v2653_v63 = vand.u32 4294901760, %v2581_v52  ;;  %v2657_v9 = vand.u32 4294901760, %v2583_v56 }
 0x981   : > { %s2553_s14 = sadd.f32 1e-05, %s2552_s7 }
 0x982   : > { %v8546_v0 = vpack.c.bf16 %v2657_v9, %v2653_v63  ;;  %v8548_v18 = vsub.f32 %v2581_v52, %v2653_v63  ;;  %v8550_v21 = vsub.f32 %v2583_v56, %v2657_v9 }
 0x983   : > { %v2554_v22 = vstv %s2553_s14 }
 0x984   : > { %7734 = vrsqrt.f32 %v2554_v22  ;;  %2600 = vrot.lane.b32.xlu1 %v2583_v56, %s7905_s25  ;;  %2598 = vrot.lane.b32.xlu0 %v2581_v52, %s7905_s25  ;;  %v2812_v14 = vand.u32 4294901760, %v8548_v18  ;;  %v2824_v25 = vand.u32 4294901760, %v8550_v21  ;;  %v7092_v27 = vpack.c.bf16 %v8550_v21, %v8548_v18  ;;  %v6936_v52 = vld [vmem:[%s9428_s2 + $0x30] sm:$0xff] }
 0x985   : > { %v2630_v61 = vsel %vm1002_vm4, %v6936_v52, 0 }
 0x986   : > { %v2813_v49 = vsub.f32 %v8548_v18, %v2812_v14  ;;  %v2825_v28 = vsub.f32 %v8550_v21, %v2824_v25  ;;  %v8560_v19 = vpack.c.bf16 %v2824_v25, %v2812_v14  ;;  %v8660_v7 = vand.u32 4294901760, %v2630_v61 }
 0x988   : > { %v2814_v5 = vand.u32 4294901760, %v2813_v49  ;;  %v2826_v31 = vand.u32 4294901760, %v2825_v28  ;;  %v8618_v49 = vsub.f32 %v2624_v32, %v8603_v24  ;;  %v8620_v28 = vand.u32 4294901760, %v2627_v46 }
 0x98a   : > { %v8562_v37 = vpack.c.bf16 %v2826_v31, %v2814_v5 }
 0x98e   : > { %v7735_v60 = vpop.eup %7734 }
 0x98f   : > { %7576 = vpush %v7735_v60 }
 0x9c0   : > { %s7577_s15 = spop %7576 }
 0x9c1   : > { %v2560_v30 = vstv %s7577_s15 }
 0x9c2   : > { %v2562_v40 = vmul.f32 %v8050_v47, %v2560_v30 }
 0x9c4   : > { %v2580_v2 = vrot.slane %v2562_v40, %v8056_v51 }
 0x9c6   : > { %v2582_v20 = vmul.f32 %v2580_v2, %v2570_v59  ;;  %v2584_v33 = vmul.f32 %v2580_v2, %v2572_v62 }
 0x9c8   : > { %2602 = vrot.lane.b32.xlu0 %v2582_v20, %s7905_s25  ;;  %2589 = vrot.lane.b32.xlu1 %v2582_v20, %s7907_s13  ;;  %v2651_v35 = vand.u32 4294901760, %v2582_v20  ;;  %v2655_v39 = vand.u32 4294901760, %v2584_v33 }
 0x9ca   : > { %v8571_v38 = vpack.c.bf16 %v2655_v39, %v2651_v35  ;;  %v8573_v42 = vsub.f32 %v2582_v20, %v2651_v35  ;;  %v8575_v48 = vsub.f32 %v2584_v33, %v2655_v39 }
 0x9cc   : > { %2591 = vrot.lane.b32.xlu1 %v2584_v33, %s7907_s13  ;;  %v2806_v29 = vand.u32 4294901760, %v8573_v42  ;;  %v2818_v34 = vand.u32 4294901760, %v8575_v48  ;;  %v7090_v53 = vpack.c.bf16 %v8575_v48, %v8573_v42 }
 0x9ce   : > { %v2807_v54 = vsub.f32 %v8573_v42, %v2806_v29  ;;  %v2819_v55 = vsub.f32 %v8575_v48, %v2818_v34  ;;  %v8584_v57 = vpack.c.bf16 %v2818_v34, %v2806_v29 }
 0x9d0   : > { %2604 = vrot.lane.b32.xlu1 %v2584_v33, %s7905_s25  ;;  %v2808_v58 = vand.u32 4294901760, %v2807_v54  ;;  %v2820_v36 = vand.u32 4294901760, %v2819_v55  ;;  %v6937_v55 = vld [vmem:[%s9428_s2 + $0x38] sm:$0xff] }
 0x9d1   : > { %v2633_v32 = vsel %vm1002_vm4, %v6937_v55, 0 }
 0x9d2   : > { %v8587_v41 = vpack.c.bf16 %v2820_v36, %v2808_v58  ;;  %v8688_v52 = vand.u32 4294901760, %v2633_v32 }
 0x9d4   : > { %v8707_v55 = vsub.f32 %v2633_v32, %v8688_v52 }
 0x9d6   : > { %v2747_v32 = vand.u32 4294901760, %v8707_v55 }
 0x9f2   : > { %v2588_v1 = vpop.permute.xlu1 %2587  ;;  %v2586_v3 = vpop.permute.xlu0 %2585 }
 0x9f6   : > { %v2601_v4 = vpop.permute.xlu1 %2600  ;;  %v2599_v6 = vpop.permute.xlu0 %2598 }
 0xa3a   : > { %v2590_v10 = vpop.permute.xlu1 %2589  ;;  %v2603_v12 = vpop.permute.xlu0 %2602 }
 0xa3b   : > { %v2594_v11 = vsel %vm2593_vm7, %v2586_v3, %v2590_v10  ;;  %v2596_v13 = vsel %vm2593_vm7, %v2590_v10, %v2586_v3  ;;  %v2606_v17 = vsel %vm972_vm3, %v2599_v6, %v2603_v12  ;;  %v2608_v56 = vsel %vm972_vm3, %v2603_v12, %v2599_v6 }
 0xa3c   : > { %v2635_v15 = vand.u32 4294901760, %v2594_v11  ;;  %v2637_v50 = vand.u32 4294901760, %v2596_v13  ;;  %v2643_v63 = vand.u32 4294901760, %v2606_v17  ;;  %v2645_v40 = vand.u32 4294901760, %v2608_v56 }
 0xa3d   : > { %v8653_v3 = vsub.f32 %v2627_v46, %v8620_v28 }
 0xa3e   : > { %v2592_v23 = vpop.permute.xlu1 %2591  ;;  %v8615_v14 = vsub.f32 %v2594_v11, %v2635_v15  ;;  %v8629_v30 = vsub.f32 %v2596_v13, %v2637_v50  ;;  %v8633_v2 = vsub.f32 %v2606_v17, %v2643_v63  ;;  %v8663_v11 = vsub.f32 %v2608_v56, %v2645_v40 }
 0xa3f   : > { %v2595_v26 = vsel %vm2593_vm7, %v2588_v1, %v2592_v23  ;;  %v2597_v43 = vsel %vm2593_vm7, %v2592_v23, %v2588_v1  ;;  %v2714_v1 = vand.u32 4294901760, %v8618_v49 }
 0xa40   : > { %v2639_v9 = vand.u32 4294901760, %v2595_v26  ;;  %v2641_v22 = vand.u32 4294901760, %v2597_v43  ;;  %v2758_v39 = vand.u32 4294901760, %v8615_v14  ;;  %v2764_v10 = vand.u32 4294901760, %v8629_v30 }
 0xa41   : > { %v2782_v44 = vand.u32 4294901760, %v8633_v2  ;;  %v2715_v23 = vsub.f32 %v8618_v49, %v2714_v1 }
 0xa42   : > { %v2605_v25 = vpop.permute.xlu1 %2604  ;;  %v8622_v5 = vsub.f32 %v2595_v26, %v2639_v9  ;;  %v8624_v31 = vsub.f32 %v2597_v43, %v2641_v22  ;;  %v8635_v20 = vpack.c.bf16 %v2641_v22, %v2637_v50  ;;  %v8641_v34 = vpack.c.bf16 %v2639_v9, %v2635_v15 }
 0xa43   : > { %v2607_v60 = vsel %vm972_vm3, %v2601_v4, %v2605_v25  ;;  %v2609_v59 = vsel %vm972_vm3, %v2605_v25, %v2601_v4  ;;  %v2759_v13 = vsub.f32 %v8615_v14, %v2758_v39  ;;  %v9437_v26 = vand.u32 4294901760, %v8653_v3 }
 0xa44   : > { %v2647_v62 = vand.u32 4294901760, %v2607_v60  ;;  %v2770_v33 = vand.u32 4294901760, %v8622_v5  ;;  %v2649_v35 = vand.u32 4294901760, %v2609_v59  ;;  %v2776_v58 = vand.u32 4294901760, %v8624_v31  ;;  %7059 = vmatprep.subr.bf16.mxu1 %v8641_v34 }
 0xa45   : > { %7061 = vmatpush1.bf16.msra.mxu1 %v8635_v20  ;;  %v8686_v50 = vsub.f32 %v2630_v61, %v8660_v7  ;;  %v2765_v56 = vsub.f32 %v8629_v30, %v2764_v10  ;;  %v2760_v9 = vand.u32 4294901760, %v2759_v13  ;;  %v2783_v22 = vsub.f32 %v8633_v2, %v2782_v44 }
 0xa46   : > { %v8639_v29 = vsub.f32 %v2607_v60, %v2647_v62  ;;  %v8643_v54 = vpack.c.bf16 %v2647_v62, %v2643_v63  ;;  %v8649_v36 = vsub.f32 %v2609_v59, %v2649_v35  ;;  %v2771_v6 = vsub.f32 %v8622_v5, %v2770_v33 }
 0xa47   : > { %v8665_v12 = vpack.c.bf16 %v2649_v35, %v2645_v40  ;;  %v2777_v15 = vsub.f32 %v8624_v31, %v2776_v58  ;;  %v2788_v63 = vand.u32 4294901760, %v8663_v11  ;;  %v2716_v61 = vand.u32 4294901760, %v2715_v23 }
 0xa48   : > { %v2794_v4 = vand.u32 4294901760, %v8639_v29  ;;  %7063 = vmatprep.subr.bf16.mxu1 %v8643_v54  ;;  %v9436_v17 = vand.u32 4294901760, %v8649_v36  ;;  %v2772_v43 = vand.u32 4294901760, %v2771_v6  ;;  %v2726_v40 = vsub.f32 %v8653_v3, %v9437_v26 }
 0xa49   : > { %7065 = vmatpush1.bf16.msra.mxu1 %v8665_v12  ;;  %v2778_v25 = vand.u32 4294901760, %v2777_v15  ;;  %v2736_v35 = vand.u32 4294901760, %v8686_v50  ;;  %v2766_v6 = vand.u32 4294901760, %v2765_v56  ;;  %v2789_v13 = vsub.f32 %v8663_v11, %v2788_v63 }
 0xa4a   : > { %v2795_v46 = vsub.f32 %v8639_v29, %v2794_v4  ;;  %7067 = vmatprep.subr.bf16.mxu1 %v8571_v38  ;;  %v2801_v60 = vsub.f32 %v8649_v36, %v9436_v17  ;;  %v7070_v59 = vpack.c.bf16 %v2772_v43, %v2760_v9  ;;  %v2784_v15 = vand.u32 4294901760, %v2783_v22 }
 0xa4b   : > { %v7072_v17 = vpack.c.bf16 %v2778_v25, %v2766_v6  ;;  %v2727_v43 = vand.u32 4294901760, %v2726_v40  ;;  %v2790_v56 = vand.u32 4294901760, %v2789_v13  ;;  %v2748_v22 = vsub.f32 %v8707_v55, %v2747_v32 }
 0xa4c   : > { %v2796_v62 = vand.u32 4294901760, %v2795_v46  ;;  %v2802_v23 = vand.u32 4294901760, %v2801_v60  ;;  %v2737_v46 = vsub.f32 %v8686_v50, %v2736_v35  ;;  %v7082_v25 = vpack.c.bf16 %v8622_v5, %v8615_v14 }
 0xa4d   : > { %7069 = vmatpush1.bf16.msra.mxu1 %v8546_v0  ;;  %v7106_v18 = vpack.c.bf16 %v2770_v33, %v2758_v39  ;;  %v7108_v21 = vpack.c.bf16 %v2776_v58, %v2764_v10  ;;  %v9448_v42 = vand.u32 4294901760, %v8649_v36 }
 0xa4e   : > { %7071 = vmatprep.subr.bf16.mxu1 %v7070_v59  ;;  %v7074_v26 = vpack.c.bf16 %v2796_v62, %v2784_v15  ;;  %v7076_v9 = vpack.c.bf16 %v2802_v23, %v2790_v56  ;;  %v2738_v59 = vand.u32 4294901760, %v2737_v46 }
 0xa4f   : > { %v7112_v48 = vpack.c.bf16 %v9448_v42, %v2788_v63 }
 0xa50   : > { %2717 = vmatmul.mubr.f32.vlgmr.msra.gmra.mrb[12].mxu1 %v2716_v61 }
 0xa51   : > { %7073 = vmatpush1.bf16.msra.mxu1 %v7072_v17  ;;  %2722 = vmatprep.mubr.f32.mxu1 %v9438_v8  ;;  %v2749_v17 = vand.u32 4294901760, %v2748_v22 }
 0xa52   : > { %7075 = vmatprep.subr.bf16.mxu1 %v7074_v26  ;;  %v7084_v26 = vpack.c.bf16 %v8624_v31, %v8629_v30  ;;  %v2618_v31 = vld [vmem:[#allocation2 + $0xa8] sm:$0xff] }
 0xa54   : > { %2728 = vmatmul.mubr.f32.gmra.mrb[14].mxu1 %v2727_v43 }
 0xa55   : > { %7077 = vmatpush1.bf16.msra.mxu1 %v7076_v9  ;;  %2733 = vmatprep.mubr.f32.mxu1 %v9438_v8 }
 0xa56   : > { %7079 = vmatprep.subr.bf16.mxu1 %v8587_v41  ;;  %v7086_v41 = vpack.c.bf16 %v8639_v29, %v8633_v2 }
 0xa58   : > { %2739 = vmatmul.mubr.f32.gmra.mrb[16].mxu1 %v2738_v59 }
 0xa59   : > { %7081 = vmatpush1.bf16.msra.mxu1 %v8562_v37  ;;  %2744 = vmatprep.mubr.f32.mxu1 %v9438_v8  ;;  %v7088_v37 = vpack.c.bf16 %v8649_v36, %v8663_v11  ;;  %v2620_v36 = vld [vmem:[#allocation2 + $0xb8] sm:$0xff]  ;;  %v2622_v11 = vld [vmem:[#allocation2 + $0xc8] sm:$0xff] }
 0xa5a   : > { %7083 = vmatprep.subr.bf16.mxu1 %v7082_v25 }
 0xa5c   : > { %2750 = vmatmul.mubr.f32.gmra.mrb[18].mxu1 %v2749_v17 }
 0xa5d   : > { %2880 = vmatprep.mubr.f32.mxu1 %v9438_v8 }
 0xa60   : > { %2882 = vmatmul.mubr.f32.vlgmr.msra.gmra.mrb[12].mxu1 %v8603_v24 }
 0xa61   : > { %7085 = vmatpush1.bf16.msra.mxu1 %v7084_v26  ;;  %2887 = vmatprep.mubr.f32.mxu1 %v9438_v8 }
 0xa62   : > { %7087 = vmatprep.subr.bf16.mxu1 %v7086_v41 }
 0xa64   : > { %2889 = vmatmul.mubr.f32.gmra.mrb[14].mxu1 %v8620_v28 }
 0xa65   : > { %7089 = vmatpush1.bf16.msra.mxu1 %v7088_v37  ;;  %2894 = vmatprep.mubr.f32.mxu1 %v9438_v8 }
 0xa66   : > { %7091 = vmatprep.subr.bf16.mxu1 %v7090_v53  ;;  %v9449_v53 = vand.u32 4294901760, %v8653_v3 }
 0xa68   : > { %2896 = vmatmul.mubr.f32.gmra.mrb[16].mxu1 %v8660_v7 }
 0xa69   : > { %7093 = vmatpush1.bf16.msra.mxu1 %v7092_v27  ;;  %2901 = vmatprep.mubr.f32.mxu1 %v9438_v8  ;;  %v7110_v27 = vpack.c.bf16 %v2794_v4, %v2782_v44 }
 0xa6a   : > { %7095 = vmatprep.subr.bf16.mxu1 %v8641_v34 }
 0xa6c   : > { %2903 = vmatmul.mubr.f32.gmra.mrb[18].mxu1 %v8688_v52 }
 0xa6d   : > { %2997 = vmatprep.mubr.f32.mxu1 %v9438_v8 }
 0xa70   : > { %3000 = vmatmul.mubr.f32.vlgmr.msra.gmra.mrb[12].mxu1 %v8618_v49  ;;  %v2617_v49 = vld [vmem:[#allocation2 + $0xa0] sm:$0xff] }
 0xa71   : > { %7097 = vmatpush1.bf16.msra.mxu1 %v8635_v20  ;;  %3005 = vmatprep.mubr.f32.mxu1 %v9438_v8 }
 0xa72   : > { %7099 = vmatprep.subr.bf16.mxu1 %v8643_v54 }
 0xa74   : > { %3008 = vmatmul.mubr.f32.gmra.mrb[14].mxu1 %v8653_v3 }
 0xa75   : > { %7101 = vmatpush1.bf16.msra.mxu1 %v8665_v12  ;;  %3013 = vmatprep.mubr.f32.mxu1 %v9438_v8 }
 0xa76   : > { %7103 = vmatprep.subr.bf16.mxu1 %v8571_v38 }
 0xa78   : > { %3016 = vmatmul.mubr.f32.gmra.mrb[16].mxu1 %v8686_v50 }
 0xa79   : > { %7105 = vmatpush1.bf16.msra.mxu1 %v8546_v0  ;;  %3021 = vmatprep.mubr.f32.mxu1 %v9438_v8 }
 0xa7a   : > { %7107 = vmatprep.subr.bf16.mxu1 %v7106_v18 }
 0xa7c   : > { %3024 = vmatmul.mubr.f32.gmra.mrb[18].mxu1 %v8707_v55 }
 0xa7d   : > { %3106 = vmatprep.mubr.f32.mxu1 %v9438_v8 }
 0xa80   : > { %3110 = vmatmul.mubr.f32.vlgmr.msra.gmra.mrb[12].mxu1 %v2714_v1 }
 0xa81   : > { %7109 = vmatpush1.bf16.msra.mxu1 %v7108_v21  ;;  %3115 = vmatprep.mubr.f32.mxu1 %v9438_v8 }
 0xa82   : > { %7111 = vmatprep.subr.bf16.mxu1 %v7110_v27 }
 0xa84   : > { %3119 = vmatmul.mubr.f32.gmra.mrb[14].mxu1 %v9449_v53 }
 0xa85   : > { %7113 = vmatpush1.bf16.msra.mxu1 %v7112_v48  ;;  %3124 = vmatprep.mubr.f32.mxu1 %v9438_v8 }
 0xa86   : > { %7115 = vmatprep.subr.bf16.mxu1 %v8584_v57 }
 0xa88   : > { %3128 = vmatmul.mubr.f32.gmra.mrb[16].mxu1 %v2736_v35 }
 0xa89   : > { %7117 = vmatpush1.bf16.msra.mxu1 %v8560_v19  ;;  %3133 = vmatprep.mubr.f32.mxu1 %v9438_v8  ;;  %v2616_v19 = vld [vmem:[#allocation2 + $0x98] sm:$0xff] }
 0xa8a   : > { %7119 = vmatprep.subr.bf16.mxu1 %v8641_v34 }
 0xa8c   : > { %3137 = vmatmul.mubr.f32.gmra.mrb[18].mxu1 %v2747_v32 }
 0xa8d   : > { %3243 = vmatprep.mubr.f32.mxu1 %v9438_v8 }
 0xa90   : > { %3245 = vmatmul.mubr.f32.vlgmr.msra.gmra.mrb[12].mxu1 %v8603_v24 }
 0xa91   : > { %7121 = vmatpush1.bf16.msra.mxu1 %v8635_v20  ;;  %3250 = vmatprep.mubr.f32.mxu1 %v9438_v8 }
 0xa92   : > { %7123 = vmatprep.subr.bf16.mxu1 %v8643_v54  ;;  %v2619_v54 = vld [vmem:[#allocation2 + $0xb0] sm:$0xff] }
 0xa94   : > { %3252 = vmatmul.mubr.f32.gmra.mrb[14].mxu1 %v8620_v28 }
 0xa95   : > { %7125 = vmatpush1.bf16.msra.mxu1 %v8665_v12  ;;  %3257 = vmatprep.mubr.f32.mxu1 %v9438_v8 }
 0xa96   : > { %7127 = vmatprep.subr.bf16.mxu1 %v8571_v38 }
 0xa98   : > { %3259 = vmatmul.mubr.f32.gmra.mrb[16].mxu1 %v8660_v7 }
 0xa99   : > { %7129 = vmatpush1.bf16.msra.mxu1 %v8546_v0  ;;  %3264 = vmatprep.mubr.f32.mxu1 %v9438_v8  ;;  %v2615_v0 = vld [vmem:[#allocation2 + $0x90] sm:$0xff] }
 0xa9c   : > { %3266 = vmatmul.mubr.f32.gmra.mrb[18].mxu1 %v8688_v52 }
 0xa9d   : > { %3348 = vmatprep.mubr.f32.mxu1 %v9438_v8 }
 0xaa0   : > { %3350 = vmatmul.mubr.f32.vlgmr.msra.gmra.mrb[12].mxu1 %v8603_v24 }
 0xaa1   : > { %3355 = vmatprep.mubr.f32.mxu1 %v9438_v8 }
 0xaa4   : > { %3357 = vmatmul.mubr.f32.gmra.mrb[14].mxu1 %v8620_v28 }
 0xaa5   : > { %3362 = vmatprep.mubr.f32.mxu1 %v9438_v8 }
 0xaa8   : > { %3364 = vmatmul.mubr.f32.gmra.mrb[16].mxu1 %v8660_v7  ;;  %v2621_v7 = vld [vmem:[#allocation2 + $0xc0] sm:$0xff] }
 0xaa9   : > { %3369 = vmatprep.mubr.f32.mxu1 %v9438_v8 }
 0xaac   : > { %3371 = vmatmul.mubr.f32.gmra.mrb[18].mxu1 %v8688_v52 }
 0xaad   : > { %4329 = vmatprep.mubr.f32.mxu1 %v9438_v8 }
 0xb73   : > { %v3351_v38 = vpop.f32.mrb[12].mxu1 }
 0xb74   : > { %v7276_v57 = vadd.f32 %v3351_v38, %v2615_v0  ;;  %v3353_v14 = vpop.f32.mrb[13].mxu1 }
 0xb75   : > { %v7277_v24 = vadd.f32 %v3353_v14, %v2616_v19 }
 0xb76   : > { %v6938_v5 = vmul.f32 -1.442695, %v7276_v57 }
 0xb77   : > { %v6939_v28 = vmul.f32 -1.442695, %v7277_v24  ;;  %v3358_v30 = vpop.f32.mrb[14].mxu1 }
 0xb78   : > { %7736 = vpow2.f32 %v6938_v5  ;;  %v7278_v2 = vadd.f32 %v3358_v30, %v2617_v49  ;;  %v3360_v20 = vpop.f32.mrb[15].mxu1 }
 0xb79   : > { %7738 = vpow2.f32 %v6939_v28  ;;  %v7279_v33 = vadd.f32 %v3360_v20, %v2618_v31 }
 0xb7a   : > { %v6940_v39 = vmul.f32 -1.442695, %v7278_v2 }
 0xb7b   : > { %v6941_v29 = vmul.f32 -1.442695, %v7279_v33  ;;  %v3365_v34 = vpop.f32.mrb[16].mxu1 }
 0xb7c   : > { %7740 = vpow2.f32 %v6940_v39  ;;  %v3367_v58 = vpop.f32.mrb[17].mxu1  ;;  %v7280_v1 = vadd.f32 %v3365_v34, %v2619_v54 }
 0xb7d   : > { %7742 = vpow2.f32 %v6941_v29  ;;  %v7281_v4 = vadd.f32 %v3367_v58, %v2620_v36 }
 0xb7e   : > { %7744 = vtanh.f32 %v7280_v1 }
 0xb7f   : > { %v3372_v3 = vpop.f32.mrb[18].mxu1  ;;  %7746 = vtanh.f32 %v7281_v4 }
 0xb80   : > { %v3374_v10 = vpop.f32.mrb[19].mxu1  ;;  %v7282_v52 = vadd.f32 %v3372_v3, %v2621_v7 }
 0xb81   : > { %v7283_v60 = vadd.f32 %v3374_v10, %v2622_v11 }
 0xb82   : > { %v7737_v12 = vpop.eup %7736 }
 0xb83   : > { %v7739_v44 = vpop.eup %7738  ;;  %v3389_v50 = vadd.f32 1.0, %v7737_v12 }
 0xb84   : > { %v3390_v63 = vadd.f32 1.0, %v7739_v44 }
 0xb85   : > { %7748 = vrcp.f32 %v3389_v50 }
 0xb86   : > { %v7741_v61 = vpop.eup %7740  ;;  %7750 = vrcp.f32 %v3390_v63 }
 0xb87   : > { %v7743_v40 = vpop.eup %7742  ;;  %v3391_v62 = vadd.f32 1.0, %v7741_v61  ;;  %7752 = vtanh.f32 %v7282_v52 }
 0xb88   : > { %v3392_v35 = vadd.f32 1.0, %v7743_v40  ;;  %7754 = vtanh.f32 %v7283_v60  ;;  %v7745_v55 = vpop.eup %7744 }
 0xb89   : > { %7756 = vrcp.f32 %v3391_v62  ;;  %v7747_v6 = vpop.eup %7746 }
 0xb8a   : > { %7758 = vrcp.f32 %v3392_v35 }
 0xb8f   : > { %v7749_v13 = vpop.eup %7748 }
 0xb90   : > { %v7751_v15 = vpop.eup %7750  ;;  %v3405_v23 = vmul.f32 %v7749_v13, %v7745_v55 }
 0xb91   : > { %v7753_v43 = vpop.eup %7752  ;;  %v3406_v46 = vmul.f32 %v7751_v15, %v7747_v6 }
 0xb92   : > { %v7755_v32 = vpop.eup %7754  ;;  %v8815_v22 = vmul.f32 %v3405_v23, %v8389_v16 }
 0xb93   : > { %v7757_v56 = vpop.eup %7756  ;;  %v8830_v27 = vmul.f32 %v3406_v46, %v8389_v16 }
 0xb94   : > { %v7759_v9 = vpop.eup %7758  ;;  %v3407_v59 = vmul.f32 %v7757_v56, %v7753_v43  ;;  %v3427_v41 = vmul.f32 %v8815_v22, %v8815_v22 }
 0xb95   : > { %v3408_v25 = vmul.f32 %v7759_v9, %v7755_v32  ;;  %v3458_v53 = vmul.f32 %v8830_v27, %v8830_v27 }
 0xb96   : > { %v8818_v17 = vmul.f32 %v3407_v59, %v8389_v16 }
 0xb97   : > { %v8827_v18 = vmul.f32 %v3408_v25, %v8389_v16 }
 0xb98   : > { %v3417_v26 = vadd.f32 %v8818_v17, %v8815_v22  ;;  %v3428_v37 = vmul.f32 %v8818_v17, %v8818_v17 }
 0xb99   : > { %v3448_v42 = vadd.f32 %v8827_v18, %v8830_v27  ;;  %v3459_v48 = vmul.f32 %v8827_v18, %v8827_v18 }
 0xb9a   : > { %3418 = vadd.xlane.f32.xlu0 %v3417_v26  ;;  %v3429_v21 = vadd.f32 %v3428_v37, %v3427_v41 }
 0xb9b   : > { %v3460_v0 = vadd.f32 %v3459_v48, %v3458_v53  ;;  %v6942_v48 = vld [vmem:[%s9429_s3 + $0x18] sm:$0xff] }
 0xb9c   : > { %3430 = vadd.xlane.f32.xlu1 %v3429_v21  ;;  %v3514_v53 = vsel %vm1896_vm6, %v6942_v48, 0 }
 0xb9e   : > { %3449 = vadd.xlane.f32.xlu0 %v3448_v42 }
 0xba2   : > { %3461 = vadd.xlane.f32.xlu0 %v3460_v0  ;;  %v6943_v0 = vld [vmem:[%s9429_s3 + $0x20] sm:$0xff] }
 0xc27   : > { %v3419_v19 = vpop.xlane.xlu0 %3418 }
 0xc28   : > { %v3420_v38 = vrot.slane %v3419_v19, 4 }
 0xc29   : > { %v3431_v57 = vpop.xlane.xlu1 %3430 }
 0xc2a   : > { %v3421_v14 = vadd.f32 %v3420_v38, %v3419_v19  ;;  %v3432_v24 = vrot.slane %v3431_v57, 4  ;;  %v8874_v19 = vand.u32 4294901760, %v3514_v53  ;;  %v3517_v38 = vsel %vm1896_vm6, %v6943_v0, 0 }
 0xc2b   : > { %v3450_v29 = vpop.xlane.xlu0 %3449 }
 0xc2c   : > { %v3422_v49 = vrot.slane %v3421_v14, 2  ;;  %v3433_v5 = vadd.f32 %v3432_v24, %v3431_v57  ;;  %v3451_v54 = vrot.slane %v3450_v29, 4  ;;  %v6944_v57 = vld [vmem:[%s9429_s3 + $0x28] sm:$0xf]  ;;  %v8883_v24 = vand.u32 4294901760, %v3517_v38 }
 0xc2e   : > { %v3434_v31 = vrot.slane %v3433_v5, 2  ;;  %v3423_v28 = vadd.f32 %v3422_v49, %v3421_v14  ;;  %v3452_v36 = vadd.f32 %v3451_v54, %v3450_v29  ;;  %v8881_v14 = vsub.f32 %v3514_v53, %v8874_v19 }
 0xc2f   : > { %v3462_v34 = vpop.xlane.xlu0 %3461 }
 0xc30   : > { %v3424_v30 = vrot.slane %v3423_v28, 1  ;;  %v3435_v2 = vadd.f32 %v3434_v31, %v3433_v5  ;;  %v3463_v58 = vrot.slane %v3462_v34, 4  ;;  %v3453_v3 = vrot.slane %v3452_v36, 2 }
 0xc31   : > { %v3520_v31 = vsel %vm1896_vm6, %v6944_v57, 0 }
 0xc32   : > { %v3425_v20 = vadd.f32 %v3424_v30, %v3423_v28  ;;  %v3436_v33 = vrot.slane %v3435_v2, 1  ;;  %v3464_v1 = vadd.f32 %v3463_v58, %v3462_v34  ;;  %v3454_v10 = vadd.f32 %v3453_v3, %v3452_v36 }
 0xc33   : > { %v3593_v30 = vand.u32 4294901760, %v8881_v14  ;;  %v8893_v29 = vand.u32 4294901760, %v3520_v31 }
 0xc34   : > { %7578 = vpush %v3425_v20  ;;  %v3437_v39 = vadd.f32 %v3436_v33, %v3435_v2  ;;  %v3465_v4 = vrot.slane %v3464_v1, 2  ;;  %v3455_v12 = vrot.slane %v3454_v10, 1  ;;  %v3603_v2 = vsub.f32 %v3517_v38, %v8883_v24 }
 0xc35   : > { %v3594_v58 = vsub.f32 %v8881_v14, %v3593_v30 }
 0xc36   : > { %7580 = vpush %v3437_v39  ;;  %v3466_v11 = vadd.f32 %v3465_v4, %v3464_v1  ;;  %v3456_v52 = vadd.f32 %v3455_v12, %v3454_v10  ;;  %v3604_v3 = vand.u32 4294901760, %v3603_v2  ;;  %v3614_v4 = vsub.f32 %v3520_v31, %v8893_v29 }
 0xc37   : > { %v3595_v12 = vand.u32 4294901760, %v3594_v58 }
 0xc38   : > { %v3467_v44 = vrot.slane %v3466_v11, 1 }
 0xc3a   : > { %v3468_v63 = vadd.f32 %v3467_v44, %v3466_v11 }
 0xc65   : > { %s7579_s11 = spop %7578 }
 0xc66   : > { %s8838_s30 = smul.f32 0.00390625, %s7579_s11 }
 0xc67   : > { %s7581_s12 = spop %7580 }
 0xc68   : > { %s3441_s7 = smul.f32 %s8838_s30, %s8838_s30  ;;  %v3479_v60 = vstv %s8838_s30 }
 0xc69   : > { %s3440_s14 = smul.f32 0.00390625, %s7581_s12  ;;  %v3491_v62 = vsub.f32 %v8815_v22, %v3479_v60  ;;  %v3493_v35 = vsub.f32 %v8818_v17, %v3479_v60 }
 0xc6b   : > { %s3442_s15 = ssub.f32 %s3440_s14, %s3441_s7 }
 0xc6d   : > { %s3443_s17 = smax.f32 %s7904_s16, %s3442_s15 }
 0xc6e   : > { %s3444_s23 = sadd.f32 1e-05, %s3443_s17 }
 0xc70   : > { %v3445_v7 = vstv %s3444_s23 }
 0xc71   : > { %7760 = vrsqrt.f32 %v3445_v7 }
 0xc7b   : > { %v7761_v50 = vpop.eup %7760 }
 0xc7c   : > { %7582 = vpush %v7761_v50  ;;  %v3615_v50 = vand.u32 4294901760, %v3614_v4 }
 0xc7d   : > { %7584 = vpush %v3456_v52 }
 0xc7e   : > { %7586 = vpush %v3468_v63 }
 0xcad   : > { %s7583_s25 = spop %7582 }
 0xcae   : > { %v3481_v61 = vstv %s7583_s25  ;;  %s7585_s26 = spop %7584 }
 0xcaf   : > { %v3483_v40 = vmul.f32 %v8050_v47, %v3481_v61  ;;  %s8845_s6 = smul.f32 0.00390625, %s7585_s26  ;;  %s7587_s9 = spop %7586 }
 0xcb0   : > { %s3471_s8 = smul.f32 0.00390625, %s7587_s9 }
 0xcb1   : > { %v3498_v55 = vrot.slane %v3483_v40, %v8056_v51  ;;  %s3472_s10 = smul.f32 %s8845_s6, %s8845_s6  ;;  %v3480_v49 = vstv %s8845_s6 }
 0xcb2   : > { %v3492_v20 = vsub.f32 %v8830_v27, %v3480_v49  ;;  %v3494_v33 = vsub.f32 %v8827_v18, %v3480_v49  ;;  %v3605_v27 = vsub.f32 %v3603_v2, %v3604_v3 }
 0xcb3   : > { %v3503_v6 = vmul.f32 %v3498_v55, %v3491_v62  ;;  %v3505_v13 = vmul.f32 %v3498_v55, %v3493_v35  ;;  %s3473_s11 = ssub.f32 %s3471_s8, %s3472_s10  ;;  %v3616_v62 = vsub.f32 %v3614_v4, %v3615_v50 }
 0xcb4   : > { %v3606_v60 = vand.u32 4294901760, %v3605_v27 }
 0xcb5   : > { %v3524_v15 = vand.u32 4294901760, %v3503_v6  ;;  %v3528_v23 = vand.u32 4294901760, %v3505_v13  ;;  %s3474_s30 = smax.f32 %s7904_s16, %s3473_s11 }
 0xcb6   : > { %s3475_s12 = sadd.f32 1e-05, %s3474_s30 }
 0xcb7   : > { %v8853_v43 = vsub.f32 %v3503_v6, %v3524_v15  ;;  %v8855_v46 = vsub.f32 %v3505_v13, %v3528_v23  ;;  %v8857_v32 = vpack.c.bf16 %v3528_v23, %v3524_v15  ;;  %v3617_v6 = vand.u32 4294901760, %v3616_v62  ;;  %v3507_v15 = vld [vmem:[#allocation2 + $0xd0] sm:$0xff] }
 0xcb8   : > { %v3476_v56 = vstv %s3475_s12 }
 0xcb9   : > { %7762 = vrsqrt.f32 %v3476_v56  ;;  %v3632_v9 = vand.u32 4294901760, %v8853_v43  ;;  %v3644_v59 = vand.u32 4294901760, %v8855_v46  ;;  %v7140_v22 = vpack.c.bf16 %v8855_v46, %v8853_v43  ;;  %v3510_v56 = vld [vmem:[#allocation2 + $0xe8] sm:$0xff] }
 0xcbb   : > { %v3633_v25 = vsub.f32 %v8853_v43, %v3632_v9  ;;  %v3645_v17 = vsub.f32 %v8855_v46, %v3644_v59  ;;  %v8865_v26 = vpack.c.bf16 %v3644_v59, %v3632_v9  ;;  %v3509_v46 = vld [vmem:[#allocation2 + $0xe0] sm:$0xff]  ;;  %v3508_v9 = vld [vmem:[#allocation2 + $0xd8] sm:$0xff] }
 0xcbd   : > { %v3634_v41 = vand.u32 4294901760, %v3633_v25  ;;  %v3646_v37 = vand.u32 4294901760, %v3645_v17 }
 0xcbf   : > { %v7136_v21 = vpack.c.bf16 %v3646_v37, %v3634_v41 }
 0xcc3   : > { %v7763_v42 = vpop.eup %7762 }
 0xcc4   : > { %7588 = vpush %v7763_v42 }
 0xcf5   : > { %s7589_s26 = spop %7588 }
 0xcf6   : > { %v3482_v5 = vstv %s7589_s26 }
 0xcf7   : > { %v3484_v28 = vmul.f32 %v8050_v47, %v3482_v5 }
 0xcf9   : > { %v3502_v39 = vrot.slane %v3484_v28, %v8056_v51 }
 0xcfb   : > { %v3504_v34 = vmul.f32 %v3502_v39, %v3492_v20  ;;  %v3506_v54 = vmul.f32 %v3502_v39, %v3494_v33 }
 0xcfd   : > { %v3522_v36 = vand.u32 4294901760, %v3504_v34  ;;  %v3526_v1 = vand.u32 4294901760, %v3506_v54 }
 0xcff   : > { %v7130_v7 = vpack.c.bf16 %v3526_v1, %v3522_v36  ;;  %v3625_v10 = vsub.f32 %v3504_v34, %v3522_v36  ;;  %v3637_v11 = vsub.f32 %v3506_v54, %v3526_v1 }
 0xd01   : > { %7131 = vmatprep.subr.bf16.mxu0 %v7130_v7  ;;  %v3626_v18 = vand.u32 4294901760, %v3625_v10  ;;  %v3638_v44 = vand.u32 4294901760, %v3637_v11  ;;  %v7138_v55 = vpack.c.bf16 %v3637_v11, %v3625_v10 }
 0xd02   : > { %7133 = vmatpush1.bf16.msra.mxu0 %v8857_v32 }
 0xd03   : > { %v3627_v52 = vsub.f32 %v3625_v10, %v3626_v18  ;;  %v3639_v63 = vsub.f32 %v3637_v11, %v3638_v44  ;;  %v7146_v13 = vpack.c.bf16 %v3638_v44, %v3626_v18 }
 0xd05   : > { %3596 = vmatmul.mubr.f32.vlgmr.msra.gmra.mrb[10].mxu0 %v3595_v12  ;;  %v3628_v61 = vand.u32 4294901760, %v3627_v52  ;;  %v3640_v40 = vand.u32 4294901760, %v3639_v63 }
 0xd06   : > { %3601 = vmatprep.mubr.f32.mxu0 %v9438_v8 }
 0xd07   : > { %v7134_v35 = vpack.c.bf16 %v3640_v40, %v3628_v61 }
 0xd09   : > { %3607 = vmatmul.mubr.f32.gmra.mrb[12].mxu0 %v3606_v60  ;;  %7135 = vmatprep.subr.bf16.mxu0 %v7134_v35 }
 0xd0a   : > { %7137 = vmatpush1.bf16.msra.mxu0 %v7136_v21  ;;  %3612 = vmatprep.mubr.f32.mxu0 %v9438_v8 }
 0xd0b   : > { %7139 = vmatprep.subr.bf16.mxu0 %v7138_v55 }
 0xd0d   : > { %3618 = vmatmul.mubr.f32.gmra.mrb[8].mxu0 %v3617_v6 }
 0xd0e   : > { %3708 = vmatprep.mubr.f32.mxu0 %v9438_v8 }
 0xd11   : > { %3710 = vmatmul.mubr.f32.vlgmr.msra.gmra.mrb[10].mxu0 %v8874_v19 }
 0xd12   : > { %7141 = vmatpush1.bf16.msra.mxu0 %v7140_v22  ;;  %3715 = vmatprep.mubr.f32.mxu0 %v9438_v8 }
 0xd13   : > { %7143 = vmatprep.subr.bf16.mxu0 %v7130_v7 }
 0xd15   : > { %3717 = vmatmul.mubr.f32.gmra.mrb[12].mxu0 %v8883_v24 }
 0xd16   : > { %3722 = vmatprep.mubr.f32.mxu0 %v9438_v8 }
 0xd19   : > { %3724 = vmatmul.mubr.f32.gmra.mrb[8].mxu0 %v8893_v29 }
 0xd1a   : > { %3802 = vmatprep.mubr.f32.mxu0 %v9438_v8 }
 0xd1d   : > { %3805 = vmatmul.mubr.f32.vlgmr.msra.gmra.mrb[10].mxu0 %v8881_v14 }
 0xd1e   : > { %7145 = vmatpush1.bf16.msra.mxu0 %v8857_v32  ;;  %3810 = vmatprep.mubr.f32.mxu0 %v9438_v8 }
 0xd1f   : > { %7147 = vmatprep.subr.bf16.mxu0 %v7146_v13 }
 0xd21   : > { %3813 = vmatmul.mubr.f32.gmra.mrb[12].mxu0 %v3603_v2 }
 0xd22   : > { %3818 = vmatprep.mubr.f32.mxu0 %v9438_v8 }
 0xd25   : > { %3821 = vmatmul.mubr.f32.gmra.mrb[8].mxu0 %v3614_v4 }
 0xd26   : > { %3895 = vmatprep.mubr.f32.mxu0 %v9438_v8 }
 0xd29   : > { %3899 = vmatmul.mubr.f32.vlgmr.msra.gmra.mrb[10].mxu0 %v3593_v30 }
 0xd2a   : > { %7149 = vmatpush1.bf16.msra.mxu0 %v8865_v26  ;;  %3904 = vmatprep.mubr.f32.mxu0 %v9438_v8 }
 0xd2b   : > { %7151 = vmatprep.subr.bf16.mxu0 %v7130_v7 }
 0xd2d   : > { %3908 = vmatmul.mubr.f32.gmra.mrb[12].mxu0 %v3604_v3 }
 0xd2e   : > { %3913 = vmatprep.mubr.f32.mxu0 %v9438_v8 }
 0xd31   : > { %3917 = vmatmul.mubr.f32.gmra.mrb[8].mxu0 %v3615_v50 }
 0xd32   : > { %3999 = vmatprep.mubr.f32.mxu0 %v9438_v8 }
 0xd35   : > { %4001 = vmatmul.mubr.f32.vlgmr.msra.gmra.mrb[10].mxu0 %v8874_v19 }
 0xd36   : > { %7153 = vmatpush1.bf16.msra.mxu0 %v8857_v32  ;;  %4006 = vmatprep.mubr.f32.mxu0 %v9438_v8 }
 0xd39   : > { %4008 = vmatmul.mubr.f32.gmra.mrb[12].mxu0 %v8883_v24 }
 0xd3a   : > { %4013 = vmatprep.mubr.f32.mxu0 %v9438_v8 }
 0xd3d   : > { %4015 = vmatmul.mubr.f32.gmra.mrb[8].mxu0 %v8893_v29 }
 0xd3e   : > { %4089 = vmatprep.mubr.f32.mxu0 %v9438_v8 }
 0xd41   : > { %4091 = vmatmul.mubr.f32.vlgmr.msra.gmra.mrb[10].mxu0 %v8874_v19 }
 0xd42   : > { %4096 = vmatprep.mubr.f32.mxu0 %v9438_v8 }
 0xd45   : > { %4098 = vmatmul.mubr.f32.gmra.mrb[12].mxu0 %v8883_v24 }
 0xd46   : > { %4103 = vmatprep.mubr.f32.mxu0 %v9438_v8 }
 0xd49   : > { %4105 = vmatmul.mubr.f32.gmra.mrb[8].mxu0 %v8893_v29 }
 0xd4a   : > { %4724 = vmatprep.mubr.f32.mxu0 %v9438_v8 }
 0xe14   : > { %v4092_v23 = vpop.f32.mrb[10].mxu0 }
 0xe15   : > { %v4094_v43 = vpop.f32.mrb[11].mxu0  ;;  %v8932_v32 = vadd.f32 %v4092_v23, %v3507_v15 }
 0xe16   : > { %v8938_v26 = vadd.f32 %v4094_v43, %v3508_v9 }
 0xe17   : > { %v4123_v37 = vmul.f32 %v8932_v32, %v8932_v32 }
 0xe18   : > { %v4099_v59 = vpop.f32.mrb[12].mxu0  ;;  %v4154_v0 = vmul.f32 %v8938_v26, %v8938_v26 }
 0xe19   : > { %v8934_v22 = vadd.f32 %v4099_v59, %v3509_v46  ;;  %v4101_v25 = vpop.f32.mrb[13].mxu0 }
 0xe1a   : > { %v8936_v17 = vadd.f32 %v4101_v25, %v3510_v56 }
 0xe1b   : > { %v4113_v41 = vadd.f32 %v8934_v22, %v8932_v32  ;;  %v4124_v21 = vmul.f32 %v8934_v22, %v8934_v22 }
 0xe1c   : > { %v4155_v48 = vmul.f32 %v8936_v17, %v8936_v17  ;;  %v4144_v53 = vadd.f32 %v8936_v17, %v8938_v26 }
 0xe1d   : > { %4114 = vadd.xlane.f32.xlu0 %v4113_v41  ;;  %v4125_v42 = vadd.f32 %v4124_v21, %v4123_v37 }
 0xe1e   : > { %v4156_v19 = vadd.f32 %v4155_v48, %v4154_v0 }
 0xe1f   : > { %4126 = vadd.xlane.f32.xlu1 %v4125_v42 }
 0xe21   : > { %4145 = vadd.xlane.f32.xlu0 %v4144_v53 }
 0xe23   : > { %4157 = vadd.xlane.f32.xlu1 %v4156_v19 }
 0xeaa   : > { %v4115_v38 = vpop.xlane.xlu0 %4114 }
 0xeab   : > { %v4116_v57 = vrot.slane %v4115_v38, 4 }
 0xeac   : > { %v4127_v14 = vpop.xlane.xlu1 %4126 }
 0xead   : > { %v4117_v24 = vadd.f32 %v4116_v57, %v4115_v38  ;;  %v4128_v49 = vrot.slane %v4127_v14, 4 }
 0xeae   : > { %v4146_v34 = vpop.xlane.xlu0 %4145 }
 0xeaf   : > { %v4118_v5 = vrot.slane %v4117_v24, 2  ;;  %v4129_v31 = vadd.f32 %v4128_v49, %v4127_v14  ;;  %v4147_v58 = vrot.slane %v4146_v34, 4 }
 0xeb0   : > { %v4158_v54 = vpop.xlane.xlu1 %4157 }
 0xeb1   : > { %v4130_v28 = vrot.slane %v4129_v31, 2  ;;  %v4119_v30 = vadd.f32 %v4118_v5, %v4117_v24  ;;  %v4159_v36 = vrot.slane %v4158_v54, 4  ;;  %v4148_v1 = vadd.f32 %v4147_v58, %v4146_v34 }
 0xeb3   : > { %v4120_v2 = vrot.slane %v4119_v30, 1  ;;  %v4131_v20 = vadd.f32 %v4130_v28, %v4129_v31  ;;  %v4160_v3 = vadd.f32 %v4159_v36, %v4158_v54  ;;  %v4149_v4 = vrot.slane %v4148_v1, 2 }
 0xeb5   : > { %v4121_v33 = vadd.f32 %v4120_v2, %v4119_v30  ;;  %v4132_v39 = vrot.slane %v4131_v20, 1  ;;  %v4161_v7 = vrot.slane %v4160_v3, 2  ;;  %v4150_v11 = vadd.f32 %v4149_v4, %v4148_v1 }
 0xeb7   : > { %7590 = vpush %v4121_v33  ;;  %v4133_v29 = vadd.f32 %v4132_v39, %v4131_v20  ;;  %v4162_v12 = vadd.f32 %v4161_v7, %v4160_v3  ;;  %v4151_v27 = vrot.slane %v4150_v11, 1  ;;  %v6945_v3 = vld [vmem:[%s9428_s2 + $0x40] sm:$0xff] }
 0xeb9   : > { %7592 = vpush %v4133_v29  ;;  %v4163_v18 = vrot.slane %v4162_v12, 1  ;;  %v4152_v50 = vadd.f32 %v4151_v27, %v4150_v11 }
 0xebb   : > { %v4164_v52 = vadd.f32 %v4163_v18, %v4162_v12 }
 0xee8   : > { %s7591_s6 = spop %7590 }
 0xee9   : > { %s8952_s9 = smul.f32 0.00390625, %s7591_s6 }
 0xeea   : > { %s7593_s8 = spop %7592 }
 0xeeb   : > { %s4137_s10 = smul.f32 %s8952_s9, %s8952_s9  ;;  %v4175_v63 = vstv %s8952_s9 }
 0xeec   : > { %s4136_s11 = smul.f32 0.00390625, %s7593_s8  ;;  %v4187_v40 = vsub.f32 %v8932_v32, %v4175_v63  ;;  %v4189_v62 = vsub.f32 %v8934_v22, %v4175_v63  ;;  %s7908_s8 = smov 8  }
 0xeee   : > { %s4138_s30 = ssub.f32 %s4136_s11, %s4137_s10 }
 0xef0   : > { %s4139_s12 = smax.f32 %s7904_s16, %s4138_s30 }
 0xef1   : > { %s4140_s7 = sadd.f32 1e-05, %s4139_s12 }
 0xef3   : > { %v4141_v10 = vstv %s4140_s7 }
 0xef4   : > { %7764 = vrsqrt.f32 %v4141_v10  ;;  %v4242_v10 = vsel %vm1002_vm4, %v6945_v3, 0 }
 0xef5   : > { %v9017_v12 = vand.u32 4294901760, %v4242_v10 }
 0xefe   : > { %v7765_v44 = vpop.eup %7764 }
 0xeff   : > { %7594 = vpush %v7765_v44  ;;  %v6946_v44 = vld [vmem:[%s9428_s2 + $0x48] sm:$0xff] }
 0xf00   : > { %7596 = vpush %v4152_v50 }
 0xf01   : > { %7598 = vpush %v4164_v52 }
 0xf30   : > { %s7595_s14 = spop %7594 }
 0xf31   : > { %v4177_v60 = vstv %s7595_s14  ;;  %s7597_s15 = spop %7596 }
 0xf32   : > { %v4179_v61 = vmul.f32 %v8050_v47, %v4177_v60  ;;  %s8959_s17 = smul.f32 0.00390625, %s7597_s15  ;;  %s7599_s23 = spop %7598 }
 0xf33   : > { %s4167_s25 = smul.f32 0.00390625, %s7599_s23 }
 0xf34   : > { %v4194_v35 = vrot.slane %v4179_v61, %v8056_v51  ;;  %s4168_s26 = smul.f32 %s8959_s17, %s8959_s17  ;;  %v4176_v53 = vstv %s8959_s17  ;;  %v9025_v61 = vsub.f32 %v4242_v10, %v9017_v12 }
 0xf35   : > { %v4188_v38 = vsub.f32 %v8938_v26, %v4176_v53  ;;  %v4190_v57 = vsub.f32 %v8936_v17, %v4176_v53 }
 0xf36   : > { %v4199_v55 = vmul.f32 %v4194_v35, %v4187_v40  ;;  %v4201_v6 = vmul.f32 %v4194_v35, %v4189_v62  ;;  %s4169_s6 = ssub.f32 %s4167_s25, %s4168_s26  ;;  %v4245_v35 = vsel %vm1002_vm4, %v6946_v44, 0 }
 0xf38   : > { %s4170_s9 = smax.f32 %s7904_s16, %s4169_s6  ;;  %4205 = vrot.lane.b32.xlu1 %v4201_v6, %s7908_s8  ;;  %4203 = vrot.lane.b32.xlu0 %v4199_v55, %s7908_s8  ;;  %v4271_v13 = vand.u32 4294901760, %v4199_v55  ;;  %v4275_v15 = vand.u32 4294901760, %v4201_v6 }
 0xf39   : > { %s4171_s10 = sadd.f32 1e-05, %s4170_s9 }
 0xf3a   : > { %v8969_v23 = vpack.c.bf16 %v4275_v15, %v4271_v13  ;;  %v8971_v43 = vsub.f32 %v4199_v55, %v4271_v13  ;;  %v8973_v46 = vsub.f32 %v4201_v6, %v4275_v15 }
 0xf3b   : > { %v4172_v32 = vstv %s4171_s10 }
 0xf3c   : > { %7766 = vrsqrt.f32 %v4172_v32  ;;  %4218 = vrot.lane.b32.xlu1 %v4201_v6, %s7907_s13  ;;  %4216 = vrot.lane.b32.xlu0 %v4199_v55, %s7907_s13  ;;  %v4430_v56 = vand.u32 4294901760, %v8971_v43  ;;  %v4442_v9 = vand.u32 4294901760, %v8973_v46  ;;  %v6947_v6 = vld [vmem:[%s9428_s2 + $0x50] sm:$0xff] }
 0xf3e   : > { %v4431_v22 = vsub.f32 %v8971_v43, %v4430_v56  ;;  %v4443_v25 = vsub.f32 %v8973_v46, %v4442_v9  ;;  %v8983_v41 = vpack.c.bf16 %v4442_v9, %v4430_v56 }
 0xf40   : > { %v4432_v37 = vand.u32 4294901760, %v4431_v22  ;;  %v4444_v21 = vand.u32 4294901760, %v4443_v25  ;;  %v4332_v25 = vand.u32 4294901760, %v9025_v61 }
 0xf42   : > { %v8985_v42 = vpack.c.bf16 %v4444_v21, %v4432_v37  ;;  %v9036_v37 = vand.u32 4294901760, %v4245_v35 }
 0xf46   : > { %v7767_v48 = vpop.eup %7766 }
 0xf47   : > { %7600 = vpush %v7767_v48 }
 0xf78   : > { %s7601_s11 = spop %7600 }
 0xf79   : > { %v4178_v0 = vstv %s7601_s11 }
 0xf7a   : > { %v4180_v19 = vmul.f32 %v8050_v47, %v4178_v0  ;;  %v4248_v0 = vsel %vm1002_vm4, %v6947_v6, 0 }
 0xf7c   : > { %v4198_v14 = vrot.slane %v4180_v19, %v8056_v51 }
 0xf7e   : > { %v4200_v24 = vmul.f32 %v4198_v14, %v4188_v38  ;;  %v4202_v49 = vmul.f32 %v4198_v14, %v4190_v57 }
 0xf80   : > { %4220 = vrot.lane.b32.xlu0 %v4200_v24, %s7907_s13  ;;  %4207 = vrot.lane.b32.xlu1 %v4200_v24, %s7908_s8  ;;  %v4269_v5 = vand.u32 4294901760, %v4200_v24  ;;  %v4273_v31 = vand.u32 4294901760, %v4202_v49 }
 0xf82   : > { %v8994_v28 = vpack.c.bf16 %v4273_v31, %v4269_v5  ;;  %v8996_v30 = vsub.f32 %v4200_v24, %v4269_v5  ;;  %v8998_v2 = vsub.f32 %v4202_v49, %v4273_v31 }
 0xf84   : > { %4209 = vrot.lane.b32.xlu1 %v4202_v49, %s7908_s8  ;;  %v4424_v17 = vand.u32 4294901760, %v8996_v30  ;;  %v4436_v26 = vand.u32 4294901760, %v8998_v2 }
 0xf86   : > { %v4425_v33 = vsub.f32 %v8996_v30, %v4424_v17  ;;  %v4437_v39 = vsub.f32 %v8998_v2, %v4436_v26  ;;  %v9007_v29 = vpack.c.bf16 %v4436_v26, %v4424_v17 }
 0xf88   : > { %4222 = vrot.lane.b32.xlu1 %v4202_v49, %s7907_s13  ;;  %v4426_v34 = vand.u32 4294901760, %v4425_v33  ;;  %v4438_v54 = vand.u32 4294901760, %v4437_v39 }
 0xf8a   : > { %v9010_v58 = vpack.c.bf16 %v4438_v54, %v4426_v34 }
 0xfaa   : > { %v4206_v36 = vpop.permute.xlu1 %4205  ;;  %v4204_v1 = vpop.permute.xlu0 %4203 }
 0xfae   : > { %v4219_v4 = vpop.permute.xlu1 %4218  ;;  %v4217_v7 = vpop.permute.xlu0 %4216 }
 0xff2   : > { %v4208_v11 = vpop.permute.xlu1 %4207  ;;  %v4221_v18 = vpop.permute.xlu0 %4220 }
 0xff3   : > { %v4212_v27 = vsel %vm4211_vm8, %v4204_v1, %v4208_v11  ;;  %v4214_v50 = vsel %vm4211_vm8, %v4208_v11, %v4204_v1  ;;  %v4224_v63 = vsel %vm2593_vm7, %v4217_v7, %v4221_v18  ;;  %v4226_v13 = vsel %vm2593_vm7, %v4221_v18, %v4217_v7 }
 0xff4   : > { %v4253_v52 = vand.u32 4294901760, %v4212_v27  ;;  %v4255_v55 = vand.u32 4294901760, %v4214_v50  ;;  %v4261_v15 = vand.u32 4294901760, %v4224_v63  ;;  %v4263_v38 = vand.u32 4294901760, %v4226_v13 }
 0xff5   : > { %v9070_v1 = vand.u32 4294901760, %v4248_v0 }
 0xff6   : > { %v4210_v60 = vpop.permute.xlu1 %4209  ;;  %v9033_v9 = vsub.f32 %v4212_v27, %v4253_v52  ;;  %v9045_v19 = vsub.f32 %v4214_v50, %v4255_v55  ;;  %v9049_v24 = vsub.f32 %v4224_v63, %v4261_v15  ;;  %v9077_v10 = vsub.f32 %v4226_v13, %v4263_v38 }
 0xff7   : > { %v4213_v40 = vsel %vm4211_vm8, %v4206_v36, %v4210_v60  ;;  %v4215_v62 = vsel %vm4211_vm8, %v4210_v60, %v4206_v36  ;;  %v9068_v36 = vsub.f32 %v4245_v35, %v9036_v37  ;;  %v4251_v27 = vsel %vm1002_vm4, %v6948_v45, 0 }
 0xff8   : > { %v4257_v32 = vand.u32 4294901760, %v4213_v40  ;;  %v4259_v56 = vand.u32 4294901760, %v4215_v62  ;;  %v4376_v17 = vand.u32 4294901760, %v9033_v9  ;;  %v4382_v7 = vand.u32 4294901760, %v9045_v19 }
 0xff9   : > { %v4400_v18 = vand.u32 4294901760, %v9049_v24  ;;  %v4333_v50 = vsub.f32 %v9025_v61, %v4332_v25  ;;  %v4343_v60 = vand.u32 4294901760, %v9068_v36  ;;  %v4406_v13 = vand.u32 4294901760, %v9077_v10 }
 0xffa   : > { %v4223_v22 = vpop.permute.xlu1 %4222  ;;  %v9038_v21 = vsub.f32 %v4213_v40, %v4257_v32  ;;  %v9040_v48 = vsub.f32 %v4215_v62, %v4259_v56  ;;  %v9051_v49 = vpack.c.bf16 %v4259_v56, %v4255_v55  ;;  %v9057_v33 = vpack.c.bf16 %v4257_v32, %v4253_v52 }
 0xffb   : > { %v4225_v53 = vsel %vm2593_vm7, %v4219_v4, %v4223_v22  ;;  %v4227_v57 = vsel %vm2593_vm7, %v4223_v22, %v4219_v4  ;;  %v4377_v44 = vsub.f32 %v9033_v9, %v4376_v17  ;;  %v9095_v40 = vsub.f32 %v4248_v0, %v9070_v1 }
 0xffc   : > { %v4265_v14 = vand.u32 4294901760, %v4225_v53  ;;  %v4388_v5 = vand.u32 4294901760, %v9038_v21  ;;  %v4267_v31 = vand.u32 4294901760, %v4227_v57  ;;  %v4394_v34 = vand.u32 4294901760, %v9040_v48  ;;  %7155 = vmatprep.subr.bf16.mxu1 %v9057_v33  ;;  %7191 = vmatprep.subr.bf16.mxu0 %v9057_v33 }
 0xffd   : > { %7157 = vmatpush1.bf16.msra.mxu1 %v9051_v49  ;;  %7193 = vmatpush1.bf16.msra.mxu0 %v9051_v49  ;;  %v9098_v55 = vand.u32 4294901760, %v4251_v27  ;;  %v4383_v6 = vsub.f32 %v9045_v19, %v4382_v7  ;;  %v4334_v32 = vand.u32 4294901760, %v4333_v50  ;;  %v4401_v56 = vsub.f32 %v9049_v24, %v4400_v18 }
 0xffe   : > { %v9055_v26 = vsub.f32 %v4225_v53, %v4265_v14  ;;  %v9059_v39 = vpack.c.bf16 %v4265_v14, %v4261_v15  ;;  %v9065_v54 = vsub.f32 %v4227_v57, %v4267_v31  ;;  %v4389_v4 = vsub.f32 %v9038_v21, %v4388_v5 }
 0xfff   : > { %v9079_v11 = vpack.c.bf16 %v4267_v31, %v4263_v38  ;;  %v4395_v52 = vsub.f32 %v9040_v48, %v4394_v34  ;;  %v4378_v15 = vand.u32 4294901760, %v4377_v44  ;;  %v4344_v0 = vsub.f32 %v9068_v36, %v4343_v60 }
0x1000   : > { %v4412_v3 = vand.u32 4294901760, %v9055_v26  ;;  %7159 = vmatprep.subr.bf16.mxu1 %v9059_v39  ;;  %7195 = vmatprep.subr.bf16.mxu0 %v9059_v39  ;;  %v4418_v63 = vand.u32 4294901760, %v9065_v54  ;;  %v4390_v62 = vand.u32 4294901760, %v4389_v4  ;;  %v4354_v38 = vand.u32 4294901760, %v9095_v40 }
0x1001   : > { %7161 = vmatpush1.bf16.msra.mxu1 %v9079_v11  ;;  %7197 = vmatpush1.bf16.msra.mxu0 %v9079_v11  ;;  %v4396_v22 = vand.u32 4294901760, %v4395_v52  ;;  %v7202_v14 = vpack.c.bf16 %v4388_v5, %v4376_v17  ;;  %v9111_v45 = vsub.f32 %v4251_v27, %v9098_v55  ;;  %v4384_v4 = vand.u32 4294901760, %v4383_v6 }
0x1002   : > { %v4413_v35 = vsub.f32 %v9055_v26, %v4412_v3  ;;  %7163 = vmatprep.subr.bf16.mxu1 %v8994_v28  ;;  %7199 = vmatprep.subr.bf16.mxu0 %v8994_v28  ;;  %v4419_v53 = vsub.f32 %v9065_v54, %v4418_v63  ;;  %v7166_v57 = vpack.c.bf16 %v4390_v62, %v4378_v15  ;;  %v4402_v44 = vand.u32 4294901760, %v4401_v56 }
0x1003   : > { %v4407_v59 = vsub.f32 %v9077_v10, %v4406_v13  ;;  %v7168_v52 = vpack.c.bf16 %v4396_v22, %v4384_v4  ;;  %v7204_v20 = vpack.c.bf16 %v4394_v34, %v4382_v7  ;;  %v4345_v8 = vand.u32 4294901760, %v4344_v0  ;;  %v4239_v22 = vld [vmem:[#allocation2 + $0x130] sm:$0xff]  ;;  %v4240_v0 = vld [vmem:[#allocation2 + $0x138] sm:$0xff] }
0x1004   : > { %v4414_v31 = vand.u32 4294901760, %v4413_v35  ;;  %v4420_v50 = vand.u32 4294901760, %v4419_v53  ;;  %v7206_v17 = vpack.c.bf16 %v4412_v3, %v4400_v18  ;;  %v4355_v27 = vsub.f32 %v9095_v40, %v4354_v38 }
0x1005   : > { %7165 = vmatpush1.bf16.msra.mxu1 %v8969_v23  ;;  %7201 = vmatpush1.bf16.msra.mxu0 %v8969_v23  ;;  %v4365_v62 = vand.u32 4294901760, %v9111_v45  ;;  %v4408_v35 = vand.u32 4294901760, %v4407_v59  ;;  %v9450_v6 = vmov 0.0   ;;  %v7208_v7 = vpack.c.bf16 %v4418_v63, %v4406_v13 }
0x1006   : > { %7167 = vmatprep.subr.bf16.mxu1 %v7166_v57  ;;  %7203 = vmatprep.subr.bf16.mxu0 %v7202_v14  ;;  %v7170_v5 = vpack.c.bf16 %v4414_v31, %v4402_v44  ;;  %v7178_v59 = vpack.c.bf16 %v9038_v21, %v9033_v9  ;;  %v4235_v9 = vld [vmem:[#allocation2 + $0x110] sm:$0xff]  ;;  %v4236_v21 = vld [vmem:[#allocation2 + $0x118] sm:$0xff] }
0x1007   : > { %v7172_v34 = vpack.c.bf16 %v4420_v50, %v4408_v35  ;;  %v4366_v3 = vsub.f32 %v9111_v45, %v4365_v62 }
0x1008   : > { %4335 = vmatmul.mubr.f32.vlgmr.msra.gmra.mrb[20].mxu1 %v4334_v32  ;;  %4728 = vmatmul.mubr.f32.vlgmr.msra.gmra.mrb[14].mxu0 %v4332_v25  ;;  %v4356_v25 = vand.u32 4294901760, %v4355_v27 }
0x1009   : > { %7169 = vmatpush1.bf16.msra.mxu1 %v7168_v52  ;;  %7205 = vmatpush1.bf16.msra.mxu0 %v7204_v20  ;;  %v7180_v20 = vpack.c.bf16 %v9040_v48, %v9045_v19 }
0x100a   : > { %7171 = vmatprep.subr.bf16.mxu1 %v7170_v5  ;;  %7207 = vmatprep.subr.bf16.mxu0 %v7206_v17 }
0x100b   : > { %4340 = vmatprep.mubr.f32.mxu1 %v9450_v6  ;;  %4733 = vmatprep.mubr.f32.mxu0 %v9450_v6 }
0x100c   : > { %4346 = vmatmul.mubr.f32.gmra.mrb[22].mxu1 %v4345_v8  ;;  %4737 = vmatmul.mubr.f32.gmra.mrb[16].mxu0 %v4343_v60  ;;  %v4367_v8 = vand.u32 4294901760, %v4366_v3 }
0x100d   : > { %7173 = vmatpush1.bf16.msra.mxu1 %v7172_v34  ;;  %7209 = vmatpush1.bf16.msra.mxu0 %v7208_v7 }
0x100e   : > { %7175 = vmatprep.subr.bf16.mxu1 %v9010_v58  ;;  %7211 = vmatprep.subr.bf16.mxu0 %v9007_v29  ;;  %v9451_v29 = vpack.c.bf16 %v8998_v2, %v8996_v30  ;;  %v9452_v58 = vpack.c.bf16 %v8973_v46, %v8971_v43  ;;  %v4234_v43 = vld [vmem:[#allocation2 + $0x108] sm:$0xff] }
0x100f   : > { %4351 = vmatprep.mubr.f32.mxu1 %v9450_v6  ;;  %4742 = vmatprep.mubr.f32.mxu0 %v9450_v6 }
0x1010   : > { %4357 = vmatmul.mubr.f32.gmra.mrb[24].mxu1 %v4356_v25  ;;  %4746 = vmatmul.mubr.f32.gmra.mrb[18].mxu0 %v4354_v38 }
0x1011   : > { %7177 = vmatpush1.bf16.msra.mxu1 %v8985_v42  ;;  %7213 = vmatpush1.bf16.msra.mxu0 %v8983_v41  ;;  %v7182_v41 = vpack.c.bf16 %v9055_v26, %v9049_v24  ;;  %v7184_v42 = vpack.c.bf16 %v9065_v54, %v9077_v10 }
0x1012   : > { %7179 = vmatprep.subr.bf16.mxu1 %v7178_v59  ;;  %7215 = vmatprep.subr.bf16.mxu0 %v9057_v33 }
0x1013   : > { %4362 = vmatprep.mubr.f32.mxu1 %v9450_v6  ;;  %4751 = vmatprep.mubr.f32.mxu0 %v9450_v6 }
0x1014   : > { %4368 = vmatmul.mubr.f32.gmra.mrb[26].mxu1 %v4367_v8  ;;  %4755 = vmatmul.mubr.f32.gmra.mrb[20].mxu0 %v4365_v62 }
0x1015   : > { %4498 = vmatprep.mubr.f32.mxu1 %v9450_v6  ;;  %4861 = vmatprep.mubr.f32.mxu0 %v9450_v6 }
0x1018   : > { %4500 = vmatmul.mubr.f32.vlgmr.msra.gmra.mrb[20].mxu1 %v9017_v12  ;;  %4863 = vmatmul.mubr.f32.vlgmr.msra.gmra.mrb[14].mxu0 %v9017_v12 }
0x1019   : > { %7181 = vmatpush1.bf16.msra.mxu1 %v7180_v20  ;;  %7217 = vmatpush1.bf16.msra.mxu0 %v9051_v49 }
0x101a   : > { %7183 = vmatprep.subr.bf16.mxu1 %v7182_v41  ;;  %7219 = vmatprep.subr.bf16.mxu0 %v9059_v39 }
0x101b   : > { %4505 = vmatprep.mubr.f32.mxu1 %v9450_v6  ;;  %4868 = vmatprep.mubr.f32.mxu0 %v9450_v6 }
0x101c   : > { %4507 = vmatmul.mubr.f32.gmra.mrb[22].mxu1 %v9036_v37  ;;  %4870 = vmatmul.mubr.f32.gmra.mrb[16].mxu0 %v9036_v37 }
0x101d   : > { %7185 = vmatpush1.bf16.msra.mxu1 %v7184_v42  ;;  %7221 = vmatpush1.bf16.msra.mxu0 %v9079_v11  ;;  %v4238_v11 = vld [vmem:[#allocation2 + $0x128] sm:$0xff] }
0x101e   : > { %7187 = vmatprep.subr.bf16.mxu1 %v9451_v29  ;;  %7223 = vmatprep.subr.bf16.mxu0 %v8994_v28 }
0x101f   : > { %4512 = vmatprep.mubr.f32.mxu1 %v9450_v6  ;;  %4875 = vmatprep.mubr.f32.mxu0 %v9450_v6 }
0x1020   : > { %4514 = vmatmul.mubr.f32.gmra.mrb[24].mxu1 %v9070_v1  ;;  %4877 = vmatmul.mubr.f32.gmra.mrb[18].mxu0 %v9070_v1 }
0x1021   : > { %7189 = vmatpush1.bf16.msra.mxu1 %v9452_v58  ;;  %7225 = vmatpush1.bf16.msra.mxu0 %v8969_v23  ;;  %v4233_v23 = vld [vmem:[#allocation2 + $0x100] sm:$0xff] }
0x1022   : > { %4519 = vmatprep.mubr.f32.mxu1 %v9450_v6  ;;  %4882 = vmatprep.mubr.f32.mxu0 %v9450_v6 }
0x1024   : > { %4521 = vmatmul.mubr.f32.gmra.mrb[26].mxu1 %v9098_v55  ;;  %4884 = vmatmul.mubr.f32.gmra.mrb[20].mxu0 %v9098_v55 }
0x1025   : > { %4615 = vmatprep.mubr.f32.mxu1 %v9450_v6  ;;  %4966 = vmatprep.mubr.f32.mxu0 %v9450_v6 }
0x1028   : > { %4618 = vmatmul.mubr.f32.vlgmr.msra.gmra.mrb[20].mxu1 %v9025_v61  ;;  %4968 = vmatmul.mubr.f32.vlgmr.msra.gmra.mrb[14].mxu0 %v9017_v12 }
0x1029   : > { %4623 = vmatprep.mubr.f32.mxu1 %v9450_v6  ;;  %4973 = vmatprep.mubr.f32.mxu0 %v9450_v6 }
0x102c   : > { %4626 = vmatmul.mubr.f32.gmra.mrb[22].mxu1 %v9068_v36  ;;  %4975 = vmatmul.mubr.f32.gmra.mrb[16].mxu0 %v9036_v37 }
0x102d   : > { %4631 = vmatprep.mubr.f32.mxu1 %v9450_v6  ;;  %4980 = vmatprep.mubr.f32.mxu0 %v9450_v6 }
0x1030   : > { %4634 = vmatmul.mubr.f32.gmra.mrb[24].mxu1 %v9095_v40  ;;  %4982 = vmatmul.mubr.f32.gmra.mrb[18].mxu0 %v9070_v1  ;;  %v4237_v1 = vld [vmem:[#allocation2 + $0x120] sm:$0xff] }
0x1031   : > { %4639 = vmatprep.mubr.f32.mxu1 %v9450_v6  ;;  %4987 = vmatprep.mubr.f32.mxu0 %v9450_v6 }
0x1034   : > { %4642 = vmatmul.mubr.f32.gmra.mrb[26].mxu1 %v9111_v45  ;;  %4989 = vmatmul.mubr.f32.gmra.mrb[20].mxu0 %v9098_v55 }
0x1035   : > { %5204 = vmatprep.mubr.f32.mxu0 %v9450_v6  ;;  %5867 = vmatprep.mubr.f32.mxu1 %v9450_v6 }
0x10fb   : > { %v4619_v46 = vpop.f32.mrb[20].mxu1  ;;  %v4969_v28 = vpop.f32.mrb[14].mxu0 }
0x10fc   : > { %v7288_v30 = vadd.f32 %v4619_v46, %v4233_v23  ;;  %v4621_v2 = vpop.f32.mrb[21].mxu1  ;;  %v4971_v12 = vpop.f32.mrb[15].mxu0 }
0x10fd   : > { %v7290_v61 = vadd.f32 %v4621_v2, %v4234_v43 }
0x10fe   : > { %v7289_v37 = vadd.f32 %v7288_v30, %v4969_v28 }
0x10ff   : > { %v7291_v48 = vadd.f32 %v7290_v61, %v4971_v12  ;;  %v4627_v19 = vpop.f32.mrb[22].mxu1  ;;  %v4976_v24 = vpop.f32.mrb[16].mxu0 }
0x1100   : > { %v6949_v49 = vmul.f32 -1.442695, %v7289_v37  ;;  %v7292_v26 = vadd.f32 %v4627_v19, %v4235_v9  ;;  %v4629_v33 = vpop.f32.mrb[23].mxu1  ;;  %v4978_v39 = vpop.f32.mrb[17].mxu0 }
0x1101   : > { %v6950_v54 = vmul.f32 -1.442695, %v7291_v48  ;;  %v7294_v36 = vadd.f32 %v4629_v33, %v4236_v21 }
0x1102   : > { %7768 = vpow2.f32 %v6949_v49  ;;  %v7293_v10 = vadd.f32 %v7292_v26, %v4976_v24 }
0x1103   : > { %7770 = vpow2.f32 %v6950_v54  ;;  %v7295_v18 = vadd.f32 %v7294_v36, %v4978_v39  ;;  %v4635_v63 = vpop.f32.mrb[24].mxu1  ;;  %v4983_v60 = vpop.f32.mrb[18].mxu0 }
0x1104   : > { %v6951_v40 = vmul.f32 -1.442695, %v7293_v10  ;;  %v7296_v55 = vadd.f32 %v4635_v63, %v4237_v1  ;;  %v4637_v13 = vpop.f32.mrb[25].mxu1  ;;  %v4985_v15 = vpop.f32.mrb[19].mxu0 }
0x1105   : > { %v6952_v32 = vmul.f32 -1.442695, %v7295_v18  ;;  %v7298_v56 = vadd.f32 %v4637_v13, %v4238_v11 }
0x1106   : > { %7772 = vpow2.f32 %v6951_v40  ;;  %v7297_v53 = vadd.f32 %v7296_v55, %v4983_v60 }
0x1107   : > { %7774 = vpow2.f32 %v6952_v32  ;;  %v7299_v38 = vadd.f32 %v7298_v56, %v4985_v15  ;;  %v4643_v57 = vpop.f32.mrb[26].mxu1  ;;  %v4990_v14 = vpop.f32.mrb[20].mxu0 }
0x1108   : > { %v7300_v31 = vadd.f32 %v4643_v57, %v4239_v22  ;;  %v4645_v45 = vpop.f32.mrb[27].mxu1  ;;  %v4992_v4 = vpop.f32.mrb[21].mxu0  ;;  %7776 = vtanh.f32 %v7297_v53 }
0x1109   : > { %v7302_v44 = vadd.f32 %v4645_v45, %v4240_v0  ;;  %7778 = vtanh.f32 %v7299_v38 }
0x110a   : > { %v7301_v50 = vadd.f32 %v7300_v31, %v4990_v14 }
0x110b   : > { %v7303_v52 = vadd.f32 %v7302_v44, %v4992_v4 }
0x110c   : > { %v7769_v5 = vpop.eup %7768 }
0x110d   : > { %v7771_v17 = vpop.eup %7770  ;;  %v5007_v27 = vadd.f32 1.0, %v7769_v5 }
0x110e   : > { %v5008_v62 = vadd.f32 1.0, %v7771_v17 }
0x110f   : > { %7780 = vrcp.f32 %v5007_v27 }
0x1110   : > { %v7773_v35 = vpop.eup %7772  ;;  %7782 = vrcp.f32 %v5008_v62 }
0x1111   : > { %v7775_v34 = vpop.eup %7774  ;;  %v5009_v7 = vadd.f32 1.0, %v7773_v35  ;;  %7784 = vtanh.f32 %v7301_v50 }
0x1112   : > { %v5010_v25 = vadd.f32 1.0, %v7775_v34  ;;  %7786 = vtanh.f32 %v7303_v52  ;;  %v7777_v3 = vpop.eup %7776 }
0x1113   : > { %7788 = vrcp.f32 %v5009_v7  ;;  %v7779_v59 = vpop.eup %7778 }
0x1114   : > { %7790 = vrcp.f32 %v5010_v25 }
0x1119   : > { %v7781_v8 = vpop.eup %7780 }
0x111a   : > { %v7783_v20 = vpop.eup %7782  ;;  %v5023_v41 = vmul.f32 %v7781_v8, %v7777_v3 }
0x111b   : > { %v7785_v42 = vpop.eup %7784  ;;  %v5024_v29 = vmul.f32 %v7783_v20, %v7779_v59 }
0x111c   : > { %v7787_v58 = vpop.eup %7786  ;;  %v9186_v28 = vmul.f32 %v5023_v41, %v8389_v16 }
0x111d   : > { %v7789_v23 = vpop.eup %7788  ;;  %v9201_v48 = vmul.f32 %v5024_v29, %v8389_v16 }
0x111e   : > { %v7791_v43 = vpop.eup %7790  ;;  %v5025_v46 = vmul.f32 %v7789_v23, %v7785_v42  ;;  %v5045_v61 = vmul.f32 %v9186_v28, %v9186_v28 }
0x111f   : > { %v5026_v30 = vmul.f32 %v7791_v43, %v7787_v58  ;;  %v5076_v49 = vmul.f32 %v9201_v48, %v9201_v48 }
0x1120   : > { %v9189_v2 = vmul.f32 %v5025_v46, %v8389_v16 }
0x1121   : > { %v9198_v37 = vmul.f32 %v5026_v30, %v8389_v16 }
0x1122   : > { %v5035_v12 = vadd.f32 %v9189_v2, %v9186_v28  ;;  %v5046_v9 = vmul.f32 %v9189_v2, %v9189_v2 }
0x1123   : > { %v5066_v19 = vadd.f32 %v9198_v37, %v9201_v48  ;;  %v5077_v24 = vmul.f32 %v9198_v37, %v9198_v37 }
0x1124   : > { %5036 = vadd.xlane.f32.xlu0 %v5035_v12  ;;  %v5047_v21 = vadd.f32 %v5046_v9, %v5045_v61 }
0x1125   : > { %v5078_v26 = vadd.f32 %v5077_v24, %v5076_v49  ;;  %v6954_v24 = vld [vmem:[%s9429_s3 + $0x38] sm:$0xff] }
0x1126   : > { %5048 = vadd.xlane.f32.xlu1 %v5047_v21  ;;  %v6953_v21 = vld [vmem:[%s9429_s3 + $0x30] sm:$0xff] }
0x1128   : > { %5067 = vadd.xlane.f32.xlu0 %v5066_v19  ;;  %v5128_v19 = vsel %vm1896_vm6, %v6953_v21, 0 }
0x1129   : > { %v9245_v49 = vand.u32 4294901760, %v5128_v19 }
0x112c   : > { %5079 = vadd.xlane.f32.xlu0 %v5078_v26  ;;  %v5131_v26 = vsel %vm1896_vm6, %v6954_v24, 0  ;;  %v1894_v24 = vld [vmem:[#allocation2 + $0x80] sm:$0xf] }
0x11b1   : > { %v5037_v33 = vpop.xlane.xlu0 %5036 }
0x11b2   : > { %v5038_v39 = vrot.slane %v5037_v33, 4 }
0x11b3   : > { %v5049_v54 = vpop.xlane.xlu1 %5048 }
0x11b4   : > { %v5039_v36 = vadd.f32 %v5038_v39, %v5037_v33  ;;  %v5050_v1 = vrot.slane %v5049_v54, 4  ;;  %v6955_v33 = vld [vmem:[%s9429_s3 + $0x40] sm:$0xf]  ;;  %v9252_v39 = vsub.f32 %v5128_v19, %v9245_v49 }
0x11b5   : > { %v5068_v15 = vpop.xlane.xlu0 %5067 }
0x11b6   : > { %v5040_v16 = vrot.slane %v5039_v36, 2  ;;  %v5051_v10 = vadd.f32 %v5050_v1, %v5049_v54  ;;  %v5069_v56 = vrot.slane %v5068_v15, 4  ;;  %v9254_v54 = vand.u32 4294901760, %v5131_v26 }
0x11b8   : > { %v5052_v11 = vrot.slane %v5051_v10, 2  ;;  %v5041_v18 = vadd.f32 %v5040_v16, %v5039_v36  ;;  %v5070_v53 = vadd.f32 %v5069_v56, %v5068_v15  ;;  %v5134_v16 = vsel %vm1896_vm6, %v6955_v33, 0  ;;  %v3512_v33 = vld [vmem:[#allocation2 + $0xf8] sm:$0xf] }
0x11b9   : > { %v5080_v32 = vpop.xlane.xlu0 %5079 }
0x11ba   : > { %v5042_v63 = vrot.slane %v5041_v18, 1  ;;  %v5053_v60 = vadd.f32 %v5052_v11, %v5051_v10  ;;  %v5081_v22 = vrot.slane %v5080_v32, 4  ;;  %v5071_v38 = vrot.slane %v5070_v53, 2 }
0x11bb   : > { %v5207_v11 = vand.u32 4294901760, %v9252_v39 }
0x11bc   : > { %v5043_v40 = vadd.f32 %v5042_v63, %v5041_v18  ;;  %v5054_v55 = vrot.slane %v5053_v60, 1  ;;  %v5082_v0 = vadd.f32 %v5081_v22, %v5080_v32  ;;  %v5072_v31 = vadd.f32 %v5071_v38, %v5070_v53 }
0x11bd   : > { %v5215_v18 = vsub.f32 %v5131_v26, %v9254_v54  ;;  %v5208_v32 = vsub.f32 %v9252_v39, %v5207_v11  ;;  %v1895_v26 = vld [vmem:[#allocation2 + $0x88] sm:$0xf] }
0x11be   : > { %7602 = vpush %v5043_v40  ;;  %v5055_v13 = vadd.f32 %v5054_v55, %v5053_v60  ;;  %v5083_v57 = vrot.slane %v5082_v0, 2  ;;  %v5073_v4 = vrot.slane %v5072_v31, 1  ;;  %v9264_v55 = vand.u32 4294901760, %v5134_v16 }
0x11bf   : > { %v5216_v53 = vand.u32 4294901760, %v5215_v18 }
0x11c0   : > { %7604 = vpush %v5055_v13  ;;  %v5084_v45 = vadd.f32 %v5083_v57, %v5082_v0  ;;  %v5074_v52 = vadd.f32 %v5073_v4, %v5072_v31  ;;  %v5224_v0 = vsub.f32 %v5134_v16, %v9264_v55  ;;  %v5209_v31 = vand.u32 4294901760, %v5208_v32 }
0x11c1   : > { %v7273_v16 = vadd.f32 %v3512_v33, %v1895_v26  ;;  %v5705_v33 = vld [vmem:[%s9427_s1 + $0x10] sm:$0xf] }
0x11c2   : > { %v5085_v44 = vrot.slane %v5084_v45, 1  ;;  %v5225_v4 = vand.u32 4294901760, %v5224_v0 }
0x11c4   : > { %v5086_v5 = vadd.f32 %v5085_v44, %v5084_v45 }
0x11ef   : > { %s7603_s25 = spop %7602 }
0x11f0   : > { %s9209_s26 = smul.f32 0.00390625, %s7603_s25 }
0x11f1   : > { %s7605_s6 = spop %7604 }
0x11f2   : > { %s5059_s9 = smul.f32 %s9209_s26, %s9209_s26  ;;  %v5097_v17 = vstv %s9209_s26 }
0x11f3   : > { %s5058_s8 = smul.f32 0.00390625, %s7605_s6  ;;  %v5109_v35 = vsub.f32 %v9186_v28, %v5097_v17  ;;  %v5111_v34 = vsub.f32 %v9189_v2, %v5097_v17 }
0x11f5   : > { %s5060_s10 = ssub.f32 %s5058_s8, %s5059_s9 }
0x11f7   : > { %s5061_s11 = smax.f32 %s7904_s16, %s5060_s10 }
0x11f8   : > { %s5062_s30 = sadd.f32 1e-05, %s5061_s11 }
0x11fa   : > { %v5063_v14 = vstv %s5062_s30 }
0x11fb   : > { %7792 = vrsqrt.f32 %v5063_v14 }
0x1205   : > { %v7793_v50 = vpop.eup %7792 }
0x1206   : > { %7606 = vpush %v7793_v50 }
0x1207   : > { %7608 = vpush %v5074_v52 }
0x1208   : > { %7610 = vpush %v5086_v5 }
0x1237   : > { %s7607_s12 = spop %7606 }
0x1238   : > { %v5099_v27 = vstv %s7607_s12  ;;  %s7609_s13 = spop %7608 }
0x1239   : > { %v5101_v62 = vmul.f32 %v8050_v47, %v5099_v27  ;;  %s9216_s7 = smul.f32 0.00390625, %s7609_s13  ;;  %s7611_s14 = spop %7610  ;;  %v5226_v27 = vsub.f32 %v5224_v0, %v5225_v4 }
0x123a   : > { %s5089_s15 = smul.f32 0.00390625, %s7611_s14 }
0x123b   : > { %v5116_v7 = vrot.slane %v5101_v62, %v8056_v51  ;;  %s5090_s17 = smul.f32 %s9216_s7, %s9216_s7  ;;  %v5098_v36 = vstv %s9216_s7 }
0x123c   : > { %v5110_v63 = vsub.f32 %v9201_v48, %v5098_v36  ;;  %v5112_v60 = vsub.f32 %v9198_v37, %v5098_v36  ;;  %v5217_v48 = vsub.f32 %v5215_v18, %v5216_v53 }
0x123d   : > { %v5121_v25 = vmul.f32 %v5116_v7, %v5109_v35  ;;  %v5123_v3 = vmul.f32 %v5116_v7, %v5111_v34  ;;  %s5091_s23 = ssub.f32 %s5089_s15, %s5090_s17  ;;  %v5227_v34 = vand.u32 4294901760, %v5226_v27 }
0x123e   : > { %v5218_v52 = vand.u32 4294901760, %v5217_v48 }
0x123f   : > { %v5138_v59 = vand.u32 4294901760, %v5121_v25  ;;  %v5142_v8 = vand.u32 4294901760, %v5123_v3  ;;  %s5092_s25 = smax.f32 %s7904_s16, %s5091_s23 }
0x1240   : > { %s5093_s26 = sadd.f32 1e-05, %s5092_s25 }
0x1241   : > { %v9224_v20 = vsub.f32 %v5121_v25, %v5138_v59  ;;  %v9226_v41 = vsub.f32 %v5123_v3, %v5142_v8  ;;  %v9228_v42 = vpack.c.bf16 %v5142_v8, %v5138_v59 }
0x1242   : > { %v5094_v29 = vstv %s5093_s26 }
0x1243   : > { %7794 = vrsqrt.f32 %v5094_v29  ;;  %v5242_v58 = vand.u32 4294901760, %v9224_v20  ;;  %v5254_v23 = vand.u32 4294901760, %v9226_v41  ;;  %v7236_v43 = vpack.c.bf16 %v9226_v41, %v9224_v20 }
0x1245   : > { %v5243_v46 = vsub.f32 %v9224_v20, %v5242_v58  ;;  %v5255_v28 = vsub.f32 %v9226_v41, %v5254_v23  ;;  %v9236_v30 = vpack.c.bf16 %v5254_v23, %v5242_v58 }
0x1247   : > { %v5244_v2 = vand.u32 4294901760, %v5243_v46  ;;  %v5256_v12 = vand.u32 4294901760, %v5255_v28 }
0x1249   : > { %v7232_v61 = vpack.c.bf16 %v5256_v12, %v5244_v2 }
0x124d   : > { %v7795_v9 = vpop.eup %7794 }
0x124e   : > { %7612 = vpush %v7795_v9 }
0x127f   : > { %s7613_s12 = spop %7612 }
0x1280   : > { %v5100_v1 = vstv %s7613_s12 }
0x1281   : > { %v5102_v10 = vmul.f32 %v8050_v47, %v5100_v1  ;;  %v5125_v1 = vld [vmem:[#allocation2 + $0x160] sm:$0xf] }
0x1283   : > { %v5120_v40 = vrot.slane %v5102_v10, %v8056_v51  ;;  %v5126_v10 = vld [vmem:[#allocation2 + $0x168] sm:$0xf] }
0x1285   : > { %v5122_v13 = vmul.f32 %v5120_v40, %v5110_v63  ;;  %v5124_v15 = vmul.f32 %v5120_v40, %v5112_v60  ;;  %v7274_v60 = vadd.f32 %v7273_v16, %v5126_v10 }
0x1287   : > { %v5136_v56 = vand.u32 4294901760, %v5122_v13  ;;  %v5140_v22 = vand.u32 4294901760, %v5124_v15 }
0x1289   : > { %v7226_v38 = vpack.c.bf16 %v5140_v22, %v5136_v56  ;;  %v5235_v57 = vsub.f32 %v5122_v13, %v5136_v56  ;;  %v5247_v14 = vsub.f32 %v5124_v15, %v5140_v22 }
0x128b   : > { %7227 = vmatprep.subr.bf16.mxu0 %v7226_v38  ;;  %v5236_v37 = vand.u32 4294901760, %v5235_v57  ;;  %v5248_v45 = vand.u32 4294901760, %v5247_v14  ;;  %v7234_v35 = vpack.c.bf16 %v5247_v14, %v5235_v57 }
0x128c   : > { %7229 = vmatpush1.bf16.msra.mxu0 %v9228_v42 }
0x128d   : > { %v5237_v44 = vsub.f32 %v5235_v57, %v5236_v37  ;;  %v5249_v50 = vsub.f32 %v5247_v14, %v5248_v45  ;;  %v7242_v7 = vpack.c.bf16 %v5248_v45, %v5236_v37 }
0x128f   : > { %5210 = vmatmul.mubr.f32.vlgmr.msra.gmra.mrb[22].mxu0 %v5209_v31  ;;  %v5238_v5 = vand.u32 4294901760, %v5237_v44  ;;  %v5250_v17 = vand.u32 4294901760, %v5249_v50 }
0x1290   : > { %5213 = vmatprep.mubr.f32.mxu0 %v9450_v6 }
0x1291   : > { %v7230_v62 = vpack.c.bf16 %v5250_v17, %v5238_v5 }
0x1293   : > { %5219 = vmatmul.mubr.f32.gmra.mrb[24].mxu0 %v5218_v52  ;;  %7231 = vmatprep.subr.bf16.mxu0 %v7230_v62 }
0x1294   : > { %7233 = vmatpush1.bf16.msra.mxu0 %v7232_v61  ;;  %5222 = vmatprep.mubr.f32.mxu0 %v9450_v6 }
0x1295   : > { %7235 = vmatprep.subr.bf16.mxu0 %v7234_v35 }
0x1297   : > { %5228 = vmatmul.mubr.f32.gmra.mrb[8].mxu0 %v5227_v34 }
0x1298   : > { %5318 = vmatprep.mubr.f32.mxu0 %v9450_v6 }
0x129b   : > { %5320 = vmatmul.mubr.f32.vlgmr.msra.gmra.mrb[26].mxu0 %v9245_v49 }
0x129c   : > { %7237 = vmatpush1.bf16.msra.mxu0 %v7236_v43  ;;  %5323 = vmatprep.mubr.f32.mxu0 %v9450_v6 }
0x129d   : > { %7239 = vmatprep.subr.bf16.mxu0 %v7226_v38 }
0x129f   : > { %5325 = vmatmul.mubr.f32.gmra.mrb[28].mxu0 %v9254_v54 }
0x12a0   : > { %5328 = vmatprep.mubr.f32.mxu0 %v9450_v6 }
0x12a3   : > { %5330 = vmatmul.mubr.f32.gmra.mrb[8].mxu0 %v9264_v55 }
0x12a4   : > { %5408 = vmatprep.mubr.f32.mxu0 %v9450_v6 }
0x12a7   : > { %5411 = vmatmul.mubr.f32.vlgmr.msra.gmra.mrb[30].mxu0 %v9252_v39 }
0x12a8   : > { %7241 = vmatpush1.bf16.msra.mxu0 %v9228_v42  ;;  %5414 = vmatprep.mubr.f32.mxu0 %v9450_v6 }
0x12a9   : > { %7243 = vmatprep.subr.bf16.mxu0 %v7242_v7 }
0x12ab   : > { %5417 = vmatmul.mubr.f32.gmra.mrb[32].mxu0 %v5215_v18 }
0x12ac   : > { %5420 = vmatprep.mubr.f32.mxu0 %v9450_v6 }
0x12af   : > { %5423 = vmatmul.mubr.f32.gmra.mrb[8].mxu0 %v5224_v0 }
0x12b0   : > { %5497 = vmatprep.mubr.f32.mxu0 %v9450_v6 }
0x12b3   : > { %5501 = vmatmul.mubr.f32.vlgmr.msra.gmra.mrb[34].mxu0 %v5207_v11 }
0x12b4   : > { %7245 = vmatpush1.bf16.msra.mxu0 %v9236_v30  ;;  %5504 = vmatprep.mubr.f32.mxu0 %v9450_v6 }
0x12b5   : > { %7247 = vmatprep.subr.bf16.mxu0 %v7226_v38 }
0x12b7   : > { %5508 = vmatmul.mubr.f32.gmra.mrb[36].mxu0 %v5216_v53 }
0x12b8   : > { %5511 = vmatprep.mubr.f32.mxu0 %v9450_v6 }
0x12bb   : > { %5515 = vmatmul.mubr.f32.gmra.mrb[8].mxu0 %v5225_v4 }
0x12bc   : > { %5597 = vmatprep.mubr.f32.mxu0 %v9450_v6 }
0x12bf   : > { %5599 = vmatmul.mubr.f32.vlgmr.msra.gmra.mrb[38].mxu0 %v9245_v49 }
0x12c0   : > { %7249 = vmatpush1.bf16.msra.mxu0 %v9228_v42  ;;  %5602 = vmatprep.mubr.f32.mxu0 %v9450_v6 }
0x12c3   : > { %5604 = vmatmul.mubr.f32.gmra.mrb[40].mxu0 %v9254_v54 }
0x12c4   : > { %5607 = vmatprep.mubr.f32.mxu0 %v9450_v6 }
0x12c7   : > { %5609 = vmatmul.mubr.f32.gmra.mrb[8].mxu0 %v9264_v55 }
0x12c8   : > { %5683 = vmatprep.mubr.f32.mxu0 %v9450_v6 }
0x12cb   : > { %5685 = vmatmul.mubr.f32.vlgmr.msra.gmra.mrb[42].mxu0 %v9245_v49  ;;  %v3511_v49 = vld [vmem:[#allocation2 + $0xf0] sm:$0xf] }
0x12cc   : > { %5688 = vmatprep.mubr.f32.mxu0 %v9450_v6  ;;  %v7270_v36 = vadd.f32 %v3511_v49, %v1894_v24 }
0x12ce   : > { %v7271_v63 = vadd.f32 %v7270_v36, %v5125_v1 }
0x12cf   : > { %5690 = vmatmul.mubr.f32.gmra.mrb[44].mxu0 %v9254_v54 }
0x12d0   : > { %5693 = vmatprep.mubr.f32.mxu0 %v9450_v6 }
0x12d3   : > { %5695 = vmatmul.mubr.f32.gmra.mrb[8].mxu0 %v9264_v55 }
0x1362   : > { %v5211_v25 = vpop.f32.mrb[22].mxu0 }
0x1363   : > { %v5212_v3 = vpop.f32.mrb[23].mxu0 }
0x1366   : > { %v5220_v59 = vpop.f32.mrb[24].mxu0 }
0x1367   : > { %v5221_v8 = vpop.f32.mrb[25].mxu0 }
0x136e   : > { %v5321_v20 = vpop.f32.mrb[26].mxu0 }
0x136f   : > { %v5322_v41 = vpop.f32.mrb[27].mxu0 }
0x1372   : > { %v5326_v42 = vpop.f32.mrb[28].mxu0 }
0x1373   : > { %v5327_v29 = vpop.f32.mrb[29].mxu0 }
0x137a   : > { %v5412_v58 = vpop.f32.mrb[30].mxu0 }
0x137b   : > { %v5413_v23 = vpop.f32.mrb[31].mxu0 }
0x137e   : > { %v5418_v43 = vpop.f32.mrb[32].mxu0 }
0x137f   : > { %v5419_v46 = vpop.f32.mrb[33].mxu0 }
0x1386   : > { %v5502_v28 = vpop.f32.mrb[34].mxu0 }
0x1387   : > { %v5503_v30 = vpop.f32.mrb[35].mxu0 }
0x138a   : > { %v5509_v2 = vpop.f32.mrb[36].mxu0 }
0x138b   : > { %v5510_v12 = vpop.f32.mrb[37].mxu0 }
0x1392   : > { %v5600_v61 = vpop.f32.mrb[38].mxu0 }
0x1393   : > { %v5601_v9 = vpop.f32.mrb[39].mxu0 }
0x1396   : > { %v5605_v21 = vpop.f32.mrb[40].mxu0 }
0x1397   : > { %v5606_v19 = vpop.f32.mrb[41].mxu0 }
0x139e   : > { %v5686_v39 = vpop.f32.mrb[42].mxu0 }
0x139f   : > { %v5687_v54 = vpop.f32.mrb[43].mxu0  ;;  %v5793_v39 = vsel %vm349_vm2, %v5705_v33, 0 }
0x13a0   : > { %v5868_v54 = vand.u32 4294901760, %v5793_v39 }
0x13a2   : > { %v5691_v11 = vpop.f32.mrb[44].mxu0  ;;  %v5869_v36 = vsub.f32 %v5793_v39, %v5868_v54 }
0x13a3   : > { %v5692_v18 = vpop.f32.mrb[45].mxu0 }
0x13a4   : > { %v5870_v11 = vand.u32 4294901760, %v5869_v36 }
0x13a6   : > { %v5696_v40 = vpop.f32.mrb[8].mxu0 }
0x13a7   : > { %v7272_v55 = vadd.f32 %v7271_v63, %v5696_v40  ;;  %v5698_v13 = vpop.f32.mrb[9].mxu0 }
0x13a8   : > { %v7275_v15 = vadd.f32 %v7274_v60, %v5698_v13 }
0x13a9   : > { %v9302_v32 = vmax.f32 %v7272_v55, 0.0  ;;  %v5871_v55 = vsub.f32 %v5869_v36, %v5870_v11 }
0x13aa   : > { %v9304_v56 = vmax.f32 %v7275_v15, 0.0 }
0x13ab   : > { %v5706_v22 = vsel %vm249_vm0, %v9302_v32, 0.0  ;;  %v5716_v53 = vmul.f32 %v9302_v32, %v9302_v32 }
0x13ac   : > { %5707 = vadd.xlane.f32.xlu0 %v5706_v22  ;;  %v5746_v38 = vmul.f32 %v9304_v56, %v9304_v56  ;;  %v5736_v57 = vsel %vm249_vm0, %v9304_v56, 0.0 }
0x13ad   : > { %v5717_v0 = vsel %vm249_vm0, %v5716_v53, 0.0  ;;  %v5872_v53 = vand.u32 4294901760, %v5871_v55 }
0x13ae   : > { %5718 = vadd.xlane.f32.xlu1 %v5717_v0  ;;  %v5747_v14 = vsel %vm249_vm0, %v5746_v38, 0.0 }
0x13b0   : > { %5737 = vadd.xlane.f32.xlu0 %v5736_v57 }
0x13b2   : > { %5748 = vadd.xlane.f32.xlu1 %v5747_v14 }
0x1439   : > { %v5708_v31 = vpop.xlane.xlu0 %5707 }
0x143a   : > { %v5709_v48 = vrot.slane %v5708_v31, 4 }
0x143b   : > { %v5719_v37 = vpop.xlane.xlu1 %5718 }
0x143c   : > { %v5710_v45 = vadd.f32 %v5709_v48, %v5708_v31  ;;  %v5720_v4 = vrot.slane %v5719_v37, 4 }
0x143d   : > { %v5738_v7 = vpop.xlane.xlu0 %5737 }
0x143e   : > { %v5711_v44 = vrot.slane %v5710_v45, 2  ;;  %v5721_v50 = vadd.f32 %v5720_v4, %v5719_v37  ;;  %v5739_v3 = vrot.slane %v5738_v7, 4  ;;  %v5790_v37 = vld [vmem:[#allocation2 + $0x170] sm:$0xf] }
0x143f   : > { %v5749_v25 = vpop.xlane.xlu1 %5748 }
0x1440   : > { %v5722_v52 = vrot.slane %v5721_v50, 2  ;;  %v5712_v5 = vadd.f32 %v5711_v44, %v5710_v45  ;;  %v5750_v59 = vrot.slane %v5749_v25, 4  ;;  %v5740_v8 = vadd.f32 %v5739_v3, %v5738_v7  ;;  %v5791_v45 = vld [vmem:[#allocation2 + $0x178] sm:$0xf] }
0x1442   : > { %v5713_v17 = vrot.slane %v5712_v5, 1  ;;  %v5723_v27 = vadd.f32 %v5722_v52, %v5721_v50  ;;  %v5751_v20 = vadd.f32 %v5750_v59, %v5749_v25  ;;  %v5741_v41 = vrot.slane %v5740_v8, 2 }
0x1444   : > { %v5714_v62 = vadd.f32 %v5713_v17, %v5712_v5  ;;  %v5724_v35 = vrot.slane %v5723_v27, 1  ;;  %v5752_v42 = vrot.slane %v5751_v20, 2  ;;  %v5742_v58 = vadd.f32 %v5741_v41, %v5740_v8 }
0x1446   : > { %7614 = vpush %v5714_v62  ;;  %v5725_v34 = vadd.f32 %v5724_v35, %v5723_v27  ;;  %v5753_v23 = vadd.f32 %v5752_v42, %v5751_v20  ;;  %v5743_v43 = vrot.slane %v5742_v58, 1 }
0x1448   : > { %7616 = vpush %v5725_v34  ;;  %v5754_v46 = vrot.slane %v5753_v23, 1  ;;  %v5744_v30 = vadd.f32 %v5743_v43, %v5742_v58 }
0x144a   : > { %v5755_v2 = vadd.f32 %v5754_v46, %v5753_v23 }
0x1477   : > { %s7615_s13 = spop %7614 }
0x1478   : > { %s9316_s7 = smul.f32 0.015625, %s7615_s13 }
0x1479   : > { %s7617_s14 = spop %7616 }
0x147a   : > { %s5729_s15 = smul.f32 %s9316_s7, %s9316_s7  ;;  %v5766_v12 = vstv %s9316_s7 }
0x147b   : > { %s5728_s17 = smul.f32 0.015625, %s7617_s14  ;;  %v5778_v21 = vsub.f32 %v9302_v32, %v5766_v12 }
0x147d   : > { %s5730_s23 = ssub.f32 %s5728_s17, %s5729_s15 }
0x147f   : > { %s5731_s25 = smax.f32 %s7904_s16, %s5730_s23 }
0x1480   : > { %s5732_s26 = sadd.f32 1e-05, %s5731_s25 }
0x1482   : > { %v5733_v29 = vstv %s5732_s26 }
0x1483   : > { %7796 = vrsqrt.f32 %v5733_v29 }
0x148d   : > { %v7797_v28 = vpop.eup %7796 }
0x148e   : > { %7618 = vpush %v7797_v28 }
0x148f   : > { %7620 = vpush %v5744_v30 }
0x1490   : > { %7622 = vpush %v5755_v2 }
0x14bf   : > { %s7619_s6 = spop %7618 }
0x14c0   : > { %v5768_v61 = vstv %s7619_s6  ;;  %s7621_s9 = spop %7620 }
0x14c1   : > { %v5770_v9 = vmul.f32 %v8050_v47, %v5768_v61  ;;  %s5757_s8 = smul.f32 0.015625, %s7621_s9  ;;  %s7623_s10 = spop %7622 }
0x14c2   : > { %s5758_s11 = smul.f32 0.015625, %s7623_s10 }
0x14c3   : > { %v5783_v19 = vrot.slane %v5770_v9, %v8056_v51  ;;  %s5759_s30 = smul.f32 %s5757_s8, %s5757_s8  ;;  %v5767_v16 = vstv %s5757_s8 }
0x14c4   : > { %v5779_v60 = vsub.f32 %v9304_v56, %v5767_v16 }
0x14c5   : > { %v5788_v24 = vmul.f32 %v5783_v19, %v5778_v21  ;;  %s5760_s12 = ssub.f32 %s5758_s11, %s5759_s30 }
0x14c7   : > { %s5761_s13 = smax.f32 %s7904_s16, %s5760_s12  ;;  %v5796_v1 = vsel %vm249_vm0, %v5788_v24, 0 }
0x14c8   : > { %s5762_s14 = sadd.f32 1e-05, %s5761_s13  ;;  %v5803_v63 = vand.u32 4294901760, %v5796_v1 }
0x14ca   : > { %v5763_v49 = vstv %s5762_s14  ;;  %v5886_v15 = vsub.f32 %v5796_v1, %v5803_v63 }
0x14cb   : > { %7798 = vrsqrt.f32 %v5763_v49 }
0x14cc   : > { %v5887_v0 = vand.u32 4294901760, %v5886_v15 }
0x14ce   : > { %v5888_v14 = vsub.f32 %v5886_v15, %v5887_v0 }
0x14d0   : > { %v5889_v48 = vand.u32 4294901760, %v5888_v14 }
0x14d5   : > { %v7799_v26 = vpop.eup %7798 }
0x14d6   : > { %7624 = vpush %v7799_v26 }
0x1507   : > { %s7625_s17 = spop %7624 }
0x1508   : > { %v5769_v10 = vstv %s7625_s17 }
0x1509   : > { %v5771_v18 = vmul.f32 %v8050_v47, %v5769_v10 }
0x150b   : > { %v5787_v40 = vrot.slane %v5771_v18, %v8056_v51 }
0x150d   : > { %v5789_v13 = vmul.f32 %v5787_v40, %v5779_v60 }
0x150f   : > { %v5799_v32 = vsel %vm249_vm0, %v5789_v13, 0 }
0x1510   : > { %v5801_v22 = vand.u32 4294901760, %v5799_v32 }
0x1512   : > { %5802 = vmatprep.subr.mxu1 %v5801_v22  ;;  %v5880_v38 = vsub.f32 %v5799_v32, %v5801_v22 }
0x1513   : > { %5804 = vmatpush1.msra.mxu1 %v5803_v63 }
0x1514   : > { %5873 = vmatmul.mubr.f32.vlgmr.msra.gmra.mrb[28].mxu1 %v5872_v53  ;;  %v5881_v57 = vand.u32 4294901760, %v5880_v38 }
0x1515   : > { %5953 = vmatprep.mubr.f32.mxu1 %v9450_v6 }
0x1516   : > { %v5882_v31 = vsub.f32 %v5880_v38, %v5881_v57 }
0x1518   : > { %v5883_v56 = vand.u32 4294901760, %v5882_v31 }
0x151a   : > { %5884 = vmatprep.subr.mxu1 %v5883_v56 }
0x151b   : > { %5890 = vmatpush1.msra.mxu1 %v5889_v48 }
0x151c   : > { %5955 = vmatmul.mubr.f32.vlgmr.msra.gmra.mrb[28].mxu1 %v5868_v54  ;;  %5963 = vmatprep.subr.mxu1 %v5880_v38 }
0x151d   : > { %5966 = vmatpush1.msra.mxu1 %v5886_v15  ;;  %6029 = vmatprep.mubr.f32.mxu1 %v9450_v6 }
0x151e   : > { %6039 = vmatprep.subr.mxu1 %v5801_v22 }
0x1524   : > { %6032 = vmatmul.mubr.f32.vlgmr.msra.gmra.mrb[28].mxu1 %v5869_v36 }
0x1525   : > { %6041 = vmatpush1.msra.mxu1 %v5803_v63  ;;  %6104 = vmatprep.mubr.f32.mxu1 %v9450_v6 }
0x1526   : > { %6117 = vmatprep.subr.mxu1 %v5881_v57 }
0x152c   : > { %6108 = vmatmul.mubr.f32.vlgmr.msra.gmra.mrb[28].mxu1 %v5870_v11 }
0x152d   : > { %6121 = vmatpush1.msra.mxu1 %v5887_v0  ;;  %6184 = vmatprep.mubr.f32.mxu1 %v9450_v6 }
0x152e   : > { %6193 = vmatprep.subr.mxu1 %v5801_v22  ;;  %v6268_v22 = vld [vmem:[%s9427_s1 + $0x18] sm:$0xf] }
0x152f   : > { %v6356_v53 = vsel %vm349_vm2, %v6268_v22, 0 }
0x1530   : > { %v6431_v0 = vand.u32 4294901760, %v6356_v53 }
0x1532   : > { %v6432_v38 = vsub.f32 %v6356_v53, %v6431_v0 }
0x1534   : > { %6186 = vmatmul.mubr.f32.vlgmr.msra.gmra.mrb[28].mxu1 %v5868_v54  ;;  %v6433_v56 = vand.u32 4294901760, %v6432_v38 }
0x1535   : > { %6195 = vmatpush1.msra.mxu1 %v5803_v63  ;;  %6258 = vmatprep.mubr.f32.mxu1 %v9450_v6 }
0x153c   : > { %6260 = vmatmul.mubr.f32.vlgmr.msra.gmra.mrb[28].mxu1 %v5868_v54 }
0x153d   : > { %6430 = vmatprep.mubr.f32.mxu1 %v9450_v6 }
0x160f   : > { %v6261_v4 = vpop.f32.mrb[28].mxu1 }
0x1610   : > { %v7304_v44 = vadd.f32 %v6261_v4, %v5790_v37  ;;  %v6263_v50 = vpop.f32.mrb[29].mxu1 }
0x1611   : > { %v7305_v52 = vadd.f32 %v6263_v50, %v5791_v45 }
0x1612   : > { %v9341_v5 = vmax.f32 %v7304_v44, 0.0  ;;  %v6434_v44 = vsub.f32 %v6432_v38, %v6433_v56 }
0x1613   : > { %v9343_v17 = vmax.f32 %v7305_v52, 0.0 }
0x1614   : > { %v6269_v27 = vsel %vm249_vm0, %v9341_v5, 0.0  ;;  %v6279_v62 = vmul.f32 %v9341_v5, %v9341_v5 }
0x1615   : > { %6270 = vadd.xlane.f32.xlu0 %v6269_v27  ;;  %v6309_v34 = vmul.f32 %v9343_v17, %v9343_v17  ;;  %v6299_v7 = vsel %vm249_vm0, %v9343_v17, 0.0 }
0x1616   : > { %v6280_v35 = vsel %vm249_vm0, %v6279_v62, 0.0  ;;  %v6435_v62 = vand.u32 4294901760, %v6434_v44 }
0x1617   : > { %6281 = vadd.xlane.f32.xlu1 %v6280_v35  ;;  %v6310_v25 = vsel %vm249_vm0, %v6309_v34, 0.0 }
0x1619   : > { %6300 = vadd.xlane.f32.xlu0 %v6299_v7 }
0x161b   : > { %6311 = vadd.xlane.f32.xlu1 %v6310_v25 }
0x16a2   : > { %v6271_v3 = vpop.xlane.xlu0 %6270 }
0x16a3   : > { %v6272_v59 = vrot.slane %v6271_v3, 4 }
0x16a4   : > { %v6282_v8 = vpop.xlane.xlu1 %6281 }
0x16a5   : > { %v6273_v20 = vadd.f32 %v6272_v59, %v6271_v3  ;;  %v6283_v41 = vrot.slane %v6282_v8, 4  ;;  %v6354_v59 = vld [vmem:[#allocation2 + $0x188] sm:$0xf] }
0x16a6   : > { %v6301_v12 = vpop.xlane.xlu0 %6300 }
0x16a7   : > { %v6274_v42 = vrot.slane %v6273_v20, 2  ;;  %v6284_v29 = vadd.f32 %v6283_v41, %v6282_v8  ;;  %v6302_v9 = vrot.slane %v6301_v12, 4 }
0x16a8   : > { %v6312_v61 = vpop.xlane.xlu1 %6311 }
0x16a9   : > { %v6285_v58 = vrot.slane %v6284_v29, 2  ;;  %v6275_v23 = vadd.f32 %v6274_v42, %v6273_v20  ;;  %v6313_v21 = vrot.slane %v6312_v61, 4  ;;  %v6303_v19 = vadd.f32 %v6302_v9, %v6301_v12 }
0x16ab   : > { %v6276_v43 = vrot.slane %v6275_v23, 1  ;;  %v6286_v46 = vadd.f32 %v6285_v58, %v6284_v29  ;;  %v6314_v24 = vadd.f32 %v6313_v21, %v6312_v61  ;;  %v6304_v49 = vrot.slane %v6303_v19, 2 }
0x16ad   : > { %v6277_v28 = vadd.f32 %v6276_v43, %v6275_v23  ;;  %v6287_v30 = vrot.slane %v6286_v46, 1  ;;  %v6315_v26 = vrot.slane %v6314_v24, 2  ;;  %v6305_v39 = vadd.f32 %v6304_v49, %v6303_v19 }
0x16af   : > { %7626 = vpush %v6277_v28  ;;  %v6288_v2 = vadd.f32 %v6287_v30, %v6286_v46  ;;  %v6316_v54 = vadd.f32 %v6315_v26, %v6314_v24  ;;  %v6306_v36 = vrot.slane %v6305_v39, 1 }
0x16b1   : > { %7628 = vpush %v6288_v2  ;;  %v6317_v1 = vrot.slane %v6316_v54, 1  ;;  %v6307_v10 = vadd.f32 %v6306_v36, %v6305_v39 }
0x16b3   : > { %v6318_v11 = vadd.f32 %v6317_v1, %v6316_v54 }
0x16e0   : > { %s7627_s23 = spop %7626 }
0x16e1   : > { %s9355_s25 = smul.f32 0.015625, %s7627_s23 }
0x16e2   : > { %s7629_s26 = spop %7628 }
0x16e3   : > { %s6292_s6 = smul.f32 %s9355_s25, %s9355_s25  ;;  %v6329_v18 = vstv %s9355_s25 }
0x16e4   : > { %s6291_s9 = smul.f32 0.015625, %s7629_s26  ;;  %v6341_v40 = vsub.f32 %v9341_v5, %v6329_v18 }
0x16e6   : > { %s6293_s8 = ssub.f32 %s6291_s9, %s6292_s6 }
0x16e8   : > { %s6294_s10 = smax.f32 %s7904_s16, %s6293_s8 }
0x16e9   : > { %s6295_s11 = sadd.f32 1e-05, %s6294_s10  ;;  %s6961_s10 = sshll.u32 %s7961_s22, 7 }
0x16ea   : > { %s7909_s22 = smov [#allocation5]  }
0x16eb   : > { %v6296_v33 = vstv %s6295_s11 }
0x16ec   : > { %7800 = vrsqrt.f32 %v6296_v33 }
0x16f6   : > { %v7801_v16 = vpop.eup %7800 }
0x16f7   : > { %7630 = vpush %v7801_v16 }
0x16f8   : > { %7632 = vpush %v6307_v10 }
0x16f9   : > { %7634 = vpush %v6318_v11 }
0x1728   : > { %s7631_s30 = spop %7630 }
0x1729   : > { %v6331_v63 = vstv %s7631_s30  ;;  %s7633_s12 = spop %7632 }
0x172a   : > { %v6333_v60 = vmul.f32 %v8050_v47, %v6331_v63  ;;  %s6320_s13 = smul.f32 0.015625, %s7633_s12  ;;  %s7635_s14 = spop %7634 }
0x172b   : > { %s6321_s7 = smul.f32 0.015625, %s7635_s14  ;;  %s9384_s14 = scalar_lea.hbm %s9431_s5, %s6961_s10 }
0x172c   : > { %v6346_v55 = vrot.slane %v6333_v60, %v8056_v51  ;;  %s6322_s15 = smul.f32 %s6320_s13, %s6320_s13  ;;  %v6330_v14 = vstv %s6320_s13 }
0x172d   : > { %v6342_v45 = vsub.f32 %v9343_v17, %v6330_v14 }
0x172e   : > { %v6351_v13 = vmul.f32 %v6346_v55, %v6341_v40  ;;  %s6323_s17 = ssub.f32 %s6321_s7, %s6322_s15 }
0x1730   : > { %s6324_s23 = smax.f32 %s7904_s16, %s6323_s17  ;;  %v6359_v57 = vsel %vm249_vm0, %v6351_v13, 0  ;;  %s231_s16 = sand.u32 1, %s7890_s19  }
0x1731   : > { %s6325_s26 = sadd.f32 1e-05, %s6324_s23  ;;  %v6366_v37 = vand.u32 4294901760, %v6359_v57  ;;  %s6926_s8 = sshll.u32 %s231_s16, 3 }
0x1732   : > { %s233_s11 = scalar_lea.vmem [#allocation5], %s6926_s8  ;;  %s6835_s7 = scalar_lea.sflag [#allocation4], %s231_s16 }
0x1733   : > { %v6326_v15 = vstv %s6325_s26  ;;  %v6449_v52 = vsub.f32 %v6359_v57, %v6366_v37  ;;  %s6849_s30 = sshll.u32 %s233_s11, 4  ;;  %s7836_s17 = sshll.u32 %s7909_s22, 4  ;;  %s9386_s30 = int_to_ptr.vmem [resolvable:$true] %s6849_s30  ;;  %s7837_s17 = int_to_ptr.vmem [resolvable:$false] %s7836_s17 }
0x1734   : > { %7802 = vrsqrt.f32 %v6326_v15  ;;  %s7832_s15 = scalar_lea.vmem %s9386_s30, 128  ;;  %s7838_s23 = scalar_lea.vmem %s7837_s17, 256 }
0x1735   : > { %v6450_v35 = vand.u32 4294901760, %v6449_v52  ;;  %p7833_p6 = scmp.ne.s32.totalorder %s9386_s30, %s7832_s15  ;;  %p7839_p2 = scmp.lt.s32.totalorder %s9386_s30, %s7837_s17 }
0x1736   : > { %p7840_p3 = scmp.lt.s32.totalorder %s7838_s23, %s7832_s15 }
0x1737   : > { %v6451_v25 = vsub.f32 %v6449_v52, %v6450_v35  ;;  %p7834_p10 = pnand %p7833_p6, %p9453_p9 }
0x1738   : > { %p7841_p4 = por %p7840_p3, %p7839_p2 }
0x1739   : > { %v6452_v3 = vand.u32 4294901760, %v6451_v25  ;;  %p7835_p12 = pneg %p7834_p10 }
0x173b   : > { %p7842_p7 = pnand %p7841_p4, %p7835_p12 }
0x173e   : > { %v7803_v32 = vpop.eup %7802 }
0x173f   : > { %7636 = vpush %v7803_v32 }
0x1770   : > { %s7637_s9 = spop %7636 }
0x1771   : > { %v6332_v31 = vstv %s7637_s9 }
0x1772   : > { %v6334_v48 = vmul.f32 %v8050_v47, %v6332_v31 }
0x1774   : > { %v6350_v4 = vrot.slane %v6334_v48, %v8056_v51  ;;  %v6353_v51 = vld [vmem:[#allocation2 + $0x180] sm:$0xf] }
0x1776   : > { %v6352_v50 = vmul.f32 %v6350_v4, %v6342_v45 }
0x1778   : > { %v6362_v5 = vsel %vm249_vm0, %v6352_v50, 0 }
0x1779   : > { %v6364_v27 = vand.u32 4294901760, %v6362_v5 }
0x177b   : > { %6365 = vmatprep.subr.mxu1 %v6364_v27  ;;  %v6443_v34 = vsub.f32 %v6362_v5, %v6364_v27 }
0x177c   : > { %6367 = vmatpush1.msra.mxu1 %v6366_v37 }
0x177d   : > { %6436 = vmatmul.mubr.f32.vlgmr.msra.gmra.mrb[30].mxu1 %v6435_v62  ;;  %v6444_v7 = vand.u32 4294901760, %v6443_v34 }
0x177e   : > { %6516 = vmatprep.mubr.f32.mxu1 %v9450_v6 }
0x177f   : > { %v6445_v47 = vsub.f32 %v6443_v34, %v6444_v7 }
0x1781   : > { %v6446_v17 = vand.u32 4294901760, %v6445_v47 }
0x1783   : > { %6447 = vmatprep.subr.mxu1 %v6446_v17 }
0x1784   : > { %6453 = vmatpush1.msra.mxu1 %v6452_v3 }
0x1785   : > { %6518 = vmatmul.mubr.f32.vlgmr.msra.gmra.mrb[30].mxu1 %v6431_v0  ;;  %6526 = vmatprep.subr.mxu1 %v6443_v34 }
0x1786   : > { %6529 = vmatpush1.msra.mxu1 %v6449_v52  ;;  %6592 = vmatprep.mubr.f32.mxu1 %v9450_v6 }
0x1787   : > { %6602 = vmatprep.subr.mxu1 %v6364_v27 }
0x178d   : > { %6595 = vmatmul.mubr.f32.vlgmr.msra.gmra.mrb[30].mxu1 %v6432_v38 }
0x178e   : > { %6604 = vmatpush1.msra.mxu1 %v6366_v37  ;;  %6667 = vmatprep.mubr.f32.mxu1 %v9450_v6 }
0x178f   : > { %6680 = vmatprep.subr.mxu1 %v6444_v7 }
0x1795   : > { %6671 = vmatmul.mubr.f32.vlgmr.msra.gmra.mrb[30].mxu1 %v6433_v56 }
0x1796   : > { %6684 = vmatpush1.msra.mxu1 %v6450_v35  ;;  %6747 = vmatprep.mubr.f32.mxu1 %v9450_v6 }
0x1797   : > { %6756 = vmatprep.subr.mxu1 %v6364_v27 }
0x179d   : > { %6749 = vmatmul.mubr.f32.vlgmr.msra.gmra.mrb[30].mxu1 %v6431_v0 }
0x179e   : > { %6758 = vmatpush1.msra.mxu1 %v6366_v37  ;;  %6821 = vmatprep.mubr.f32.mxu1 %v9450_v6 }
0x17a5   : > { %6823 = vmatmul.mubr.f32.vlgmr.msra.gmra.mrb[30].mxu1 %v6431_v0 }
0x1878   : > { %v6824_v8 = vpop.f32.mrb[30].mxu1 }
0x1879   : > { %v7306_v20 = vadd.f32 %v6824_v8, %v6353_v51  ;;  %v6826_v41 = vpop.f32.mrb[31].mxu1 }
0x187a   : > { %v7307_v42 = vadd.f32 %v6826_v41, %v6354_v59 }
0x187c   : > { %v6831_v29 = vcombine.low %v7306_v20, %v7307_v42 }
0x187e   : > { %6833 = vst [vmem:[%s233_s11] sm:$0xff] %v6831_v29 }
0x187f   : > { %7845 = shalt.err (!%p7842_p7)
}
0x1880   : > { %s7846_s26 = scalar_lea.hbm %s9384_s14, 128  ;;  %s7850_s9 = scalar_lea.hbm %s9431_s5, 256 }
0x1881   : > { %p7847_p8 = scmp.ne.s32.totalorder %s9384_s14, %s7846_s26  ;;  %p7851_p1 = scmp.lt.u32.totalorder %s9384_s14, %s9431_s5 }
0x1882   : > { %p7852_p0 = scmp.lt.u32.totalorder %s7850_s9, %s7846_s26  ;;  %p7854_p6 = scmp.lt.u32.totalorder %s7846_s26, %s9384_s14 }
0x1883   : > { %p7848_p11 = pnand %p7847_p8, %p9453_p9 }
0x1884   : > { %p7853_p5 = por %p7852_p0, %p7851_p1 }
0x1885   : > { %p7849_p13 = pneg %p7848_p11 }
0x1886   : > { %p7855_p10 = por %p7854_p6, %p7853_p5 }
0x1888   : > { %p7856_p12 = pnand %p7855_p10, %p7849_p13 }
0x188a   : > { %7859 = shalt.err (!%p7856_p12)
}
0x188b   : > { %7642 = dma.vmem_to_hbm [thread:$0]  (%p9453_p9), %s9386_s30, 128, %s9384_s14, %s6835_s7  }
0x188c PF: > { %p7654_p2 = scmp.ge.s32.totalorder %s7898_s21, 2  ;;  %s6861_s10 = sand.u32 1, %s7886_s18  }
0x188d   : > { %p9454_p3 = scmp.ne.s32.totalorder %s9441_s29, 0  ;;  %s6862_s11 = scalar_lea.sflag [#allocation4], %s6861_s10 }
0x188f   : > { %p7649_p4 = pnand %p7654_p2, %p9454_p3 }
0x1891   : > { %7881 = dma.done.wait (!%p7649_p4), %s6862_s11, 128  }
0x1892   : > { %7883 = vsyncadd (!%p7649_p4), %s6862_s11, 4294967168  ;;  %p16_p7 = scmp.ge.s32.totalorder %s7965_s24, 4   ;;  %s9455_s18 = smov %s7890_s19 }
0x1893   : > { %s9456_s19 = smov %s7894_s20  ;;  %s9457_s20 = smov %s7976_s27 }
0x1894   : > { %s9458_s21 = smov %s7965_s24  ;;  %18 = sbr.rel (!%p16_p7) target bundleno = 4 (0x4), region = 84 }
0x189b   :  { %6867 = vsyncpa [#allocation3], 1 }
0x189c   :  { %6869 = vsyncpa [#allocation3 + $0x1], 1 }
0x189d   :  { %6870 = vsyncpa [#allocation4], 1 }
0x189e   :  { %6872 = vsyncpa [#allocation4 + $0x1], 1 }

// kernel: tpu_custom_call.1
= control target key start
LH: loop header
LB: loop body
LE: loop exit
PB: predicated region body
PF: predicated region fallthrough
CT: control target
= control target key end

     0   :  { %10 = vsyncpa [#allocation3], 0  ;;  %s3458_s0 = inlined_call_operand.vmem [shape: f32[4,512], index: 0, kind: input, shape index: {}]   ;;  %s3459_s1 = inlined_call_operand.vmem [shape: f32[32,4], index: 1, kind: input, shape index: {}]   ;;  %s3460_s2 = inlined_call_operand.vmem [shape: f32[3,32,48], index: 2, kind: input, shape index: {}]   ;;  %s3461_s3 = inlined_call_operand.vmem [shape: f32[3,20,16], index: 3, kind: input, shape index: {}]   ;;  %s3462_s4 = inlined_call_operand.hbm [shape: f32[200,256], index: 4, kind: input, shape index: {}]   ;;  %s3463_s5 = inlined_call_operand.hbm [shape: f32[4,512], index: 5, kind: output, shape index: {}]  }
   0x1   :  { %11 = vsyncpa [#allocation4], 0 }
   0x2   :  { %13 = vsyncpa [#allocation4 + $0x1], 0  ;;  %s2839_s18 = smov 0   ;;  %s2841_s19 = smov 0  }
   0x3   :  { %s2843_s20 = smov 0   ;;  %s2845_s21 = smov 0  }
   0x4 LB: > { %s2860_s22 = sadd.s32 4294967295, %s2797_s21   ;;  %s2238_s23 = sadd.s32 4294967294, %s2797_s21   ;;  %s2797_s21 = sphi %s2845_s21, %s3479_s21   ;;  %s2793_s20 = sphi %s2843_s20, %s3478_s20   ;;  %s2789_s19 = sphi %s2841_s19, %s3477_s19   ;;  %s2785_s18 = sphi %s2839_s18, %s3476_s18  }
   0x5   : > { %s2864_s24 = sadd.s32 1, %s2797_s21   ;;  %s136_s25 = sadd.s32 1, %s2793_s20 }
   0x6   : > { %s133_s26 = ssub.s32 %s2797_s21, %s2864_s24  ;;  %p146_p0 = scmp.ne.s32.totalorder %s2793_s20, %s2789_s19 }
   0x7   : > { %p134_p1 = scmp.eq.s32.totalorder %s133_s26, 0  ;;  %p147_p2 = scmp.eq.s32.totalorder %s2860_s22, 1 }
   0x8   : > { %p152_p3 = scmp.ne.s32.totalorder %s2789_s19, %s2785_s18  ;;  %p153_p4 = scmp.eq.s32.totalorder %s2238_s23, 1 }
   0x9   : > { %s2875_s27 = scalar_select %p134_p1, %s2793_s20, %s136_s25  }
   0xa   : > { %p2877_p5 = por %p147_p2, %p146_p0  ;;  %p2881_p6 = por %p153_p4, %p152_p3 }
   0xb   : > { %p2239_p7 = scmp.ge.s32.totalorder %s2797_s21, 1  ;;  %p160_p8 = scmp.lt.s32.totalorder %s2797_s21, 3 }
   0xc   : > { %s3467_s28 = scalar_select %p2877_p5, 1, 0 }
   0xd   : > { %s3468_s29 = scalar_select %p2881_p6, 1, 0 }
   0xe   : > { %p3464_p9 = scmp.eq.s32.totalorder %s2860_s22, 0  ;;  %p2888_p10 = pnand %p2239_p7, %p160_p8 }
   0xf   : > { %s2799_s6 = smov [#allocation2]   ;;  %s2703_s11 = scalar_lea.hbm %s3462_s4, 6400 }
  0x10   : > { %s3469_s30 = scalar_select %p2888_p10, 1, 0 }
  0x11   : > { %s181_s7 = sshll.u32 %s2799_s6, 4  ;;  %p2483_p11 = pneg %p2888_p10  ;;  %s182_s7 = int_to_ptr.vmem [resolvable:$true] %s181_s7 }
  0x12   : > { %p2704_p13 = scmp.ne.s32.totalorder %s3462_s4, %s2703_s11  ;;  %p2710_p3 = scmp.lt.u32.totalorder %s2703_s11, %s3462_s4 }
  0x13   : > { %p2896_p12 = pnand %p3464_p9, %p2483_p11 }
  0x15   : > { %p2705_p0 = pneg %p2896_p12 }
  0x17   : > { %p2706_p1 = pnand %p2705_p0, %p2704_p13 }
  0x19   : > { %p2707_p2 = pneg %p2706_p1 }
  0x1b   : > { %p2712_p4 = pnand %p2710_p3, %p2707_p2 }
  0x1d   : > { %2715 = shalt.err (!%p2712_p4)
}
  0x1e   : > { %s2716_s16 = scalar_lea.vmem %s182_s7, 6400  ;;  %p2724_p9 = scmp.lt.s32.totalorder %s182_s7, %s182_s7 }
  0x1f   : > { %p2717_p7 = scmp.ne.s32.totalorder %s182_s7, %s2716_s16  ;;  %p2725_p6 = scmp.lt.s32.totalorder %s2716_s16, %s2716_s16 }
  0x21   : > { %p2719_p8 = pnand %p2717_p7, %p2705_p0  ;;  %p2726_p5 = por %p2725_p6, %p2724_p9 }
  0x23   : > { %p2720_p11 = pneg %p2719_p8 }
  0x25   : > { %p2727_p10 = pnand %p2726_p5, %p2720_p11 }
  0x27   : > { %2730 = shalt.err (!%p2727_p10)
}
  0x28   : > { %s2800_s17 = smov 256   ;;  %s2801_s23 = smov 16  }
  0x29   : > { %2486 = dma.hbm_to_vmem [thread:$0]  (!%p2896_p12), %s3462_s4, 6400, %s182_s7, [#allocation3], %s2800_s17, %s2800_s17, %s2801_s23  }
  0x2a   : > { %p3471_p13 = scmp.ne.s32.totalorder %s3469_s30, 0 }
  0x2b   : > { %p3472_p1 = scmp.eq.s32.totalorder (!%p3471_p13), %s2860_s22, 0 }
  0x2c   : > { %206 = sbr.rel (%p3471_p13) target bundleno = 5769 (0x1689), region = 40 }
  0x33   : > { %2776 = dma.done.wait (%p3472_p1), [#allocation3], 6400   ;;  %p3473_p0 = pmov %p3472_p1 }
  0x34   : > { %s2245_s6 = sshll.u32 %s2860_s22, 1  ;;  %vm249_vm0 = vcmask 1043456   ;;  %v2802_v8 = vmov 0.0   ;;  %s2803_s16 = smov 0.0   ;;  %v241_v44 = vlaneseq  ;;  %v247_v59 = vld [vmem:[%s3459_s1] sm:$0xff]  ;;  %vm349_vm2 = vcmask 31744  }
  0x35   : > { %2778 = vsyncadd (%p3473_p0), [#allocation3], 4294960896  ;;  %p235_p5 = scmp.lt.s32.totalorder %s2245_s6, 3  ;;  %424 = vmatprep.mubr.f32.mxu1 %v2802_v8  ;;  %880 = vmatprep.mubr.f32.mxu0 %v2802_v8  ;;  %v248_v60 = vld [vmem:[%s3459_s1 + $0x8] sm:$0xff]  ;;  %v343_v61 = vld [vmem:[#allocation2] sm:$0xff]  ;;  %vm565_vm5 = vcmask 392192  }
  0x36   : > { %v2945_v45 = vand.u32 127, %v241_v44  ;;  %v331_v46 = vshrl.u32 %v241_v44, 7  ;;  %vm806_vm6 = vcmask 130048   ;;  %p3474_p9 = scmp.ne.s32.totalorder %s3467_s28, 0 }
  0x37   : > { %s3481_s6 = smov (!%p235_p5, %s2245_s6), 3 }
  0x38   : > { %s2246_s9 = sshll.u32 %s3481_s6, 2  ;;  %vm243_vm1 = vcmp.lt.s32.totalorder %v2945_v45, 16  ;;  %v2952_v50 = vsub.s32 0, %v331_v46  ;;  %vm535_vm3 = vcmp.lt.s32.totalorder %v2945_v45, 2  ;;  %vm548_vm4 = vcmp.lt.s32.totalorder %v2945_v45, 1 }
  0x39   : > { %s238_s11 = scalar_lea.vmem %s3458_s0, %s2246_s9  ;;  %v2949_v47 = vsel %vm243_vm1, 1.0, %v2802_v8  ;;  %vm997_vm7 = vcmp.lt.s32.totalorder %v2945_v45, 4  ;;  %vm1456_vm8 = vcmp.lt.s32.totalorder %v2945_v45, 8  ;;  %v2283_v45 = vld [vmem:[%s3460_s2 + $0x50] sm:$0xff] }
  0x3a   : > { %v2926_v0 = vld [vmem:[%s238_s11] sm:$0xff] }
  0x3b   : > { %v250_v1 = vsel %vm249_vm0, %v2926_v0, 0.0  ;;  %v260_v2 = vmul.f32 %v2926_v0, %v2926_v0  ;;  %v281_v3 = vrot.slane %v2926_v0, 4 }
  0x3c   : > { %251 = vadd.xlane.f32.xlu0 %v250_v1 }
  0x3d   : > { %v261_v4 = vsel %vm249_vm0, %v260_v2, 0.0  ;;  %v283_v5 = vsel %vm249_vm0, %v281_v3, 0.0  ;;  %v293_v6 = vmul.f32 %v281_v3, %v281_v3  ;;  %v346_v2 = vld [vmem:[#allocation2 + $0x18] sm:$0xff]  ;;  %v344_v3 = vld [vmem:[#allocation2 + $0x8] sm:$0xff] }
  0x3e   : > { %284 = vadd.xlane.f32.xlu1 %v283_v5 }
  0x3f   : > { %v294_v7 = vsel %vm249_vm0, %v293_v6, 0.0 }
  0x40   : > { %262 = vadd.xlane.f32.xlu0 %v261_v4 }
  0x42   : > { %295 = vadd.xlane.f32.xlu1 %v294_v7 }
  0xc9   : > { %v252_v9 = vpop.xlane.xlu0 %251 }
  0xca   : > { %v253_v10 = vrot.slane %v252_v9, 4 }
  0xcb   : > { %v285_v23 = vpop.xlane.xlu1 %284 }
  0xcc   : > { %v254_v11 = vadd.f32 %v253_v10, %v252_v9  ;;  %v286_v25 = vrot.slane %v285_v23, 4 }
  0xcd   : > { %v263_v12 = vpop.xlane.xlu0 %262 }
  0xce   : > { %v255_v13 = vrot.slane %v254_v11, 2  ;;  %v264_v14 = vrot.slane %v263_v12, 4  ;;  %v287_v27 = vadd.f32 %v286_v25, %v285_v23 }
  0xcf   : > { %v296_v24 = vpop.xlane.xlu1 %295 }
  0xd0   : > { %v265_v15 = vadd.f32 %v264_v14, %v263_v12  ;;  %v256_v16 = vadd.f32 %v255_v13, %v254_v11  ;;  %v297_v26 = vrot.slane %v296_v24, 4  ;;  %v288_v29 = vrot.slane %v287_v27, 2 }
  0xd2   : > { %v266_v17 = vrot.slane %v265_v15, 2  ;;  %v257_v18 = vrot.slane %v256_v16, 1  ;;  %v298_v28 = vadd.f32 %v297_v26, %v296_v24  ;;  %v289_v32 = vadd.f32 %v288_v29, %v287_v27 }
  0xd4   : > { %v258_v19 = vadd.f32 %v257_v18, %v256_v16  ;;  %v267_v20 = vadd.f32 %v266_v17, %v265_v15  ;;  %v299_v31 = vrot.slane %v298_v28, 2  ;;  %v290_v34 = vrot.slane %v289_v32, 1 }
  0xd6   : > { %2369 = vpush %v258_v19  ;;  %v268_v21 = vrot.slane %v267_v20, 1  ;;  %v300_v33 = vadd.f32 %v299_v31, %v298_v28  ;;  %v291_v37 = vadd.f32 %v290_v34, %v289_v32 }
  0xd8   : > { %v269_v22 = vadd.f32 %v268_v21, %v267_v20  ;;  %v301_v35 = vrot.slane %v300_v33, 1 }
  0xda   : > { %2371 = vpush %v269_v22  ;;  %v302_v38 = vadd.f32 %v301_v35, %v300_v33 }
 0x107   : > { %s2370_s30 = spop %2369 }
 0x108   : > { %s2938_s7 = smul.f32 0.015625, %s2370_s30 }
 0x10a   : > { %s273_s12 = smul.f32 %s2938_s7, %s2938_s7  ;;  %v313_v39 = vstv %s2938_s7 }
 0x10b   : > { %s2372_s13 = spop %2371 }
 0x10c   : > { %s272_s14 = smul.f32 0.015625, %s2372_s13 }
 0x10e   : > { %s274_s15 = ssub.f32 %s272_s14, %s273_s12 }
 0x110   : > { %s275_s17 = smax.f32 %s2803_s16, %s274_s15 }
 0x111   : > { %s276_s23 = sadd.f32 1e-05, %s275_s17 }
 0x113   : > { %v277_v30 = vstv %s276_s23 }
 0x114   : > { %2595 = vrsqrt.f32 %v277_v30 }
 0x11e   : > { %v2596_v36 = vpop.eup %2595 }
 0x11f   : > { %2373 = vpush %v2596_v36 }
 0x120   : > { %2375 = vpush %v291_v37 }
 0x121   : > { %2377 = vpush %v302_v38 }
 0x150   : > { %s2374_s25 = spop %2373 }
 0x151   : > { %s2376_s26 = spop %2375  ;;  %v315_v48 = vstv %s2374_s25 }
 0x152   : > { %s304_s6 = smul.f32 0.015625, %s2376_s26  ;;  %s2378_s9 = spop %2377  ;;  %v317_v49 = vmul.f32 %v2949_v47, %v315_v48 }
 0x153   : > { %s305_s8 = smul.f32 0.015625, %s2378_s9 }
 0x154   : > { %s306_s10 = smul.f32 %s304_s6, %s304_s6  ;;  %v314_v40 = vstv %s304_s6  ;;  %v333_v53 = vrot.slane %v317_v49, %v2952_v50 }
 0x155   : > { %v327_v41 = vcombine.low %v313_v39, %v314_v40 }
 0x156   : > { %s307_s11 = ssub.f32 %s305_s8, %s306_s10 }
 0x157   : > { %v329_v55 = vsub.f32 %v2926_v0, %v327_v41  ;;  %v345_v0 = vld [vmem:[#allocation2 + $0x10] sm:$0xff] }
 0x158   : > { %s308_s30 = smax.f32 %s2803_s16, %s307_s11 }
 0x159   : > { %s309_s12 = sadd.f32 1e-05, %s308_s30 }
 0x15b   : > { %v310_v42 = vstv %s309_s12 }
 0x15c   : > { %2597 = vrsqrt.f32 %v310_v42 }
 0x166   : > { %v2598_v43 = vpop.eup %2597 }
 0x167   : > { %2379 = vpush %v2598_v43 }
 0x198   : > { %s2380_s7 = spop %2379 }
 0x199   : > { %v316_v51 = vstv %s2380_s7 }
 0x19a   : > { %v318_v52 = vmul.f32 %v2949_v47, %v316_v51 }
 0x19c   : > { %v337_v54 = vrot.slane %v318_v52, %v2952_v50 }
 0x19e   : > { %v340_v56 = vcombine.low %v333_v53, %v337_v54 }
 0x1a0   : > { %v342_v57 = vmul.f32 %v340_v56, %v329_v55 }
 0x1a2   : > { %v348_v58 = vcombine.high %v342_v57, %v342_v57 }
 0x1a4   : > { %2248 = vmatprep.subr.msk.mxu1 %vm249_vm0, %v348_v58 }
 0x1a5   : > { %2249 = vmatpush1.msk.msra.mxu1 %vm249_vm0, %v342_v57 }
 0x1a6   : > { %2250 = vmatmul.mubr.msk.f32.vlgmr.msra.gmra.mrb[0].mxu1 %vm349_vm2, %v247_v59 }
 0x1a7   : > { %430 = vmatprep.mubr.f32.mxu1 %v2802_v8 }
 0x1aa   : > { %2251 = vmatmul.mubr.msk.f32.gmra.mrb[2].mxu1 %vm349_vm2, %v248_v60 }
 0x1ab   : > { %642 = vmatprep.mubr.f32.mxu1 %v2802_v8 }
 0x279   : > { %v426_v62 = vpop.f32.mrb[0].mxu1 }
 0x27a   : > { %v428_v63 = vpop.f32.mrb[1].mxu1  ;;  %v2970_v1 = vadd.f32 %v426_v62, %v343_v61 }
 0x27b   : > { %v2976_v9 = vadd.f32 %v428_v63, %v344_v3 }
 0x27c   : > { %v447_v11 = vmul.f32 %v2970_v1, %v2970_v1 }
 0x27d   : > { %v432_v4 = vpop.f32.mrb[2].mxu1  ;;  %v478_v16 = vmul.f32 %v2976_v9, %v2976_v9 }
 0x27e   : > { %v2972_v5 = vadd.f32 %v432_v4, %v345_v0  ;;  %v434_v6 = vpop.f32.mrb[3].mxu1 }
 0x27f   : > { %v2974_v7 = vadd.f32 %v434_v6, %v346_v2 }
 0x280   : > { %v437_v10 = vadd.f32 %v2972_v5, %v2970_v1  ;;  %v448_v12 = vmul.f32 %v2972_v5, %v2972_v5 }
 0x281   : > { %v479_v14 = vmul.f32 %v2974_v7, %v2974_v7  ;;  %v468_v15 = vadd.f32 %v2974_v7, %v2976_v9 }
 0x282   : > { %438 = vadd.xlane.f32.xlu0 %v437_v10  ;;  %v449_v13 = vadd.f32 %v448_v12, %v447_v11 }
 0x283   : > { %v480_v17 = vadd.f32 %v479_v14, %v478_v16 }
 0x284   : > { %450 = vadd.xlane.f32.xlu1 %v449_v13 }
 0x286   : > { %469 = vadd.xlane.f32.xlu0 %v468_v15 }
 0x288   : > { %481 = vadd.xlane.f32.xlu1 %v480_v17 }
 0x30f   : > { %v439_v18 = vpop.xlane.xlu0 %438 }
 0x310   : > { %v440_v19 = vrot.slane %v439_v18, 4 }
 0x311   : > { %v451_v20 = vpop.xlane.xlu1 %450 }
 0x312   : > { %v441_v21 = vadd.f32 %v440_v19, %v439_v18  ;;  %v452_v22 = vrot.slane %v451_v20, 4 }
 0x313   : > { %v470_v32 = vpop.xlane.xlu0 %469 }
 0x314   : > { %v442_v23 = vrot.slane %v441_v21, 2  ;;  %v453_v24 = vadd.f32 %v452_v22, %v451_v20  ;;  %v471_v34 = vrot.slane %v470_v32, 4 }
 0x315   : > { %v482_v33 = vpop.xlane.xlu1 %481 }
 0x316   : > { %v454_v25 = vrot.slane %v453_v24, 2  ;;  %v443_v26 = vadd.f32 %v442_v23, %v441_v21  ;;  %v483_v35 = vrot.slane %v482_v33, 4  ;;  %v472_v36 = vadd.f32 %v471_v34, %v470_v32  ;;  %v553_v34 = vld [vmem:[%s3460_s2] sm:$0xff] }
 0x318   : > { %v444_v27 = vrot.slane %v443_v26, 1  ;;  %v455_v28 = vadd.f32 %v454_v25, %v453_v24  ;;  %v484_v37 = vadd.f32 %v483_v35, %v482_v33  ;;  %v473_v38 = vrot.slane %v472_v36, 2  ;;  %v554_v35 = vld [vmem:[%s3460_s2 + $0x8] sm:$0xff] }
 0x31a   : > { %v445_v29 = vadd.f32 %v444_v27, %v443_v26  ;;  %v456_v30 = vrot.slane %v455_v28, 1  ;;  %v485_v39 = vrot.slane %v484_v37, 2  ;;  %v474_v41 = vadd.f32 %v473_v38, %v472_v36  ;;  %v555_v36 = vld [vmem:[%s3460_s2 + $0x10] sm:$0xff]  ;;  %v557_v38 = vld [vmem:[#allocation2 + $0x20] sm:$0xff] }
 0x31c   : > { %2381 = vpush %v445_v29  ;;  %v457_v31 = vadd.f32 %v456_v30, %v455_v28  ;;  %v486_v42 = vadd.f32 %v485_v39, %v484_v37  ;;  %v475_v43 = vrot.slane %v474_v41, 1  ;;  %v556_v37 = vld [vmem:[%s3460_s2 + $0x18] sm:$0xff]  ;;  %v558_v39 = vld [vmem:[#allocation2 + $0x28] sm:$0xff] }
 0x31e   : > { %2383 = vpush %v457_v31  ;;  %v487_v44 = vrot.slane %v486_v42, 1  ;;  %v476_v48 = vadd.f32 %v475_v43, %v474_v41 }
 0x320   : > { %v488_v49 = vadd.f32 %v487_v44, %v486_v42  ;;  %v559_v44 = vld [vmem:[#allocation2 + $0x30] sm:$0xff] }
 0x34d   : > { %s2382_s23 = spop %2381 }
 0x34e   : > { %s2990_s25 = smul.f32 0.00390625, %s2382_s23 }
 0x34f   : > { %s2384_s26 = spop %2383 }
 0x350   : > { %s461_s6 = smul.f32 %s2990_s25, %s2990_s25  ;;  %v499_v51 = vstv %s2990_s25 }
 0x351   : > { %s460_s9 = smul.f32 0.00390625, %s2384_s26  ;;  %v511_v54 = vsub.f32 %v2970_v1, %v499_v51  ;;  %v513_v55 = vsub.f32 %v2972_v5, %v499_v51  ;;  %s2804_s26 = smov 1  }
 0x353   : > { %s462_s8 = ssub.f32 %s460_s9, %s461_s6  ;;  %s2805_s6 = smov 2  }
 0x355   : > { %s463_s10 = smax.f32 %s2803_s16, %s462_s8 }
 0x356   : > { %s464_s11 = sadd.f32 1e-05, %s463_s10 }
 0x358   : > { %v465_v40 = vstv %s464_s11 }
 0x359   : > { %2599 = vrsqrt.f32 %v465_v40 }
 0x363   : > { %v2600_v46 = vpop.eup %2599 }
 0x364   : > { %2385 = vpush %v2600_v46 }
 0x365   : > { %2387 = vpush %v476_v48  ;;  %v560_v48 = vld [vmem:[#allocation2 + $0x38] sm:$0xff] }
 0x366   : > { %2389 = vpush %v488_v49 }
 0x395   : > { %s2386_s30 = spop %2385 }
 0x396   : > { %v501_v52 = vstv %s2386_s30  ;;  %s2388_s12 = spop %2387 }
 0x397   : > { %v503_v53 = vmul.f32 %v2949_v47, %v501_v52  ;;  %s490_s7 = smul.f32 0.00390625, %s2388_s12  ;;  %s2390_s13 = spop %2389 }
 0x398   : > { %s491_s14 = smul.f32 0.00390625, %s2390_s13 }
 0x399   : > { %v518_v56 = vrot.slane %v503_v53, %v2952_v50  ;;  %s492_s15 = smul.f32 %s490_s7, %s490_s7  ;;  %v500_v63 = vstv %s490_s7 }
 0x39a   : > { %v512_v2 = vsub.f32 %v2976_v9, %v500_v63  ;;  %v514_v3 = vsub.f32 %v2974_v7, %v500_v63 }
 0x39b   : > { %v523_v57 = vmul.f32 %v518_v56, %v511_v54  ;;  %v525_v58 = vmul.f32 %v518_v56, %v513_v55  ;;  %s493_s17 = ssub.f32 %s491_s14, %s492_s15 }
 0x39d   : > { %s494_s23 = smax.f32 %s2803_s16, %s493_s17  ;;  %v2540_v59 = vpack.i.bf16 %v525_v58, %v523_v57  ;;  %v2321_v60 = vpack.c.bf16 %v525_v58, %v523_v57  ;;  %v561_v58 = vld [vmem:[#allocation2 + $0x40] sm:$0xff] }
 0x39e   : > { %s495_s25 = sadd.f32 1e-05, %s494_s23 }
 0x39f   : > { %2541 = vrot.lane.b32.xlu1 %v2540_v59, %s2804_s26  ;;  %2536 = vrot.lane.b32.xlu0 %v2540_v59, %s2805_s6 }
 0x3a0   : > { %v496_v61 = vstv %s495_s25 }
 0x3a1   : > { %2601 = vrsqrt.f32 %v496_v61 }
 0x3ab   : > { %v2602_v62 = vpop.eup %2601 }
 0x3ac   : > { %2391 = vpush %v2602_v62 }
 0x3dd   : > { %s2392_s9 = spop %2391 }
 0x3de   : > { %v502_v0 = vstv %s2392_s9 }
 0x3df   : > { %v504_v1 = vmul.f32 %v2949_v47, %v502_v0  ;;  %v563_v0 = vld [vmem:[#allocation2 + $0x50] sm:$0xff] }
 0x3e1   : > { %v522_v4 = vrot.slane %v504_v1, %v2952_v50 }
 0x3e3   : > { %v524_v5 = vmul.f32 %v522_v4, %v512_v2  ;;  %v526_v6 = vmul.f32 %v522_v4, %v514_v3  ;;  %v564_v2 = vld [vmem:[#allocation2 + $0x58] sm:$0xff] }
 0x3e5   : > { %v2545_v10 = vpack.i.bf16 %v526_v6, %v524_v5  ;;  %v2319_v11 = vpack.c.bf16 %v526_v6, %v524_v5 }
 0x3e7   : > { %2546 = vrot.lane.b32.xlu1 %v2545_v10, %s2805_s6 }
 0x3eb   : > { %2551 = vrot.lane.b32.xlu1 %v2545_v10, %s2804_s26 }
 0x411   : > { %v2542_v12 = vpop.permute.xlu1 %2541  ;;  %v2537_v13 = vpop.permute.xlu0 %2536 }
 0x412   : > { %v2539_v15 = vunpack.i.h.bf16 %v2537_v13  ;;  %v2538_v16 = vunpack.i.l.bf16 %v2537_v13  ;;  %v2544_v24 = vunpack.i.h.bf16 %v2542_v12  ;;  %v2543_v25 = vunpack.i.l.bf16 %v2542_v12 }
 0x459   : > { %v2547_v14 = vpop.permute.xlu1 %2546 }
 0x45a   : > { %v2549_v17 = vunpack.i.h.bf16 %v2547_v14  ;;  %v2548_v9 = vunpack.i.l.bf16 %v2547_v14 }
 0x45c   : > { %v538_v7 = vsel %vm535_vm3, %v2548_v9, %v2538_v16  ;;  %v539_v18 = vsel %vm535_vm3, %v2549_v17, %v2539_v15  ;;  %v536_v19 = vsel %vm535_vm3, %v2538_v16, %v2548_v9  ;;  %v537_v20 = vsel %vm535_vm3, %v2539_v15, %v2549_v17 }
 0x45d   : > { %v2313_v21 = vpack.c.bf16 %v539_v18, %v538_v7  ;;  %v2552_v22 = vpop.permute.xlu1 %2551  ;;  %v2311_v23 = vpack.c.bf16 %v537_v20, %v536_v19  ;;  %v3039_v19 = vrot.slane %v2949_v47, %v2952_v50 }
 0x45e   : > { %v2554_v26 = vunpack.i.h.bf16 %v2552_v22  ;;  %v2553_v27 = vunpack.i.l.bf16 %v2552_v22 }
 0x45f   : > { %2312 = vmatprep.subr.bf16.mxu1 %v2311_v23 }
 0x460   : > { %v552_v28 = vsel %vm548_vm4, %v2554_v26, %v2544_v24  ;;  %v551_v29 = vsel %vm548_vm4, %v2553_v27, %v2543_v25  ;;  %2314 = vmatpush1.bf16.msra.mxu1 %v2313_v21  ;;  %v549_v30 = vsel %vm548_vm4, %v2543_v25, %v2553_v27  ;;  %v550_v31 = vsel %vm548_vm4, %v2544_v24, %v2554_v26 }
 0x461   : > { %v2317_v32 = vpack.c.bf16 %v552_v28, %v551_v29  ;;  %v2315_v33 = vpack.c.bf16 %v550_v31, %v549_v30 }
 0x463   : > { %2316 = vmatprep.subr.bf16.mxu1 %v2315_v33 }
 0x464   : > { %2318 = vmatpush1.bf16.msra.mxu1 %v2317_v32 }
 0x465   : > { %2320 = vmatprep.subr.bf16.mxu1 %v2319_v11 }
 0x468   : > { %2322 = vmatpush1.bf16.msra.mxu1 %v2321_v60  ;;  %v562_v60 = vld [vmem:[#allocation2 + $0x48] sm:$0xff] }
 0x46b   : > { %2252 = vmatmul.mubr.msk.f32.vlgmr.msra.gmra.mrb[4].mxu1 %vm565_vm5, %v553_v34 }
 0x46c   : > { %648 = vmatprep.mubr.f32.mxu1 %v2802_v8 }
 0x46f   : > { %2253 = vmatmul.mubr.msk.f32.gmra.mrb[6].mxu1 %vm565_vm5, %v554_v35 }
 0x470   : > { %654 = vmatprep.mubr.f32.mxu1 %v2802_v8 }
 0x473   : > { %2254 = vmatmul.mubr.msk.f32.gmra.mrb[8].mxu1 %vm565_vm5, %v555_v36 }
 0x474   : > { %660 = vmatprep.mubr.f32.mxu1 %v2802_v8 }
 0x477   : > { %2255 = vmatmul.mubr.msk.f32.gmra.mrb[10].mxu1 %vm565_vm5, %v556_v37 }
 0x478   : > { %1562 = vmatprep.mubr.f32.mxu1 %v2802_v8 }
 0x53e   : > { %v644_v40 = vpop.f32.mrb[4].mxu1 }
 0x53f   : > { %v645_v41 = vadd.f32 %v644_v40, %v557_v38  ;;  %v646_v42 = vpop.f32.mrb[5].mxu1 }
 0x540   : > { %v647_v43 = vadd.f32 %v646_v42, %v558_v39 }
 0x541   : > { %v2256_v46 = vmul.f32 -1.442695, %v645_v41 }
 0x542   : > { %v2257_v49 = vmul.f32 -1.442695, %v647_v43  ;;  %v650_v51 = vpop.f32.mrb[6].mxu1 }
 0x543   : > { %2603 = vpow2.f32 %v2256_v46  ;;  %v651_v52 = vadd.f32 %v650_v51, %v559_v44  ;;  %v652_v53 = vpop.f32.mrb[7].mxu1 }
 0x544   : > { %2605 = vpow2.f32 %v2257_v49  ;;  %v653_v54 = vadd.f32 %v652_v53, %v560_v48 }
 0x545   : > { %v2258_v55 = vmul.f32 -1.442695, %v651_v52 }
 0x546   : > { %v2259_v56 = vmul.f32 -1.442695, %v653_v54  ;;  %v656_v57 = vpop.f32.mrb[8].mxu1 }
 0x547   : > { %2607 = vpow2.f32 %v2258_v55  ;;  %v658_v59 = vpop.f32.mrb[9].mxu1  ;;  %v657_v61 = vadd.f32 %v656_v57, %v561_v58 }
 0x548   : > { %2609 = vpow2.f32 %v2259_v56  ;;  %v659_v63 = vadd.f32 %v658_v59, %v562_v60 }
 0x549   : > { %2611 = vtanh.f32 %v657_v61 }
 0x54a   : > { %v662_v62 = vpop.f32.mrb[10].mxu1  ;;  %2613 = vtanh.f32 %v659_v63 }
 0x54b   : > { %v664_v1 = vpop.f32.mrb[11].mxu1  ;;  %v663_v6 = vadd.f32 %v662_v62, %v563_v0 }
 0x54c   : > { %v665_v11 = vadd.f32 %v664_v1, %v564_v2 }
 0x54d   : > { %v2604_v3 = vpop.eup %2603 }
 0x54e   : > { %v2606_v4 = vpop.eup %2605  ;;  %v679_v5 = vadd.f32 1.0, %v2604_v3 }
 0x54f   : > { %v680_v10 = vadd.f32 1.0, %v2606_v4 }
 0x550   : > { %2615 = vrcp.f32 %v679_v5 }
 0x551   : > { %v2608_v12 = vpop.eup %2607  ;;  %2617 = vrcp.f32 %v680_v10 }
 0x552   : > { %v2610_v13 = vpop.eup %2609  ;;  %v681_v14 = vadd.f32 1.0, %v2608_v12  ;;  %2619 = vtanh.f32 %v663_v6 }
 0x553   : > { %v682_v15 = vadd.f32 1.0, %v2610_v13  ;;  %2621 = vtanh.f32 %v665_v11  ;;  %v2612_v16 = vpop.eup %2611 }
 0x554   : > { %2623 = vrcp.f32 %v681_v14  ;;  %v2614_v17 = vpop.eup %2613 }
 0x555   : > { %2625 = vrcp.f32 %v682_v15 }
 0x55a   : > { %v2616_v9 = vpop.eup %2615 }
 0x55b   : > { %v2618_v7 = vpop.eup %2617  ;;  %v695_v18 = vmul.f32 %v2616_v9, %v2612_v16 }
 0x55c   : > { %v2620_v20 = vpop.eup %2619  ;;  %v696_v21 = vmul.f32 %v2618_v7, %v2614_v17 }
 0x55d   : > { %v2622_v22 = vpop.eup %2621  ;;  %v3042_v26 = vmul.f32 %v3039_v19, %v695_v18 }
 0x55e   : > { %v2624_v23 = vpop.eup %2623  ;;  %v3057_v34 = vmul.f32 %v3039_v19, %v696_v21 }
 0x55f   : > { %v2626_v24 = vpop.eup %2625  ;;  %v697_v25 = vmul.f32 %v2624_v23, %v2620_v20  ;;  %v720_v30 = vmul.f32 %v3042_v26, %v3042_v26 }
 0x560   : > { %v698_v27 = vmul.f32 %v2626_v24, %v2622_v22  ;;  %v751_v37 = vmul.f32 %v3057_v34, %v3057_v34 }
 0x561   : > { %v3045_v28 = vmul.f32 %v3039_v19, %v697_v25 }
 0x562   : > { %v3054_v32 = vmul.f32 %v3039_v19, %v698_v27 }
 0x563   : > { %v710_v29 = vadd.f32 %v3045_v28, %v3042_v26  ;;  %v721_v31 = vmul.f32 %v3045_v28, %v3045_v28 }
 0x564   : > { %v741_v35 = vadd.f32 %v3054_v32, %v3057_v34  ;;  %v752_v36 = vmul.f32 %v3054_v32, %v3054_v32 }
 0x565   : > { %711 = vadd.xlane.f32.xlu0 %v710_v29  ;;  %v722_v33 = vadd.f32 %v721_v31, %v720_v30  ;;  %v707_v30 = vld [vmem:[%s3461_s3] sm:$0xff]  ;;  %v708_v31 = vld [vmem:[%s3461_s3 + $0x8] sm:$0xff] }
 0x566   : > { %v753_v38 = vadd.f32 %v752_v36, %v751_v37  ;;  %v803_v37 = vld [vmem:[#allocation2 + $0x78] sm:$0xff] }
 0x567   : > { %723 = vadd.xlane.f32.xlu1 %v722_v33 }
 0x569   : > { %742 = vadd.xlane.f32.xlu0 %v741_v35  ;;  %v802_v35 = vld [vmem:[#allocation2 + $0x70] sm:$0xff] }
 0x56d   : > { %754 = vadd.xlane.f32.xlu0 %v753_v38  ;;  %v801_v38 = vld [vmem:[#allocation2 + $0x68] sm:$0xff] }
 0x5f2   : > { %v712_v39 = vpop.xlane.xlu0 %711 }
 0x5f3   : > { %v713_v40 = vrot.slane %v712_v39, 4 }
 0x5f4   : > { %v724_v41 = vpop.xlane.xlu1 %723 }
 0x5f5   : > { %v714_v42 = vadd.f32 %v713_v40, %v712_v39  ;;  %v725_v43 = vrot.slane %v724_v41, 4 }
 0x5f6   : > { %v743_v56 = vpop.xlane.xlu0 %742 }
 0x5f7   : > { %v715_v44 = vrot.slane %v714_v42, 2  ;;  %v726_v46 = vadd.f32 %v725_v43, %v724_v41  ;;  %v744_v58 = vrot.slane %v743_v56, 4 }
 0x5f9   : > { %v727_v48 = vrot.slane %v726_v46, 2  ;;  %v716_v49 = vadd.f32 %v715_v44, %v714_v42  ;;  %v745_v60 = vadd.f32 %v744_v58, %v743_v56 }
 0x5fa   : > { %v755_v57 = vpop.xlane.xlu0 %754 }
 0x5fb   : > { %v717_v51 = vrot.slane %v716_v49, 1  ;;  %v728_v52 = vadd.f32 %v727_v48, %v726_v46  ;;  %v756_v59 = vrot.slane %v755_v57, 4  ;;  %v746_v62 = vrot.slane %v745_v60, 2 }
 0x5fd   : > { %v718_v53 = vadd.f32 %v717_v51, %v716_v49  ;;  %v729_v54 = vrot.slane %v728_v52, 1  ;;  %v757_v61 = vadd.f32 %v756_v59, %v755_v57  ;;  %v747_v1 = vadd.f32 %v746_v62, %v745_v60 }
 0x5ff   : > { %2393 = vpush %v718_v53  ;;  %v730_v55 = vadd.f32 %v729_v54, %v728_v52  ;;  %v758_v63 = vrot.slane %v757_v61, 2  ;;  %v748_v3 = vrot.slane %v747_v1, 1 }
 0x601   : > { %2395 = vpush %v730_v55  ;;  %v759_v2 = vadd.f32 %v758_v63, %v757_v61  ;;  %v749_v6 = vadd.f32 %v748_v3, %v747_v1 }
 0x603   : > { %v760_v4 = vrot.slane %v759_v2, 1 }
 0x605   : > { %v761_v10 = vadd.f32 %v760_v4, %v759_v2 }
 0x630   : > { %s2394_s15 = spop %2393 }
 0x631   : > { %s3065_s17 = smul.f32 0.00390625, %s2394_s15 }
 0x632   : > { %s2396_s23 = spop %2395 }
 0x633   : > { %s734_s25 = smul.f32 %s3065_s17, %s3065_s17  ;;  %v772_v11 = vstv %s3065_s17 }
 0x634   : > { %s733_s26 = smul.f32 0.00390625, %s2396_s23  ;;  %v784_v14 = vsub.f32 %v3042_v26, %v772_v11  ;;  %v786_v15 = vsub.f32 %v3045_v28, %v772_v11 }
 0x636   : > { %s735_s9 = ssub.f32 %s733_s26, %s734_s25 }
 0x638   : > { %s736_s8 = smax.f32 %s2803_s16, %s735_s9 }
 0x639   : > { %s737_s10 = sadd.f32 1e-05, %s736_s8 }
 0x63b   : > { %v738_v0 = vstv %s737_s10 }
 0x63c   : > { %2627 = vrsqrt.f32 %v738_v0 }
 0x646   : > { %v2628_v5 = vpop.eup %2627 }
 0x647   : > { %2397 = vpush %v2628_v5 }
 0x648   : > { %2399 = vpush %v749_v6 }
 0x649   : > { %2401 = vpush %v761_v10 }
 0x678   : > { %s2398_s11 = spop %2397 }
 0x679   : > { %v774_v12 = vstv %s2398_s11  ;;  %s2400_s30 = spop %2399 }
 0x67a   : > { %v776_v13 = vmul.f32 %v2949_v47, %v774_v12  ;;  %s763_s12 = smul.f32 0.00390625, %s2400_s30  ;;  %s2402_s7 = spop %2401 }
 0x67b   : > { %s764_s13 = smul.f32 0.00390625, %s2402_s7 }
 0x67c   : > { %v791_v16 = vrot.slane %v776_v13, %v2952_v50  ;;  %s765_s14 = smul.f32 %s763_s12, %s763_s12  ;;  %v773_v21 = vstv %s763_s12 }
 0x67d   : > { %v785_v24 = vsub.f32 %v3057_v34, %v773_v21  ;;  %v787_v25 = vsub.f32 %v3054_v32, %v773_v21  ;;  %v800_v32 = vld [vmem:[#allocation2 + $0x60] sm:$0xff] }
 0x67e   : > { %s766_s15 = ssub.f32 %s764_s13, %s765_s14  ;;  %v796_v17 = vmul.f32 %v791_v16, %v784_v14  ;;  %v798_v9 = vmul.f32 %v791_v16, %v786_v15 }
 0x680   : > { %s767_s23 = smax.f32 %s2803_s16, %s766_s15  ;;  %v2325_v7 = vpack.c.bf16 %v798_v9, %v796_v17 }
 0x681   : > { %s768_s17 = sadd.f32 1e-05, %s767_s23 }
 0x683   : > { %v769_v18 = vstv %s768_s17 }
 0x684   : > { %2629 = vrsqrt.f32 %v769_v18 }
 0x68e   : > { %v2630_v20 = vpop.eup %2629 }
 0x68f   : > { %2403 = vpush %v2630_v20 }
 0x6c0   : > { %s2404_s25 = spop %2403 }
 0x6c1   : > { %v775_v22 = vstv %s2404_s25 }
 0x6c2   : > { %v777_v23 = vmul.f32 %v2949_v47, %v775_v22 }
 0x6c4   : > { %v795_v26 = vrot.slane %v777_v23, %v2952_v50 }
 0x6c6   : > { %v797_v27 = vmul.f32 %v795_v26, %v785_v24  ;;  %v799_v28 = vmul.f32 %v795_v26, %v787_v25 }
 0x6c8   : > { %v2323_v29 = vpack.c.bf16 %v799_v28, %v797_v27 }
 0x6ca   : > { %2324 = vmatprep.subr.bf16.mxu0 %v2323_v29 }
 0x6cb   : > { %2326 = vmatpush1.bf16.msra.mxu0 %v2325_v7 }
 0x6ce   : > { %2260 = vmatmul.mubr.msk.f32.vlgmr.msra.gmra.mrb[0].mxu0 %vm806_vm6, %v707_v30 }
 0x6cf   : > { %886 = vmatprep.mubr.f32.mxu0 %v2802_v8 }
 0x6d2   : > { %2261 = vmatmul.mubr.msk.f32.gmra.mrb[2].mxu0 %vm806_vm6, %v708_v31 }
 0x6d3   : > { %892 = vmatprep.mubr.f32.mxu0 %v2802_v8 }
 0x7a1   : > { %v882_v33 = vpop.f32.mrb[0].mxu0 }
 0x7a2   : > { %v884_v34 = vpop.f32.mrb[1].mxu0  ;;  %v3090_v36 = vadd.f32 %v882_v33, %v800_v32 }
 0x7a3   : > { %v3096_v43 = vadd.f32 %v884_v34, %v801_v38 }
 0x7a4   : > { %v909_v46 = vmul.f32 %v3090_v36, %v3090_v36 }
 0x7a5   : > { %v888_v39 = vpop.f32.mrb[2].mxu0  ;;  %v940_v53 = vmul.f32 %v3096_v43, %v3096_v43 }
 0x7a6   : > { %v3092_v40 = vadd.f32 %v888_v39, %v802_v35  ;;  %v890_v41 = vpop.f32.mrb[3].mxu0 }
 0x7a7   : > { %v3094_v42 = vadd.f32 %v890_v41, %v803_v37 }
 0x7a8   : > { %v899_v44 = vadd.f32 %v3092_v40, %v3090_v36  ;;  %v910_v48 = vmul.f32 %v3092_v40, %v3092_v40 }
 0x7a9   : > { %v941_v51 = vmul.f32 %v3094_v42, %v3094_v42  ;;  %v930_v52 = vadd.f32 %v3094_v42, %v3096_v43 }
 0x7aa   : > { %900 = vadd.xlane.f32.xlu0 %v899_v44  ;;  %v911_v49 = vadd.f32 %v910_v48, %v909_v46 }
 0x7ab   : > { %v942_v54 = vadd.f32 %v941_v51, %v940_v53 }
 0x7ac   : > { %912 = vadd.xlane.f32.xlu1 %v911_v49  ;;  %v709_v49 = vld [vmem:[%s3461_s3 + $0x10] sm:$0xf] }
 0x7ad   : > { %2262 = vmatmul.mubr.msk.f32.gmra.mrb[4].mxu0 %vm806_vm6, %v709_v49 }
 0x7ae   : > { %931 = vadd.xlane.f32.xlu0 %v930_v52  ;;  %1103 = vmatprep.mubr.f32.mxu0 %v2802_v8 }
 0x7b0   : > { %943 = vadd.xlane.f32.xlu1 %v942_v54 }
 0x837   : > { %v901_v55 = vpop.xlane.xlu0 %900 }
 0x838   : > { %v902_v56 = vrot.slane %v901_v55, 4 }
 0x839   : > { %v913_v57 = vpop.xlane.xlu1 %912 }
 0x83a   : > { %v903_v58 = vadd.f32 %v902_v56, %v901_v55  ;;  %v914_v59 = vrot.slane %v913_v57, 4 }
 0x83b   : > { %v932_v5 = vpop.xlane.xlu0 %931 }
 0x83c   : > { %v904_v60 = vrot.slane %v903_v58, 2  ;;  %v915_v61 = vadd.f32 %v914_v59, %v913_v57  ;;  %v933_v10 = vrot.slane %v932_v5, 4 }
 0x83d   : > { %v944_v6 = vpop.xlane.xlu1 %943 }
 0x83e   : > { %v916_v62 = vrot.slane %v915_v61, 2  ;;  %v905_v63 = vadd.f32 %v904_v60, %v903_v58  ;;  %v945_v11 = vrot.slane %v944_v6, 4  ;;  %v934_v12 = vadd.f32 %v933_v10, %v932_v5 }
 0x840   : > { %v906_v0 = vrot.slane %v905_v63, 1  ;;  %v917_v1 = vadd.f32 %v916_v62, %v915_v61  ;;  %v946_v13 = vadd.f32 %v945_v11, %v944_v6  ;;  %v935_v14 = vrot.slane %v934_v12, 2 }
 0x842   : > { %v907_v2 = vadd.f32 %v906_v0, %v905_v63  ;;  %v918_v3 = vrot.slane %v917_v1, 1  ;;  %v947_v15 = vrot.slane %v946_v13, 2  ;;  %v936_v17 = vadd.f32 %v935_v14, %v934_v12  ;;  %v2263_v12 = vld [vmem:[%s3460_s2 + $0x20] sm:$0xff]  ;;  %v2265_v14 = vld [vmem:[%s3460_s2 + $0x30] sm:$0xff] }
 0x844   : > { %2405 = vpush %v907_v2  ;;  %v919_v4 = vadd.f32 %v918_v3, %v917_v1  ;;  %v948_v9 = vadd.f32 %v947_v15, %v946_v13  ;;  %v937_v7 = vrot.slane %v936_v17, 1  ;;  %v2264_v13 = vld [vmem:[%s3460_s2 + $0x28] sm:$0xff]  ;;  %v2266_v15 = vld [vmem:[%s3460_s2 + $0x38] sm:$0xff] }
 0x846   : > { %2407 = vpush %v919_v4  ;;  %v949_v18 = vrot.slane %v948_v9, 1  ;;  %v938_v21 = vadd.f32 %v937_v7, %v936_v17  ;;  %v1020_v17 = vld [vmem:[#allocation2 + $0x98] sm:$0xff] }
 0x848   : > { %v950_v22 = vadd.f32 %v949_v18, %v948_v9 }
 0x875   : > { %s2406_s11 = spop %2405 }
 0x876   : > { %s3110_s30 = smul.f32 0.00390625, %s2406_s11 }
 0x877   : > { %s2408_s12 = spop %2407 }
 0x878   : > { %s923_s7 = smul.f32 %s3110_s30, %s3110_s30  ;;  %v961_v23 = vstv %s3110_s30 }
 0x879   : > { %s922_s13 = smul.f32 0.00390625, %s2408_s12  ;;  %v973_v26 = vsub.f32 %v3090_v36, %v961_v23  ;;  %v975_v27 = vsub.f32 %v3092_v40, %v961_v23  ;;  %v1022_v23 = vld [vmem:[#allocation2 + $0xa8] sm:$0xff] }
 0x87b   : > { %s924_s14 = ssub.f32 %s922_s13, %s923_s7  ;;  %s2806_s7 = smov 4  }
 0x87d   : > { %s925_s15 = smax.f32 %s2803_s16, %s924_s14 }
 0x87e   : > { %s926_s23 = sadd.f32 1e-05, %s925_s15 }
 0x880   : > { %v927_v16 = vstv %s926_s23 }
 0x881   : > { %2631 = vrsqrt.f32 %v927_v16  ;;  %v1019_v16 = vld [vmem:[#allocation2 + $0x90] sm:$0xff] }
 0x88b   : > { %v2632_v20 = vpop.eup %2631 }
 0x88c   : > { %2409 = vpush %v2632_v20 }
 0x88d   : > { %2411 = vpush %v938_v21  ;;  %v1021_v21 = vld [vmem:[#allocation2 + $0xa0] sm:$0xff] }
 0x88e   : > { %2413 = vpush %v950_v22 }
 0x8bd   : > { %s2410_s17 = spop %2409 }
 0x8be   : > { %v963_v24 = vstv %s2410_s17  ;;  %s2412_s25 = spop %2411 }
 0x8bf   : > { %v965_v25 = vmul.f32 %v2949_v47, %v963_v24  ;;  %s952_s26 = smul.f32 0.00390625, %s2412_s25  ;;  %s2414_s9 = spop %2413 }
 0x8c0   : > { %s953_s8 = smul.f32 0.00390625, %s2414_s9 }
 0x8c1   : > { %v980_v28 = vrot.slane %v965_v25, %v2952_v50  ;;  %s954_s10 = smul.f32 %s952_s26, %s952_s26  ;;  %v962_v35 = vstv %s952_s26 }
 0x8c2   : > { %v974_v38 = vsub.f32 %v3096_v43, %v962_v35  ;;  %v976_v39 = vsub.f32 %v3094_v42, %v962_v35 }
 0x8c3   : > { %v985_v29 = vmul.f32 %v980_v28, %v973_v26  ;;  %v987_v30 = vmul.f32 %v980_v28, %v975_v27  ;;  %s955_s11 = ssub.f32 %s953_s8, %s954_s10 }
 0x8c5   : > { %s956_s12 = smax.f32 %s2803_s16, %s955_s11  ;;  %v2560_v31 = vpack.i.bf16 %v987_v30, %v985_v29  ;;  %v2337_v32 = vpack.c.bf16 %v987_v30, %v985_v29 }
 0x8c6   : > { %s957_s30 = sadd.f32 1e-05, %s956_s12 }
 0x8c7   : > { %2561 = vrot.lane.b32.xlu1 %v2560_v31, %s2805_s6  ;;  %2556 = vrot.lane.b32.xlu0 %v2560_v31, %s2806_s7 }
 0x8c8   : > { %v958_v33 = vstv %s957_s30 }
 0x8c9   : > { %2633 = vrsqrt.f32 %v958_v33 }
 0x8d3   : > { %v2634_v34 = vpop.eup %2633 }
 0x8d4   : > { %2415 = vpush %v2634_v34  ;;  %v1024_v34 = vld [vmem:[#allocation2 + $0xb8] sm:$0xff] }
 0x905   : > { %s2416_s13 = spop %2415 }
 0x906   : > { %v964_v36 = vstv %s2416_s13 }
 0x907   : > { %v966_v37 = vmul.f32 %v2949_v47, %v964_v36 }
 0x909   : > { %v984_v40 = vrot.slane %v966_v37, %v2952_v50 }
 0x90b   : > { %v986_v41 = vmul.f32 %v984_v40, %v974_v38  ;;  %v988_v44 = vmul.f32 %v984_v40, %v976_v39  ;;  %v1025_v38 = vld [vmem:[#allocation2 + $0xc0] sm:$0xff]  ;;  %v1026_v40 = vld [vmem:[#allocation2 + $0xc8] sm:$0xff] }
 0x90d   : > { %v2565_v46 = vpack.i.bf16 %v988_v44, %v986_v41  ;;  %v2335_v48 = vpack.c.bf16 %v988_v44, %v986_v41 }
 0x90f   : > { %2566 = vrot.lane.b32.xlu1 %v2565_v46, %s2806_s7 }
 0x913   : > { %2571 = vrot.lane.b32.xlu1 %v2565_v46, %s2805_s6 }
 0x939   : > { %v2562_v43 = vpop.permute.xlu1 %2561  ;;  %v2557_v42 = vpop.permute.xlu0 %2556 }
 0x93a   : > { %v2559_v52 = vunpack.i.h.bf16 %v2557_v42  ;;  %v2558_v53 = vunpack.i.l.bf16 %v2557_v42  ;;  %v2564_v63 = vunpack.i.h.bf16 %v2562_v43  ;;  %v2563_v0 = vunpack.i.l.bf16 %v2562_v43 }
 0x981   : > { %v2567_v51 = vpop.permute.xlu1 %2566 }
 0x982   : > { %v2569_v54 = vunpack.i.h.bf16 %v2567_v51  ;;  %v2568_v55 = vunpack.i.l.bf16 %v2567_v51 }
 0x984   : > { %v1000_v56 = vsel %vm997_vm7, %v2568_v55, %v2558_v53  ;;  %v1001_v57 = vsel %vm997_vm7, %v2569_v54, %v2559_v52  ;;  %v998_v58 = vsel %vm997_vm7, %v2558_v53, %v2568_v55  ;;  %v999_v59 = vsel %vm997_vm7, %v2559_v52, %v2569_v54 }
 0x985   : > { %v2329_v60 = vpack.c.bf16 %v1001_v57, %v1000_v56  ;;  %v2572_v61 = vpop.permute.xlu1 %2571  ;;  %v2327_v62 = vpack.c.bf16 %v999_v59, %v998_v58 }
 0x986   : > { %v2574_v1 = vunpack.i.h.bf16 %v2572_v61  ;;  %v2573_v2 = vunpack.i.l.bf16 %v2572_v61 }
 0x987   : > { %2328 = vmatprep.subr.bf16.mxu0 %v2327_v62 }
 0x988   : > { %v1013_v3 = vsel %vm535_vm3, %v2574_v1, %v2564_v63  ;;  %v1012_v4 = vsel %vm535_vm3, %v2573_v2, %v2563_v0  ;;  %2330 = vmatpush1.bf16.msra.mxu0 %v2329_v60  ;;  %v1010_v5 = vsel %vm535_vm3, %v2563_v0, %v2573_v2  ;;  %v1011_v6 = vsel %vm535_vm3, %v2564_v63, %v2574_v1 }
 0x989   : > { %v2333_v10 = vpack.c.bf16 %v1013_v3, %v1012_v4  ;;  %v2331_v11 = vpack.c.bf16 %v1011_v6, %v1010_v5 }
 0x98b   : > { %2332 = vmatprep.subr.bf16.mxu0 %v2331_v11 }
 0x98c   : > { %2334 = vmatpush1.bf16.msra.mxu0 %v2333_v10 }
 0x98d   : > { %2336 = vmatprep.subr.bf16.mxu0 %v2335_v48 }
 0x990   : > { %2338 = vmatpush1.bf16.msra.mxu0 %v2337_v32  ;;  %v1023_v32 = vld [vmem:[#allocation2 + $0xb0] sm:$0xff] }
 0x993   : > { %2267 = vmatmul.mubr.msk.f32.vlgmr.msra.gmra.mrb[6].mxu0 %vm565_vm5, %v2263_v12 }
 0x994   : > { %1109 = vmatprep.mubr.f32.mxu0 %v2802_v8 }
 0x997   : > { %2268 = vmatmul.mubr.msk.f32.gmra.mrb[8].mxu0 %vm565_vm5, %v2264_v13 }
 0x998   : > { %1115 = vmatprep.mubr.f32.mxu0 %v2802_v8 }
 0x99b   : > { %2269 = vmatmul.mubr.msk.f32.gmra.mrb[10].mxu0 %vm565_vm5, %v2265_v14 }
 0x99c   : > { %1121 = vmatprep.mubr.f32.mxu0 %v2802_v8 }
 0x99f   : > { %2270 = vmatmul.mubr.msk.f32.gmra.mrb[12].mxu0 %vm565_vm5, %v2266_v15 }
 0x9a0   : > { %1337 = vmatprep.mubr.f32.mxu0 %v2802_v8 }
 0xa66   : > { %v1105_v9 = vpop.f32.mrb[6].mxu0 }
 0xa67   : > { %v1106_v7 = vadd.f32 %v1105_v9, %v1019_v16  ;;  %v1107_v18 = vpop.f32.mrb[7].mxu0 }
 0xa68   : > { %v1108_v20 = vadd.f32 %v1107_v18, %v1020_v17 }
 0xa69   : > { %v2271_v22 = vmul.f32 -1.442695, %v1106_v7 }
 0xa6a   : > { %v2272_v24 = vmul.f32 -1.442695, %v1108_v20  ;;  %v1111_v25 = vpop.f32.mrb[8].mxu0 }
 0xa6b   : > { %2635 = vpow2.f32 %v2271_v22  ;;  %v1112_v26 = vadd.f32 %v1111_v25, %v1021_v21  ;;  %v1113_v27 = vpop.f32.mrb[9].mxu0 }
 0xa6c   : > { %2637 = vpow2.f32 %v2272_v24  ;;  %v1114_v28 = vadd.f32 %v1113_v27, %v1022_v23 }
 0xa6d   : > { %v2273_v29 = vmul.f32 -1.442695, %v1112_v26 }
 0xa6e   : > { %v2274_v30 = vmul.f32 -1.442695, %v1114_v28  ;;  %v1117_v31 = vpop.f32.mrb[10].mxu0 }
 0xa6f   : > { %2639 = vpow2.f32 %v2273_v29  ;;  %v1119_v33 = vpop.f32.mrb[11].mxu0  ;;  %v1118_v35 = vadd.f32 %v1117_v31, %v1023_v32 }
 0xa70   : > { %2641 = vpow2.f32 %v2274_v30  ;;  %v1120_v37 = vadd.f32 %v1119_v33, %v1024_v34 }
 0xa71   : > { %2643 = vtanh.f32 %v1118_v35 }
 0xa72   : > { %v1123_v36 = vpop.f32.mrb[12].mxu0  ;;  %2645 = vtanh.f32 %v1120_v37 }
 0xa73   : > { %v1125_v39 = vpop.f32.mrb[13].mxu0  ;;  %v1124_v48 = vadd.f32 %v1123_v36, %v1025_v38 }
 0xa74   : > { %v1126_v43 = vadd.f32 %v1125_v39, %v1026_v40 }
 0xa75   : > { %v2636_v41 = vpop.eup %2635 }
 0xa76   : > { %v2638_v44 = vpop.eup %2637  ;;  %v1140_v46 = vadd.f32 1.0, %v2636_v41 }
 0xa77   : > { %v1141_v49 = vadd.f32 1.0, %v2638_v44 }
 0xa78   : > { %2647 = vrcp.f32 %v1140_v46 }
 0xa79   : > { %v2640_v42 = vpop.eup %2639  ;;  %2649 = vrcp.f32 %v1141_v49 }
 0xa7a   : > { %v2642_v51 = vpop.eup %2641  ;;  %v1142_v52 = vadd.f32 1.0, %v2640_v42  ;;  %2651 = vtanh.f32 %v1124_v48 }
 0xa7b   : > { %v1143_v53 = vadd.f32 1.0, %v2642_v51  ;;  %2653 = vtanh.f32 %v1126_v43  ;;  %v2644_v54 = vpop.eup %2643 }
 0xa7c   : > { %2655 = vrcp.f32 %v1142_v52  ;;  %v2646_v55 = vpop.eup %2645 }
 0xa7d   : > { %2657 = vrcp.f32 %v1143_v53 }
 0xa82   : > { %v2648_v56 = vpop.eup %2647 }
 0xa83   : > { %v2650_v57 = vpop.eup %2649  ;;  %v1156_v58 = vmul.f32 %v2648_v56, %v2644_v54 }
 0xa84   : > { %v2652_v59 = vpop.eup %2651  ;;  %v1157_v60 = vmul.f32 %v2650_v57, %v2646_v55 }
 0xa85   : > { %v2654_v61 = vpop.eup %2653  ;;  %v3172_v1 = vmul.f32 %v1156_v58, %v3039_v19 }
 0xa86   : > { %v2656_v62 = vpop.eup %2655  ;;  %v3187_v12 = vmul.f32 %v1157_v60, %v3039_v19 }
 0xa87   : > { %v2658_v63 = vpop.eup %2657  ;;  %v1158_v0 = vmul.f32 %v2656_v62, %v2652_v59  ;;  %v1178_v5 = vmul.f32 %v3172_v1, %v3172_v1 }
 0xa88   : > { %v1159_v2 = vmul.f32 %v2658_v63, %v2654_v61  ;;  %v1209_v15 = vmul.f32 %v3187_v12, %v3187_v12 }
 0xa89   : > { %v3175_v3 = vmul.f32 %v1158_v0, %v3039_v19 }
 0xa8a   : > { %v3184_v10 = vmul.f32 %v1159_v2, %v3039_v19 }
 0xa8b   : > { %v1168_v4 = vadd.f32 %v3175_v3, %v3172_v1  ;;  %v1179_v6 = vmul.f32 %v3175_v3, %v3175_v3 }
 0xa8c   : > { %v1199_v13 = vadd.f32 %v3184_v10, %v3187_v12  ;;  %v1210_v14 = vmul.f32 %v3184_v10, %v3184_v10 }
 0xa8d   : > { %1169 = vadd.xlane.f32.xlu0 %v1168_v4  ;;  %v1180_v11 = vadd.f32 %v1179_v6, %v1178_v5  ;;  %v2275_v5 = vld [vmem:[%s3461_s3 + $0x18] sm:$0xff]  ;;  %v2276_v6 = vld [vmem:[%s3461_s3 + $0x20] sm:$0xff] }
 0xa8e   : > { %v1211_v16 = vadd.f32 %v1210_v14, %v1209_v15  ;;  %v1261_v15 = vld [vmem:[#allocation2 + $0xe8] sm:$0xff] }
 0xa8f   : > { %1181 = vadd.xlane.f32.xlu1 %v1180_v11 }
 0xa91   : > { %1200 = vadd.xlane.f32.xlu0 %v1199_v13  ;;  %v1260_v13 = vld [vmem:[#allocation2 + $0xe0] sm:$0xff] }
 0xa95   : > { %1212 = vadd.xlane.f32.xlu0 %v1211_v16  ;;  %v1259_v16 = vld [vmem:[#allocation2 + $0xd8] sm:$0xff] }
 0xb1a   : > { %v1170_v17 = vpop.xlane.xlu0 %1169 }
 0xb1b   : > { %v1171_v9 = vrot.slane %v1170_v17, 4 }
 0xb1c   : > { %v1182_v7 = vpop.xlane.xlu1 %1181 }
 0xb1d   : > { %v1172_v18 = vadd.f32 %v1171_v9, %v1170_v17  ;;  %v1183_v20 = vrot.slane %v1182_v7, 4 }
 0xb1e   : > { %v1201_v30 = vpop.xlane.xlu0 %1200 }
 0xb1f   : > { %v1173_v21 = vrot.slane %v1172_v18, 2  ;;  %v1184_v22 = vadd.f32 %v1183_v20, %v1182_v7  ;;  %v1202_v32 = vrot.slane %v1201_v30, 4 }
 0xb21   : > { %v1185_v23 = vrot.slane %v1184_v22, 2  ;;  %v1174_v24 = vadd.f32 %v1173_v21, %v1172_v18  ;;  %v1203_v34 = vadd.f32 %v1202_v32, %v1201_v30 }
 0xb22   : > { %v1213_v31 = vpop.xlane.xlu0 %1212 }
 0xb23   : > { %v1175_v25 = vrot.slane %v1174_v24, 1  ;;  %v1186_v26 = vadd.f32 %v1185_v23, %v1184_v22  ;;  %v1214_v33 = vrot.slane %v1213_v31, 4  ;;  %v1204_v36 = vrot.slane %v1203_v34, 2 }
 0xb25   : > { %v1176_v27 = vadd.f32 %v1175_v25, %v1174_v24  ;;  %v1187_v28 = vrot.slane %v1186_v26, 1  ;;  %v1215_v35 = vadd.f32 %v1214_v33, %v1213_v31  ;;  %v1205_v39 = vadd.f32 %v1204_v36, %v1203_v34 }
 0xb27   : > { %2417 = vpush %v1176_v27  ;;  %v1188_v29 = vadd.f32 %v1187_v28, %v1186_v26  ;;  %v1216_v37 = vrot.slane %v1215_v35, 2  ;;  %v1206_v41 = vrot.slane %v1205_v39, 1 }
 0xb29   : > { %2419 = vpush %v1188_v29  ;;  %v1217_v40 = vadd.f32 %v1216_v37, %v1215_v35  ;;  %v1207_v48 = vadd.f32 %v1206_v41, %v1205_v39 }
 0xb2b   : > { %v1218_v44 = vrot.slane %v1217_v40, 1 }
 0xb2d   : > { %v1219_v49 = vadd.f32 %v1218_v44, %v1217_v40 }
 0xb58   : > { %s2418_s11 = spop %2417 }
 0xb59   : > { %s3195_s12 = smul.f32 0.00390625, %s2418_s11 }
 0xb5a   : > { %s2420_s30 = spop %2419 }
 0xb5b   : > { %s1192_s13 = smul.f32 %s3195_s12, %s3195_s12  ;;  %v1230_v43 = vstv %s3195_s12 }
 0xb5c   : > { %s1191_s14 = smul.f32 0.00390625, %s2420_s30  ;;  %v1242_v52 = vsub.f32 %v3172_v1, %v1230_v43  ;;  %v1244_v53 = vsub.f32 %v3175_v3, %v1230_v43 }
 0xb5e   : > { %s1193_s15 = ssub.f32 %s1191_s14, %s1192_s13 }
 0xb60   : > { %s1194_s6 = smax.f32 %s2803_s16, %s1193_s15 }
 0xb61   : > { %s1195_s23 = sadd.f32 1e-05, %s1194_s6 }
 0xb63   : > { %v1196_v38 = vstv %s1195_s23 }
 0xb64   : > { %2659 = vrsqrt.f32 %v1196_v38 }
 0xb6e   : > { %v2660_v46 = vpop.eup %2659 }
 0xb6f   : > { %2421 = vpush %v2660_v46 }
 0xb70   : > { %2423 = vpush %v1207_v48 }
 0xb71   : > { %2425 = vpush %v1219_v49 }
 0xba0   : > { %s2422_s17 = spop %2421 }
 0xba1   : > { %v1232_v42 = vstv %s2422_s17  ;;  %s2424_s25 = spop %2423 }
 0xba2   : > { %v1234_v51 = vmul.f32 %v2949_v47, %v1232_v42  ;;  %s1221_s26 = smul.f32 0.00390625, %s2424_s25  ;;  %s2426_s9 = spop %2425 }
 0xba3   : > { %s1222_s8 = smul.f32 0.00390625, %s2426_s9 }
 0xba4   : > { %v1249_v54 = vrot.slane %v1234_v51, %v2952_v50  ;;  %s1223_s10 = smul.f32 %s1221_s26, %s1221_s26  ;;  %v1231_v60 = vstv %s1221_s26 }
 0xba5   : > { %v1243_v63 = vsub.f32 %v3187_v12, %v1231_v60  ;;  %v1245_v0 = vsub.f32 %v3184_v10, %v1231_v60  ;;  %v1258_v10 = vld [vmem:[#allocation2 + $0xd0] sm:$0xff] }
 0xba6   : > { %v1254_v55 = vmul.f32 %v1249_v54, %v1242_v52  ;;  %v1256_v56 = vmul.f32 %v1249_v54, %v1244_v53  ;;  %s1224_s11 = ssub.f32 %s1222_s8, %s1223_s10 }
 0xba8   : > { %s1225_s30 = smax.f32 %s2803_s16, %s1224_s11  ;;  %v2341_v57 = vpack.c.bf16 %v1256_v56, %v1254_v55 }
 0xba9   : > { %s1226_s12 = sadd.f32 1e-05, %s1225_s30 }
 0xbab   : > { %v1227_v58 = vstv %s1226_s12 }
 0xbac   : > { %2661 = vrsqrt.f32 %v1227_v58 }
 0xbb6   : > { %v2662_v59 = vpop.eup %2661 }
 0xbb7   : > { %2427 = vpush %v2662_v59 }
 0xbe8   : > { %s2428_s13 = spop %2427 }
 0xbe9   : > { %v1233_v61 = vstv %s2428_s13 }
 0xbea   : > { %v1235_v62 = vmul.f32 %v2949_v47, %v1233_v61 }
 0xbec   : > { %v1253_v1 = vrot.slane %v1235_v62, %v2952_v50 }
 0xbee   : > { %v1255_v2 = vmul.f32 %v1253_v1, %v1243_v63  ;;  %v1257_v3 = vmul.f32 %v1253_v1, %v1245_v0 }
 0xbf0   : > { %v2339_v4 = vpack.c.bf16 %v1257_v3, %v1255_v2 }
 0xbf2   : > { %2340 = vmatprep.subr.bf16.mxu0 %v2339_v4 }
 0xbf3   : > { %2342 = vmatpush1.bf16.msra.mxu0 %v2341_v57 }
 0xbf6   : > { %2278 = vmatmul.mubr.msk.f32.vlgmr.msra.gmra.mrb[14].mxu0 %vm806_vm6, %v2275_v5 }
 0xbf7   : > { %1343 = vmatprep.mubr.f32.mxu0 %v2802_v8 }
 0xbfa   : > { %2279 = vmatmul.mubr.msk.f32.gmra.mrb[16].mxu0 %vm806_vm6, %v2276_v6 }
 0xbfb   : > { %1349 = vmatprep.mubr.f32.mxu0 %v2802_v8 }
 0xcc9   : > { %v1339_v11 = vpop.f32.mrb[14].mxu0 }
 0xcca   : > { %v1341_v12 = vpop.f32.mrb[15].mxu0  ;;  %v3220_v14 = vadd.f32 %v1339_v11, %v1258_v10 }
 0xccb   : > { %v3226_v20 = vadd.f32 %v1341_v12, %v1259_v16 }
 0xccc   : > { %v1368_v22 = vmul.f32 %v3220_v14, %v3220_v14 }
 0xccd   : > { %v1345_v17 = vpop.f32.mrb[16].mxu0  ;;  %v1399_v27 = vmul.f32 %v3226_v20, %v3226_v20 }
 0xcce   : > { %v3222_v9 = vadd.f32 %v1345_v17, %v1260_v13  ;;  %v1347_v7 = vpop.f32.mrb[17].mxu0 }
 0xccf   : > { %v3224_v18 = vadd.f32 %v1347_v7, %v1261_v15 }
 0xcd0   : > { %v1358_v21 = vadd.f32 %v3222_v9, %v3220_v14  ;;  %v1369_v23 = vmul.f32 %v3222_v9, %v3222_v9 }
 0xcd1   : > { %v1400_v25 = vmul.f32 %v3224_v18, %v3224_v18  ;;  %v1389_v26 = vadd.f32 %v3224_v18, %v3226_v20 }
 0xcd2   : > { %1359 = vadd.xlane.f32.xlu0 %v1358_v21  ;;  %v1370_v24 = vadd.f32 %v1369_v23, %v1368_v22 }
 0xcd3   : > { %v1401_v28 = vadd.f32 %v1400_v25, %v1399_v27 }
 0xcd4   : > { %1371 = vadd.xlane.f32.xlu1 %v1370_v24 }
 0xcd6   : > { %1390 = vadd.xlane.f32.xlu0 %v1389_v26 }
 0xcd8   : > { %1402 = vadd.xlane.f32.xlu1 %v1401_v28 }
 0xd5f   : > { %v1360_v29 = vpop.xlane.xlu0 %1359 }
 0xd60   : > { %v1361_v30 = vrot.slane %v1360_v29, 4 }
 0xd61   : > { %v1372_v31 = vpop.xlane.xlu1 %1371 }
 0xd62   : > { %v1362_v32 = vadd.f32 %v1361_v30, %v1360_v29  ;;  %v1373_v33 = vrot.slane %v1372_v31, 4 }
 0xd63   : > { %v1391_v46 = vpop.xlane.xlu0 %1390 }
 0xd64   : > { %v1363_v34 = vrot.slane %v1362_v32, 2  ;;  %v1374_v35 = vadd.f32 %v1373_v33, %v1372_v31  ;;  %v1392_v49 = vrot.slane %v1391_v46, 4 }
 0xd65   : > { %v1403_v48 = vpop.xlane.xlu1 %1402 }
 0xd66   : > { %v1375_v36 = vrot.slane %v1374_v35, 2  ;;  %v1364_v37 = vadd.f32 %v1363_v34, %v1362_v32  ;;  %v1404_v43 = vrot.slane %v1403_v48, 4  ;;  %v1393_v42 = vadd.f32 %v1392_v49, %v1391_v46 }
 0xd68   : > { %v1365_v38 = vrot.slane %v1364_v37, 1  ;;  %v1376_v39 = vadd.f32 %v1375_v36, %v1374_v35  ;;  %v1405_v51 = vadd.f32 %v1404_v43, %v1403_v48  ;;  %v1394_v52 = vrot.slane %v1393_v42, 2  ;;  %v2281_v43 = vld [vmem:[%s3460_s2 + $0x40] sm:$0xff] }
 0xd6a   : > { %v1366_v40 = vadd.f32 %v1365_v38, %v1364_v37  ;;  %v1377_v41 = vrot.slane %v1376_v39, 1  ;;  %v1406_v53 = vrot.slane %v1405_v51, 2  ;;  %v1395_v55 = vadd.f32 %v1394_v52, %v1393_v42  ;;  %v2282_v42 = vld [vmem:[%s3460_s2 + $0x48] sm:$0xff]  ;;  %v1478_v52 = vld [vmem:[#allocation2 + $0x100] sm:$0xff] }
 0xd6c   : > { %2429 = vpush %v1366_v40  ;;  %v1378_v44 = vadd.f32 %v1377_v41, %v1376_v39  ;;  %v1407_v56 = vadd.f32 %v1406_v53, %v1405_v51  ;;  %v1396_v57 = vrot.slane %v1395_v55, 1  ;;  %v2284_v51 = vld [vmem:[%s3460_s2 + $0x58] sm:$0xff]  ;;  %v1479_v53 = vld [vmem:[#allocation2 + $0x108] sm:$0xff] }
 0xd6e   : > { %2431 = vpush %v1378_v44  ;;  %v1408_v58 = vrot.slane %v1407_v56, 1  ;;  %v1397_v60 = vadd.f32 %v1396_v57, %v1395_v55 }
 0xd70   : > { %v1409_v61 = vadd.f32 %v1408_v58, %v1407_v56  ;;  %v1480_v58 = vld [vmem:[#allocation2 + $0x110] sm:$0xff] }
 0xd9d   : > { %s2430_s17 = spop %2429 }
 0xd9e   : > { %s3240_s25 = smul.f32 0.00390625, %s2430_s17 }
 0xd9f   : > { %s2432_s26 = spop %2431 }
 0xda0   : > { %s1382_s9 = smul.f32 %s3240_s25, %s3240_s25  ;;  %v1420_v62 = vstv %s3240_s25 }
 0xda1   : > { %s1381_s8 = smul.f32 0.00390625, %s2432_s26  ;;  %v1432_v1 = vsub.f32 %v3220_v14, %v1420_v62  ;;  %v1434_v2 = vsub.f32 %v3222_v9, %v1420_v62 }
 0xda3   : > { %s1383_s10 = ssub.f32 %s1381_s8, %s1382_s9  ;;  %s2807_s9 = smov 8  }
 0xda5   : > { %s1384_s11 = smax.f32 %s2803_s16, %s1383_s10 }
 0xda6   : > { %s1385_s30 = sadd.f32 1e-05, %s1384_s11 }
 0xda8   : > { %v1386_v54 = vstv %s1385_s30 }
 0xda9   : > { %2663 = vrsqrt.f32 %v1386_v54 }
 0xdb3   : > { %v2664_v59 = vpop.eup %2663 }
 0xdb4   : > { %2433 = vpush %v2664_v59 }
 0xdb5   : > { %2435 = vpush %v1397_v60  ;;  %v1481_v60 = vld [vmem:[#allocation2 + $0x118] sm:$0xff] }
 0xdb6   : > { %2437 = vpush %v1409_v61 }
 0xde5   : > { %s2434_s12 = spop %2433 }
 0xde6   : > { %v1422_v63 = vstv %s2434_s12  ;;  %s2436_s13 = spop %2435 }
 0xde7   : > { %v1424_v0 = vmul.f32 %v2949_v47, %v1422_v63  ;;  %s1411_s14 = smul.f32 0.00390625, %s2436_s13  ;;  %s2438_s15 = spop %2437 }
 0xde8   : > { %s1412_s6 = smul.f32 0.00390625, %s2438_s15 }
 0xde9   : > { %v1439_v3 = vrot.slane %v1424_v0, %v2952_v50  ;;  %s1413_s23 = smul.f32 %s1411_s14, %s1411_s14  ;;  %v1421_v13 = vstv %s1411_s14 }
 0xdea   : > { %v1433_v16 = vsub.f32 %v3226_v20, %v1421_v13  ;;  %v1435_v17 = vsub.f32 %v3224_v18, %v1421_v13 }
 0xdeb   : > { %v1444_v4 = vmul.f32 %v1439_v3, %v1432_v1  ;;  %v1446_v5 = vmul.f32 %v1439_v3, %v1434_v2  ;;  %s1414_s17 = ssub.f32 %s1412_s6, %s1413_s23 }
 0xded   : > { %s1415_s26 = smax.f32 %s2803_s16, %s1414_s17  ;;  %v2580_v6 = vpack.i.bf16 %v1446_v5, %v1444_v4  ;;  %v2353_v10 = vpack.c.bf16 %v1446_v5, %v1444_v4  ;;  %v1482_v5 = vld [vmem:[#allocation2 + $0x120] sm:$0xff] }
 0xdee   : > { %s1416_s25 = sadd.f32 1e-05, %s1415_s26 }
 0xdef   : > { %2581 = vrot.lane.b32.xlu1 %v2580_v6, %s2806_s7  ;;  %2576 = vrot.lane.b32.xlu0 %v2580_v6, %s2807_s9 }
 0xdf0   : > { %v1417_v11 = vstv %s1416_s25 }
 0xdf1   : > { %2665 = vrsqrt.f32 %v1417_v11 }
 0xdfb   : > { %v2666_v12 = vpop.eup %2665 }
 0xdfc   : > { %2439 = vpush %v2666_v12 }
 0xe2d   : > { %s2440_s8 = spop %2439 }
 0xe2e   : > { %v1423_v14 = vstv %s2440_s8 }
 0xe2f   : > { %v1425_v15 = vmul.f32 %v2949_v47, %v1423_v14  ;;  %v1484_v14 = vld [vmem:[#allocation2 + $0x130] sm:$0xff] }
 0xe31   : > { %v1443_v9 = vrot.slane %v1425_v15, %v2952_v50 }
 0xe33   : > { %v1445_v7 = vmul.f32 %v1443_v9, %v1433_v16  ;;  %v1447_v21 = vmul.f32 %v1443_v9, %v1435_v17  ;;  %v1485_v16 = vld [vmem:[#allocation2 + $0x138] sm:$0xff] }
 0xe35   : > { %v2585_v22 = vpack.i.bf16 %v1447_v21, %v1445_v7  ;;  %v2351_v23 = vpack.c.bf16 %v1447_v21, %v1445_v7 }
 0xe37   : > { %2586 = vrot.lane.b32.xlu1 %v2585_v22, %s2807_s9 }
 0xe3b   : > { %2591 = vrot.lane.b32.xlu1 %v2585_v22, %s2806_s7 }
 0xe61   : > { %v2582_v24 = vpop.permute.xlu1 %2581  ;;  %v2577_v25 = vpop.permute.xlu0 %2576 }
 0xe62   : > { %v2579_v27 = vunpack.i.h.bf16 %v2577_v25  ;;  %v2578_v28 = vunpack.i.l.bf16 %v2577_v25  ;;  %v2584_v36 = vunpack.i.h.bf16 %v2582_v24  ;;  %v2583_v37 = vunpack.i.l.bf16 %v2582_v24 }
 0xea9   : > { %v2587_v26 = vpop.permute.xlu1 %2586 }
 0xeaa   : > { %v2589_v29 = vunpack.i.h.bf16 %v2587_v26  ;;  %v2588_v20 = vunpack.i.l.bf16 %v2587_v26 }
 0xeac   : > { %v1459_v30 = vsel %vm1456_vm8, %v2588_v20, %v2578_v28  ;;  %v1460_v18 = vsel %vm1456_vm8, %v2589_v29, %v2579_v27  ;;  %v1457_v31 = vsel %vm1456_vm8, %v2578_v28, %v2588_v20  ;;  %v1458_v32 = vsel %vm1456_vm8, %v2579_v27, %v2589_v29 }
 0xead   : > { %v2345_v33 = vpack.c.bf16 %v1460_v18, %v1459_v30  ;;  %v2592_v34 = vpop.permute.xlu1 %2591  ;;  %v2343_v35 = vpack.c.bf16 %v1458_v32, %v1457_v31 }
 0xeae   : > { %v2594_v38 = vunpack.i.h.bf16 %v2592_v34  ;;  %v2593_v39 = vunpack.i.l.bf16 %v2592_v34 }
 0xeaf   : > { %2344 = vmatprep.subr.bf16.mxu1 %v2343_v35 }
 0xeb0   : > { %v1472_v40 = vsel %vm997_vm7, %v2594_v38, %v2584_v36  ;;  %v1471_v41 = vsel %vm997_vm7, %v2593_v39, %v2583_v37  ;;  %2346 = vmatpush1.bf16.msra.mxu1 %v2345_v33  ;;  %v1469_v44 = vsel %vm997_vm7, %v2583_v37, %v2593_v39  ;;  %v1470_v46 = vsel %vm997_vm7, %v2584_v36, %v2594_v38 }
 0xeb1   : > { %v2349_v48 = vpack.c.bf16 %v1472_v40, %v1471_v41  ;;  %v2347_v49 = vpack.c.bf16 %v1470_v46, %v1469_v44 }
 0xeb3   : > { %2348 = vmatprep.subr.bf16.mxu1 %v2347_v49 }
 0xeb4   : > { %2350 = vmatpush1.bf16.msra.mxu1 %v2349_v48 }
 0xeb5   : > { %2352 = vmatprep.subr.bf16.mxu1 %v2351_v23 }
 0xeb8   : > { %2354 = vmatpush1.bf16.msra.mxu1 %v2353_v10  ;;  %v1483_v10 = vld [vmem:[#allocation2 + $0x128] sm:$0xff] }
 0xebb   : > { %2285 = vmatmul.mubr.msk.f32.vlgmr.msra.gmra.mrb[12].mxu1 %vm565_vm5, %v2281_v43 }
 0xebc   : > { %1568 = vmatprep.mubr.f32.mxu1 %v2802_v8 }
 0xebf   : > { %2286 = vmatmul.mubr.msk.f32.gmra.mrb[14].mxu1 %vm565_vm5, %v2282_v42 }
 0xec0   : > { %1574 = vmatprep.mubr.f32.mxu1 %v2802_v8 }
 0xec3   : > { %2287 = vmatmul.mubr.msk.f32.gmra.mrb[16].mxu1 %vm565_vm5, %v2283_v45 }
 0xec4   : > { %1580 = vmatprep.mubr.f32.mxu1 %v2802_v8 }
 0xec7   : > { %2288 = vmatmul.mubr.msk.f32.gmra.mrb[18].mxu1 %vm565_vm5, %v2284_v51 }
 0xec8   : > { %1971 = vmatprep.mubr.f32.mxu1 %v2802_v8 }
 0xf8e   : > { %v1564_v54 = vpop.f32.mrb[12].mxu1 }
 0xf8f   : > { %v1565_v55 = vadd.f32 %v1564_v54, %v1478_v52  ;;  %v1566_v56 = vpop.f32.mrb[13].mxu1 }
 0xf90   : > { %v1567_v57 = vadd.f32 %v1566_v56, %v1479_v53 }
 0xf91   : > { %v2289_v59 = vmul.f32 -1.442695, %v1565_v55 }
 0xf92   : > { %v2290_v61 = vmul.f32 -1.442695, %v1567_v57  ;;  %v1570_v62 = vpop.f32.mrb[14].mxu1 }
 0xf93   : > { %2667 = vpow2.f32 %v2289_v59  ;;  %v1571_v63 = vadd.f32 %v1570_v62, %v1480_v58  ;;  %v1572_v0 = vpop.f32.mrb[15].mxu1 }
 0xf94   : > { %2669 = vpow2.f32 %v2290_v61  ;;  %v1573_v1 = vadd.f32 %v1572_v0, %v1481_v60 }
 0xf95   : > { %v2291_v2 = vmul.f32 -1.442695, %v1571_v63 }
 0xf96   : > { %v2292_v3 = vmul.f32 -1.442695, %v1573_v1  ;;  %v1576_v4 = vpop.f32.mrb[16].mxu1 }
 0xf97   : > { %2671 = vpow2.f32 %v2291_v2  ;;  %v1578_v6 = vpop.f32.mrb[17].mxu1  ;;  %v1577_v11 = vadd.f32 %v1576_v4, %v1482_v5 }
 0xf98   : > { %2673 = vpow2.f32 %v2292_v3  ;;  %v1579_v13 = vadd.f32 %v1578_v6, %v1483_v10 }
 0xf99   : > { %2675 = vtanh.f32 %v1577_v11 }
 0xf9a   : > { %v1582_v12 = vpop.f32.mrb[18].mxu1  ;;  %2677 = vtanh.f32 %v1579_v13 }
 0xf9b   : > { %v1584_v15 = vpop.f32.mrb[19].mxu1  ;;  %v1583_v21 = vadd.f32 %v1582_v12, %v1484_v14 }
 0xf9c   : > { %v1585_v23 = vadd.f32 %v1584_v15, %v1485_v16 }
 0xf9d   : > { %v2668_v17 = vpop.eup %2667 }
 0xf9e   : > { %v2670_v9 = vpop.eup %2669  ;;  %v1599_v7 = vadd.f32 1.0, %v2668_v17 }
 0xf9f   : > { %v1600_v22 = vadd.f32 1.0, %v2670_v9 }
 0xfa0   : > { %2679 = vrcp.f32 %v1599_v7  ;;  %v2277_v7 = vld [vmem:[%s3461_s3 + $0x28] sm:$0xf] }
 0xfa1   : > { %v2672_v24 = vpop.eup %2671  ;;  %2681 = vrcp.f32 %v1600_v22  ;;  %2280 = vmatmul.mubr.msk.f32.gmra.mrb[4].mxu0 %vm806_vm6, %v2277_v7 }
 0xfa2   : > { %v2674_v25 = vpop.eup %2673  ;;  %v1601_v26 = vadd.f32 1.0, %v2672_v24  ;;  %2683 = vtanh.f32 %v1583_v21  ;;  %1792 = vmatprep.mubr.f32.mxu0 %v2802_v8 }
 0xfa3   : > { %v1602_v27 = vadd.f32 1.0, %v2674_v25  ;;  %2685 = vtanh.f32 %v1585_v23  ;;  %v2676_v28 = vpop.eup %2675 }
 0xfa4   : > { %2687 = vrcp.f32 %v1601_v26  ;;  %v2678_v29 = vpop.eup %2677 }
 0xfa5   : > { %2689 = vrcp.f32 %v1602_v27 }
 0xfaa   : > { %v2680_v20 = vpop.eup %2679 }
 0xfab   : > { %v2682_v30 = vpop.eup %2681  ;;  %v1615_v18 = vmul.f32 %v2680_v20, %v2676_v28 }
 0xfac   : > { %v2684_v31 = vpop.eup %2683  ;;  %v1616_v32 = vmul.f32 %v2682_v30, %v2678_v29 }
 0xfad   : > { %v2686_v33 = vpop.eup %2685  ;;  %v3287_v37 = vmul.f32 %v1615_v18, %v3039_v19 }
 0xfae   : > { %v2688_v34 = vpop.eup %2687  ;;  %v3302_v49 = vmul.f32 %v1616_v32, %v3039_v19 }
 0xfaf   : > { %v2690_v35 = vpop.eup %2689  ;;  %v1617_v36 = vmul.f32 %v2688_v34, %v2684_v31  ;;  %v1637_v41 = vmul.f32 %v3287_v37, %v3287_v37 }
 0xfb0   : > { %v1618_v38 = vmul.f32 %v2690_v35, %v2686_v33  ;;  %v1668_v45 = vmul.f32 %v3302_v49, %v3302_v49 }
 0xfb1   : > { %v3290_v39 = vmul.f32 %v1617_v36, %v3039_v19 }
 0xfb2   : > { %v3299_v46 = vmul.f32 %v1618_v38, %v3039_v19 }
 0xfb3   : > { %v1627_v40 = vadd.f32 %v3290_v39, %v3287_v37  ;;  %v1638_v44 = vmul.f32 %v3290_v39, %v3290_v39 }
 0xfb4   : > { %v1658_v43 = vadd.f32 %v3299_v46, %v3302_v49  ;;  %v1669_v42 = vmul.f32 %v3299_v46, %v3299_v46 }
 0xfb5   : > { %1628 = vadd.xlane.f32.xlu0 %v1627_v40  ;;  %v1639_v48 = vadd.f32 %v1638_v44, %v1637_v41  ;;  %v2293_v40 = vld [vmem:[%s3461_s3 + $0x30] sm:$0xff]  ;;  %v2294_v41 = vld [vmem:[%s3461_s3 + $0x38] sm:$0xff]  ;;  %v2295_v44 = vld [vmem:[%s3461_s3 + $0x40] sm:$0xf] }
 0xfb6   : > { %v1670_v51 = vadd.f32 %v1669_v42, %v1668_v45 }
 0xfb7   : > { %1640 = vadd.xlane.f32.xlu1 %v1639_v48  ;;  %v1262_v48 = vld [vmem:[#allocation2 + $0xf0] sm:$0xf] }
 0xfb9   : > { %1659 = vadd.xlane.f32.xlu0 %v1658_v43  ;;  %v1263_v43 = vld [vmem:[#allocation2 + $0xf8] sm:$0xf] }
 0xfbd   : > { %1671 = vadd.xlane.f32.xlu0 %v1670_v51 }
0x1042   : > { %v1629_v52 = vpop.xlane.xlu0 %1628 }
0x1043   : > { %v1630_v53 = vrot.slane %v1629_v52, 4 }
0x1044   : > { %v1641_v54 = vpop.xlane.xlu1 %1640 }
0x1045   : > { %v1631_v55 = vadd.f32 %v1630_v53, %v1629_v52  ;;  %v1642_v56 = vrot.slane %v1641_v54, 4  ;;  %v1717_v52 = vld [vmem:[#allocation2 + $0x160] sm:$0xf] }
0x1046   : > { %v1660_v1 = vpop.xlane.xlu0 %1659 }
0x1047   : > { %v1632_v19 = vrot.slane %v1631_v55, 2  ;;  %v1643_v57 = vadd.f32 %v1642_v56, %v1641_v54  ;;  %v1661_v3 = vrot.slane %v1660_v1, 4  ;;  %v1718_v54 = vld [vmem:[#allocation2 + $0x168] sm:$0xf] }
0x1049   : > { %v1644_v58 = vrot.slane %v1643_v57, 2  ;;  %v1633_v59 = vadd.f32 %v1632_v19, %v1631_v55  ;;  %v1662_v5 = vadd.f32 %v1661_v3, %v1660_v1 }
0x104a   : > { %v1672_v2 = vpop.xlane.xlu0 %1671 }
0x104b   : > { %v1634_v60 = vrot.slane %v1633_v59, 1  ;;  %v1645_v61 = vadd.f32 %v1644_v58, %v1643_v57  ;;  %v1673_v4 = vrot.slane %v1672_v2, 4  ;;  %v1663_v10 = vrot.slane %v1662_v5, 2 }
0x104d   : > { %v1635_v62 = vadd.f32 %v1634_v60, %v1633_v59  ;;  %v1646_v63 = vrot.slane %v1645_v61, 1  ;;  %v1674_v6 = vadd.f32 %v1673_v4, %v1672_v2  ;;  %v1664_v13 = vadd.f32 %v1663_v10, %v1662_v5 }
0x104f   : > { %2441 = vpush %v1635_v62  ;;  %v1647_v0 = vadd.f32 %v1646_v63, %v1645_v61  ;;  %v1675_v11 = vrot.slane %v1674_v6, 2  ;;  %v1665_v15 = vrot.slane %v1664_v13, 1 }
0x1051   : > { %2443 = vpush %v1647_v0  ;;  %v1676_v14 = vadd.f32 %v1675_v11, %v1674_v6  ;;  %v1666_v9 = vadd.f32 %v1665_v15, %v1664_v13 }
0x1053   : > { %v1677_v16 = vrot.slane %v1676_v14, 1 }
0x1055   : > { %v1678_v21 = vadd.f32 %v1677_v16, %v1676_v14 }
0x1080   : > { %s2442_s6 = spop %2441 }
0x1081   : > { %s3310_s23 = smul.f32 0.00390625, %s2442_s6 }
0x1082   : > { %s2444_s17 = spop %2443 }
0x1083   : > { %s1651_s26 = smul.f32 %s3310_s23, %s3310_s23  ;;  %v1689_v22 = vstv %s3310_s23 }
0x1084   : > { %s1650_s25 = smul.f32 0.00390625, %s2444_s17  ;;  %v1701_v25 = vsub.f32 %v3287_v37, %v1689_v22  ;;  %v1703_v26 = vsub.f32 %v3290_v39, %v1689_v22 }
0x1086   : > { %s1652_s9 = ssub.f32 %s1650_s25, %s1651_s26 }
0x1088   : > { %s1653_s8 = smax.f32 %s2803_s16, %s1652_s9 }
0x1089   : > { %s1654_s7 = sadd.f32 1e-05, %s1653_s8 }
0x108b   : > { %v1655_v12 = vstv %s1654_s7 }
0x108c   : > { %2691 = vrsqrt.f32 %v1655_v12 }
0x1096   : > { %v2692_v17 = vpop.eup %2691 }
0x1097   : > { %2445 = vpush %v2692_v17 }
0x1098   : > { %2447 = vpush %v1666_v9 }
0x1099   : > { %2449 = vpush %v1678_v21 }
0x10c8   : > { %s2446_s30 = spop %2445 }
0x10c9   : > { %v1691_v23 = vstv %s2446_s30  ;;  %s2448_s12 = spop %2447 }
0x10ca   : > { %v1693_v24 = vmul.f32 %v2949_v47, %v1691_v23  ;;  %s1680_s13 = smul.f32 0.00390625, %s2448_s12  ;;  %s2450_s14 = spop %2449 }
0x10cb   : > { %s1681_s15 = smul.f32 0.00390625, %s2450_s14 }
0x10cc   : > { %v1708_v27 = vrot.slane %v1693_v24, %v2952_v50  ;;  %s1682_s6 = smul.f32 %s1680_s13, %s1680_s13  ;;  %v1690_v31 = vstv %s1680_s13 }
0x10cd   : > { %v1702_v34 = vsub.f32 %v3302_v49, %v1690_v31  ;;  %v1704_v35 = vsub.f32 %v3299_v46, %v1690_v31  ;;  %v804_v46 = vld [vmem:[#allocation2 + $0x80] sm:$0xf]  ;;  %v805_v49 = vld [vmem:[#allocation2 + $0x88] sm:$0xf] }
0x10ce   : > { %v1713_v28 = vmul.f32 %v1708_v27, %v1701_v25  ;;  %v1715_v29 = vmul.f32 %v1708_v27, %v1703_v26  ;;  %s1683_s17 = ssub.f32 %s1681_s15, %s1682_s6  ;;  %v2359_v51 = vadd.f32 %v1262_v48, %v804_v46  ;;  %v2362_v53 = vadd.f32 %v1263_v43, %v805_v49 }
0x10d0   : > { %s1684_s26 = smax.f32 %s2803_s16, %s1683_s17  ;;  %v2357_v20 = vpack.c.bf16 %v1715_v29, %v1713_v28  ;;  %v2360_v19 = vadd.f32 %v2359_v51, %v1717_v52  ;;  %v2363_v57 = vadd.f32 %v2362_v53, %v1718_v54  ;;  %v1811_v54 = vld [vmem:[%s3459_s1 + $0x10] sm:$0xf] }
0x10d1   : > { %s1685_s23 = sadd.f32 1e-05, %s1684_s26 }
0x10d3   : > { %v1686_v30 = vstv %s1685_s23 }
0x10d4   : > { %2693 = vrsqrt.f32 %v1686_v30 }
0x10de   : > { %v2694_v18 = vpop.eup %2693 }
0x10df   : > { %2451 = vpush %v2694_v18 }
0x1110   : > { %s2452_s25 = spop %2451 }
0x1111   : > { %v1692_v32 = vstv %s2452_s25 }
0x1112   : > { %v1694_v33 = vmul.f32 %v2949_v47, %v1692_v32 }
0x1114   : > { %v1712_v36 = vrot.slane %v1694_v33, %v2952_v50 }
0x1116   : > { %v1714_v37 = vmul.f32 %v1712_v36, %v1702_v34  ;;  %v1716_v38 = vmul.f32 %v1712_v36, %v1704_v35 }
0x1118   : > { %v2355_v39 = vpack.c.bf16 %v1716_v38, %v1714_v37 }
0x111a   : > { %2356 = vmatprep.subr.bf16.mxu0 %v2355_v39 }
0x111b   : > { %2358 = vmatpush1.bf16.msra.mxu0 %v2357_v20 }
0x111e   : > { %2296 = vmatmul.mubr.msk.f32.vlgmr.msra.gmra.mrb[18].mxu0 %vm806_vm6, %v2293_v40 }
0x111f   : > { %1796 = vmatprep.mubr.f32.mxu0 %v2802_v8 }
0x1122   : > { %2297 = vmatmul.mubr.msk.f32.gmra.mrb[20].mxu0 %vm806_vm6, %v2294_v41 }
0x1123   : > { %1800 = vmatprep.mubr.f32.mxu0 %v2802_v8 }
0x1126   : > { %2298 = vmatmul.mubr.msk.f32.gmra.mrb[4].mxu0 %vm806_vm6, %v2295_v44 }
0x11f1   : > { %v1794_v42 = vpop.f32.mrb[18].mxu0 }
0x11f2   : > { %v1795_v45 = vpop.f32.mrb[19].mxu0 }
0x11f5   : > { %v1798_v55 = vpop.f32.mrb[20].mxu0 }
0x11f6   : > { %v1799_v56 = vpop.f32.mrb[21].mxu0  ;;  %v1896_v55 = vld [vmem:[#allocation2 + $0x170] sm:$0xf] }
0x11f7   : > { %v1897_v56 = vld [vmem:[#allocation2 + $0x178] sm:$0xf] }
0x11f9   : > { %v1802_v58 = vpop.f32.mrb[4].mxu0 }
0x11fa   : > { %v2361_v59 = vadd.f32 %v2360_v19, %v1802_v58  ;;  %v1804_v60 = vpop.f32.mrb[5].mxu0 }
0x11fb   : > { %v2364_v61 = vadd.f32 %v2363_v57, %v1804_v60 }
0x11fc   : > { %v3344_v62 = vmax.f32 %v2361_v59, 0.0 }
0x11fd   : > { %v3346_v63 = vmax.f32 %v2364_v61, 0.0 }
0x11fe   : > { %v1812_v0 = vsel %vm249_vm0, %v3344_v62, 0.0  ;;  %v1822_v1 = vmul.f32 %v3344_v62, %v3344_v62 }
0x11ff   : > { %1813 = vadd.xlane.f32.xlu0 %v1812_v0  ;;  %v1852_v3 = vmul.f32 %v3346_v63, %v3346_v63  ;;  %v1842_v4 = vsel %vm249_vm0, %v3346_v63, 0.0 }
0x1200   : > { %v1823_v2 = vsel %vm249_vm0, %v1822_v1, 0.0 }
0x1201   : > { %1824 = vadd.xlane.f32.xlu1 %v1823_v2  ;;  %v1853_v5 = vsel %vm249_vm0, %v1852_v3, 0.0 }
0x1203   : > { %1843 = vadd.xlane.f32.xlu0 %v1842_v4 }
0x1205   : > { %1854 = vadd.xlane.f32.xlu1 %v1853_v5 }
0x128c   : > { %v1814_v6 = vpop.xlane.xlu0 %1813 }
0x128d   : > { %v1815_v10 = vrot.slane %v1814_v6, 4 }
0x128e   : > { %v1825_v11 = vpop.xlane.xlu1 %1824 }
0x128f   : > { %v1816_v12 = vadd.f32 %v1815_v10, %v1814_v6  ;;  %v1826_v13 = vrot.slane %v1825_v11, 4 }
0x1290   : > { %v1844_v24 = vpop.xlane.xlu0 %1843 }
0x1291   : > { %v1817_v14 = vrot.slane %v1816_v12, 2  ;;  %v1827_v15 = vadd.f32 %v1826_v13, %v1825_v11  ;;  %v1845_v26 = vrot.slane %v1844_v24, 4 }
0x1292   : > { %v1855_v25 = vpop.xlane.xlu1 %1854 }
0x1293   : > { %v1828_v16 = vrot.slane %v1827_v15, 2  ;;  %v1818_v17 = vadd.f32 %v1817_v14, %v1816_v12  ;;  %v1856_v27 = vrot.slane %v1855_v25, 4  ;;  %v1846_v28 = vadd.f32 %v1845_v26, %v1844_v24 }
0x1295   : > { %v1819_v9 = vrot.slane %v1818_v17, 1  ;;  %v1829_v7 = vadd.f32 %v1828_v16, %v1827_v15  ;;  %v1857_v29 = vadd.f32 %v1856_v27, %v1855_v25  ;;  %v1847_v20 = vrot.slane %v1846_v28, 2 }
0x1297   : > { %v1820_v21 = vadd.f32 %v1819_v9, %v1818_v17  ;;  %v1830_v22 = vrot.slane %v1829_v7, 1  ;;  %v1858_v30 = vrot.slane %v1857_v29, 2  ;;  %v1848_v31 = vadd.f32 %v1847_v20, %v1846_v28 }
0x1299   : > { %2453 = vpush %v1820_v21  ;;  %v1831_v23 = vadd.f32 %v1830_v22, %v1829_v7  ;;  %v1859_v32 = vadd.f32 %v1858_v30, %v1857_v29  ;;  %v1849_v33 = vrot.slane %v1848_v31, 1 }
0x129b   : > { %2455 = vpush %v1831_v23  ;;  %v1860_v34 = vrot.slane %v1859_v32, 1  ;;  %v1850_v36 = vadd.f32 %v1849_v33, %v1848_v31 }
0x129d   : > { %v1861_v37 = vadd.f32 %v1860_v34, %v1859_v32 }
0x12ca   : > { %s2454_s12 = spop %2453 }
0x12cb   : > { %s3358_s13 = smul.f32 0.015625, %s2454_s12 }
0x12cc   : > { %s2456_s14 = spop %2455 }
0x12cd   : > { %s1835_s15 = smul.f32 %s3358_s13, %s3358_s13  ;;  %v1872_v38 = vstv %s3358_s13 }
0x12ce   : > { %s1834_s6 = smul.f32 0.015625, %s2456_s14  ;;  %v1884_v41 = vsub.f32 %v3344_v62, %v1872_v38 }
0x12d0   : > { %s1836_s17 = ssub.f32 %s1834_s6, %s1835_s15 }
0x12d2   : > { %s1837_s26 = smax.f32 %s2803_s16, %s1836_s17 }
0x12d3   : > { %s1838_s23 = sadd.f32 1e-05, %s1837_s26 }
0x12d5   : > { %v1839_v18 = vstv %s1838_s23 }
0x12d6   : > { %2695 = vrsqrt.f32 %v1839_v18 }
0x12e0   : > { %v2696_v35 = vpop.eup %2695 }
0x12e1   : > { %2457 = vpush %v2696_v35 }
0x12e2   : > { %2459 = vpush %v1850_v36 }
0x12e3   : > { %2461 = vpush %v1861_v37 }
0x1312   : > { %s2458_s25 = spop %2457 }
0x1313   : > { %v1874_v39 = vstv %s2458_s25  ;;  %s2460_s9 = spop %2459 }
0x1314   : > { %v1876_v40 = vmul.f32 %v2949_v47, %v1874_v39  ;;  %s1863_s8 = smul.f32 0.015625, %s2460_s9  ;;  %s2462_s7 = spop %2461 }
0x1315   : > { %s1864_s10 = smul.f32 0.015625, %s2462_s7 }
0x1316   : > { %v1889_v44 = vrot.slane %v1876_v40, %v2952_v50  ;;  %s1865_s11 = smul.f32 %s1863_s8, %s1863_s8  ;;  %v1873_v43 = vstv %s1863_s8 }
0x1317   : > { %v1885_v51 = vsub.f32 %v3346_v63, %v1873_v43 }
0x1318   : > { %v1894_v46 = vmul.f32 %v1889_v44, %v1884_v41  ;;  %s1866_s30 = ssub.f32 %s1864_s10, %s1865_s11 }
0x131a   : > { %s1867_s12 = smax.f32 %s2803_s16, %s1866_s30 }
0x131b   : > { %s1868_s14 = sadd.f32 1e-05, %s1867_s12 }
0x131d   : > { %v1869_v48 = vstv %s1868_s14 }
0x131e   : > { %2697 = vrsqrt.f32 %v1869_v48 }
0x1328   : > { %v2698_v49 = vpop.eup %2697 }
0x1329   : > { %2463 = vpush %v2698_v49 }
0x135a   : > { %s2464_s13 = spop %2463 }
0x135b   : > { %v1875_v42 = vstv %s2464_s13 }
0x135c   : > { %v1877_v45 = vmul.f32 %v2949_v47, %v1875_v42 }
0x135e   : > { %v1893_v52 = vrot.slane %v1877_v45, %v2952_v50 }
0x1360   : > { %v1895_v53 = vmul.f32 %v1893_v52, %v1885_v51  ;;  %v1980_v51 = vld [vmem:[%s3459_s1 + $0x18] sm:$0xf]  ;;  %v2065_v52 = vld [vmem:[#allocation2 + $0x180] sm:$0xf] }
0x1362   : > { %2299 = vmatprep.subr.msk.mxu1 %vm249_vm0, %v1895_v53 }
0x1363   : > { %2300 = vmatpush1.msk.msra.mxu1 %vm249_vm0, %v1894_v46 }
0x1364   : > { %2301 = vmatmul.mubr.msk.f32.vlgmr.msra.gmra.mrb[20].mxu1 %vm349_vm2, %v1811_v54 }
0x1365   : > { %2140 = vmatprep.mubr.f32.mxu1 %v2802_v8 }
0x1437   : > { %v1973_v19 = vpop.f32.mrb[20].mxu1 }
0x1438   : > { %v1974_v57 = vadd.f32 %v1973_v19, %v1896_v55  ;;  %v1975_v58 = vpop.f32.mrb[21].mxu1 }
0x1439   : > { %v1976_v59 = vadd.f32 %v1975_v58, %v1897_v56 }
0x143a   : > { %v3378_v60 = vmax.f32 %v1974_v57, 0.0 }
0x143b   : > { %v3380_v61 = vmax.f32 %v1976_v59, 0.0 }
0x143c   : > { %v1981_v62 = vsel %vm249_vm0, %v3378_v60, 0.0  ;;  %v1991_v63 = vmul.f32 %v3378_v60, %v3378_v60 }
0x143d   : > { %1982 = vadd.xlane.f32.xlu0 %v1981_v62  ;;  %v2021_v8 = vmul.f32 %v3380_v61, %v3380_v61  ;;  %v2011_v1 = vsel %vm249_vm0, %v3380_v61, 0.0 }
0x143e   : > { %v1992_v0 = vsel %vm249_vm0, %v1991_v63, 0.0 }
0x143f   : > { %1993 = vadd.xlane.f32.xlu1 %v1992_v0  ;;  %v2022_v2 = vsel %vm249_vm0, %v2021_v8, 0.0 }
0x1441   : > { %2012 = vadd.xlane.f32.xlu0 %v2011_v1 }
0x1443   : > { %2023 = vadd.xlane.f32.xlu1 %v2022_v2 }
0x14ca   : > { %v1983_v3 = vpop.xlane.xlu0 %1982 }
0x14cb   : > { %v1984_v4 = vrot.slane %v1983_v3, 4 }
0x14cc   : > { %v1994_v5 = vpop.xlane.xlu1 %1993 }
0x14cd   : > { %v1985_v6 = vadd.f32 %v1984_v4, %v1983_v3  ;;  %v1995_v10 = vrot.slane %v1994_v5, 4 }
0x14ce   : > { %v2013_v21 = vpop.xlane.xlu0 %2012 }
0x14cf   : > { %v1986_v11 = vrot.slane %v1985_v6, 2  ;;  %v1996_v12 = vadd.f32 %v1995_v10, %v1994_v5  ;;  %v2014_v23 = vrot.slane %v2013_v21, 4 }
0x14d0   : > { %v2024_v22 = vpop.xlane.xlu1 %2023 }
0x14d1   : > { %v1997_v13 = vrot.slane %v1996_v12, 2  ;;  %v1987_v14 = vadd.f32 %v1986_v11, %v1985_v6  ;;  %v2025_v24 = vrot.slane %v2024_v22, 4  ;;  %v2015_v25 = vadd.f32 %v2014_v23, %v2013_v21 }
0x14d3   : > { %v1988_v15 = vrot.slane %v1987_v14, 1  ;;  %v1998_v16 = vadd.f32 %v1997_v13, %v1996_v12  ;;  %v2026_v26 = vadd.f32 %v2025_v24, %v2024_v22  ;;  %v2016_v27 = vrot.slane %v2015_v25, 2 }
0x14d5   : > { %v1989_v17 = vadd.f32 %v1988_v15, %v1987_v14  ;;  %v1999_v9 = vrot.slane %v1998_v16, 1  ;;  %v2027_v28 = vrot.slane %v2026_v26, 2  ;;  %v2017_v20 = vadd.f32 %v2016_v27, %v2015_v25 }
0x14d7   : > { %2465 = vpush %v1989_v17  ;;  %v2000_v7 = vadd.f32 %v1999_v9, %v1998_v16  ;;  %v2028_v30 = vadd.f32 %v2027_v28, %v2026_v26  ;;  %v2018_v18 = vrot.slane %v2017_v20, 1 }
0x14d9   : > { %2467 = vpush %v2000_v7  ;;  %v2029_v31 = vrot.slane %v2028_v30, 1  ;;  %v2019_v33 = vadd.f32 %v2018_v18, %v2017_v20 }
0x14db   : > { %v2030_v34 = vadd.f32 %v2029_v31, %v2028_v30 }
0x1508   : > { %s2466_s17 = spop %2465 }
0x1509   : > { %s3392_s26 = smul.f32 0.015625, %s2466_s17 }
0x150a   : > { %s2468_s23 = spop %2467 }
0x150b   : > { %s2004_s25 = smul.f32 %s3392_s26, %s3392_s26  ;;  %v2041_v35 = vstv %s3392_s26 }
0x150c   : > { %s2003_s9 = smul.f32 0.015625, %s2468_s23  ;;  %v2053_v38 = vsub.f32 %v3378_v60, %v2041_v35 }
0x150e   : > { %s2005_s8 = ssub.f32 %s2003_s9, %s2004_s25 }
0x1510   : > { %s2006_s7 = smax.f32 %s2803_s16, %s2005_s8 }
0x1511   : > { %s2007_s10 = sadd.f32 1e-05, %s2006_s7  ;;  %s2310_s7 = sshll.u32 %s2860_s22, 7 }
0x1512   : > { %s2808_s22 = smov [#allocation5]  }
0x1513   : > { %v2008_v29 = vstv %s2007_s10 }
0x1514   : > { %2699 = vrsqrt.f32 %v2008_v29 }
0x151e   : > { %v2700_v32 = vpop.eup %2699 }
0x151f   : > { %2469 = vpush %v2700_v32 }
0x1520   : > { %2471 = vpush %v2019_v33 }
0x1521   : > { %2473 = vpush %v2030_v34 }
0x1550   : > { %s2470_s11 = spop %2469 }
0x1551   : > { %v2043_v36 = vstv %s2470_s11  ;;  %s2472_s30 = spop %2471 }
0x1552   : > { %v2045_v37 = vmul.f32 %v2949_v47, %v2043_v36  ;;  %s2032_s12 = smul.f32 0.015625, %s2472_s30  ;;  %s2474_s14 = spop %2473 }
0x1553   : > { %s2033_s13 = smul.f32 0.015625, %s2474_s14  ;;  %s3416_s14 = scalar_lea.hbm %s3463_s5, %s2310_s7 }
0x1554   : > { %v2058_v39 = vrot.slane %v2045_v37, %v2952_v50  ;;  %s2034_s15 = smul.f32 %s2032_s12, %s2032_s12  ;;  %v2042_v46 = vstv %s2032_s12 }
0x1555   : > { %v2054_v43 = vsub.f32 %v3380_v61, %v2042_v46 }
0x1556   : > { %v2063_v40 = vmul.f32 %v2058_v39, %v2053_v38  ;;  %s2035_s6 = ssub.f32 %s2033_s13, %s2034_s15 }
0x1558   : > { %s2036_s17 = smax.f32 %s2803_s16, %s2035_s6  ;;  %s231_s16 = sand.u32 1, %s2789_s19  }
0x1559   : > { %s2037_s23 = sadd.f32 1e-05, %s2036_s17  ;;  %s2244_s8 = sshll.u32 %s231_s16, 3 }
0x155a   : > { %s233_s10 = scalar_lea.vmem [#allocation5], %s2244_s8  ;;  %s2153_s13 = scalar_lea.sflag [#allocation4], %s231_s16 }
0x155b   : > { %v2038_v41 = vstv %s2037_s23  ;;  %s2167_s11 = sshll.u32 %s233_s10, 4  ;;  %s2735_s6 = sshll.u32 %s2808_s22, 4  ;;  %s3418_s11 = int_to_ptr.vmem [resolvable:$true] %s2167_s11  ;;  %s2736_s6 = int_to_ptr.vmem [resolvable:$false] %s2735_s6 }
0x155c   : > { %2701 = vrsqrt.f32 %v2038_v41  ;;  %s2731_s15 = scalar_lea.vmem %s3418_s11, 128  ;;  %s2737_s17 = scalar_lea.vmem %s2736_s6, 256 }
0x155d   : > { %p2732_p6 = scmp.ne.s32.totalorder %s3418_s11, %s2731_s15  ;;  %p2738_p2 = scmp.lt.s32.totalorder %s3418_s11, %s2736_s6 }
0x155e   : > { %p2739_p3 = scmp.lt.s32.totalorder %s2737_s17, %s2731_s15 }
0x155f   : > { %p2733_p10 = pnand %p2732_p6, %p3474_p9 }
0x1560   : > { %p2740_p4 = por %p2739_p3, %p2738_p2 }
0x1561   : > { %p2734_p12 = pneg %p2733_p10 }
0x1563   : > { %p2741_p7 = pnand %p2740_p4, %p2734_p12 }
0x1566   : > { %v2702_v44 = vpop.eup %2701 }
0x1567   : > { %2475 = vpush %v2702_v44 }
0x1598   : > { %s2476_s26 = spop %2475 }
0x1599   : > { %v2044_v48 = vstv %s2476_s26 }
0x159a   : > { %v2046_v49 = vmul.f32 %v2949_v47, %v2044_v48  ;;  %v2066_v47 = vld [vmem:[#allocation2 + $0x188] sm:$0xf] }
0x159c   : > { %v2062_v42 = vrot.slane %v2046_v49, %v2952_v50 }
0x159e   : > { %v2064_v45 = vmul.f32 %v2062_v42, %v2054_v43 }
0x15a0   : > { %2302 = vmatprep.subr.msk.mxu1 %vm249_vm0, %v2064_v45 }
0x15a1   : > { %2303 = vmatpush1.msk.msra.mxu1 %vm249_vm0, %v2063_v40 }
0x15a2   : > { %2304 = vmatmul.mubr.msk.f32.vlgmr.msra.gmra.mrb[22].mxu1 %vm349_vm2, %v1980_v51 }
0x1675   : > { %v2142_v53 = vpop.f32.mrb[22].mxu1 }
0x1676   : > { %v2143_v54 = vadd.f32 %v2142_v53, %v2065_v52  ;;  %v2144_v55 = vpop.f32.mrb[23].mxu1 }
0x1677   : > { %v2145_v50 = vadd.f32 %v2144_v55, %v2066_v47 }
0x1679   : > { %v2149_v56 = vcombine.low %v2143_v54, %v2145_v50 }
0x167b   : > { %2151 = vst [vmem:[%s233_s10] sm:$0xff] %v2149_v56 }
0x167c   : > { %2744 = shalt.err (!%p2741_p7)
}
0x167d   : > { %s2745_s23 = scalar_lea.hbm %s3416_s14, 128  ;;  %s2749_s9 = scalar_lea.hbm %s3463_s5, 256 }
0x167e   : > { %p2746_p8 = scmp.ne.s32.totalorder %s3416_s14, %s2745_s23  ;;  %p2750_p1 = scmp.lt.u32.totalorder %s3416_s14, %s3463_s5 }
0x167f   : > { %p2751_p0 = scmp.lt.u32.totalorder %s2749_s9, %s2745_s23  ;;  %p2753_p6 = scmp.lt.u32.totalorder %s2745_s23, %s3416_s14 }
0x1680   : > { %p2747_p11 = pnand %p2746_p8, %p3474_p9 }
0x1681   : > { %p2752_p5 = por %p2751_p0, %p2750_p1 }
0x1682   : > { %p2748_p13 = pneg %p2747_p11 }
0x1683   : > { %p2754_p10 = por %p2753_p6, %p2752_p5 }
0x1685   : > { %p2755_p12 = pnand %p2754_p10, %p2748_p13 }
0x1687   : > { %2758 = shalt.err (!%p2755_p12)
}
0x1688   : > { %2481 = dma.vmem_to_hbm [thread:$0]  (%p3474_p9), %s3418_s11, 128, %s3416_s14, %s2153_s13  }
0x1689 PF: > { %p2493_p2 = scmp.ge.s32.totalorder %s2797_s21, 2  ;;  %s2179_s7 = sand.u32 1, %s2785_s18  }
0x168a   : > { %p3475_p3 = scmp.ne.s32.totalorder %s3468_s29, 0  ;;  %s2180_s10 = scalar_lea.sflag [#allocation4], %s2179_s7 }
0x168c   : > { %p2488_p4 = pnand %p2493_p2, %p3475_p3 }
0x168e   : > { %2780 = dma.done.wait (!%p2488_p4), %s2180_s10, 128  }
0x168f   : > { %2782 = vsyncadd (!%p2488_p4), %s2180_s10, 4294967168  ;;  %p16_p7 = scmp.ge.s32.totalorder %s2864_s24, 4   ;;  %s3476_s18 = smov %s2789_s19 }
0x1690   : > { %s3477_s19 = smov %s2793_s20  ;;  %s3478_s20 = smov %s2875_s27 }
0x1691   : > { %s3479_s21 = smov %s2864_s24  ;;  %18 = sbr.rel (!%p16_p7) target bundleno = 4 (0x4), region = 84 }
0x1698   :  { %2185 = vsyncpa [#allocation3], 1 }
0x1699   :  { %2187 = vsyncpa [#allocation3 + $0x1], 1 }
0x169a   :  { %2188 = vsyncpa [#allocation4], 1 }
0x169b   :  { %2190 = vsyncpa [#allocation4 + $0x1], 1 }

</bundles_post_ra>
